<compile_context>
chip_gen: v6e
topology: v6e:2x2x1
jax: 0.10.0
libtpu: 0.0.40
codegen_flags: <defaults>
</compile_context>

<pallas_src>
import functools

import jax
import jax.numpy as jnp
from jax.experimental import pallas as pl
from jax.experimental.pallas import tpu as pltpu

NUM_CLASSES = 9
LEAKY_SLOPE = 0.2
BN_EPS = 1e-5
VMEM_LIMIT = 32 * 1024 * 1024          # explicit; safe on v5e/v6e/v7x
CONV2_BN_FUSE_MAX_ROWS = 4096          # fuse BN into conv2 epilogue up to this M
FC1_K_TILE = 4096                      # bf16 weight block <= 8 MB (double-buffer 16 MB)
FC1_HIDDEN_SPLIT = 2                   # parallel hidden tiles -> both v7x TCs busy


# ----------------------------------------------------------------------------
# Pallas kernels
# ----------------------------------------------------------------------------
def _matmul_bias_act_single_k_kernel(a_ref, b_ref, bias_ref, o_ref, *, act):
    """out = act(A @ B + bias), whole K in one step (no accumulator scratch)."""
    y = jnp.dot(a_ref[...], b_ref[...], preferred_element_type=jnp.float32)
    y = y + bias_ref[...]
    if act:
        y = jnp.where(y >= 0, y, LEAKY_SLOPE * y)
    o_ref[...] = y.astype(o_ref.dtype)


def _matmul_bias_act_multi_k_kernel(a_ref, b_ref, bias_ref, o_ref, acc_ref, *, act):
    """Tiled matmul with K reduction axis.  Grid = (M/tm, N/tn, K/tk)."""
    k = pl.program_id(2)

    @pl.when(k == 0)
    def _():
        acc_ref[...] = jnp.zeros_like(acc_ref)

    acc_ref[...] += jnp.dot(a_ref[...], b_ref[...],
                            preferred_element_type=jnp.float32)

    @pl.when(k == pl.num_programs(2) - 1)
    def _():
        y = acc_ref[...] + bias_ref[...]
        if act:
            y = jnp.where(y >= 0, y, LEAKY_SLOPE * y)
        o_ref[...] = y.astype(o_ref.dtype)


def _matmul_bias_leaky_bn_kernel(a_ref, b_ref, bias_ref, gamma_ref, beta_ref,
                                 o_ref):
    """conv2 fused path: BN(LeakyReLU(A @ B + bias)) with exact batch stats.

    Requires the whole (rows, channels) output in this single tile so the
    batch statistics are exact (training-mode, biased variance).
    """
    y = jnp.dot(a_ref[...], b_ref[...], preferred_element_type=jnp.float32)
    y = y + bias_ref[...]
    y = jnp.where(y >= 0, y, LEAKY_SLOPE * y)
    inv_r = 1.0 / y.shape[0]
    mean = jnp.sum(y, axis=0, keepdims=True) * inv_r
    ex2 = jnp.sum(y * y, axis=0, keepdims=True) * inv_r
    var = jnp.maximum(ex2 - mean * mean, 0.0)
    xhat = (y - mean) * jax.lax.rsqrt(var + BN_EPS)
    o_ref[...] = (xhat * gamma_ref[...] + beta_ref[...]).astype(o_ref.dtype)


def _batchnorm_kernel(x_ref, gamma_ref, beta_ref, o_ref):
    """Fallback BatchNorm2d on a (N*H*W, C) slab, single-pass statistics."""
    x = x_ref[...]
    inv_r = 1.0 / x.shape[0]
    mean = jnp.sum(x, axis=0, keepdims=True) * inv_r
    ex2 = jnp.sum(x * x, axis=0, keepdims=True) * inv_r
    var = jnp.maximum(ex2 - mean * mean, 0.0)
    xhat = (x - mean) * jax.lax.rsqrt(var + BN_EPS)
    o_ref[...] = xhat * gamma_ref[...] + beta_ref[...]


def _fc1_act_fc2_kernel(a_ref, w1_ref, b1_ref, w2_ref, o_ref, acc_ref):
    """Fused FC1 -> LeakyReLU -> FC2, one hidden slice per grid row.

    out[j] = LeakyReLU(A @ W1[:, j_slice] + b1[j_slice]) @ W2[j_slice, :]
    Grid = (hidden_tiles [parallel], K_tiles [arbitrary]).  Partial logits
    across hidden slices are exact and summed outside (tiny XLA add).
    """
    k = pl.program_id(1)

    @pl.when(k == 0)
    def _():
        acc_ref[...] = jnp.zeros_like(acc_ref)

    acc_ref[...] += jnp.dot(a_ref[...], w1_ref[...],
                            preferred_element_type=jnp.float32)

    @pl.when(k == pl.num_programs(1) - 1)
    def _():
        h = acc_ref[...] + b1_ref[...]
        h = jnp.where(h >= 0, h, LEAKY_SLOPE * h)
        y = jnp.dot(h.astype(w2_ref.dtype), w2_ref[...],
                    preferred_element_type=jnp.float32)
        o_ref[...] = y[None].astype(o_ref.dtype)


# ----------------------------------------------------------------------------
# Padding / tiling helpers (skip copies when already aligned)
# ----------------------------------------------------------------------------
def _round_up(x, m):
    return ((x + m - 1) // m) * m


def _pad2(x, rows, cols):
    pr, pc = rows - x.shape[0], cols - x.shape[1]
    if pr == 0 and pc == 0:
        return x                       # already tile-aligned: no copy
    return jnp.pad(x, ((0, pr), (0, pc)))


def _pad_row(v, cols):
    v = v.reshape(1, -1).astype(jnp.float32)
    if v.shape[1] == cols:
        return v
    return jnp.pad(v, ((0, 0), (0, cols - v.shape[1])))


def _pick_tiles(Mp, Kp, Np):
    tm = min(Mp, 512)
    tn = min(Np, 512)
    tk = min(Kp, 4096)     # bf16 operands; double-buffered B tile <= 8 MB
    return tm, tn, tk


# ----------------------------------------------------------------------------
# Pallas wrappers
# ----------------------------------------------------------------------------
def pallas_matmul_bias_act(a, b, bias, act, out_dtype=jnp.float32):
    """act(A @ B + bias); A:(M,K), B:(K,N), bias:(N,).  bf16 MXU, fp32 epilogue."""
    M, K = a.shape
    K2, N = b.shape
    assert K == K2

    Mp = _round_up(M, 8)
    Kp = _round_up(K, 128)
    Np = _round_up(N, 128)
    tm, tn, tk = _pick_tiles(Mp, Kp, Np)
    Mp = _round_up(Mp, tm)
    Kp = _round_up(Kp, tk)
    Np = _round_up(Np, tn)

    a_p = _pad2(a.astype(jnp.bfloat16), Mp, Kp)
    b_p = _pad2(b.astype(jnp.bfloat16), Kp, Np)      # no-op for pre-padded weights
    bias_p = _pad_row(bias, Np)

    nk = Kp // tk

    if nk == 1:
        out = pl.pallas_call(
            functools.partial(_matmul_bias_act_single_k_kernel, act=act),
            out_shape=jax.ShapeDtypeStruct((Mp, Np), out_dtype),
            grid=(Mp // tm, Np // tn),
            in_specs=[
                pl.BlockSpec((tm, Kp), lambda i, j: (i, 0)),
                pl.BlockSpec((Kp, tn), lambda i, j: (0, j)),
                pl.BlockSpec((1, tn), lambda i, j: (0, j)),
            ],
            out_specs=pl.BlockSpec((tm, tn), lambda i, j: (i, j)),
            compiler_params=pltpu.CompilerParams(
                dimension_semantics=("parallel", "parallel"),
                vmem_limit_bytes=VMEM_LIMIT),
        )(a_p, b_p, bias_p)
    else:
        out = pl.pallas_call(
            functools.partial(_matmul_bias_act_multi_k_kernel, act=act),
            out_shape=jax.ShapeDtypeStruct((Mp, Np), out_dtype),
            grid=(Mp // tm, Np // tn, nk),
            in_specs=[
                pl.BlockSpec((tm, tk), lambda i, j, k: (i, k)),
                pl.BlockSpec((tk, tn), lambda i, j, k: (k, j)),
                pl.BlockSpec((1, tn), lambda i, j, k: (0, j)),
            ],
            out_specs=pl.BlockSpec((tm, tn), lambda i, j, k: (i, j)),
            scratch_shapes=[pltpu.VMEM((tm, tn), jnp.float32)],
            compiler_params=pltpu.CompilerParams(
                dimension_semantics=("parallel", "parallel", "arbitrary"),
                vmem_limit_bytes=VMEM_LIMIT),
        )(a_p, b_p, bias_p)

    if (Mp, Np) == (M, N):
        return out
    return out[:M, :N]


def pallas_conv_bias_leaky_bn(a, b, bias, gamma, beta):
    """Fused conv2 path: BN(LeakyReLU(A @ B + bias)) with batch stats, one tile."""
    M, K = a.shape
    K2, N = b.shape
    assert K == K2 and M % 8 == 0
    Kp = _round_up(K, 128)
    Np = _round_up(N, 128)

    a_p = _pad2(a.astype(jnp.bfloat16), M, Kp)
    b_p = _pad2(b.astype(jnp.bfloat16), Kp, Np)
    bias_p = _pad_row(bias, Np)
    gamma_p = _pad_row(gamma, Np)
    beta_p = _pad_row(beta, Np)

    out = pl.pallas_call(
        _matmul_bias_leaky_bn_kernel,
        out_shape=jax.ShapeDtypeStruct((M, Np), jnp.bfloat16),
        grid=(1,),
        in_specs=[
            pl.BlockSpec((M, Kp), lambda i: (0, 0)),
            pl.BlockSpec((Kp, Np), lambda i: (0, 0)),
            pl.BlockSpec((1, Np), lambda i: (0, 0)),
            pl.BlockSpec((1, Np), lambda i: (0, 0)),
            pl.BlockSpec((1, Np), lambda i: (0, 0)),
        ],
        out_specs=pl.BlockSpec((M, Np), lambda i: (0, 0)),
        compiler_params=pltpu.CompilerParams(vmem_limit_bytes=VMEM_LIMIT),
    )(a_p, b_p, bias_p, gamma_p, beta_p)
    return out if Np == N else out[:, :N]


def pallas_batchnorm(x2d, gamma, beta):
    """Fallback: per-channel batch norm on a (N*H*W, C) fp32 slab."""
    R, C = x2d.shape
    return pl.pallas_call(
        _batchnorm_kernel,
        out_shape=jax.ShapeDtypeStruct((R, C), jnp.float32),
        grid=(1,),
        in_specs=[
            pl.BlockSpec((R, C), lambda i: (0, 0)),
            pl.BlockSpec((1, C), lambda i: (0, 0)),
            pl.BlockSpec((1, C), lambda i: (0, 0)),
        ],
        out_specs=pl.BlockSpec((R, C), lambda i: (0, 0)),
        compiler_params=pltpu.CompilerParams(vmem_limit_bytes=VMEM_LIMIT),
    )(x2d.astype(jnp.float32), gamma.reshape(1, C), beta.reshape(1, C))


def pallas_fc1_act_fc2(a, w1, b1, w2, b2):
    """logits = LeakyReLU(a @ w1 + b1) @ w2 + b2, fused in one pallas_call.

    a:(M,K), w1:(K,H) pre-transposed bf16, b1:(H,), w2:(H,C) bf16, b2:(C,).
    """
    M, K = a.shape
    K1, H = w1.shape
    H2, C = w2.shape
    assert K == K1 and H == H2

    Mp = _round_up(M, 8)
    Hp = _round_up(H, 128)
    Cp = _round_up(C, 128)

    nj = FC1_HIDDEN_SPLIT if Hp % (128 * FC1_HIDDEN_SPLIT) == 0 else 1
    th = Hp // nj
    tk = min(_round_up(K, 128), FC1_K_TILE)
    Kp = _round_up(_round_up(K, 128), tk)
    nk = Kp // tk

    a_p = _pad2(a.astype(jnp.bfloat16), Mp, Kp)
    w1_p = _pad2(w1.astype(jnp.bfloat16), Kp, Hp)    # no-op: stored pre-padded
    b1_p = _pad_row(b1, Hp)
    w2_p = _pad2(w2.astype(jnp.bfloat16), Hp, Cp)

    partials = pl.pallas_call(
        _fc1_act_fc2_kernel,
        out_shape=jax.ShapeDtypeStruct((nj, Mp, Cp), jnp.float32),
        grid=(nj, nk),
        in_specs=[
            pl.BlockSpec((Mp, tk), lambda j, k: (0, k)),
            pl.BlockSpec((tk, th), lambda j, k: (k, j)),
            pl.BlockSpec((1, th), lambda j, k: (0, j)),
            pl.BlockSpec((th, Cp), lambda j, k: (j, 0)),
        ],
        out_specs=pl.BlockSpec((1, Mp, Cp), lambda j, k: (j, 0, 0)),
        scratch_shapes=[pltpu.VMEM((Mp, th), jnp.float32)],
        compiler_params=pltpu.CompilerParams(
            dimension_semantics=("parallel", "arbitrary"),
            vmem_limit_bytes=VMEM_LIMIT),
    )(a_p, w1_p, b1_p, w2_p)

    logits = jnp.sum(partials, axis=0)[:M, :C] + b2.reshape(1, C).astype(jnp.float32)
    return logits


# ----------------------------------------------------------------------------
# Plain-JAX glue: im2col, spectral norm (weight re-parametrization at setup)
# ----------------------------------------------------------------------------
def im2col(x_nhwc, k, stride, pad):
    """Returns (N*Ho*Wo, C*k*k) with K-axis ordered (C, kh, kw) like PyTorch."""
    N, H, W, C = x_nhwc.shape
    xp = jnp.pad(x_nhwc, ((0, 0), (pad, pad), (pad, pad), (0, 0)))
    Ho = (H + 2 * pad - k) // stride + 1
    Wo = (W + 2 * pad - k) // stride + 1
    cols = []
    for kh in range(k):
        for kw in range(k):
            cols.append(xp[:, kh:kh + stride * Ho:stride,
                           kw:kw + stride * Wo:stride, :])
    p = jnp.stack(cols, axis=3)                 # (N, Ho, Wo, k*k, C)
    p = jnp.transpose(p, (0, 1, 2, 4, 3))       # (N, Ho, Wo, C, k*k)
    return p.reshape(N * Ho * Wo, C * k * k), (N, Ho, Wo)


def spectral_normalize(w2d, n_iter=30):
    """w / sigma_max(w) via power iteration (deterministic, setup time only)."""
    u = jnp.ones((w2d.shape[0],), jnp.float32) / jnp.sqrt(w2d.shape[0])
    for _ in range(n_iter):
        v = w2d.T @ u
        v = v / (jnp.linalg.norm(v) + 1e-12)
        u = w2d @ v
        u = u / (jnp.linalg.norm(u) + 1e-12)
    sigma = u @ (w2d @ v)
    return w2d / sigma


def init_params(key, num_classes):
    ks = jax.random.split(key, 8)
    w1 = jax.random.normal(ks[0], (64, 1, 5, 5), jnp.float32) * 0.1
    b1 = jax.random.normal(ks[1], (64,), jnp.float32) * 0.1
    w2 = jax.random.normal(ks[2], (128, 64, 5, 5), jnp.float32) * 0.05
    b2 = jax.random.normal(ks[3], (128,), jnp.float32) * 0.05
    gamma = jnp.ones((128,), jnp.float32)
    beta = jnp.zeros((128,), jnp.float32)
    fcw1 = jax.random.normal(ks[4], (1024, 128 * 8 * 8), jnp.float32) * 0.02
    fcb1 = jax.random.normal(ks[5], (1024,), jnp.float32) * 0.02
    fcw2 = jax.random.normal(ks[6], (num_classes, 1024), jnp.float32) * 0.05
    fcb2 = jax.random.normal(ks[7], (num_classes,), jnp.float32) * 0.05

    # spectral_norm is applied to the `weight` of each wrapped module.
    w1 = spectral_normalize(w1.reshape(64, -1)).reshape(64, 1, 5, 5)
    w2 = spectral_normalize(w2.reshape(128, -1)).reshape(128, 64, 5, 5)
    gamma = spectral_normalize(gamma.reshape(128, 1)).reshape(128)
    fcw1 = spectral_normalize(fcw1)
    fcw2 = spectral_normalize(fcw2)

    # ---- Runtime layouts: pre-transposed, pre-permuted, bf16 (one-time cost) --
    # Conv weights stored as (K, Cout), K ordered (Cin, kh, kw) = im2col order.
    w1m = w1.reshape(64, -1).T.astype(jnp.bfloat16)          # (25, 64)
    w2m = w2.reshape(128, -1).T.astype(jnp.bfloat16)         # (1600, 128)
    # FC1 weight: permute K axis from NCHW-flatten (c,h,w) to NHWC-flatten
    # (h,w,c) order and store K-major so forward needs no transpose/pad/copy.
    fcw1_t = (fcw1.reshape(1024, 128, 8, 8)
                  .transpose(2, 3, 1, 0)                     # (h, w, c, out)
                  .reshape(128 * 8 * 8, 1024)
                  .astype(jnp.bfloat16))                     # (8192, 1024)
    fcw2_t = fcw2.T.astype(jnp.bfloat16)                     # (1024, num_classes)

    return dict(w1m=w1m, b1=b1, w2m=w2m, b2=b2, gamma=gamma, beta=beta,
                fcw1_t=fcw1_t, fcb1=fcb1, fcw2_t=fcw2_t, fcb2=fcb2)


# ----------------------------------------------------------------------------
# Forward pass
# ----------------------------------------------------------------------------
def classifier_forward(x_nchw, params):
    # layout: input NCHW -> NHWC for the conv path.
    x = jnp.transpose(x_nchw, (0, 2, 3, 1)).astype(jnp.float32)

    # conv1 (1->64, k5, s2, p2) + LeakyReLU(0.2), single grid step, bf16 out.
    p1, (N, H1, W1) = im2col(x, 5, 2, 2)
    y1 = pallas_matmul_bias_act(p1, params["w1m"], params["b1"], act=True,
                                out_dtype=jnp.bfloat16)
    y1 = y1.reshape(N, H1, W1, 64)

    # conv2 (64->128, k5, s2, p2) + LeakyReLU(0.2) + BatchNorm2d(128)
    # (training-mode batch statistics), fused into one kernel when the whole
    # (N*H*W, 128) output fits a single tile.
    p2, (N, H2, W2) = im2col(y1, 5, 2, 2)
    rows = N * H2 * W2
    if rows <= CONV2_BN_FUSE_MAX_ROWS and rows % 8 == 0:
        y3 = pallas_conv_bias_leaky_bn(p2, params["w2m"], params["b2"],
                                       params["gamma"], params["beta"])
    else:
        y2 = pallas_matmul_bias_act(p2, params["w2m"], params["b2"], act=True)
        y3 = pallas_batchnorm(y2, params["gamma"], params["beta"])

    # Flatten in NHWC order; fcw1_t's rows were permuted at init so this is
    # exactly equivalent to PyTorch's NCHW flatten + Linear.
    flat = y3.reshape(N, H2 * W2 * 128)

    # Linear(8192 -> 1024) + LeakyReLU(0.2) + Linear(1024 -> num_classes),
    # fused in one pallas_call (hidden axis split across TensorCores).
    logits = pallas_fc1_act_fc2(flat, params["fcw1_t"], params["fcb1"],
                                params["fcw2_t"], params["fcb2"])
    return logits


if __name__ == "__main__":
    key = jax.random.PRNGKey(0)
    k_param, k_x = jax.random.split(key)

    params = init_params(k_param, NUM_CLASSES)
    # Flatten expects 128*8*8, so spatial must be 32x32 (small batch=2).
    x = jax.random.normal(k_x, (2, 1, 32, 32), jnp.float32)

    fwd = jax.jit(classifier_forward)
    logits = fwd(x, params)
    jax.block_until_ready(logits)
    assert logits.shape == (2, NUM_CLASSES), logits.shape
    print("KERNEL_OK")
</pallas_src>

<mosaic_0001>
module attributes {stable_mosaic.version = 11 : i64} {
  func.func @_matmul_bias_act_single_k_kernel(%arg0: i32, %arg1: i32, %arg2: memref<512x128xbf16, #tpu.memory_space<vmem>>, %arg3: memref<128x128xbf16, #tpu.memory_space<vmem>>, %arg4: memref<1x128xf32, #tpu.memory_space<vmem>>, %arg5: memref<512x128xbf16, #tpu.memory_space<vmem>>) attributes {dimension_semantics = [#tpu.dimension_semantics<parallel>, #tpu.dimension_semantics<parallel>], iteration_bounds = array<i64: 1, 1>, scalar_prefetch = 0 : i64, scratch_operands = 0 : i64, tpu.core_type = #tpu.core_type<tc>, window_params = [{transform_indices = @transform_0, window_bounds = array<i64: 512, 128>}, {transform_indices = @transform_1, window_bounds = array<i64: 128, 128>}, {transform_indices = @transform_2, window_bounds = array<i64: 1, 128>}, {transform_indices = @transform_3, window_bounds = array<i64: 512, 128>}]} {
    %c0 = arith.constant 0 : index
    %c0_0 = arith.constant 0 : index
    %0 = vector.load %arg2[%c0, %c0_0] : memref<512x128xbf16, #tpu.memory_space<vmem>>, vector<512x128xbf16>
    %c0_1 = arith.constant 0 : index
    %c0_2 = arith.constant 0 : index
    %1 = vector.load %arg3[%c0_1, %c0_2] : memref<128x128xbf16, #tpu.memory_space<vmem>>, vector<128x128xbf16>
    %cst = arith.constant dense<0.000000e+00> : vector<512x128xf32>
    %2 = tpu.matmul %0, %1, %cst {dimension_numbers = #tpu.dot_dimension_numbers<[1], [0], [0], [1], [0, 0, 1, 1], [], []>} : vector<512x128xbf16>, vector<128x128xbf16>, vector<512x128xf32> -> vector<512x128xf32>
    %c0_3 = arith.constant 0 : index
    %c0_4 = arith.constant 0 : index
    %3 = vector.load %arg4[%c0_3, %c0_4] : memref<1x128xf32, #tpu.memory_space<vmem>>, vector<1x128xf32>
    %4 = vector.broadcast %3 : vector<1x128xf32> to vector<512x128xf32>
    %5 = arith.addf %2, %4 : vector<512x128xf32>
    %cst_5 = arith.constant 0.000000e+00 : f32
    %6 = vector.broadcast %cst_5 : f32 to vector<512x128xf32>
    %7 = arith.cmpf oge, %5, %6 : vector<512x128xf32>
    %cst_6 = arith.constant 2.000000e-01 : f32
    %8 = vector.broadcast %cst_6 : f32 to vector<512x128xf32>
    %9 = arith.mulf %8, %5 : vector<512x128xf32>
    %10 = arith.select %7, %5, %9 : vector<512x128xi1>, vector<512x128xf32>
    %11 = arith.truncf %10 : vector<512x128xf32> to vector<512x128xbf16>
    %c0_7 = arith.constant 0 : index
    %c0_8 = arith.constant 0 : index
    %12 = vector.load %arg5[%c0_7, %c0_8] : memref<512x128xbf16, #tpu.memory_space<vmem>>, vector<512x128xbf16>
    tpu.vector_store %arg5[%c0_7, %c0_8], %11 {strides = array<i32>} : memref<512x128xbf16, #tpu.memory_space<vmem>>, vector<512x128xbf16>,
    return
  }
  func.func @transform_0(%arg0: i32, %arg1: i32) -> (i32, i32) {
    %c0_i32 = arith.constant 0 : i32
    %c0_i32_0 = arith.constant 0 : i32
    return %arg0, %c0_i32 : i32, i32
  }
  func.func @transform_1(%arg0: i32, %arg1: i32) -> (i32, i32) {
    %c0_i32 = arith.constant 0 : i32
    %c0_i32_0 = arith.constant 0 : i32
    return %c0_i32, %arg1 : i32, i32
  }
  func.func @transform_2(%arg0: i32, %arg1: i32) -> (i32, i32) {
    %c0_i32 = arith.constant 0 : i32
    %c0_i32_0 = arith.constant 0 : i32
    return %c0_i32, %arg1 : i32, i32
  }
  func.func @transform_3(%arg0: i32, %arg1: i32) -> (i32, i32) {
    %c0_i32 = arith.constant 0 : i32
    return %arg0, %arg1 : i32, i32
  }
}

module attributes {stable_mosaic.version = 11 : i64} {
  func.func @_matmul_bias_leaky_bn_kernel(%arg0: i32, %arg1: memref<128x1664xbf16, #tpu.memory_space<vmem>>, %arg2: memref<1664x128xbf16, #tpu.memory_space<vmem>>, %arg3: memref<1x128xf32, #tpu.memory_space<vmem>>, %arg4: memref<1x128xf32, #tpu.memory_space<vmem>>, %arg5: memref<1x128xf32, #tpu.memory_space<vmem>>, %arg6: memref<128x128xbf16, #tpu.memory_space<vmem>>) attributes {dimension_semantics = [#tpu.dimension_semantics<arbitrary>], iteration_bounds = array<i64: 1>, scalar_prefetch = 0 : i64, scratch_operands = 0 : i64, tpu.core_type = #tpu.core_type<tc>, window_params = [{pipeline_mode = #tpu.pipeline_mode<synchronous>, transform_indices = @transform_0, window_bounds = array<i64: 128, 1664>}, {pipeline_mode = #tpu.pipeline_mode<synchronous>, transform_indices = @transform_1, window_bounds = array<i64: 1664, 128>}, {pipeline_mode = #tpu.pipeline_mode<synchronous>, transform_indices = @transform_2, window_bounds = array<i64: 1, 128>}, {pipeline_mode = #tpu.pipeline_mode<synchronous>, transform_indices = @transform_3, window_bounds = array<i64: 1, 128>}, {pipeline_mode = #tpu.pipeline_mode<synchronous>, transform_indices = @transform_4, window_bounds = array<i64: 1, 128>}, {pipeline_mode = #tpu.pipeline_mode<synchronous>, transform_indices = @transform_5, window_bounds = array<i64: 128, 128>}]} {
    %c0 = arith.constant 0 : index
    %c0_0 = arith.constant 0 : index
    %0 = vector.load %arg1[%c0, %c0_0] : memref<128x1664xbf16, #tpu.memory_space<vmem>>, vector<128x1664xbf16>
    %c0_1 = arith.constant 0 : index
    %c0_2 = arith.constant 0 : index
    %1 = vector.load %arg2[%c0_1, %c0_2] : memref<1664x128xbf16, #tpu.memory_space<vmem>>, vector<1664x128xbf16>
    %cst = arith.constant dense<0.000000e+00> : vector<128x128xf32>
    %2 = tpu.matmul %0, %1, %cst {dimension_numbers = #tpu.dot_dimension_numbers<[1], [0], [0], [1], [0, 0, 1, 1], [], []>} : vector<128x1664xbf16>, vector<1664x128xbf16>, vector<128x128xf32> -> vector<128x128xf32>
    %c0_3 = arith.constant 0 : index
    %c0_4 = arith.constant 0 : index
    %3 = vector.load %arg3[%c0_3, %c0_4] : memref<1x128xf32, #tpu.memory_space<vmem>>, vector<1x128xf32>
    %4 = vector.broadcast %3 : vector<1x128xf32> to vector<128x128xf32>
    %5 = arith.addf %2, %4 : vector<128x128xf32>
    %cst_5 = arith.constant 0.000000e+00 : f32
    %6 = vector.broadcast %cst_5 : f32 to vector<128x128xf32>
    %7 = arith.cmpf oge, %5, %6 : vector<128x128xf32>
    %cst_6 = arith.constant 2.000000e-01 : f32
    %8 = vector.broadcast %cst_6 : f32 to vector<128x128xf32>
    %9 = arith.mulf %8, %5 : vector<128x128xf32>
    %10 = arith.select %7, %5, %9 : vector<128x128xi1>, vector<128x128xf32>
    %cst_7 = arith.constant dense<0.000000e+00> : vector<128xf32>
    %11 = vector.multi_reduction <add>, %10, %cst_7 [0] : vector<128x128xf32> to vector<128xf32>
    %12 = vector.shape_cast %11 : vector<128xf32> to vector<1x128xf32>
    %cst_8 = arith.constant 7.812500e-03 : f32
    %13 = vector.broadcast %cst_8 : f32 to vector<1x128xf32>
    %14 = arith.mulf %12, %13 : vector<1x128xf32>
    %15 = arith.mulf %10, %10 : vector<128x128xf32>
    %cst_9 = arith.constant dense<0.000000e+00> : vector<128xf32>
    %16 = vector.multi_reduction <add>, %15, %cst_9 [0] : vector<128x128xf32> to vector<128xf32>
    %17 = vector.shape_cast %16 : vector<128xf32> to vector<1x128xf32>
    %cst_10 = arith.constant 7.812500e-03 : f32
    %18 = vector.broadcast %cst_10 : f32 to vector<1x128xf32>
    %19 = arith.mulf %17, %18 : vector<1x128xf32>
    %20 = arith.mulf %14, %14 : vector<1x128xf32>
    %21 = arith.subf %19, %20 : vector<1x128xf32>
    %cst_11 = arith.constant 0.000000e+00 : f32
    %22 = vector.broadcast %cst_11 : f32 to vector<1x128xf32>
    %23 = arith.maximumf %21, %22 : vector<1x128xf32>
    %24 = vector.broadcast %14 : vector<1x128xf32> to vector<128x128xf32>
    %25 = arith.subf %10, %24 : vector<128x128xf32>
    %cst_12 = arith.constant 9.99999974E-6 : f32
    %26 = vector.broadcast %cst_12 : f32 to vector<1x128xf32>
    %27 = arith.addf %23, %26 : vector<1x128xf32>
    %28 = math.rsqrt %27 : vector<1x128xf32>
    %29 = vector.broadcast %28 : vector<1x128xf32> to vector<128x128xf32>
    %30 = arith.mulf %25, %29 : vector<128x128xf32>
    %c0_13 = arith.constant 0 : index
    %c0_14 = arith.constant 0 : index
    %31 = vector.load %arg4[%c0_13, %c0_14] : memref<1x128xf32, #tpu.memory_space<vmem>>, vector<1x128xf32>
    %32 = vector.broadcast %31 : vector<1x128xf32> to vector<128x128xf32>
    %33 = arith.mulf %30, %32 : vector<128x128xf32>
    %c0_15 = arith.constant 0 : index
    %c0_16 = arith.constant 0 : index
    %34 = vector.load %arg5[%c0_15, %c0_16] : memref<1x128xf32, #tpu.memory_space<vmem>>, vector<1x128xf32>
    %35 = vector.broadcast %34 : vector<1x128xf32> to vector<128x128xf32>
    %36 = arith.addf %33, %35 : vector<128x128xf32>
    %37 = arith.truncf %36 : vector<128x128xf32> to vector<128x128xbf16>
    %c0_17 = arith.constant 0 : index
    %c0_18 = arith.constant 0 : index
    %38 = vector.load %arg6[%c0_17, %c0_18] : memref<128x128xbf16, #tpu.memory_space<vmem>>, vector<128x128xbf16>
    tpu.vector_store %arg6[%c0_17, %c0_18], %37 {strides = array<i32>} : memref<128x128xbf16, #tpu.memory_space<vmem>>, vector<128x128xbf16>,
    return
  }
  func.func @transform_0(%arg0: i32) -> (i32, i32) {
    %c0_i32 = arith.constant 0 : i32
    %c0_i32_0 = arith.constant 0 : i32
    %c0_i32_1 = arith.constant 0 : i32
    return %c0_i32, %c0_i32_0 : i32, i32
  }
  func.func @transform_1(%arg0: i32) -> (i32, i32) {
    %c0_i32 = arith.constant 0 : i32
    %c0_i32_0 = arith.constant 0 : i32
    %c0_i32_1 = arith.constant 0 : i32
    return %c0_i32, %c0_i32_0 : i32, i32
  }
  func.func @transform_2(%arg0: i32) -> (i32, i32) {
    %c0_i32 = arith.constant 0 : i32
    %c0_i32_0 = arith.constant 0 : i32
    %c0_i32_1 = arith.constant 0 : i32
    return %c0_i32, %c0_i32_0 : i32, i32
  }
  func.func @transform_3(%arg0: i32) -> (i32, i32) {
    %c0_i32 = arith.constant 0 : i32
    %c0_i32_0 = arith.constant 0 : i32
    %c0_i32_1 = arith.constant 0 : i32
    return %c0_i32, %c0_i32_0 : i32, i32
  }
  func.func @transform_4(%arg0: i32) -> (i32, i32) {
    %c0_i32 = arith.constant 0 : i32
    %c0_i32_0 = arith.constant 0 : i32
    %c0_i32_1 = arith.constant 0 : i32
    return %c0_i32, %c0_i32_0 : i32, i32
  }
  func.func @transform_5(%arg0: i32) -> (i32, i32) {
    %c0_i32 = arith.constant 0 : i32
    %c0_i32_0 = arith.constant 0 : i32
    %c0_i32_1 = arith.constant 0 : i32
    return %c0_i32, %c0_i32_0 : i32, i32
  }
}

module attributes {stable_mosaic.version = 11 : i64} {
  func.func @_fc1_act_fc2_kernel(%arg0: i32, %arg1: i32, %arg2: memref<8x4096xbf16, #tpu.memory_space<vmem>>, %arg3: memref<4096x512xbf16, #tpu.memory_space<vmem>>, %arg4: memref<1x512xf32, #tpu.memory_space<vmem>>, %arg5: memref<512x128xbf16, #tpu.memory_space<vmem>>, %arg6: memref<1x8x128xf32, #tpu.memory_space<vmem>>, %arg7: memref<8x512xf32, #tpu.memory_space<vmem>>) attributes {dimension_semantics = [#tpu.dimension_semantics<parallel>, #tpu.dimension_semantics<arbitrary>], iteration_bounds = array<i64: 2, 2>, scalar_prefetch = 0 : i64, scratch_operands = 1 : i64, tpu.core_type = #tpu.core_type<tc>, window_params = [{transform_indices = @transform_0, window_bounds = array<i64: 8, 4096>}, {transform_indices = @transform_1, window_bounds = array<i64: 4096, 512>}, {transform_indices = @transform_2, window_bounds = array<i64: 1, 512>}, {transform_indices = @transform_3, window_bounds = array<i64: 512, 128>}, {transform_indices = @transform_4, window_bounds = array<i64: 1, 8, 128>}]} {
    %c0_i32 = arith.constant 0 : i32
    %0 = arith.cmpi eq, %arg1, %c0_i32 : i32
    %1 = arith.extui %0 : i1 to i32
    %c0_i32_0 = arith.constant 0 : i32
    %2 = arith.cmpi ne, %1, %c0_i32_0 : i32
    scf.if %2 {
      %cst_9 = arith.constant 0.000000e+00 : f32
      %12 = vector.broadcast %cst_9 : f32 to vector<8x512xf32>
      %c0_10 = arith.constant 0 : index
      %c0_11 = arith.constant 0 : index
      %13 = vector.load %arg7[%c0_10, %c0_11] : memref<8x512xf32, #tpu.memory_space<vmem>>, vector<8x512xf32>
      tpu.vector_store %arg7[%c0_10, %c0_11], %12 {strides = array<i32>} : memref<8x512xf32, #tpu.memory_space<vmem>>, vector<8x512xf32>,
    } else {
    }
    %c0 = arith.constant 0 : index
    %c0_1 = arith.constant 0 : index
    %3 = vector.load %arg7[%c0, %c0_1] : memref<8x512xf32, #tpu.memory_space<vmem>>, vector<8x512xf32>
    %c0_2 = arith.constant 0 : index
    %c0_3 = arith.constant 0 : index
    %4 = vector.load %arg2[%c0_2, %c0_3] : memref<8x4096xbf16, #tpu.memory_space<vmem>>, vector<8x4096xbf16>
    %c0_4 = arith.constant 0 : index
    %c0_5 = arith.constant 0 : index
    %5 = vector.load %arg3[%c0_4, %c0_5] : memref<4096x512xbf16, #tpu.memory_space<vmem>>, vector<4096x512xbf16>
    %cst = arith.constant dense<0.000000e+00> : vector<8x512xf32>
    %6 = tpu.matmul %4, %5, %cst {dimension_numbers = #tpu.dot_dimension_numbers<[1], [0], [0], [1], [0, 0, 1, 1], [], []>} : vector<8x4096xbf16>, vector<4096x512xbf16>, vector<8x512xf32> -> vector<8x512xf32>
    %7 = arith.addf %3, %6 : vector<8x512xf32>
    %c0_6 = arith.constant 0 : index
    %c0_7 = arith.constant 0 : index
    %8 = vector.load %arg7[%c0_6, %c0_7] : memref<8x512xf32, #tpu.memory_space<vmem>>, vector<8x512xf32>
    tpu.vector_store %arg7[%c0_6, %c0_7], %7 {strides = array<i32>} : memref<8x512xf32, #tpu.memory_space<vmem>>, vector<8x512xf32>,
    %c1_i32 = arith.constant 1 : i32
    %9 = arith.cmpi eq, %arg1, %c1_i32 : i32
    %10 = arith.extui %9 : i1 to i32
    %c0_i32_8 = arith.constant 0 : i32
    %11 = arith.cmpi ne, %10, %c0_i32_8 : i32
    scf.if %11 {
      %c0_9 = arith.constant 0 : index
      %c0_10 = arith.constant 0 : index
      %12 = vector.load %arg7[%c0_9, %c0_10] : memref<8x512xf32, #tpu.memory_space<vmem>>, vector<8x512xf32>
      %c0_11 = arith.constant 0 : index
      %c0_12 = arith.constant 0 : index
      %13 = vector.load %arg4[%c0_11, %c0_12] : memref<1x512xf32, #tpu.memory_space<vmem>>, vector<1x512xf32>
      %14 = vector.broadcast %13 : vector<1x512xf32> to vector<8x512xf32>
      %15 = arith.addf %12, %14 : vector<8x512xf32>
      %cst_13 = arith.constant 0.000000e+00 : f32
      %16 = vector.broadcast %cst_13 : f32 to vector<8x512xf32>
      %17 = arith.cmpf oge, %15, %16 : vector<8x512xf32>
      %cst_14 = arith.constant 2.000000e-01 : f32
      %18 = vector.broadcast %cst_14 : f32 to vector<8x512xf32>
      %19 = arith.mulf %18, %15 : vector<8x512xf32>
      %20 = arith.select %17, %15, %19 : vector<8x512xi1>, vector<8x512xf32>
      %21 = arith.truncf %20 : vector<8x512xf32> to vector<8x512xbf16>
      %c0_15 = arith.constant 0 : index
      %c0_16 = arith.constant 0 : index
      %22 = vector.load %arg5[%c0_15, %c0_16] : memref<512x128xbf16, #tpu.memory_space<vmem>>, vector<512x128xbf16>
      %cst_17 = arith.constant dense<0.000000e+00> : vector<8x128xf32>
      %23 = tpu.matmul %21, %22, %cst_17 {dimension_numbers = #tpu.dot_dimension_numbers<[1], [0], [0], [1], [0, 0, 1, 1], [], []>} : vector<8x512xbf16>, vector<512x128xbf16>, vector<8x128xf32> -> vector<8x128xf32>
      %24 = vector.shape_cast %23 : vector<8x128xf32> to vector<1x8x128xf32>
      %c0_18 = arith.constant 0 : index
      %c0_19 = arith.constant 0 : index
      %c0_20 = arith.constant 0 : index
      %25 = vector.load %arg6[%c0_18, %c0_19, %c0_20] : memref<1x8x128xf32, #tpu.memory_space<vmem>>, vector<1x8x128xf32>
      tpu.vector_store %arg6[%c0_18, %c0_19, %c0_20], %24 {strides = array<i32>} : memref<1x8x128xf32, #tpu.memory_space<vmem>>, vector<1x8x128xf32>,
    } else {
    }
    return
  }
  func.func @transform_0(%arg0: i32, %arg1: i32) -> (i32, i32) {
    %c0_i32 = arith.constant 0 : i32
    %c0_i32_0 = arith.constant 0 : i32
    return %c0_i32, %arg1 : i32, i32
  }
  func.func @transform_1(%arg0: i32, %arg1: i32) -> (i32, i32) {
    %c0_i32 = arith.constant 0 : i32
    return %arg1, %arg0 : i32, i32
  }
  func.func @transform_2(%arg0: i32, %arg1: i32) -> (i32, i32) {
    %c0_i32 = arith.constant 0 : i32
    %c0_i32_0 = arith.constant 0 : i32
    return %c0_i32, %arg0 : i32, i32
  }
  func.func @transform_3(%arg0: i32, %arg1: i32) -> (i32, i32) {
    %c0_i32 = arith.constant 0 : i32
    %c0_i32_0 = arith.constant 0 : i32
    return %arg0, %c0_i32 : i32, i32
  }
  func.func @transform_4(%arg0: i32, %arg1: i32) -> (i32, i32, i32) {
    %c0_i32 = arith.constant 0 : i32
    %c0_i32_0 = arith.constant 0 : i32
    %c0_i32_1 = arith.constant 0 : i32
    return %arg0, %c0_i32, %c0_i32_0 : i32, i32, i32
  }
}

</mosaic_0001>

<bundles_post_ra>
// kernel: classifier_forward.3
= control target key start
LH: loop header
LB: loop body
LE: loop exit
PB: predicated region body
PF: predicated region fallthrough
CT: control target
= control target key end

     0   :  { %s1991_s1 = inlined_call_operand.vmem [shape: bf16[128,128], index: 1, kind: input, shape index: {}]   ;;  %s1992_s0 = inlined_call_operand.vmem [shape: bf16[512,128], index: 0, kind: input, shape index: {}]   ;;  %s1993_s2 = inlined_call_operand.vmem [shape: f32[1,128], index: 2, kind: input, shape index: {}]   ;;  %s1994_s3 = inlined_call_operand.vmem [shape: bf16[512,128], index: 3, kind: output, shape index: {}]  }
   0x1   :  { %v1643_v0 = vld [vmem:[%s1991_s1 + $0x38] sm:$0xff]   ;;  %v1644_v1 = vld [vmem:[%s1991_s1 + $0x30] sm:$0xff]   ;;  %v1645_v2 = vld [vmem:[%s1991_s1 + $0x28] sm:$0xff]  }
   0x2   :  { %1547 = vmatprep.subr.bf16.mxu0 %v1643_v0  ;;  %1627 = vmatprep.subr.bf16.mxu1 %v1643_v0  ;;  %v1646_v3 = vld [vmem:[%s1991_s1 + $0x20] sm:$0xff]   ;;  %v1647_v6 = vld [vmem:[%s1991_s1 + $0x18] sm:$0xff]   ;;  %v1648_v7 = vld [vmem:[%s1991_s1 + $0x10] sm:$0xff]  }
   0x3   :  { %1548 = vmatpush3.bf16.msra.mxu0 %v1643_v0  ;;  %1635 = vmatpush3.bf16.msra.mxu1 %v1643_v0  ;;  %v1651_v4 = vld [vmem:[%s1992_s0] sm:$0xff]   ;;  %v1649_v8 = vld [vmem:[%s1991_s1 + $0x8] sm:$0xff]   ;;  %v1655_v12 = vld [vmem:[%s1992_s0 + $0x10] sm:$0xff]  }
   0x4   :  { %1549 = vmatprep.subr.bf16.mxu0 %v1644_v1  ;;  %1628 = vmatprep.subr.bf16.mxu1 %v1644_v1  ;;  %v1652_v5 = vld [vmem:[%s1992_s0 + $0x80] sm:$0xff]   ;;  %v1653_v10 = vld [vmem:[%s1992_s0 + $0x8] sm:$0xff]   ;;  %v1656_v13 = vld [vmem:[%s1992_s0 + $0x90] sm:$0xff]  }
   0x5   :  { %1563 = vmatprep.mubr.bf16.mxu0 %v1651_v4  ;;  %1595 = vmatprep.mubr.bf16.mxu1 %v1652_v5  ;;  %v1650_v9 = vld [vmem:[%s1991_s1] sm:$0xff]   ;;  %v1654_v11 = vld [vmem:[%s1992_s0 + $0x88] sm:$0xff]   ;;  %v1657_v14 = vld [vmem:[%s1992_s0 + $0x18] sm:$0xff]  }
   0x6   :  { %v1658_v15 = vld [vmem:[%s1992_s0 + $0x98] sm:$0xff]   ;;  %v1659_v16 = vld [vmem:[%s1992_s0 + $0x20] sm:$0xff]   ;;  %v1661_v18 = vld [vmem:[%s1992_s0 + $0x28] sm:$0xff]  }
   0x7   :  { %1550 = vmatpush3.bf16.msra.mxu0 %v1644_v1  ;;  %1636 = vmatpush3.bf16.msra.mxu1 %v1644_v1  ;;  %v1660_v17 = vld [vmem:[%s1992_s0 + $0xa0] sm:$0xff]   ;;  %v1662_v19 = vld [vmem:[%s1992_s0 + $0xa8] sm:$0xff]   ;;  %v1663_v20 = vld [vmem:[%s1992_s0 + $0x30] sm:$0xff]  }
   0x8   :  { %1551 = vmatprep.subr.bf16.mxu0 %v1645_v2  ;;  %1629 = vmatprep.subr.bf16.mxu1 %v1645_v2  ;;  %v1664_v21 = vld [vmem:[%s1992_s0 + $0xb0] sm:$0xff]   ;;  %v1665_v22 = vld [vmem:[%s1992_s0 + $0x38] sm:$0xff]   ;;  %v1667_v24 = vld [vmem:[%s1992_s0 + $0x40] sm:$0xff]  }
   0x9   :  { %v1666_v23 = vld [vmem:[%s1992_s0 + $0xb8] sm:$0xff]   ;;  %v1668_v25 = vld [vmem:[%s1992_s0 + $0xc0] sm:$0xff]   ;;  %v1669_v26 = vld [vmem:[%s1992_s0 + $0x48] sm:$0xff]  }
   0xa   :  { %v1670_v27 = vld [vmem:[%s1992_s0 + $0xc8] sm:$0xff]   ;;  %v1671_v28 = vld [vmem:[%s1992_s0 + $0x50] sm:$0xff]   ;;  %v1673_v30 = vld [vmem:[%s1992_s0 + $0x58] sm:$0xff]  }
   0xb   :  { %1552 = vmatpush3.bf16.msra.mxu0 %v1645_v2  ;;  %1637 = vmatpush3.bf16.msra.mxu1 %v1645_v2  ;;  %v1672_v29 = vld [vmem:[%s1992_s0 + $0xd0] sm:$0xff]   ;;  %v1674_v31 = vld [vmem:[%s1992_s0 + $0xd8] sm:$0xff]   ;;  %v1675_v32 = vld [vmem:[%s1992_s0 + $0x60] sm:$0xff]  }
   0xc   :  { %1553 = vmatprep.subr.bf16.mxu0 %v1646_v3  ;;  %1630 = vmatprep.subr.bf16.mxu1 %v1646_v3  ;;  %v1676_v33 = vld [vmem:[%s1992_s0 + $0xe0] sm:$0xff]   ;;  %v1677_v34 = vld [vmem:[%s1992_s0 + $0x68] sm:$0xff]   ;;  %v1679_v36 = vld [vmem:[%s1992_s0 + $0x70] sm:$0xff]  }
   0xd   :  { %v1678_v35 = vld [vmem:[%s1992_s0 + $0xe8] sm:$0xff]   ;;  %v1680_v37 = vld [vmem:[%s1992_s0 + $0xf0] sm:$0xff]   ;;  %v1681_v38 = vld [vmem:[%s1992_s0 + $0x78] sm:$0xff]  }
   0xe   :  { %v1682_v39 = vld [vmem:[%s1992_s0 + $0xf8] sm:$0xff]   ;;  %v1826_v40 = vld [vmem:[%s1993_s2] ss:$0 sm:$0xff] }
   0xf   :  { %1554 = vmatpush3.bf16.msra.mxu0 %v1646_v3  ;;  %1638 = vmatpush3.bf16.msra.mxu1 %v1646_v3 }
  0x10   :  { %1555 = vmatprep.subr.bf16.mxu0 %v1647_v6  ;;  %1631 = vmatprep.subr.bf16.mxu1 %v1647_v6 }
  0x13   :  { %1556 = vmatpush3.bf16.msra.mxu0 %v1647_v6  ;;  %1639 = vmatpush3.bf16.msra.mxu1 %v1647_v6 }
  0x14   :  { %1557 = vmatprep.subr.bf16.mxu0 %v1648_v7  ;;  %1632 = vmatprep.subr.bf16.mxu1 %v1648_v7 }
  0x17   :  { %1558 = vmatpush3.bf16.msra.mxu0 %v1648_v7  ;;  %1640 = vmatpush3.bf16.msra.mxu1 %v1648_v7 }
  0x18   :  { %1559 = vmatprep.subr.bf16.mxu0 %v1649_v8  ;;  %1633 = vmatprep.subr.bf16.mxu1 %v1649_v8 }
  0x1b   :  { %1560 = vmatpush3.bf16.msra.mxu0 %v1649_v8  ;;  %1641 = vmatpush3.bf16.msra.mxu1 %v1649_v8 }
  0x1c   :  { %1561 = vmatprep.subr.bf16.mxu0 %v1650_v9  ;;  %1634 = vmatprep.subr.bf16.mxu1 %v1650_v9 }
  0x1f   :  { %1562 = vmatpush3.bf16.msra.mxu0 %v1650_v9  ;;  %1642 = vmatpush3.bf16.msra.mxu1 %v1650_v9 }
  0x22   :  { %1564 = vmatmul.mubr.bf16.vlgmr.msra.gmra.mxu0 %v1653_v10  ;;  %1596 = vmatmul.mubr.bf16.vlgmr.msra.gmra.mxu1 %v1654_v11 }
  0x23   :  { %1567 = vmatprep.mubr.bf16.mxu0 %v1655_v12  ;;  %1599 = vmatprep.mubr.bf16.mxu1 %v1656_v13 }
  0x2a   :  { %1568 = vmatmul.mubr.bf16.gmra.mxu0 %v1657_v14  ;;  %1600 = vmatmul.mubr.bf16.gmra.mxu1 %v1658_v15 }
  0x2b   :  { %1571 = vmatprep.mubr.bf16.mxu0 %v1659_v16  ;;  %1603 = vmatprep.mubr.bf16.mxu1 %v1660_v17 }
  0x32   :  { %1572 = vmatmul.mubr.bf16.gmra.mxu0 %v1661_v18  ;;  %1604 = vmatmul.mubr.bf16.gmra.mxu1 %v1662_v19 }
  0x33   :  { %1575 = vmatprep.mubr.bf16.mxu0 %v1663_v20  ;;  %1607 = vmatprep.mubr.bf16.mxu1 %v1664_v21 }
  0x3a   :  { %1576 = vmatmul.mubr.bf16.gmra.mxu0 %v1665_v22  ;;  %1608 = vmatmul.mubr.bf16.gmra.mxu1 %v1666_v23 }
  0x3b   :  { %1579 = vmatprep.mubr.bf16.mxu0 %v1667_v24  ;;  %1611 = vmatprep.mubr.bf16.mxu1 %v1668_v25 }
  0x42   :  { %1580 = vmatmul.mubr.bf16.gmra.mxu0 %v1669_v26  ;;  %1612 = vmatmul.mubr.bf16.gmra.mxu1 %v1670_v27 }
  0x43   :  { %1583 = vmatprep.mubr.bf16.mxu0 %v1671_v28  ;;  %1615 = vmatprep.mubr.bf16.mxu1 %v1672_v29 }
  0x4a   :  { %1584 = vmatmul.mubr.bf16.gmra.mxu0 %v1673_v30  ;;  %1616 = vmatmul.mubr.bf16.gmra.mxu1 %v1674_v31 }
  0x4b   :  { %1587 = vmatprep.mubr.bf16.mxu0 %v1675_v32  ;;  %1619 = vmatprep.mubr.bf16.mxu1 %v1676_v33 }
  0x52   :  { %1588 = vmatmul.mubr.bf16.gmra.mxu0 %v1677_v34  ;;  %1620 = vmatmul.mubr.bf16.gmra.mxu1 %v1678_v35 }
  0x53   :  { %1591 = vmatprep.mubr.bf16.mxu0 %v1679_v36  ;;  %1623 = vmatprep.mubr.bf16.mxu1 %v1680_v37 }
  0x5a   :  { %1592 = vmatmul.mubr.bf16.gmra.mxu0 %v1681_v38  ;;  %1624 = vmatmul.mubr.bf16.gmra.mxu1 %v1682_v39 }
  0xe2   :  { %v1565_v41 = vpop.f32.mrf.mxu0  ;;  %v1597_v42 = vpop.f32.mrf.mxu1 }
  0xe3   :  { %v385_v43 = vadd.f32 %v1565_v41, %v1826_v40  ;;  %v513_v44 = vadd.f32 %v1597_v42, %v1826_v40 }
  0xe4   :  { %v376_v45 = vpop.f32.mrf.mxu0  ;;  %v504_v46 = vpop.f32.mrf.mxu1 }
  0xe5   :  { %vm633_vm0 = vcmp.ge.f32.partialorder %v385_v43, 0.0  ;;  %v697_v47 = vmul.f32 0.2, %v385_v43  ;;  %vm665_vm1 = vcmp.ge.f32.partialorder %v513_v44, 0.0  ;;  %v729_v48 = vmul.f32 0.2, %v513_v44 }
  0xe6   :  { %v377_v49 = vadd.f32 %v1826_v40, %v376_v45  ;;  %v505_v50 = vadd.f32 %v1826_v40, %v504_v46  ;;  %v1566_v51 = vpop.f32.mrf.mxu0  ;;  %v1598_v52 = vpop.f32.mrf.mxu1 }
  0xe7   :  { %v761_v53 = vsel %vm633_vm0, %v385_v43, %v697_v47  ;;  %v388_v54 = vadd.f32 %v1566_v51, %v1826_v40  ;;  %v516_v55 = vadd.f32 %v1598_v52, %v1826_v40  ;;  %v793_v56 = vsel %vm665_vm1, %v513_v44, %v729_v48 }
  0xe8   :  { %vm631_vm2 = vcmp.ge.f32.partialorder %v377_v49, 0.0  ;;  %v695_v57 = vmul.f32 0.2, %v377_v49  ;;  %vm663_vm3 = vcmp.ge.f32.partialorder %v505_v50, 0.0  ;;  %v379_v58 = vpop.f32.mrf.mxu0  ;;  %v507_v59 = vpop.f32.mrf.mxu1  ;;  %v727_v63 = vmul.f32 0.2, %v505_v50 }
  0xe9   :  { %vm634_vm4 = vcmp.ge.f32.partialorder %v388_v54, 0.0  ;;  %v698_v60 = vmul.f32 0.2, %v388_v54  ;;  %vm666_vm5 = vcmp.ge.f32.partialorder %v516_v55, 0.0  ;;  %v730_v61 = vmul.f32 0.2, %v516_v55 }
  0xea   :  { %v759_v62 = vsel %vm631_vm2, %v377_v49, %v695_v57  ;;  %v380_v0 = vadd.f32 %v1826_v40, %v379_v58  ;;  %v508_v1 = vadd.f32 %v1826_v40, %v507_v59  ;;  %v1569_v2 = vpop.f32.mrf.mxu0  ;;  %v1601_v3 = vpop.f32.mrf.mxu1  ;;  %v791_v15 = vsel %vm663_vm3, %v505_v50, %v727_v63 }
  0xeb   :  { %v762_v4 = vsel %vm634_vm4, %v388_v54, %v698_v60  ;;  %v794_v5 = vsel %vm666_vm5, %v516_v55, %v730_v61  ;;  %v401_v6 = vadd.f32 %v1569_v2, %v1826_v40  ;;  %v529_v7 = vadd.f32 %v1601_v3, %v1826_v40 }
  0xec   :  { %v1324_v8 = vpack.c.bf16 %v762_v4, %v761_v53  ;;  %v1404_v9 = vpack.c.bf16 %v794_v5, %v793_v56  ;;  %vm632_vm6 = vcmp.ge.f32.partialorder %v380_v0, 0.0  ;;  %v696_v10 = vmul.f32 0.2, %v380_v0  ;;  %v392_v11 = vpop.f32.mrf.mxu0  ;;  %v520_v12 = vpop.f32.mrf.mxu1 }
  0xed   :  { %vm664_vm7 = vcmp.ge.f32.partialorder %v508_v1, 0.0  ;;  %v728_v13 = vmul.f32 0.2, %v508_v1  ;;  %vm637_vm8 = vcmp.ge.f32.partialorder %v401_v6, 0.0  ;;  %v701_v14 = vmul.f32 0.2, %v401_v6 }
  0xee   :  { %1476 = vst [vmem:[%s1994_s3 + $0x8] sm:$0xff] %v1324_v8   ;;  %1492 = vst [vmem:[%s1994_s3 + $0x88] sm:$0xff] %v1404_v9   ;;  %v760_v16 = vsel %vm632_vm6, %v380_v0, %v696_v10  ;;  %v733_v17 = vmul.f32 0.2, %v529_v7  ;;  %v393_v18 = vadd.f32 %v1826_v40, %v392_v11  ;;  %v1570_v19 = vpop.f32.mrf.mxu0  ;;  %v1602_v20 = vpop.f32.mrf.mxu1  ;;  %vm669_vm9 = vcmp.ge.f32.partialorder %v529_v7, 0.0 }
  0xef   :  { %v1319_v21 = vpack.c.bf16 %v760_v16, %v759_v62  ;;  %v792_v22 = vsel %vm664_vm7, %v508_v1, %v728_v13  ;;  %v521_v23 = vadd.f32 %v1826_v40, %v520_v12  ;;  %v765_v25 = vsel %vm637_vm8, %v401_v6, %v701_v14 }
  0xf0   :  { %v1399_v24 = vpack.c.bf16 %v792_v22, %v791_v15  ;;  %vm635_vm10 = vcmp.ge.f32.partialorder %v393_v18, 0.0  ;;  %v699_v26 = vmul.f32 0.2, %v393_v18  ;;  %v395_v27 = vpop.f32.mrf.mxu0  ;;  %v523_v28 = vpop.f32.mrf.mxu1  ;;  %v404_v30 = vadd.f32 %v1570_v19, %v1826_v40 }
  0xf1   :  { %1320 = vst [vmem:[%s1994_s3] sm:$0xff] %v1319_v21   ;;  %vm667_vm11 = vcmp.ge.f32.partialorder %v521_v23, 0.0  ;;  %v731_v29 = vmul.f32 0.2, %v521_v23  ;;  %v532_v31 = vadd.f32 %v1602_v20, %v1826_v40  ;;  %v797_v32 = vsel %vm669_vm9, %v529_v7, %v733_v17 }
  0xf2   :  { %1491 = vst [vmem:[%s1994_s3 + $0x80] sm:$0xff] %v1399_v24   ;;  %v763_v33 = vsel %vm635_vm10, %v393_v18, %v699_v26  ;;  %v396_v34 = vadd.f32 %v1826_v40, %v395_v27  ;;  %v524_v35 = vadd.f32 %v1826_v40, %v523_v28  ;;  %v1573_v36 = vpop.f32.mrf.mxu0  ;;  %v1605_v37 = vpop.f32.mrf.mxu1  ;;  %vm638_vm12 = vcmp.ge.f32.partialorder %v404_v30, 0.0 }
  0xf3   :  { %v795_v38 = vsel %vm667_vm11, %v521_v23, %v731_v29  ;;  %v702_v39 = vmul.f32 0.2, %v404_v30  ;;  %vm670_vm13 = vcmp.ge.f32.partialorder %v532_v31, 0.0  ;;  %v734_v41 = vmul.f32 0.2, %v532_v31 }
  0xf4   :  { %vm636_vm14 = vcmp.ge.f32.partialorder %v396_v34, 0.0  ;;  %v700_v42 = vmul.f32 0.2, %v396_v34  ;;  %vm668_vm15 = vcmp.ge.f32.partialorder %v524_v35, 0.0  ;;  %v408_v43 = vpop.f32.mrf.mxu0  ;;  %v536_v44 = vpop.f32.mrf.mxu1  ;;  %v732_v46 = vmul.f32 0.2, %v524_v35 }
  0xf5   :  { %v766_v45 = vsel %vm638_vm12, %v404_v30, %v702_v39  ;;  %v417_v47 = vadd.f32 %v1573_v36, %v1826_v40  ;;  %v545_v48 = vadd.f32 %v1605_v37, %v1826_v40  ;;  %v798_v50 = vsel %vm670_vm13, %v532_v31, %v734_v41 }
  0xf6   :  { %v1334_v49 = vpack.c.bf16 %v766_v45, %v765_v25  ;;  %v764_v51 = vsel %vm636_vm14, %v396_v34, %v700_v42  ;;  %v409_v52 = vadd.f32 %v1826_v40, %v408_v43  ;;  %v1574_v53 = vpop.f32.mrf.mxu0  ;;  %v1606_v54 = vpop.f32.mrf.mxu1  ;;  %v1414_v55 = vpack.c.bf16 %v798_v50, %v797_v32 }
  0xf7   :  { %v1329_v56 = vpack.c.bf16 %v764_v51, %v763_v33  ;;  %v796_v57 = vsel %vm668_vm15, %v524_v35, %v732_v46  ;;  %vm641_vm0 = vcmp.ge.f32.partialorder %v417_v47, 0.0  ;;  %v705_v59 = vmul.f32 0.2, %v417_v47 }
  0xf8   :  { %1478 = vst [vmem:[%s1994_s3 + $0x18] sm:$0xff] %v1334_v49   ;;  %v1409_v58 = vpack.c.bf16 %v796_v57, %v795_v38  ;;  %vm673_vm1 = vcmp.ge.f32.partialorder %v545_v48, 0.0  ;;  %v737_v60 = vmul.f32 0.2, %v545_v48  ;;  %v411_v61 = vpop.f32.mrf.mxu0  ;;  %v539_v62 = vpop.f32.mrf.mxu1  ;;  %1494 = vst [vmem:[%s1994_s3 + $0x98] sm:$0xff] %v1414_v55   ;;  %vm639_vm2 = vcmp.ge.f32.partialorder %v409_v52, 0.0 }
  0xf9   :  { %1477 = vst [vmem:[%s1994_s3 + $0x10] sm:$0xff] %v1329_v56   ;;  %v703_v63 = vmul.f32 0.2, %v409_v52  ;;  %v537_v0 = vadd.f32 %v1826_v40, %v536_v44  ;;  %v420_v1 = vadd.f32 %v1574_v53, %v1826_v40  ;;  %v769_v2 = vsel %vm641_vm0, %v417_v47, %v705_v59 }
  0xfa   :  { %1493 = vst [vmem:[%s1994_s3 + $0x90] sm:$0xff] %v1409_v58   ;;  %v801_v3 = vsel %vm673_vm1, %v545_v48, %v737_v60  ;;  %v548_v4 = vadd.f32 %v1606_v54, %v1826_v40  ;;  %v412_v5 = vadd.f32 %v1826_v40, %v411_v61  ;;  %v1577_v6 = vpop.f32.mrf.mxu0  ;;  %v1609_v7 = vpop.f32.mrf.mxu1  ;;  %v540_v16 = vadd.f32 %v1826_v40, %v539_v62 }
  0xfb   :  { %v767_v8 = vsel %vm639_vm2, %v409_v52, %v703_v63  ;;  %vm671_vm3 = vcmp.ge.f32.partialorder %v537_v0, 0.0  ;;  %v735_v9 = vmul.f32 0.2, %v537_v0  ;;  %vm642_vm4 = vcmp.ge.f32.partialorder %v420_v1, 0.0 }
  0xfc   :  { %v706_v10 = vmul.f32 0.2, %v420_v1  ;;  %vm674_vm5 = vcmp.ge.f32.partialorder %v548_v4, 0.0  ;;  %v738_v11 = vmul.f32 0.2, %v548_v4  ;;  %vm640_vm6 = vcmp.ge.f32.partialorder %v412_v5, 0.0  ;;  %v424_v12 = vpop.f32.mrf.mxu0  ;;  %v552_v13 = vpop.f32.mrf.mxu1 }
  0xfd   :  { %v799_v14 = vsel %vm671_vm3, %v537_v0, %v735_v9  ;;  %v704_v15 = vmul.f32 0.2, %v412_v5  ;;  %v433_v17 = vadd.f32 %v1577_v6, %v1826_v40  ;;  %v561_v20 = vadd.f32 %v1609_v7, %v1826_v40 }
  0xfe   :  { %v770_v18 = vsel %vm642_vm4, %v420_v1, %v706_v10  ;;  %v802_v19 = vsel %vm674_vm5, %v548_v4, %v738_v11  ;;  %v425_v21 = vadd.f32 %v1826_v40, %v424_v12  ;;  %v1578_v22 = vpop.f32.mrf.mxu0  ;;  %v1610_v23 = vpop.f32.mrf.mxu1  ;;  %vm672_vm7 = vcmp.ge.f32.partialorder %v540_v16, 0.0 }
  0xff   :  { %v1344_v24 = vpack.c.bf16 %v770_v18, %v769_v2  ;;  %v1424_v25 = vpack.c.bf16 %v802_v19, %v801_v3  ;;  %v768_v26 = vsel %vm640_vm6, %v412_v5, %v704_v15  ;;  %v736_v28 = vmul.f32 0.2, %v540_v16 }
 0x100   :  { %v1339_v27 = vpack.c.bf16 %v768_v26, %v767_v8  ;;  %vm645_vm8 = vcmp.ge.f32.partialorder %v433_v17, 0.0  ;;  %v709_v29 = vmul.f32 0.2, %v433_v17  ;;  %v427_v30 = vpop.f32.mrf.mxu0  ;;  %v555_v31 = vpop.f32.mrf.mxu1  ;;  %vm677_vm9 = vcmp.ge.f32.partialorder %v561_v20, 0.0 }
 0x101   :  { %1480 = vst [vmem:[%s1994_s3 + $0x28] sm:$0xff] %v1344_v24   ;;  %1496 = vst [vmem:[%s1994_s3 + $0xa8] sm:$0xff] %v1424_v25   ;;  %v741_v32 = vmul.f32 0.2, %v561_v20  ;;  %vm643_vm10 = vcmp.ge.f32.partialorder %v425_v21, 0.0  ;;  %v800_v34 = vsel %vm672_vm7, %v540_v16, %v736_v28  ;;  %v553_v36 = vadd.f32 %v1826_v40, %v552_v13 }
 0x102   :  { %v707_v33 = vmul.f32 0.2, %v425_v21  ;;  %1479 = vst [vmem:[%s1994_s3 + $0x20] sm:$0xff] %v1339_v27   ;;  %v773_v35 = vsel %vm645_vm8, %v433_v17, %v709_v29  ;;  %v436_v37 = vadd.f32 %v1578_v22, %v1826_v40  ;;  %v1581_v38 = vpop.f32.mrf.mxu0  ;;  %v1613_v39 = vpop.f32.mrf.mxu1  ;;  %v1419_v41 = vpack.c.bf16 %v800_v34, %v799_v14 }
 0x103   :  { %v805_v42 = vsel %vm677_vm9, %v561_v20, %v741_v32  ;;  %v564_v44 = vadd.f32 %v1610_v23, %v1826_v40  ;;  %vm675_vm11 = vcmp.ge.f32.partialorder %v553_v36, 0.0  ;;  %v739_v45 = vmul.f32 0.2, %v553_v36 }
 0x104   :  { %v771_v43 = vsel %vm643_vm10, %v425_v21, %v707_v33  ;;  %vm646_vm12 = vcmp.ge.f32.partialorder %v436_v37, 0.0  ;;  %v710_v46 = vmul.f32 0.2, %v436_v37  ;;  %v440_v47 = vpop.f32.mrf.mxu0  ;;  %v568_v48 = vpop.f32.mrf.mxu1  ;;  %1495 = vst [vmem:[%s1994_s3 + $0xa0] sm:$0xff] %v1419_v41   ;;  %v428_v50 = vadd.f32 %v1826_v40, %v427_v30 }
 0x105   :  { %vm678_vm13 = vcmp.ge.f32.partialorder %v564_v44, 0.0  ;;  %v742_v49 = vmul.f32 0.2, %v564_v44  ;;  %v556_v51 = vadd.f32 %v1826_v40, %v555_v31  ;;  %v803_v52 = vsel %vm675_vm11, %v553_v36, %v739_v45 }
 0x106   :  { %v774_v53 = vsel %vm646_vm12, %v436_v37, %v710_v46  ;;  %v449_v54 = vadd.f32 %v1581_v38, %v1826_v40  ;;  %v577_v55 = vadd.f32 %v1613_v39, %v1826_v40  ;;  %v1582_v56 = vpop.f32.mrf.mxu0  ;;  %v1614_v57 = vpop.f32.mrf.mxu1  ;;  %vm644_vm14 = vcmp.ge.f32.partialorder %v428_v50, 0.0 }
 0x107   :  { %v1354_v58 = vpack.c.bf16 %v774_v53, %v773_v35  ;;  %v806_v59 = vsel %vm678_vm13, %v564_v44, %v742_v49  ;;  %v708_v60 = vmul.f32 0.2, %v428_v50  ;;  %vm676_vm15 = vcmp.ge.f32.partialorder %v556_v51, 0.0 }
 0x108   :  { %v1434_v61 = vpack.c.bf16 %v806_v59, %v805_v42  ;;  %v740_v62 = vmul.f32 0.2, %v556_v51  ;;  %vm649_vm0 = vcmp.ge.f32.partialorder %v449_v54, 0.0  ;;  %v443_v63 = vpop.f32.mrf.mxu0  ;;  %v571_v0 = vpop.f32.mrf.mxu1  ;;  %v713_v2 = vmul.f32 0.2, %v449_v54 }
 0x109   :  { %1482 = vst [vmem:[%s1994_s3 + $0x38] sm:$0xff] %v1354_v58   ;;  %v772_v1 = vsel %vm644_vm14, %v428_v50, %v708_v60  ;;  %vm681_vm1 = vcmp.ge.f32.partialorder %v577_v55, 0.0  ;;  %v745_v3 = vmul.f32 0.2, %v577_v55  ;;  %v441_v6 = vadd.f32 %v1826_v40, %v440_v47 }
 0x10a   :  { %1498 = vst [vmem:[%s1994_s3 + $0xb8] sm:$0xff] %v1434_v61   ;;  %v1349_v4 = vpack.c.bf16 %v772_v1, %v771_v43  ;;  %v804_v5 = vsel %vm676_vm15, %v556_v51, %v740_v62  ;;  %v569_v7 = vadd.f32 %v1826_v40, %v568_v48  ;;  %v1585_v8 = vpop.f32.mrf.mxu0  ;;  %v1617_v9 = vpop.f32.mrf.mxu1  ;;  %v777_v11 = vsel %vm649_vm0, %v449_v54, %v713_v2 }
 0x10b   :  { %v1429_v10 = vpack.c.bf16 %v804_v5, %v803_v52  ;;  %v809_v12 = vsel %vm681_vm1, %v577_v55, %v745_v3  ;;  %v452_v13 = vadd.f32 %v1582_v56, %v1826_v40  ;;  %vm647_vm2 = vcmp.ge.f32.partialorder %v441_v6, 0.0 }
 0x10c   :  { %1481 = vst [vmem:[%s1994_s3 + $0x30] sm:$0xff] %v1349_v4   ;;  %v711_v14 = vmul.f32 0.2, %v441_v6  ;;  %vm679_vm3 = vcmp.ge.f32.partialorder %v569_v7, 0.0  ;;  %v743_v15 = vmul.f32 0.2, %v569_v7  ;;  %v456_v16 = vpop.f32.mrf.mxu0  ;;  %v584_v17 = vpop.f32.mrf.mxu1  ;;  %v580_v19 = vadd.f32 %v1614_v57, %v1826_v40 }
 0x10d   :  { %1497 = vst [vmem:[%s1994_s3 + $0xb0] sm:$0xff] %v1429_v10   ;;  %vm650_vm4 = vcmp.ge.f32.partialorder %v452_v13, 0.0  ;;  %v714_v18 = vmul.f32 0.2, %v452_v13  ;;  %v444_v20 = vadd.f32 %v1826_v40, %v443_v63  ;;  %v572_v23 = vadd.f32 %v1826_v40, %v571_v0 }
 0x10e   :  { %v775_v21 = vsel %vm647_vm2, %v441_v6, %v711_v14  ;;  %v807_v22 = vsel %vm679_vm3, %v569_v7, %v743_v15  ;;  %v465_v24 = vadd.f32 %v1585_v8, %v1826_v40  ;;  %v1586_v25 = vpop.f32.mrf.mxu0  ;;  %v1618_v26 = vpop.f32.mrf.mxu1  ;;  %vm682_vm5 = vcmp.ge.f32.partialorder %v580_v19, 0.0 }
 0x10f   :  { %v778_v27 = vsel %vm650_vm4, %v452_v13, %v714_v18  ;;  %v746_v28 = vmul.f32 0.2, %v580_v19  ;;  %vm648_vm6 = vcmp.ge.f32.partialorder %v444_v20, 0.0  ;;  %v712_v30 = vmul.f32 0.2, %v444_v20 }
 0x110   :  { %v1364_v29 = vpack.c.bf16 %v778_v27, %v777_v11  ;;  %vm680_vm7 = vcmp.ge.f32.partialorder %v572_v23, 0.0  ;;  %v744_v31 = vmul.f32 0.2, %v572_v23  ;;  %v459_v32 = vpop.f32.mrf.mxu0  ;;  %v587_v33 = vpop.f32.mrf.mxu1  ;;  %vm653_vm8 = vcmp.ge.f32.partialorder %v465_v24, 0.0 }
 0x111   :  { %v810_v34 = vsel %vm682_vm5, %v580_v19, %v746_v28  ;;  %v717_v35 = vmul.f32 0.2, %v465_v24  ;;  %v593_v36 = vadd.f32 %v1617_v9, %v1826_v40  ;;  %v776_v38 = vsel %vm648_vm6, %v444_v20, %v712_v30 }
 0x112   :  { %1484 = vst [vmem:[%s1994_s3 + $0x48] sm:$0xff] %v1364_v29   ;;  %v1444_v37 = vpack.c.bf16 %v810_v34, %v809_v12  ;;  %v808_v39 = vsel %vm680_vm7, %v572_v23, %v744_v31  ;;  %v457_v41 = vadd.f32 %v1826_v40, %v456_v16  ;;  %v1589_v42 = vpop.f32.mrf.mxu0  ;;  %v1621_v43 = vpop.f32.mrf.mxu1  ;;  %v1359_v44 = vpack.c.bf16 %v776_v38, %v775_v21 }
 0x113   :  { %v1439_v45 = vpack.c.bf16 %v808_v39, %v807_v22  ;;  %v781_v46 = vsel %vm653_vm8, %v465_v24, %v717_v35  ;;  %vm685_vm9 = vcmp.ge.f32.partialorder %v593_v36, 0.0  ;;  %v749_v47 = vmul.f32 0.2, %v593_v36 }
 0x114   :  { %1500 = vst [vmem:[%s1994_s3 + $0xc8] sm:$0xff] %v1444_v37   ;;  %vm651_vm10 = vcmp.ge.f32.partialorder %v457_v41, 0.0  ;;  %v715_v48 = vmul.f32 0.2, %v457_v41  ;;  %v585_v49 = vadd.f32 %v1826_v40, %v584_v17  ;;  %v472_v50 = vpop.f32.mrf.mxu0  ;;  %v600_v51 = vpop.f32.mrf.mxu1  ;;  %1483 = vst [vmem:[%s1994_s3 + $0x40] sm:$0xff] %v1359_v44   ;;  %v468_v52 = vadd.f32 %v1586_v25, %v1826_v40 }
 0x115   :  { %1499 = vst [vmem:[%s1994_s3 + $0xc0] sm:$0xff] %v1439_v45   ;;  %v596_v53 = vadd.f32 %v1618_v26, %v1826_v40  ;;  %v460_v54 = vadd.f32 %v1826_v40, %v459_v32  ;;  %v588_v55 = vadd.f32 %v1826_v40, %v587_v33  ;;  %v813_v56 = vsel %vm685_vm9, %v593_v36, %v749_v47 }
 0x116   :  { %v779_v57 = vsel %vm651_vm10, %v457_v41, %v715_v48  ;;  %vm683_vm11 = vcmp.ge.f32.partialorder %v585_v49, 0.0  ;;  %v747_v58 = vmul.f32 0.2, %v585_v49  ;;  %v1590_v59 = vpop.f32.mrf.mxu0  ;;  %v1622_v60 = vpop.f32.mrf.mxu1  ;;  %vm654_vm12 = vcmp.ge.f32.partialorder %v468_v52, 0.0 }
 0x117   :  { %v718_v61 = vmul.f32 0.2, %v468_v52  ;;  %vm686_vm13 = vcmp.ge.f32.partialorder %v596_v53, 0.0  ;;  %v750_v62 = vmul.f32 0.2, %v596_v53  ;;  %vm652_vm14 = vcmp.ge.f32.partialorder %v460_v54, 0.0 }
 0x118   :  { %v811_v63 = vsel %vm683_vm11, %v585_v49, %v747_v58  ;;  %v716_v0 = vmul.f32 0.2, %v460_v54  ;;  %vm684_vm15 = vcmp.ge.f32.partialorder %v588_v55, 0.0  ;;  %v475_v1 = vpop.f32.mrf.mxu0  ;;  %v603_v2 = vpop.f32.mrf.mxu1  ;;  %v748_v5 = vmul.f32 0.2, %v588_v55 }
 0x119   :  { %v782_v3 = vsel %vm654_vm12, %v468_v52, %v718_v61  ;;  %v814_v4 = vsel %vm686_vm13, %v596_v53, %v750_v62  ;;  %v481_v6 = vadd.f32 %v1589_v42, %v1826_v40  ;;  %v609_v10 = vadd.f32 %v1621_v43, %v1826_v40 }
 0x11a   :  { %v1374_v7 = vpack.c.bf16 %v782_v3, %v781_v46  ;;  %v1454_v8 = vpack.c.bf16 %v814_v4, %v813_v56  ;;  %v780_v9 = vsel %vm652_vm14, %v460_v54, %v716_v0  ;;  %v1593_v11 = vpop.f32.mrf.mxu0  ;;  %v1625_v12 = vpop.f32.mrf.mxu1  ;;  %v812_v14 = vsel %vm684_vm15, %v588_v55, %v748_v5 }
 0x11b   :  { %v1369_v13 = vpack.c.bf16 %v780_v9, %v779_v57  ;;  %vm657_vm0 = vcmp.ge.f32.partialorder %v481_v6, 0.0  ;;  %v721_v15 = vmul.f32 0.2, %v481_v6  ;;  %v1449_v16 = vpack.c.bf16 %v812_v14, %v811_v63 }
 0x11c   :  { %1486 = vst [vmem:[%s1994_s3 + $0x58] sm:$0xff] %v1374_v7   ;;  %1502 = vst [vmem:[%s1994_s3 + $0xd8] sm:$0xff] %v1454_v8   ;;  %vm689_vm1 = vcmp.ge.f32.partialorder %v609_v10, 0.0  ;;  %v753_v17 = vmul.f32 0.2, %v609_v10  ;;  %v473_v18 = vadd.f32 %v1826_v40, %v472_v50  ;;  %v601_v19 = vadd.f32 %v1826_v40, %v600_v51  ;;  %v488_v25 = vpop.f32.mrf.mxu0  ;;  %v616_v26 = vpop.f32.mrf.mxu1 }
 0x11d   :  { %1485 = vst [vmem:[%s1994_s3 + $0x50] sm:$0xff] %v1369_v13   ;;  %v484_v20 = vadd.f32 %v1590_v59, %v1826_v40  ;;  %v612_v21 = vadd.f32 %v1622_v60, %v1826_v40  ;;  %1501 = vst [vmem:[%s1994_s3 + $0xd0] sm:$0xff] %v1449_v16   ;;  %v785_v22 = vsel %vm657_vm0, %v481_v6, %v721_v15 }
 0x11e   :  { %vm655_vm2 = vcmp.ge.f32.partialorder %v473_v18, 0.0  ;;  %v719_v23 = vmul.f32 0.2, %v473_v18  ;;  %v476_v24 = vadd.f32 %v1826_v40, %v475_v1  ;;  %v817_v27 = vsel %vm689_vm1, %v609_v10, %v753_v17  ;;  %v1594_v39 = vpop.f32.mrf.mxu0  ;;  %v1626_v41 = vpop.f32.mrf.mxu1 }
 0x11f   :  { %vm687_vm3 = vcmp.ge.f32.partialorder %v601_v19, 0.0  ;;  %vm658_vm4 = vcmp.ge.f32.partialorder %v484_v20, 0.0  ;;  %v722_v28 = vmul.f32 0.2, %v484_v20  ;;  %v751_v29 = vmul.f32 0.2, %v601_v19 }
 0x120   :  { %vm690_vm5 = vcmp.ge.f32.partialorder %v612_v21, 0.0  ;;  %v754_v30 = vmul.f32 0.2, %v612_v21  ;;  %vm656_vm6 = vcmp.ge.f32.partialorder %v476_v24, 0.0  ;;  %v783_v31 = vsel %vm655_vm2, %v473_v18, %v719_v23  ;;  %v491_v55 = vpop.f32.mrf.mxu0  ;;  %v619_v56 = vpop.f32.mrf.mxu1 }
 0x121   :  { %v786_v32 = vsel %vm658_vm4, %v484_v20, %v722_v28  ;;  %v720_v33 = vmul.f32 0.2, %v476_v24  ;;  %v604_v34 = vadd.f32 %v1826_v40, %v603_v2  ;;  %v497_v37 = vadd.f32 %v1593_v11, %v1826_v40 }
 0x122   :  { %v1384_v35 = vpack.c.bf16 %v786_v32, %v785_v22  ;;  %v818_v36 = vsel %vm690_vm5, %v612_v21, %v754_v30  ;;  %v625_v38 = vadd.f32 %v1625_v12, %v1826_v40  ;;  %v815_v45 = vsel %vm687_vm3, %v601_v19, %v751_v29 }
 0x123   :  { %v1464_v42 = vpack.c.bf16 %v818_v36, %v817_v27  ;;  %v784_v43 = vsel %vm656_vm6, %v476_v24, %v720_v33  ;;  %vm688_vm7 = vcmp.ge.f32.partialorder %v604_v34, 0.0  ;;  %v752_v44 = vmul.f32 0.2, %v604_v34 }
 0x124   :  { %1488 = vst [vmem:[%s1994_s3 + $0x68] sm:$0xff] %v1384_v35   ;;  %v1379_v46 = vpack.c.bf16 %v784_v43, %v783_v31  ;;  %vm661_vm8 = vcmp.ge.f32.partialorder %v497_v37, 0.0  ;;  %v725_v47 = vmul.f32 0.2, %v497_v37  ;;  %vm693_vm9 = vcmp.ge.f32.partialorder %v625_v38, 0.0 }
 0x125   :  { %1504 = vst [vmem:[%s1994_s3 + $0xe8] sm:$0xff] %v1464_v42   ;;  %v816_v48 = vsel %vm688_vm7, %v604_v34, %v752_v44  ;;  %v757_v49 = vmul.f32 0.2, %v625_v38  ;;  %v489_v50 = vadd.f32 %v1826_v40, %v488_v25  ;;  %v617_v52 = vadd.f32 %v1826_v40, %v616_v26 }
 0x126   :  { %1487 = vst [vmem:[%s1994_s3 + $0x60] sm:$0xff] %v1379_v46   ;;  %v1459_v51 = vpack.c.bf16 %v816_v48, %v815_v45  ;;  %v500_v53 = vadd.f32 %v1594_v39, %v1826_v40  ;;  %v628_v54 = vadd.f32 %v1626_v41, %v1826_v40  ;;  %v789_v57 = vsel %vm661_vm8, %v497_v37, %v725_v47 }
 0x127   :  { %v821_v58 = vsel %vm693_vm9, %v625_v38, %v757_v49  ;;  %v723_v60 = vmul.f32 0.2, %v489_v50  ;;  %v492_v62 = vadd.f32 %v1826_v40, %v491_v55  ;;  %v620_v63 = vadd.f32 %v1826_v40, %v619_v56 }
 0x128   :  { %1503 = vst [vmem:[%s1994_s3 + $0xe0] sm:$0xff] %v1459_v51   ;;  %vm662_vm10 = vcmp.ge.f32.partialorder %v500_v53, 0.0  ;;  %v726_v59 = vmul.f32 0.2, %v500_v53  ;;  %vm694_vm11 = vcmp.ge.f32.partialorder %v628_v54, 0.0  ;;  %vm659_vm12 = vcmp.ge.f32.partialorder %v489_v50, 0.0 }
 0x129   :  { %v758_v61 = vmul.f32 0.2, %v628_v54  ;;  %vm691_vm13 = vcmp.ge.f32.partialorder %v617_v52, 0.0  ;;  %v755_v0 = vmul.f32 0.2, %v617_v52  ;;  %vm660_vm14 = vcmp.ge.f32.partialorder %v492_v62, 0.0 }
 0x12a   :  { %v790_v1 = vsel %vm662_vm10, %v500_v53, %v726_v59  ;;  %v724_v4 = vmul.f32 0.2, %v492_v62  ;;  %vm692_vm15 = vcmp.ge.f32.partialorder %v620_v63, 0.0  ;;  %v756_v6 = vmul.f32 0.2, %v620_v63 }
 0x12b   :  { %v1394_v2 = vpack.c.bf16 %v790_v1, %v789_v57  ;;  %v822_v3 = vsel %vm694_vm11, %v628_v54, %v758_v61  ;;  %v787_v7 = vsel %vm659_vm12, %v489_v50, %v723_v60  ;;  %v819_v9 = vsel %vm691_vm13, %v617_v52, %v755_v0 }
 0x12c   :  { %v1474_v5 = vpack.c.bf16 %v822_v3, %v821_v58  ;;  %v788_v8 = vsel %vm660_vm14, %v492_v62, %v724_v4  ;;  %v820_v10 = vsel %vm692_vm15, %v620_v63, %v756_v6 }
 0x12d   :  { %1490 = vst [vmem:[%s1994_s3 + $0x78] sm:$0xff] %v1394_v2   ;;  %v1389_v40 = vpack.c.bf16 %v788_v8, %v787_v7  ;;  %v1469_v11 = vpack.c.bf16 %v820_v10, %v819_v9 }
 0x12e   :  { %1506 = vst [vmem:[%s1994_s3 + $0xf8] sm:$0xff] %v1474_v5  }
 0x12f   :  { %1489 = vst [vmem:[%s1994_s3 + $0x70] sm:$0xff] %v1389_v40   ;;  %1505 = vst [vmem:[%s1994_s3 + $0xf0] sm:$0xff] %v1469_v11  }

// kernel: classifier_forward.4
= control target key start
LH: loop header
LB: loop body
LE: loop exit
PB: predicated region body
PF: predicated region fallthrough
CT: control target
= control target key end

     0   :  { %10 = vsyncpa [#allocation3], 0  ;;  %s4586_s0 = inlined_call_operand.vmem [shape: bf16[128,1664], index: 0, kind: input, shape index: {}]   ;;  %s4587_s1 = inlined_call_operand.vmem [shape: bf16[1664,128], index: 1, kind: input, shape index: {}]   ;;  %s4588_s2 = inlined_call_operand.hbm [shape: f32[1,128], index: 2, kind: input, shape index: {}]   ;;  %s4589_s3 = inlined_call_operand.hbm [shape: f32[1,128], index: 3, kind: input, shape index: {}]   ;;  %s4590_s4 = inlined_call_operand.hbm [shape: f32[1,128], index: 4, kind: input, shape index: {}]   ;;  %s4591_s5 = inlined_call_operand.vmem [shape: bf16[128,128], index: 5, kind: output, shape index: {}]  }
   0x1   :  { %11 = vsyncpa [#allocation5], 0  ;;  %s3554_s18 = smov [#allocation4]   ;;  %s3555_s20 = smov [#allocation2]  }
   0x2   :  { %s32_s19 = sshll.u32 %s3554_s18, 4  ;;  %s22_s21 = sshll.u32 %s3555_s20, 4  ;;  %s33_s19 = int_to_ptr.vmem [resolvable:$true] %s32_s19  ;;  %s23_s21 = int_to_ptr.vmem [resolvable:$true] %s22_s21 }
   0x3   :  { %s3498_s22 = scalar_lea.vmem %s33_s19, 16  ;;  %s3502_s23 = scalar_lea.vmem %s33_s19, 32 }
   0x4   :  { %p3499_p0 = scmp.ne.s32.totalorder %s33_s19, %s3498_s22  ;;  %p3503_p1 = scmp.lt.s32.totalorder %s33_s19, %s33_s19 }
   0x5   :  { %p3504_p2 = scmp.lt.s32.totalorder %s3502_s23, %s3498_s22 }
   0x7   :  { %p3505_p3 = por %p3504_p2, %p3503_p1 }
   0x9   :  { %p3506_p4 = pnand %p3505_p3, %p3499_p0 }
   0xb   :  { %3509 = shalt.err (!%p3506_p4)
}
   0xc   :  { %35 = dma.hbm_to_vmem [thread:$0]  %s4589_s3, 16, %s33_s19, [#allocation5]  }
   0xd   :  { %s3518_s26 = scalar_lea.vmem %s23_s21, 16  ;;  %s3522_s27 = scalar_lea.vmem %s23_s21, 32 }
   0xe   :  { %p3519_p5 = scmp.ne.s32.totalorder %s23_s21, %s3518_s26  ;;  %p3523_p6 = scmp.lt.s32.totalorder %s23_s21, %s23_s21 }
   0xf   :  { %p3524_p7 = scmp.lt.s32.totalorder %s3522_s27, %s3518_s26 }
  0x11   :  { %p3525_p8 = por %p3524_p7, %p3523_p6 }
  0x13   :  { %p3526_p9 = pnand %p3525_p8, %p3519_p5 }
  0x15   :  { %3529 = shalt.err (!%p3526_p9)
}
  0x16   :  { %25 = dma.hbm_to_vmem [thread:$0]  %s4588_s2, 16, %s23_s21, [#allocation3]  }
  0x17   :  { %s3556_s30 = smov [#allocation6]  }
  0x18   :  { %s42_s6 = sshll.u32 %s3556_s30, 4  ;;  %s43_s6 = int_to_ptr.vmem [resolvable:$true] %s42_s6 }
  0x19   :  { %s3538_s7 = scalar_lea.vmem %s43_s6, 16  ;;  %s3542_s8 = scalar_lea.vmem %s43_s6, 32 }
  0x1a   :  { %p3539_p10 = scmp.ne.s32.totalorder %s43_s6, %s3538_s7  ;;  %p3543_p11 = scmp.lt.s32.totalorder %s43_s6, %s43_s6 }
  0x1b   :  { %p3544_p12 = scmp.lt.s32.totalorder %s3542_s8, %s3538_s7 }
  0x1d   :  { %p3545_p13 = por %p3544_p12, %p3543_p11 }
  0x1f   :  { %p3546_p0 = pnand %p3545_p13, %p3539_p10 }
  0x21   :  { %3549 = shalt.err (!%p3546_p0)
}
  0x22   :  { %45 = dma.hbm_to_vmem [thread:$0]  %s4590_s4, 16, %s43_s6, [#allocation5]  }
  0x23   :  { %3550 = dma.done.wait [#allocation3], 16  }
  0x24   :  { %3551 = vsyncadd [#allocation3], 4294967280 }
  0x25   :  { %3552 = dma.done.wait [#allocation5], 32  }
  0x26   :  { %3553 = vsyncadd [#allocation5], 4294967264  ;;  %v3232_v0 = vld [vmem:[%s4587_s1 + $0x78] sm:$0xff]   ;;  %v3236_v4 = vld [vmem:[%s4587_s1 + $0x70] sm:$0xff]  }
  0x27   :  { %v3233_v1 = vld [vmem:[%s4587_s1 + $0xf8] sm:$0xff]   ;;  %2781 = vmatprep.subr.bf16.mxu0 %v3232_v0  ;;  %v3237_v5 = vld [vmem:[%s4587_s1 + $0xf0] sm:$0xff]   ;;  %v3240_v8 = vld [vmem:[%s4587_s1 + $0x68] sm:$0xff]  }
  0x28   :  { %v3234_v2 = vld [vmem:[%s4587_s1 + $0x38] sm:$0xff]   ;;  %2845 = vmatprep.subr.bf16.mxu1 %v3233_v1  ;;  %v3238_v6 = vld [vmem:[%s4587_s1 + $0x30] sm:$0xff]   ;;  %v3241_v9 = vld [vmem:[%s4587_s1 + $0xe8] sm:$0xff]  }
  0x29   :  { %v3235_v3 = vld [vmem:[%s4587_s1 + $0xb8] sm:$0xff]   ;;  %2782 = vmatpush3.bf16.msra.mxu0 %v3234_v2  ;;  %v3239_v7 = vld [vmem:[%s4587_s1 + $0xb0] sm:$0xff]   ;;  %v3242_v10 = vld [vmem:[%s4587_s1 + $0x28] sm:$0xff]  }
  0x2a   :  { %2846 = vmatpush3.bf16.msra.mxu1 %v3235_v3  ;;  %2783 = vmatprep.subr.bf16.mxu0 %v3236_v4  ;;  %v3243_v11 = vld [vmem:[%s4587_s1 + $0xa8] sm:$0xff]   ;;  %v3244_v12 = vld [vmem:[%s4587_s1 + $0x60] sm:$0xff]   ;;  %v3248_v16 = vld [vmem:[%s4587_s1 + $0x58] sm:$0xff]  }
  0x2b   :  { %2847 = vmatprep.subr.bf16.mxu1 %v3237_v5  ;;  %v3245_v13 = vld [vmem:[%s4587_s1 + $0xe0] sm:$0xff]   ;;  %v3249_v17 = vld [vmem:[%s4587_s1 + $0xd8] sm:$0xff]   ;;  %v3252_v20 = vld [vmem:[%s4587_s1 + $0x50] sm:$0xff]  }
  0x2c   :  { %v3246_v14 = vld [vmem:[%s4587_s1 + $0x20] sm:$0xff]   ;;  %v3250_v18 = vld [vmem:[%s4587_s1 + $0x18] sm:$0xff]   ;;  %v3253_v21 = vld [vmem:[%s4587_s1 + $0xd0] sm:$0xff]  }
  0x2d   :  { %2784 = vmatpush3.bf16.msra.mxu0 %v3238_v6  ;;  %v3247_v15 = vld [vmem:[%s4587_s1 + $0xa0] sm:$0xff]   ;;  %v3251_v19 = vld [vmem:[%s4587_s1 + $0x98] sm:$0xff]   ;;  %v3254_v22 = vld [vmem:[%s4587_s1 + $0x10] sm:$0xff]  }
  0x2e   :  { %2848 = vmatpush3.bf16.msra.mxu1 %v3239_v7  ;;  %2785 = vmatprep.subr.bf16.mxu0 %v3240_v8  ;;  %v3255_v23 = vld [vmem:[%s4587_s1 + $0x90] sm:$0xff]   ;;  %v3256_v24 = vld [vmem:[%s4587_s1 + $0x48] sm:$0xff]   ;;  %v3260_v28 = vld [vmem:[%s4587_s1 + $0x40] sm:$0xff]  }
  0x2f   :  { %2849 = vmatprep.subr.bf16.mxu1 %v3241_v9  ;;  %v3257_v25 = vld [vmem:[%s4587_s1 + $0xc8] sm:$0xff]   ;;  %v3261_v29 = vld [vmem:[%s4587_s1 + $0xc0] sm:$0xff]   ;;  %v3270_v36 = vld [vmem:[%s4587_s1 + $0x178] sm:$0xff]  }
  0x30   :  { %v3258_v26 = vld [vmem:[%s4587_s1 + $0x8] sm:$0xff]   ;;  %v3262_v30 = vld [vmem:[%s4587_s1] sm:$0xff]   ;;  %v3271_v37 = vld [vmem:[%s4587_s1 + $0x138] sm:$0xff]  }
  0x31   :  { %2786 = vmatpush3.bf16.msra.mxu0 %v3242_v10  ;;  %v3259_v27 = vld [vmem:[%s4587_s1 + $0x88] sm:$0xff]   ;;  %v3263_v31 = vld [vmem:[%s4587_s1 + $0x80] sm:$0xff]   ;;  %v3278_v42 = vld [vmem:[%s4587_s1 + $0x170] sm:$0xff]  }
  0x32   :  { %2850 = vmatpush3.bf16.msra.mxu1 %v3243_v11  ;;  %2787 = vmatprep.subr.bf16.mxu0 %v3244_v12  ;;  %v3264_v32 = vld [vmem:[%s4586_s0] ss:$52 sps:$4 sm:$0xff]   ;;  %v3266_v33 = vld [vmem:[%s4586_s0 + $0x4] ss:$52 sps:$4 sm:$0xff]   ;;  %v3267_v34 = vld [vmem:[%s4586_s0 + $0x8] ss:$52 sps:$4 sm:$0xff]  }
  0x33   :  { %2851 = vmatprep.subr.bf16.mxu1 %v3245_v13  ;;  %v3269_v35 = vld [vmem:[%s4586_s0 + $0xc] ss:$52 sps:$4 sm:$0xff]   ;;  %1567 = vmatprep.mubr.bf16.mxu0 %v3266_v33  ;;  %v3274_v39 = vld [vmem:[%s4586_s0 + $0x74] ss:$52 sps:$4 sm:$0xff]   ;;  %v3277_v41 = vld [vmem:[%s4586_s0 + $0x70] ss:$52 sps:$4 sm:$0xff]  }
  0x34   :  { %1664 = vmatprep.mubr.bf16.mxu1 %v3269_v35  ;;  %v3272_v38 = vld [vmem:[%s4586_s0 + $0x6c] ss:$52 sps:$4 sm:$0xff]   ;;  %v3276_v40 = vld [vmem:[%s4586_s0 + $0x68] ss:$52 sps:$4 sm:$0xff]   ;;  %v3279_v43 = vld [vmem:[%s4587_s1 + $0x130] sm:$0xff]  }
  0x35   :  { %2788 = vmatpush3.bf16.msra.mxu0 %v3246_v14  ;;  %v3280_v44 = vld [vmem:[%s4586_s0 + $0xd4] ss:$52 sps:$4 sm:$0xff]   ;;  %v3282_v45 = vld [vmem:[%s4586_s0 + $0xdc] ss:$52 sps:$4 sm:$0xff]   ;;  %v3285_v51 = vld [vmem:[%s4586_s0 + $0xd8] ss:$52 sps:$4 sm:$0xff]  }
  0x36   :  { %2852 = vmatpush3.bf16.msra.mxu1 %v3247_v15  ;;  %2789 = vmatprep.subr.bf16.mxu0 %v3248_v16  ;;  %v3286_v46 = vld [vmem:[%s4587_s1 + $0x168] sm:$0xff]   ;;  %v3287_v47 = vld [vmem:[%s4587_s1 + $0x1f8] sm:$0xff]   ;;  %v3284_v48 = vld [vmem:[%s4586_s0 + $0xd0] ss:$52 sps:$4 sm:$0xff]  }
  0x37   :  { %2853 = vmatprep.subr.bf16.mxu1 %v3249_v17  ;;  %v3288_v49 = vld [vmem:[%s4587_s1 + $0x128] sm:$0xff]   ;;  %v3289_v50 = vld [vmem:[%s4587_s1 + $0x1b8] sm:$0xff]   ;;  %v3296_v54 = vld [vmem:[%s4587_s1 + $0x160] sm:$0xff]  }
  0x38   :  { %v3290_v52 = vld [vmem:[%s4586_s0 + $0x13c] ss:$52 sps:$4 sm:$0xff]   ;;  %v3292_v53 = vld [vmem:[%s4586_s0 + $0x144] ss:$52 sps:$4 sm:$0xff]   ;;  %v3295_v59 = vld [vmem:[%s4586_s0 + $0x140] ss:$52 sps:$4 sm:$0xff]  }
  0x39   :  { %2790 = vmatpush3.bf16.msra.mxu0 %v3250_v18  ;;  %v3297_v55 = vld [vmem:[%s4587_s1 + $0x1f0] sm:$0xff]   ;;  %v3298_v56 = vld [vmem:[%s4587_s1 + $0x120] sm:$0xff]   ;;  %v3294_v58 = vld [vmem:[%s4586_s0 + $0x138] ss:$52 sps:$4 sm:$0xff]  }
  0x3a   :  { %2854 = vmatpush3.bf16.msra.mxu1 %v3251_v19  ;;  %2791 = vmatprep.subr.bf16.mxu0 %v3252_v20  ;;  %v3299_v57 = vld [vmem:[%s4587_s1 + $0x1b0] sm:$0xff]   ;;  %v3300_v60 = vld [vmem:[%s4586_s0 + $0x1a4] ss:$52 sps:$4 sm:$0xff]   ;;  %v3302_v61 = vld [vmem:[%s4586_s0 + $0x1ac] ss:$52 sps:$4 sm:$0xff]  }
  0x3b   :  { %2855 = vmatprep.subr.bf16.mxu1 %v3253_v21  ;;  %v3306_v62 = vld [vmem:[%s4587_s1 + $0x158] sm:$0xff]   ;;  %v3307_v63 = vld [vmem:[%s4587_s1 + $0x1e8] sm:$0xff]   ;;  %v3304_v2 = vld [vmem:[%s4586_s0 + $0x1a0] ss:$52 sps:$4 sm:$0xff]  }
  0x3c   :  { %v3308_v0 = vld [vmem:[%s4587_s1 + $0x118] sm:$0xff]   ;;  %v3309_v1 = vld [vmem:[%s4587_s1 + $0x1a8] sm:$0xff]   ;;  %v3316_v6 = vld [vmem:[%s4587_s1 + $0x150] sm:$0xff]  }
  0x3d   :  { %2792 = vmatpush3.bf16.msra.mxu0 %v3254_v22  ;;  %v3305_v3 = vld [vmem:[%s4586_s0 + $0x1a8] ss:$52 sps:$4 sm:$0xff]   ;;  %v3310_v4 = vld [vmem:[%s4586_s0 + $0x20c] ss:$52 sps:$4 sm:$0xff]   ;;  %v3318_v8 = vld [vmem:[%s4587_s1 + $0x110] sm:$0xff]  }
  0x3e   :  { %2856 = vmatpush3.bf16.msra.mxu1 %v3255_v23  ;;  %2793 = vmatprep.subr.bf16.mxu0 %v3256_v24  ;;  %v3312_v5 = vld [vmem:[%s4586_s0 + $0x214] ss:$52 sps:$4 sm:$0xff]   ;;  %v3317_v7 = vld [vmem:[%s4587_s1 + $0x1e0] sm:$0xff]   ;;  %v3322_v14 = vld [vmem:[%s4586_s0 + $0x27c] ss:$52 sps:$4 sm:$0xff]  }
  0x3f   :  { %2857 = vmatprep.subr.bf16.mxu1 %v3257_v25  ;;  %v3319_v9 = vld [vmem:[%s4587_s1 + $0x1a0] sm:$0xff]   ;;  %v3314_v10 = vld [vmem:[%s4586_s0 + $0x208] ss:$52 sps:$4 sm:$0xff]   ;;  %v3330_v18 = vld [vmem:[%s4587_s1 + $0x1d0] sm:$0xff]  }
  0x40   :  { %v3315_v11 = vld [vmem:[%s4586_s0 + $0x210] ss:$52 sps:$4 sm:$0xff]   ;;  %v3320_v12 = vld [vmem:[%s4586_s0 + $0x274] ss:$52 sps:$4 sm:$0xff]   ;;  %v3327_v15 = vld [vmem:[%s4587_s1 + $0x1d8] sm:$0xff]  }
  0x41   :  { %2794 = vmatpush3.bf16.msra.mxu0 %v3258_v26  ;;  %v3326_v13 = vld [vmem:[%s4587_s1 + $0x148] sm:$0xff]   ;;  %v3329_v17 = vld [vmem:[%s4587_s1 + $0x198] sm:$0xff]   ;;  %v3331_v19 = vld [vmem:[%s4587_s1 + $0x190] sm:$0xff]  }
  0x42   :  { %2858 = vmatpush3.bf16.msra.mxu1 %v3259_v27  ;;  %2795 = vmatprep.subr.bf16.mxu0 %v3260_v28  ;;  %v3328_v16 = vld [vmem:[%s4587_s1 + $0x108] sm:$0xff]   ;;  %v3324_v20 = vld [vmem:[%s4586_s0 + $0x270] ss:$52 sps:$4 sm:$0xff]  }
  0x43   :  { %2859 = vmatprep.subr.bf16.mxu1 %v3261_v29  ;;  %v3325_v21 = vld [vmem:[%s4586_s0 + $0x278] ss:$52 sps:$4 sm:$0xff]   ;;  %v3332_v22 = vld [vmem:[%s4586_s0 + $0x2dc] ss:$52 sps:$4 sm:$0xff]   ;;  %v3338_v24 = vld [vmem:[%s4587_s1 + $0x140] sm:$0xff]  }
  0x44   :  { %v3334_v23 = vld [vmem:[%s4586_s0 + $0x2e4] ss:$52 sps:$4 sm:$0xff]   ;;  %v3339_v25 = vld [vmem:[%s4587_s1 + $0x1c8] sm:$0xff]  }
  0x45   :  { %2796 = vmatpush3.bf16.msra.mxu0 %v3262_v30  ;;  %v3340_v26 = vld [vmem:[%s4587_s1 + $0x100] sm:$0xff]   ;;  %v3341_v27 = vld [vmem:[%s4587_s1 + $0x188] sm:$0xff]  }
  0x46   :  { %2860 = vmatpush3.bf16.msra.mxu1 %v3263_v31  ;;  %2909 = vmatprep.subr.bf16.mxu0 %v3270_v36  ;;  %v3342_v28 = vld [vmem:[%s4587_s1 + $0x1c0] sm:$0xff]   ;;  %v3336_v29 = vld [vmem:[%s4586_s0 + $0x2d8] ss:$52 sps:$4 sm:$0xff]   ;;  %v3346_v33 = vld [vmem:[%s4586_s0 + $0x14] ss:$52 sps:$4 sm:$0xff]  }
  0x47   :  { %2973 = vmatprep.subr.bf16.mxu1 %v3287_v47  ;;  %v3337_v30 = vld [vmem:[%s4586_s0 + $0x2e0] ss:$52 sps:$4 sm:$0xff]   ;;  %v3344_v35 = vld [vmem:[%s4586_s0 + $0x10] ss:$52 sps:$4 sm:$0xff]   ;;  %v3347_v36 = vld [vmem:[%s4586_s0 + $0x18] ss:$52 sps:$4 sm:$0xff]  }
  0x48   :  { %1568 = vmatmul.mubr.bf16.vlgmr.msra.gmra.mxu0 %v3264_v32  ;;  %v3343_v31 = vld [vmem:[%s4587_s1 + $0x180] sm:$0xff]   ;;  %v3350_v32 = vld [vmem:[%s4587_s1 + $0x278] sm:$0xff]  }
  0x49   :  { %1665 = vmatmul.mubr.bf16.vlgmr.msra.gmra.mxu1 %v3267_v34  ;;  %2910 = vmatpush3.bf16.msra.mxu0 %v3271_v37  ;;  %v3349_v34 = vld [vmem:[%s4586_s0 + $0x1c] ss:$52 sps:$4 sm:$0xff]   ;;  %v3360_v47 = vld [vmem:[%s4586_s0 + $0xe4] ss:$52 sps:$4 sm:$0xff]  }
  0x4a   :  { %1575 = vmatprep.mubr.bf16.mxu0 %v3272_v38  ;;  %1672 = vmatprep.mubr.bf16.mxu1 %v3274_v39  ;;  %v3351_v37 = vld [vmem:[%s4587_s1 + $0x238] sm:$0xff]  }
  0x4b   :  { %2911 = vmatprep.subr.bf16.mxu0 %v3278_v42  ;;  %2974 = vmatpush3.bf16.msra.mxu1 %v3289_v50  ;;  %v3352_v38 = vld [vmem:[%s4586_s0 + $0x7c] ss:$52 sps:$4 sm:$0xff]   ;;  %v3354_v39 = vld [vmem:[%s4586_s0 + $0x84] ss:$52 sps:$4 sm:$0xff]  }
  0x4c   :  { %2975 = vmatprep.subr.bf16.mxu1 %v3297_v55  ;;  %v3359_v42 = vld [vmem:[%s4587_s1 + $0x230] sm:$0xff]   ;;  %v3365_v55 = vld [vmem:[%s4586_s0 + $0xe8] ss:$52 sps:$4 sm:$0xff]  }
  0x4d   :  { %2912 = vmatpush3.bf16.msra.mxu0 %v3279_v43  ;;  %v3369_v43 = vld [vmem:[%s4587_s1 + $0x2b8] sm:$0xff]   ;;  %v3377_v50 = vld [vmem:[%s4587_s1 + $0x2f0] sm:$0xff]  }
  0x4e   :  { %2913 = vmatprep.subr.bf16.mxu0 %v3286_v46  ;;  %v3357_v46 = vld [vmem:[%s4586_s0 + $0x80] ss:$52 sps:$4 sm:$0xff]  }
  0x4f   :  { %2976 = vmatpush3.bf16.msra.mxu1 %v3299_v57  ;;  %v3386_v57 = vld [vmem:[%s4587_s1 + $0x258] sm:$0xff]  }
  0x50   :  { %1576 = vmatmul.mubr.bf16.gmra.mxu0 %v3276_v40  ;;  %2977 = vmatprep.subr.bf16.mxu1 %v3307_v63  ;;  %v3358_v40 = vld [vmem:[%s4587_s1 + $0x270] sm:$0xff]  }
  0x51   :  { %1673 = vmatmul.mubr.bf16.gmra.mxu1 %v3277_v41  ;;  %1583 = vmatprep.mubr.bf16.mxu0 %v3280_v44  ;;  %v3367_v41 = vld [vmem:[%s4587_s1 + $0x2f8] sm:$0xff]   ;;  %v3366_v44 = vld [vmem:[%s4587_s1 + $0x268] sm:$0xff]   ;;  %v3396_v63 = vld [vmem:[%s4587_s1 + $0x250] sm:$0xff]  }
  0x52   :  { %1680 = vmatprep.mubr.bf16.mxu1 %v3282_v45  ;;  %2914 = vmatpush3.bf16.msra.mxu0 %v3288_v49  ;;  %v3356_v45 = vld [vmem:[%s4586_s0 + $0x78] ss:$52 sps:$4 sm:$0xff]  }
  0x53   :  { %2915 = vmatprep.subr.bf16.mxu0 %v3296_v54  ;;  %2978 = vmatpush3.bf16.msra.mxu1 %v3309_v1  ;;  %v3368_v49 = vld [vmem:[%s4587_s1 + $0x228] sm:$0xff]   ;;  %v3378_v54 = vld [vmem:[%s4587_s1 + $0x220] sm:$0xff]  }
  0x54   :  { %2979 = vmatprep.subr.bf16.mxu1 %v3317_v7  ;;  %v3380_v1 = vld [vmem:[%s4586_s0 + $0x1b4] ss:$52 sps:$4 sm:$0xff]   ;;  %v3407_v7 = vld [vmem:[%s4587_s1 + $0x2d8] sm:$0xff]  }
  0x56   :  { %2916 = vmatpush3.bf16.msra.mxu0 %v3298_v56  ;;  %v3370_v56 = vld [vmem:[%s4586_s0 + $0x14c] ss:$52 sps:$4 sm:$0xff]  }
  0x57   :  { %2917 = vmatprep.subr.bf16.mxu0 %v3306_v62  ;;  %2980 = vmatpush3.bf16.msra.mxu1 %v3319_v9  ;;  %v3374_v62 = vld [vmem:[%s4586_s0 + $0x148] ss:$52 sps:$4 sm:$0xff]  }
  0x58   :  { %1584 = vmatmul.mubr.bf16.gmra.mxu0 %v3284_v48  ;;  %2981 = vmatprep.subr.bf16.mxu1 %v3327_v15  ;;  %v3362_v48 = vld [vmem:[%s4586_s0 + $0xec] ss:$52 sps:$4 sm:$0xff]   ;;  %v3411_v15 = vld [vmem:[%s4587_s1 + $0x290] sm:$0xff]  }
  0x59   :  { %1681 = vmatmul.mubr.bf16.gmra.mxu1 %v3285_v51  ;;  %1591 = vmatprep.mubr.bf16.mxu0 %v3290_v52  ;;  %v3376_v51 = vld [vmem:[%s4587_s1 + $0x260] sm:$0xff]   ;;  %v3379_v52 = vld [vmem:[%s4587_s1 + $0x2b0] sm:$0xff]   ;;  %v3408_v9 = vld [vmem:[%s4587_s1 + $0x208] sm:$0xff]  }
  0x5a   :  { %1688 = vmatprep.mubr.bf16.mxu1 %v3292_v53  ;;  %2918 = vmatpush3.bf16.msra.mxu0 %v3308_v0  ;;  %v3364_v53 = vld [vmem:[%s4586_s0 + $0xe0] ss:$52 sps:$4 sm:$0xff]   ;;  %v3375_v0 = vld [vmem:[%s4586_s0 + $0x150] ss:$52 sps:$4 sm:$0xff]  }
  0x5b   :  { %2919 = vmatprep.subr.bf16.mxu0 %v3316_v6  ;;  %2982 = vmatpush3.bf16.msra.mxu1 %v3329_v17  ;;  %v3406_v6 = vld [vmem:[%s4587_s1 + $0x248] sm:$0xff]  }
  0x5c   :  { %2983 = vmatprep.subr.bf16.mxu1 %v3330_v18  ;;  %v3394_v17 = vld [vmem:[%s4586_s0 + $0x218] ss:$52 sps:$4 sm:$0xff]  }
  0x5d   :  { %v3419_v18 = vld [vmem:[%s4587_s1 + $0x2c8] sm:$0xff]  }
  0x5e   :  { %2920 = vmatpush3.bf16.msra.mxu0 %v3318_v8  ;;  %v3384_v8 = vld [vmem:[%s4586_s0 + $0x1b0] ss:$52 sps:$4 sm:$0xff]  }
  0x5f   :  { %2921 = vmatprep.subr.bf16.mxu0 %v3326_v13  ;;  %2984 = vmatpush3.bf16.msra.mxu1 %v3331_v19  ;;  %v3410_v13 = vld [vmem:[%s4587_s1 + $0x2d0] sm:$0xff]  }
  0x60   :  { %1592 = vmatmul.mubr.bf16.gmra.mxu0 %v3294_v58  ;;  %2985 = vmatprep.subr.bf16.mxu1 %v3339_v25  ;;  %v3372_v58 = vld [vmem:[%s4586_s0 + $0x154] ss:$52 sps:$4 sm:$0xff]   ;;  %v3423_v25 = vld [vmem:[%s4587_s1 + $0x280] sm:$0xff]  }
  0x61   :  { %1689 = vmatmul.mubr.bf16.gmra.mxu1 %v3295_v59  ;;  %1599 = vmatprep.mubr.bf16.mxu0 %v3300_v60  ;;  %v3387_v59 = vld [vmem:[%s4587_s1 + $0x2e8] sm:$0xff]   ;;  %v3388_v60 = vld [vmem:[%s4587_s1 + $0x218] sm:$0xff]   ;;  %v3395_v19 = vld [vmem:[%s4586_s0 + $0x220] ss:$52 sps:$4 sm:$0xff]  }
  0x62   :  { %1696 = vmatprep.mubr.bf16.mxu1 %v3302_v61  ;;  %2922 = vmatpush3.bf16.msra.mxu0 %v3328_v16  ;;  %v3389_v61 = vld [vmem:[%s4587_s1 + $0x2a8] sm:$0xff]   ;;  %v3418_v16 = vld [vmem:[%s4587_s1 + $0x240] sm:$0xff]  }
  0x63   :  { %2923 = vmatprep.subr.bf16.mxu0 %v3338_v24  ;;  %2986 = vmatpush3.bf16.msra.mxu1 %v3341_v27  ;;  %v3422_v24 = vld [vmem:[%s4587_s1 + $0x2c0] sm:$0xff]  }
  0x64   :  { %2987 = vmatprep.subr.bf16.mxu1 %v3342_v28  ;;  %v3404_v27 = vld [vmem:[%s4586_s0 + $0x280] ss:$52 sps:$4 sm:$0xff]   ;;  %v3405_v28 = vld [vmem:[%s4586_s0 + $0x288] ss:$52 sps:$4 sm:$0xff]  }
  0x66   :  { %2924 = vmatpush3.bf16.msra.mxu0 %v3340_v26  ;;  %v3430_v26 = vld [vmem:[%s4587_s1 + $0x338] sm:$0xff]  }
  0x67   :  { %3037 = vmatprep.subr.bf16.mxu0 %v3350_v32  ;;  %2988 = vmatpush3.bf16.msra.mxu1 %v3343_v31  ;;  %v3416_v31 = vld [vmem:[%s4586_s0 + $0x2e8] ss:$52 sps:$4 sm:$0xff]   ;;  %v3417_v32 = vld [vmem:[%s4586_s0 + $0x2f0] ss:$52 sps:$4 sm:$0xff]  }
  0x68   :  { %1600 = vmatmul.mubr.bf16.gmra.mxu0 %v3304_v2  ;;  %3101 = vmatprep.subr.bf16.mxu1 %v3367_v41  ;;  %v3397_v2 = vld [vmem:[%s4587_s1 + $0x2e0] sm:$0xff]   ;;  %v3435_v41 = vld [vmem:[%s4586_s0 + $0x88] ss:$52 sps:$4 sm:$0xff]  }
  0x69   :  { %1697 = vmatmul.mubr.bf16.gmra.mxu1 %v3305_v3  ;;  %1607 = vmatprep.mubr.bf16.mxu0 %v3310_v4  ;;  %v3398_v3 = vld [vmem:[%s4587_s1 + $0x210] sm:$0xff]   ;;  %v3399_v4 = vld [vmem:[%s4587_s1 + $0x2a0] sm:$0xff]  }
  0x6a   :  { %1704 = vmatprep.mubr.bf16.mxu1 %v3312_v5  ;;  %v3382_v5 = vld [vmem:[%s4586_s0 + $0x1bc] ss:$52 sps:$4 sm:$0xff]  }
  0x70   :  { %1608 = vmatmul.mubr.bf16.gmra.mxu0 %v3314_v10  ;;  %v3385_v10 = vld [vmem:[%s4586_s0 + $0x1b8] ss:$52 sps:$4 sm:$0xff]  }
  0x71   :  { %1705 = vmatmul.mubr.bf16.gmra.mxu1 %v3315_v11  ;;  %1615 = vmatprep.mubr.bf16.mxu0 %v3320_v12  ;;  %v3390_v11 = vld [vmem:[%s4586_s0 + $0x21c] ss:$52 sps:$4 sm:$0xff]  }
  0x72   :  { %1712 = vmatprep.mubr.bf16.mxu1 %v3322_v14  ;;  %v3409_v12 = vld [vmem:[%s4587_s1 + $0x298] sm:$0xff]  }
  0x73   :  { %v3392_v14 = vld [vmem:[%s4586_s0 + $0x224] ss:$52 sps:$4 sm:$0xff]  }
  0x78   :  { %1616 = vmatmul.mubr.bf16.gmra.mxu0 %v3324_v20  ;;  %v3400_v20 = vld [vmem:[%s4586_s0 + $0x284] ss:$52 sps:$4 sm:$0xff]  }
  0x79   :  { %1713 = vmatmul.mubr.bf16.gmra.mxu1 %v3325_v21  ;;  %1623 = vmatprep.mubr.bf16.mxu0 %v3332_v22  ;;  %v3420_v21 = vld [vmem:[%s4587_s1 + $0x200] sm:$0xff]  }
  0x7a   :  { %1720 = vmatprep.mubr.bf16.mxu1 %v3334_v23  ;;  %v3402_v22 = vld [vmem:[%s4586_s0 + $0x28c] ss:$52 sps:$4 sm:$0xff]  }
  0x7b   :  { %v3421_v23 = vld [vmem:[%s4587_s1 + $0x288] sm:$0xff]  }
  0x80   :  { %1624 = vmatmul.mubr.bf16.gmra.mxu0 %v3336_v29  ;;  %v3412_v29 = vld [vmem:[%s4586_s0 + $0x2ec] ss:$52 sps:$4 sm:$0xff]  }
  0x81   :  { %1721 = vmatmul.mubr.bf16.gmra.mxu1 %v3337_v30  ;;  %1761 = vmatprep.mubr.bf16.mxu0 %v3346_v33  ;;  %v3414_v30 = vld [vmem:[%s4586_s0 + $0x2f4] ss:$52 sps:$4 sm:$0xff]   ;;  %v3426_v33 = vld [vmem:[%s4586_s0 + $0x24] ss:$52 sps:$4 sm:$0xff]  }
  0x82   :  { %1858 = vmatprep.mubr.bf16.mxu1 %v3349_v34  ;;  %v3429_v34 = vld [vmem:[%s4586_s0 + $0x2c] ss:$52 sps:$4 sm:$0xff]  }
  0x88   :  { %1762 = vmatmul.mubr.bf16.vlgmr.msra.gmra.mxu0 %v3344_v35  ;;  %v3424_v35 = vld [vmem:[%s4586_s0 + $0x20] ss:$52 sps:$4 sm:$0xff]  }
  0x89   :  { %1859 = vmatmul.mubr.bf16.vlgmr.msra.gmra.mxu1 %v3347_v36  ;;  %3038 = vmatpush3.bf16.msra.mxu0 %v3351_v37  ;;  %v3427_v36 = vld [vmem:[%s4586_s0 + $0x28] ss:$52 sps:$4 sm:$0xff]   ;;  %v3431_v37 = vld [vmem:[%s4586_s0 + $0x8c] ss:$52 sps:$4 sm:$0xff]  }
  0x8a   :  { %1769 = vmatprep.mubr.bf16.mxu0 %v3352_v38  ;;  %1866 = vmatprep.mubr.bf16.mxu1 %v3354_v39  ;;  %v3433_v38 = vld [vmem:[%s4586_s0 + $0x94] ss:$52 sps:$4 sm:$0xff]  }
  0x8b   :  { %3039 = vmatprep.subr.bf16.mxu0 %v3358_v40  ;;  %3102 = vmatpush3.bf16.msra.mxu1 %v3369_v43  ;;  %v3437_v39 = vld [vmem:[%s4587_s1 + $0x330] sm:$0xff]   ;;  %v3444_v40 = vld [vmem:[%s4587_s1 + $0x328] sm:$0xff]  }
  0x8c   :  { %3103 = vmatprep.subr.bf16.mxu1 %v3377_v50  ;;  %v3438_v43 = vld [vmem:[%s4586_s0 + $0xf4] ss:$52 sps:$4 sm:$0xff]   ;;  %v3447_v50 = vld [vmem:[%s4586_s0 + $0x164] ss:$52 sps:$4 sm:$0xff]  }
  0x8d   :  { %3040 = vmatpush3.bf16.msra.mxu0 %v3359_v42  ;;  %v3436_v42 = vld [vmem:[%s4586_s0 + $0x90] ss:$52 sps:$4 sm:$0xff]  }
  0x8e   :  { %3041 = vmatprep.subr.bf16.mxu0 %v3366_v44  ;;  %v3440_v44 = vld [vmem:[%s4586_s0 + $0xfc] ss:$52 sps:$4 sm:$0xff]  }
  0x8f   :  { %3104 = vmatpush3.bf16.msra.mxu1 %v3379_v52  ;;  %v3472_v52 = vld [vmem:[%s4587_s1 + $0x308] sm:$0xff]  }
  0x90   :  { %1770 = vmatmul.mubr.bf16.gmra.mxu0 %v3356_v45  ;;  %3105 = vmatprep.subr.bf16.mxu1 %v3387_v59  ;;  %v3451_v45 = vld [vmem:[%s4587_s1 + $0x320] sm:$0xff]   ;;  %v3457_v59 = vld [vmem:[%s4586_s0 + $0x1c8] ss:$52 sps:$4 sm:$0xff]  }
  0x91   :  { %1867 = vmatmul.mubr.bf16.gmra.mxu1 %v3357_v46  ;;  %1777 = vmatprep.mubr.bf16.mxu0 %v3360_v47  ;;  %v3458_v46 = vld [vmem:[%s4587_s1 + $0x318] sm:$0xff]   ;;  %v3442_v47 = vld [vmem:[%s4586_s0 + $0xf0] ss:$52 sps:$4 sm:$0xff]  }
  0x92   :  { %1874 = vmatprep.mubr.bf16.mxu1 %v3362_v48  ;;  %3042 = vmatpush3.bf16.msra.mxu0 %v3368_v49  ;;  %v3443_v48 = vld [vmem:[%s4586_s0 + $0xf8] ss:$52 sps:$4 sm:$0xff]   ;;  %v3445_v49 = vld [vmem:[%s4586_s0 + $0x15c] ss:$52 sps:$4 sm:$0xff]  }
  0x93   :  { %3043 = vmatprep.subr.bf16.mxu0 %v3376_v51  ;;  %3106 = vmatpush3.bf16.msra.mxu1 %v3389_v61  ;;  %v3465_v51 = vld [vmem:[%s4587_s1 + $0x310] sm:$0xff]  }
  0x94   :  { %3107 = vmatprep.subr.bf16.mxu1 %v3397_v2  ;;  %v3461_v61 = vld [vmem:[%s4586_s0 + $0x234] ss:$52 sps:$4 sm:$0xff]   ;;  %v3470_v2 = vld [vmem:[%s4586_s0 + $0x290] ss:$52 sps:$4 sm:$0xff]  }
  0x96   :  { %3044 = vmatpush3.bf16.msra.mxu0 %v3378_v54  ;;  %v3450_v54 = vld [vmem:[%s4586_s0 + $0x160] ss:$52 sps:$4 sm:$0xff]  }
  0x97   :  { %3045 = vmatprep.subr.bf16.mxu0 %v3386_v57  ;;  %3108 = vmatpush3.bf16.msra.mxu1 %v3399_v4  ;;  %v3479_v57 = vld [vmem:[%s4587_s1 + $0x300] sm:$0xff]   ;;  %v3473_v4 = vld [vmem:[%s4586_s0 + $0x2fc] ss:$52 sps:$4 sm:$0xff]  }
  0x98   :  { %1778 = vmatmul.mubr.bf16.gmra.mxu0 %v3364_v53  ;;  %3109 = vmatprep.subr.bf16.mxu1 %v3407_v7  ;;  %v3449_v53 = vld [vmem:[%s4586_s0 + $0x158] ss:$52 sps:$4 sm:$0xff]   ;;  %v3478_v7 = vld [vmem:[%s4586_s0 + $0x300] ss:$52 sps:$4 sm:$0xff]  }
  0x99   :  { %1875 = vmatmul.mubr.bf16.gmra.mxu1 %v3365_v55  ;;  %1785 = vmatprep.mubr.bf16.mxu0 %v3370_v56  ;;  %v3452_v55 = vld [vmem:[%s4586_s0 + $0x1c4] ss:$52 sps:$4 sm:$0xff]   ;;  %v3454_v56 = vld [vmem:[%s4586_s0 + $0x1cc] ss:$52 sps:$4 sm:$0xff]  }
  0x9a   :  { %1882 = vmatprep.mubr.bf16.mxu1 %v3372_v58  ;;  %3046 = vmatpush3.bf16.msra.mxu0 %v3388_v60  ;;  %v3456_v58 = vld [vmem:[%s4586_s0 + $0x1c0] ss:$52 sps:$4 sm:$0xff]  }
  0x9b   :  { %3047 = vmatprep.subr.bf16.mxu0 %v3396_v63  ;;  %3110 = vmatpush3.bf16.msra.mxu1 %v3409_v12  ;;  %v3459_v60 = vld [vmem:[%s4586_s0 + $0x22c] ss:$52 sps:$4 sm:$0xff]   ;;  %v3464_v63 = vld [vmem:[%s4586_s0 + $0x230] ss:$52 sps:$4 sm:$0xff]  }
  0x9c   :  { %3111 = vmatprep.subr.bf16.mxu1 %v3410_v13  ;;  %v3484_v12 = vld [vmem:[%s4586_s0 + $0x100] ss:$52 sps:$4 sm:$0xff]  }
  0x9d   :  { %v3485_v13 = vld [vmem:[%s4586_s0 + $0x2a0] ss:$52 sps:$4 sm:$0xff]  }
  0x9e   :  { %3048 = vmatpush3.bf16.msra.mxu0 %v3398_v3  ;;  %v3471_v3 = vld [vmem:[%s4586_s0 + $0x298] ss:$52 sps:$4 sm:$0xff]  }
  0x9f   :  { %3049 = vmatprep.subr.bf16.mxu0 %v3406_v6  ;;  %3112 = vmatpush3.bf16.msra.mxu1 %v3411_v15  ;;  %v3477_v6 = vld [vmem:[%s4586_s0 + $0x2f8] ss:$52 sps:$4 sm:$0xff]  }
  0xa0   :  { %1786 = vmatmul.mubr.bf16.gmra.mxu0 %v3374_v62  ;;  %3113 = vmatprep.subr.bf16.mxu1 %v3419_v18  ;;  %v3463_v62 = vld [vmem:[%s4586_s0 + $0x228] ss:$52 sps:$4 sm:$0xff]  }
  0xa1   :  { %1883 = vmatmul.mubr.bf16.gmra.mxu1 %v3375_v0  ;;  %1793 = vmatprep.mubr.bf16.mxu0 %v3380_v1  ;;  %v3466_v0 = vld [vmem:[%s4586_s0 + $0x294] ss:$52 sps:$4 sm:$0xff]   ;;  %v3468_v1 = vld [vmem:[%s4586_s0 + $0x29c] ss:$52 sps:$4 sm:$0xff]  }
  0xa2   :  { %1890 = vmatprep.mubr.bf16.mxu1 %v3382_v5  ;;  %3050 = vmatpush3.bf16.msra.mxu0 %v3408_v9  ;;  %v3475_v5 = vld [vmem:[%s4586_s0 + $0x304] ss:$52 sps:$4 sm:$0xff]  }
  0xa3   :  { %3051 = vmatprep.subr.bf16.mxu0 %v3418_v16  ;;  %3114 = vmatpush3.bf16.msra.mxu1 %v3421_v23  ;;  %v3481_v9 = vld [vmem:[%s4586_s0 + $0x1d0] ss:$52 sps:$4 sm:$0xff]   ;;  %v4214_v16 = vld [vmem:[#allocation2] ss:$0 sm:$0xff] }
  0xa4   :  { %3115 = vmatprep.subr.bf16.mxu1 %v3422_v24 }
  0xa6   :  { %3052 = vmatpush3.bf16.msra.mxu0 %v3420_v21 }
  0xa7   :  { %3116 = vmatpush3.bf16.msra.mxu1 %v3423_v25  ;;  %3181 = vmatprep.subr.bf16.mxu0 %v3430_v26  ;;  %v3487_v25 = vld [vmem:[%s4586_s0 + $0x308] ss:$52 sps:$4 sm:$0xff]  }
  0xa8   :  { %1794 = vmatmul.mubr.bf16.gmra.mxu0 %v3384_v8  ;;  %3213 = vmatprep.subr.bf16.mxu1 %v3430_v26  ;;  %v3480_v8 = vld [vmem:[%s4586_s0 + $0x30] ss:$52 sps:$4 sm:$0xff]  }
  0xa9   :  { %1891 = vmatmul.mubr.bf16.gmra.mxu1 %v3385_v10  ;;  %1801 = vmatprep.mubr.bf16.mxu0 %v3390_v11  ;;  %v3482_v10 = vld [vmem:[%s4586_s0 + $0x98] ss:$52 sps:$4 sm:$0xff]  }
  0xaa   :  { %1898 = vmatprep.mubr.bf16.mxu1 %v3392_v14  ;;  %v3483_v11 = vld [vmem:[%s4586_s0 + $0x238] ss:$52 sps:$4 sm:$0xff]  }
  0xb0   :  { %1802 = vmatmul.mubr.bf16.gmra.mxu0 %v3394_v17 }
  0xb1   :  { %1899 = vmatmul.mubr.bf16.gmra.mxu1 %v3395_v19  ;;  %1809 = vmatprep.mubr.bf16.mxu0 %v3400_v20 }
  0xb2   :  { %1906 = vmatprep.mubr.bf16.mxu1 %v3402_v22  ;;  %v3486_v22 = vld [vmem:[%s4586_s0 + $0x168] ss:$52 sps:$4 sm:$0xff]  }
  0xb8   :  { %1810 = vmatmul.mubr.bf16.gmra.mxu0 %v3404_v27 }
  0xb9   :  { %1907 = vmatmul.mubr.bf16.gmra.mxu1 %v3405_v28  ;;  %1817 = vmatprep.mubr.bf16.mxu0 %v3412_v29 }
  0xba   :  { %1914 = vmatprep.mubr.bf16.mxu1 %v3414_v30 }
  0xc0   :  { %1818 = vmatmul.mubr.bf16.gmra.mxu0 %v3416_v31 }
  0xc1   :  { %1915 = vmatmul.mubr.bf16.gmra.mxu1 %v3417_v32  ;;  %1955 = vmatprep.mubr.bf16.mxu0 %v3426_v33 }
  0xc2   :  { %2052 = vmatprep.mubr.bf16.mxu1 %v3429_v34 }
  0xc8   :  { %1956 = vmatmul.mubr.bf16.vlgmr.msra.gmra.mxu0 %v3424_v35 }
  0xc9   :  { %2053 = vmatmul.mubr.bf16.vlgmr.msra.gmra.mxu1 %v3427_v36  ;;  %3182 = vmatpush3.bf16.msra.mxu0 %v3430_v26 }
  0xca   :  { %1963 = vmatprep.mubr.bf16.mxu0 %v3431_v37  ;;  %2060 = vmatprep.mubr.bf16.mxu1 %v3433_v38 }
  0xcb   :  { %3183 = vmatprep.subr.bf16.mxu0 %v3437_v39  ;;  %3221 = vmatpush3.bf16.msra.mxu1 %v3430_v26 }
  0xcc   :  { %3214 = vmatprep.subr.bf16.mxu1 %v3437_v39 }
  0xcd   :  { %3184 = vmatpush3.bf16.msra.mxu0 %v3437_v39 }
  0xce   :  { %3185 = vmatprep.subr.bf16.mxu0 %v3444_v40 }
  0xcf   :  { %3222 = vmatpush3.bf16.msra.mxu1 %v3437_v39 }
  0xd0   :  { %1964 = vmatmul.mubr.bf16.gmra.mxu0 %v3435_v41  ;;  %3215 = vmatprep.subr.bf16.mxu1 %v3444_v40 }
  0xd1   :  { %2061 = vmatmul.mubr.bf16.gmra.mxu1 %v3436_v42  ;;  %1971 = vmatprep.mubr.bf16.mxu0 %v3438_v43 }
  0xd2   :  { %2068 = vmatprep.mubr.bf16.mxu1 %v3440_v44  ;;  %3186 = vmatpush3.bf16.msra.mxu0 %v3444_v40 }
  0xd3   :  { %3187 = vmatprep.subr.bf16.mxu0 %v3451_v45  ;;  %3223 = vmatpush3.bf16.msra.mxu1 %v3444_v40 }
  0xd4   :  { %3216 = vmatprep.subr.bf16.mxu1 %v3451_v45 }
  0xd6   :  { %3188 = vmatpush3.bf16.msra.mxu0 %v3451_v45 }
  0xd7   :  { %3189 = vmatprep.subr.bf16.mxu0 %v3458_v46  ;;  %3224 = vmatpush3.bf16.msra.mxu1 %v3451_v45 }
  0xd8   :  { %1972 = vmatmul.mubr.bf16.gmra.mxu0 %v3442_v47  ;;  %3217 = vmatprep.subr.bf16.mxu1 %v3458_v46 }
  0xd9   :  { %2069 = vmatmul.mubr.bf16.gmra.mxu1 %v3443_v48  ;;  %1979 = vmatprep.mubr.bf16.mxu0 %v3445_v49 }
  0xda   :  { %2076 = vmatprep.mubr.bf16.mxu1 %v3447_v50  ;;  %3190 = vmatpush3.bf16.msra.mxu0 %v3458_v46 }
  0xdb   :  { %3191 = vmatprep.subr.bf16.mxu0 %v3465_v51  ;;  %3225 = vmatpush3.bf16.msra.mxu1 %v3458_v46 }
  0xdc   :  { %3218 = vmatprep.subr.bf16.mxu1 %v3465_v51 }
  0xde   :  { %3192 = vmatpush3.bf16.msra.mxu0 %v3465_v51 }
  0xdf   :  { %3193 = vmatprep.subr.bf16.mxu0 %v3472_v52  ;;  %3226 = vmatpush3.bf16.msra.mxu1 %v3465_v51 }
  0xe0   :  { %1980 = vmatmul.mubr.bf16.gmra.mxu0 %v3449_v53  ;;  %3219 = vmatprep.subr.bf16.mxu1 %v3472_v52 }
  0xe1   :  { %2077 = vmatmul.mubr.bf16.gmra.mxu1 %v3450_v54  ;;  %1987 = vmatprep.mubr.bf16.mxu0 %v3452_v55 }
  0xe2   :  { %2084 = vmatprep.mubr.bf16.mxu1 %v3454_v56  ;;  %3194 = vmatpush3.bf16.msra.mxu0 %v3472_v52 }
  0xe3   :  { %3195 = vmatprep.subr.bf16.mxu0 %v3479_v57  ;;  %3227 = vmatpush3.bf16.msra.mxu1 %v3472_v52 }
  0xe4   :  { %3220 = vmatprep.subr.bf16.mxu1 %v3479_v57 }
  0xe6   :  { %3196 = vmatpush3.bf16.msra.mxu0 %v3479_v57 }
  0xe7   :  { %3228 = vmatpush3.bf16.msra.mxu1 %v3479_v57 }
  0xe8   :  { %1988 = vmatmul.mubr.bf16.gmra.mxu0 %v3456_v58 }
  0xe9   :  { %2085 = vmatmul.mubr.bf16.gmra.mxu1 %v3457_v59  ;;  %1995 = vmatprep.mubr.bf16.mxu0 %v3459_v60 }
  0xea   :  { %2092 = vmatprep.mubr.bf16.mxu1 %v3461_v61 }
  0xf0   :  { %1996 = vmatmul.mubr.bf16.gmra.mxu0 %v3463_v62 }
  0xf1   :  { %2093 = vmatmul.mubr.bf16.gmra.mxu1 %v3464_v63  ;;  %2003 = vmatprep.mubr.bf16.mxu0 %v3466_v0 }
  0xf2   :  { %2100 = vmatprep.mubr.bf16.mxu1 %v3468_v1 }
  0xf8   :  { %2004 = vmatmul.mubr.bf16.gmra.mxu0 %v3470_v2 }
  0xf9   :  { %2101 = vmatmul.mubr.bf16.gmra.mxu1 %v3471_v3  ;;  %2011 = vmatprep.mubr.bf16.mxu0 %v3473_v4 }
  0xfa   :  { %2108 = vmatprep.mubr.bf16.mxu1 %v3475_v5 }
 0x100   :  { %2012 = vmatmul.mubr.bf16.gmra.mxu0 %v3477_v6 }
 0x101   :  { %2109 = vmatmul.mubr.bf16.gmra.mxu1 %v3478_v7  ;;  %3197 = vmatprep.mubr.bf16.mxu0 %v3480_v8 }
 0x102   :  { %3205 = vmatprep.mubr.bf16.mxu1 %v3481_v9 }
 0x108   :  { %v2797_v14 = vpop.f32.mrf.mxu0  ;;  %3198 = vmatmul.mubr.bf16.vlgmr.msra.gmra.mxu0 %v3482_v10 }
 0x109   :  { %v2861_v15 = vpop.f32.mrf.mxu1  ;;  %3206 = vmatmul.mubr.bf16.vlgmr.msra.gmra.mxu1 %v3483_v11  ;;  %3201 = vmatprep.mubr.bf16.mxu0 %v3484_v12 }
 0x10a   :  { %v2798_v17 = vpop.f32.mrf.mxu0  ;;  %3209 = vmatprep.mubr.bf16.mxu1 %v3485_v13 }
 0x10b   :  { %v2799_v18 = vadd.f32 %v2798_v17, %v2797_v14  ;;  %v2862_v19 = vpop.f32.mrf.mxu1 }
 0x10c   :  { %v2863_v20 = vadd.f32 %v2862_v19, %v2861_v15  ;;  %v2800_v21 = vpop.f32.mrf.mxu0 }
 0x10d   :  { %v1570_v23 = vadd.f32 %v2799_v18, %v4214_v16  ;;  %v2864_v24 = vpop.f32.mrf.mxu1 }
 0x10e   :  { %v2801_v26 = vpop.f32.mrf.mxu0 }
 0x10f   :  { %v4223_v27 = vadd.f32 %v2863_v20, %v1570_v23  ;;  %v2802_v28 = vadd.f32 %v2801_v26, %v2800_v21  ;;  %v2865_v29 = vpop.f32.mrf.mxu1 }
 0x110   :  { %v2866_v30 = vadd.f32 %v2865_v29, %v2864_v24  ;;  %v2803_v31 = vpop.f32.mrf.mxu0  ;;  %3202 = vmatmul.mubr.bf16.gmra.mxu0 %v3486_v22 }
 0x111   :  { %v1573_v32 = vadd.f32 %v2802_v28, %v4214_v16  ;;  %v2867_v33 = vpop.f32.mrf.mxu1  ;;  %3210 = vmatmul.mubr.bf16.gmra.mxu1 %v3487_v25 }
 0x112   :  { %v2804_v34 = vpop.f32.mrf.mxu0 }
 0x113   :  { %v4226_v35 = vadd.f32 %v2866_v30, %v1573_v32  ;;  %v2805_v36 = vadd.f32 %v2804_v34, %v2803_v31  ;;  %v2868_v37 = vpop.f32.mrf.mxu1 }
 0x114   :  { %v2869_v38 = vadd.f32 %v2868_v37, %v2867_v33  ;;  %v2806_v39 = vpop.f32.mrf.mxu0 }
 0x115   :  { %v1578_v40 = vadd.f32 %v2805_v36, %v4214_v16  ;;  %v2870_v41 = vpop.f32.mrf.mxu1 }
 0x116   :  { %v2807_v42 = vpop.f32.mrf.mxu0 }
 0x117   :  { %v4229_v43 = vadd.f32 %v2869_v38, %v1578_v40  ;;  %v2808_v44 = vadd.f32 %v2807_v42, %v2806_v39  ;;  %v2871_v45 = vpop.f32.mrf.mxu1 }
 0x118   :  { %v2872_v46 = vadd.f32 %v2871_v45, %v2870_v41  ;;  %v2809_v47 = vpop.f32.mrf.mxu0 }
 0x119   :  { %v1581_v48 = vadd.f32 %v2808_v44, %v4214_v16  ;;  %v2873_v49 = vpop.f32.mrf.mxu1 }
 0x11a   :  { %v2810_v50 = vpop.f32.mrf.mxu0 }
 0x11b   :  { %v4232_v51 = vadd.f32 %v2872_v46, %v1581_v48  ;;  %v2811_v52 = vadd.f32 %v2810_v50, %v2809_v47  ;;  %v2874_v53 = vpop.f32.mrf.mxu1 }
 0x11c   :  { %v2875_v54 = vadd.f32 %v2874_v53, %v2873_v49  ;;  %v2812_v55 = vpop.f32.mrf.mxu0 }
 0x11d   :  { %v1586_v56 = vadd.f32 %v2811_v52, %v4214_v16  ;;  %v2876_v57 = vpop.f32.mrf.mxu1 }
 0x11e   :  { %v2813_v58 = vpop.f32.mrf.mxu0 }
 0x11f   :  { %v4235_v59 = vadd.f32 %v2875_v54, %v1586_v56  ;;  %v2814_v60 = vadd.f32 %v2813_v58, %v2812_v55  ;;  %v2877_v61 = vpop.f32.mrf.mxu1 }
 0x120   :  { %v2878_v62 = vadd.f32 %v2877_v61, %v2876_v57  ;;  %v2815_v63 = vpop.f32.mrf.mxu0 }
 0x121   :  { %v1589_v0 = vadd.f32 %v2814_v60, %v4214_v16  ;;  %v2879_v1 = vpop.f32.mrf.mxu1 }
 0x122   :  { %v2816_v2 = vpop.f32.mrf.mxu0 }
 0x123   :  { %v4238_v3 = vadd.f32 %v2878_v62, %v1589_v0  ;;  %v2817_v4 = vadd.f32 %v2816_v2, %v2815_v63  ;;  %v2880_v5 = vpop.f32.mrf.mxu1 }
 0x124   :  { %v2881_v6 = vadd.f32 %v2880_v5, %v2879_v1  ;;  %v2818_v7 = vpop.f32.mrf.mxu0 }
 0x125   :  { %v1594_v8 = vadd.f32 %v2817_v4, %v4214_v16  ;;  %v2882_v9 = vpop.f32.mrf.mxu1 }
 0x126   :  { %v2819_v10 = vpop.f32.mrf.mxu0 }
 0x127   :  { %v4241_v11 = vadd.f32 %v2881_v6, %v1594_v8  ;;  %v2820_v12 = vadd.f32 %v2819_v10, %v2818_v7  ;;  %v2883_v13 = vpop.f32.mrf.mxu1 }
 0x128   :  { %v2884_v14 = vadd.f32 %v2883_v13, %v2882_v9  ;;  %v2821_v15 = vpop.f32.mrf.mxu0 }
 0x129   :  { %v1597_v17 = vadd.f32 %v2820_v12, %v4214_v16  ;;  %v2885_v18 = vpop.f32.mrf.mxu1 }
 0x12a   :  { %v2822_v19 = vpop.f32.mrf.mxu0 }
 0x12b   :  { %v4244_v20 = vadd.f32 %v2884_v14, %v1597_v17  ;;  %v2823_v21 = vadd.f32 %v2822_v19, %v2821_v15  ;;  %v2886_v22 = vpop.f32.mrf.mxu1 }
 0x12c   :  { %v2887_v23 = vadd.f32 %v2886_v22, %v2885_v18  ;;  %v2824_v24 = vpop.f32.mrf.mxu0 }
 0x12d   :  { %v1602_v25 = vadd.f32 %v2823_v21, %v4214_v16  ;;  %v2888_v26 = vpop.f32.mrf.mxu1 }
 0x12e   :  { %v2825_v28 = vpop.f32.mrf.mxu0 }
 0x12f   :  { %v4247_v29 = vadd.f32 %v2887_v23, %v1602_v25  ;;  %v2826_v30 = vadd.f32 %v2825_v28, %v2824_v24  ;;  %v2889_v31 = vpop.f32.mrf.mxu1 }
 0x130   :  { %v2890_v32 = vadd.f32 %v2889_v31, %v2888_v26  ;;  %v2827_v33 = vpop.f32.mrf.mxu0 }
 0x131   :  { %v1605_v34 = vadd.f32 %v2826_v30, %v4214_v16  ;;  %v2891_v36 = vpop.f32.mrf.mxu1 }
 0x132   :  { %v2828_v37 = vpop.f32.mrf.mxu0 }
 0x133   :  { %v4250_v38 = vadd.f32 %v2890_v32, %v1605_v34  ;;  %v2829_v39 = vadd.f32 %v2828_v37, %v2827_v33  ;;  %v2892_v40 = vpop.f32.mrf.mxu1 }
 0x134   :  { %v2893_v41 = vadd.f32 %v2892_v40, %v2891_v36  ;;  %v2830_v42 = vpop.f32.mrf.mxu0 }
 0x135   :  { %v1610_v44 = vadd.f32 %v2829_v39, %v4214_v16  ;;  %v2894_v45 = vpop.f32.mrf.mxu1 }
 0x136   :  { %v2831_v46 = vpop.f32.mrf.mxu0 }
 0x137   :  { %v4253_v47 = vadd.f32 %v2893_v41, %v1610_v44  ;;  %v2832_v48 = vadd.f32 %v2831_v46, %v2830_v42  ;;  %v2895_v49 = vpop.f32.mrf.mxu1 }
 0x138   :  { %v2896_v50 = vadd.f32 %v2895_v49, %v2894_v45  ;;  %v2833_v52 = vpop.f32.mrf.mxu0 }
 0x139   :  { %v1613_v53 = vadd.f32 %v2832_v48, %v4214_v16  ;;  %v2897_v54 = vpop.f32.mrf.mxu1 }
 0x13a   :  { %v2834_v55 = vpop.f32.mrf.mxu0 }
 0x13b   :  { %v4256_v56 = vadd.f32 %v2896_v50, %v1613_v53  ;;  %v2835_v57 = vadd.f32 %v2834_v55, %v2833_v52  ;;  %v2898_v58 = vpop.f32.mrf.mxu1 }
 0x13c   :  { %v2899_v60 = vadd.f32 %v2898_v58, %v2897_v54  ;;  %v2836_v61 = vpop.f32.mrf.mxu0 }
 0x13d   :  { %v1618_v62 = vadd.f32 %v2835_v57, %v4214_v16  ;;  %v2900_v63 = vpop.f32.mrf.mxu1 }
 0x13e   :  { %v2837_v0 = vpop.f32.mrf.mxu0 }
 0x13f   :  { %v4259_v1 = vadd.f32 %v2899_v60, %v1618_v62  ;;  %v2838_v2 = vadd.f32 %v2837_v0, %v2836_v61  ;;  %v2901_v4 = vpop.f32.mrf.mxu1 }
 0x140   :  { %v2902_v5 = vadd.f32 %v2901_v4, %v2900_v63  ;;  %v2839_v6 = vpop.f32.mrf.mxu0 }
 0x141   :  { %v1621_v7 = vadd.f32 %v2838_v2, %v4214_v16  ;;  %v2903_v8 = vpop.f32.mrf.mxu1 }
 0x142   :  { %v2840_v9 = vpop.f32.mrf.mxu0 }
 0x143   :  { %v4262_v10 = vadd.f32 %v2902_v5, %v1621_v7  ;;  %v2841_v12 = vadd.f32 %v2840_v9, %v2839_v6  ;;  %v2904_v13 = vpop.f32.mrf.mxu1 }
 0x144   :  { %v2905_v14 = vadd.f32 %v2904_v13, %v2903_v8  ;;  %v2842_v15 = vpop.f32.mrf.mxu0 }
 0x145   :  { %v1626_v17 = vadd.f32 %v2841_v12, %v4214_v16  ;;  %v2906_v18 = vpop.f32.mrf.mxu1 }
 0x146   :  { %v2843_v19 = vpop.f32.mrf.mxu0 }
 0x147   :  { %v4265_v21 = vadd.f32 %v2905_v14, %v1626_v17  ;;  %v2844_v22 = vadd.f32 %v2843_v19, %v2842_v15  ;;  %v2907_v23 = vpop.f32.mrf.mxu1 }
 0x148   :  { %v2908_v24 = vadd.f32 %v2907_v23, %v2906_v18  ;;  %v2925_v25 = vpop.f32.mrf.mxu0 }
 0x149   :  { %v1629_v26 = vadd.f32 %v2844_v22, %v4214_v16  ;;  %v2989_v28 = vpop.f32.mrf.mxu1 }
 0x14a   :  { %v2926_v30 = vpop.f32.mrf.mxu0 }
 0x14b   :  { %v4268_v31 = vadd.f32 %v2908_v24, %v1629_v26  ;;  %v2927_v32 = vadd.f32 %v2926_v30, %v2925_v25  ;;  %v2990_v33 = vpop.f32.mrf.mxu1 }
 0x14c   :  { %v2991_v34 = vadd.f32 %v2990_v33, %v2989_v28  ;;  %v2928_v36 = vpop.f32.mrf.mxu0 }
 0x14d   :  { %v1764_v37 = vadd.f32 %v2927_v32, %v4223_v27  ;;  %v2992_v39 = vpop.f32.mrf.mxu1 }
 0x14e   :  { %v2929_v40 = vpop.f32.mrf.mxu0 }
 0x14f   :  { %v4271_v41 = vadd.f32 %v2991_v34, %v1764_v37  ;;  %v2930_v42 = vadd.f32 %v2929_v40, %v2928_v36  ;;  %v2993_v44 = vpop.f32.mrf.mxu1 }
 0x150   :  { %v2994_v45 = vadd.f32 %v2993_v44, %v2992_v39  ;;  %v2931_v46 = vpop.f32.mrf.mxu0 }
 0x151   :  { %v1767_v16 = vadd.f32 %v2930_v42, %v4226_v35  ;;  %v2995_v48 = vpop.f32.mrf.mxu1 }
 0x152   :  { %v2932_v49 = vpop.f32.mrf.mxu0 }
 0x153   :  { %v4274_v50 = vadd.f32 %v2994_v45, %v1767_v16  ;;  %v2933_v52 = vadd.f32 %v2932_v49, %v2931_v46  ;;  %v2996_v53 = vpop.f32.mrf.mxu1 }
 0x154   :  { %v2997_v54 = vadd.f32 %v2996_v53, %v2995_v48  ;;  %v2934_v55 = vpop.f32.mrf.mxu0 }
 0x155   :  { %v1772_v27 = vadd.f32 %v2933_v52, %v4229_v43  ;;  %v2998_v57 = vpop.f32.mrf.mxu1 }
 0x156   :  { %v2935_v58 = vpop.f32.mrf.mxu0 }
 0x157   :  { %v4277_v60 = vadd.f32 %v2997_v54, %v1772_v27  ;;  %v2936_v61 = vadd.f32 %v2935_v58, %v2934_v55  ;;  %v2999_v62 = vpop.f32.mrf.mxu1 }
 0x158   :  { %v3000_v63 = vadd.f32 %v2999_v62, %v2998_v57  ;;  %v2937_v0 = vpop.f32.mrf.mxu0 }
 0x159   :  { %v1775_v35 = vadd.f32 %v2936_v61, %v4232_v51  ;;  %v3001_v2 = vpop.f32.mrf.mxu1 }
 0x15a   :  { %v2938_v4 = vpop.f32.mrf.mxu0 }
 0x15b   :  { %v4280_v5 = vadd.f32 %v3000_v63, %v1775_v35  ;;  %v2939_v6 = vadd.f32 %v2938_v4, %v2937_v0  ;;  %v3002_v7 = vpop.f32.mrf.mxu1 }
 0x15c   :  { %v3003_v8 = vadd.f32 %v3002_v7, %v3001_v2  ;;  %v2940_v9 = vpop.f32.mrf.mxu0 }
 0x15d   :  { %v1780_v43 = vadd.f32 %v2939_v6, %v4235_v59  ;;  %v3004_v12 = vpop.f32.mrf.mxu1 }
 0x15e   :  { %v2941_v13 = vpop.f32.mrf.mxu0 }
 0x15f   :  { %v4283_v14 = vadd.f32 %v3003_v8, %v1780_v43  ;;  %v2942_v15 = vadd.f32 %v2941_v13, %v2940_v9  ;;  %v3005_v17 = vpop.f32.mrf.mxu1 }
 0x160   :  { %v3006_v18 = vadd.f32 %v3005_v17, %v3004_v12  ;;  %v2943_v19 = vpop.f32.mrf.mxu0 }
 0x161   :  { %v1783_v51 = vadd.f32 %v2942_v15, %v4238_v3  ;;  %v3007_v22 = vpop.f32.mrf.mxu1 }
 0x162   :  { %v2944_v23 = vpop.f32.mrf.mxu0 }
 0x163   :  { %v4286_v24 = vadd.f32 %v3006_v18, %v1783_v51  ;;  %v2945_v25 = vadd.f32 %v2944_v23, %v2943_v19  ;;  %v3008_v26 = vpop.f32.mrf.mxu1 }
 0x164   :  { %v3009_v28 = vadd.f32 %v3008_v26, %v3007_v22  ;;  %v2946_v30 = vpop.f32.mrf.mxu0 }
 0x165   :  { %v1788_v59 = vadd.f32 %v2945_v25, %v4241_v11  ;;  %v3010_v32 = vpop.f32.mrf.mxu1 }
 0x166   :  { %v2947_v33 = vpop.f32.mrf.mxu0 }
 0x167   :  { %v4289_v34 = vadd.f32 %v3009_v28, %v1788_v59  ;;  %v2948_v36 = vadd.f32 %v2947_v33, %v2946_v30  ;;  %v3011_v37 = vpop.f32.mrf.mxu1 }
 0x168   :  { %v3012_v39 = vadd.f32 %v3011_v37, %v3010_v32  ;;  %v2949_v40 = vpop.f32.mrf.mxu0 }
 0x169   :  { %v1791_v3 = vadd.f32 %v2948_v36, %v4244_v20  ;;  %v3013_v42 = vpop.f32.mrf.mxu1 }
 0x16a   :  { %v2950_v44 = vpop.f32.mrf.mxu0 }
 0x16b   :  { %v4292_v45 = vadd.f32 %v3012_v39, %v1791_v3  ;;  %v2951_v46 = vadd.f32 %v2950_v44, %v2949_v40  ;;  %v3014_v16 = vpop.f32.mrf.mxu1 }
 0x16c   :  { %v3015_v48 = vadd.f32 %v3014_v16, %v3013_v42  ;;  %v2952_v49 = vpop.f32.mrf.mxu0 }
 0x16d   :  { %v1796_v11 = vadd.f32 %v2951_v46, %v4247_v29  ;;  %v3016_v52 = vpop.f32.mrf.mxu1 }
 0x16e   :  { %v2953_v53 = vpop.f32.mrf.mxu0 }
 0x16f   :  { %v4295_v54 = vadd.f32 %v3015_v48, %v1796_v11  ;;  %v2954_v55 = vadd.f32 %v2953_v53, %v2952_v49  ;;  %v3017_v27 = vpop.f32.mrf.mxu1 }
 0x170   :  { %v3018_v57 = vadd.f32 %v3017_v27, %v3016_v52  ;;  %v2955_v58 = vpop.f32.mrf.mxu0 }
 0x171   :  { %v1799_v20 = vadd.f32 %v2954_v55, %v4250_v38  ;;  %v3019_v61 = vpop.f32.mrf.mxu1 }
 0x172   :  { %v2956_v62 = vpop.f32.mrf.mxu0 }
 0x173   :  { %v4298_v63 = vadd.f32 %v3018_v57, %v1799_v20  ;;  %v2957_v0 = vadd.f32 %v2956_v62, %v2955_v58  ;;  %v3020_v35 = vpop.f32.mrf.mxu1 }
 0x174   :  { %v3021_v2 = vadd.f32 %v3020_v35, %v3019_v61  ;;  %v2958_v4 = vpop.f32.mrf.mxu0 }
 0x175   :  { %v1804_v29 = vadd.f32 %v2957_v0, %v4253_v47  ;;  %v3022_v6 = vpop.f32.mrf.mxu1 }
 0x176   :  { %v2959_v7 = vpop.f32.mrf.mxu0 }
 0x177   :  { %v4301_v8 = vadd.f32 %v3021_v2, %v1804_v29  ;;  %v2960_v9 = vadd.f32 %v2959_v7, %v2958_v4  ;;  %v3023_v43 = vpop.f32.mrf.mxu1 }
 0x178   :  { %v3024_v12 = vadd.f32 %v3023_v43, %v3022_v6  ;;  %v2961_v13 = vpop.f32.mrf.mxu0 }
 0x179   :  { %4592 = vst [vmem:[#allocation9_spill] sm:$0xff] %v4301_v8  ;;  %v1807_v38 = vadd.f32 %v2960_v9, %v4256_v56  ;;  %v3025_v15 = vpop.f32.mrf.mxu1 }
 0x17a   :  { %v2962_v17 = vpop.f32.mrf.mxu0 }
 0x17b   :  { %v4304_v18 = vadd.f32 %v3024_v12, %v1807_v38  ;;  %v2963_v19 = vadd.f32 %v2962_v17, %v2961_v13  ;;  %v3026_v51 = vpop.f32.mrf.mxu1 }
 0x17c   :  { %v3027_v22 = vadd.f32 %v3026_v51, %v3025_v15  ;;  %v2964_v23 = vpop.f32.mrf.mxu0 }
 0x17d   :  { %4593 = vst [vmem:[#allocation10_spill] sm:$0xff] %v4304_v18  ;;  %v1812_v47 = vadd.f32 %v2963_v19, %v4259_v1  ;;  %v3028_v25 = vpop.f32.mrf.mxu1 }
 0x17e   :  { %v2965_v26 = vpop.f32.mrf.mxu0 }
 0x17f   :  { %v4307_v28 = vadd.f32 %v3027_v22, %v1812_v47  ;;  %v2966_v30 = vadd.f32 %v2965_v26, %v2964_v23  ;;  %v3029_v59 = vpop.f32.mrf.mxu1 }
 0x180   :  { %v3030_v32 = vadd.f32 %v3029_v59, %v3028_v25  ;;  %v2967_v33 = vpop.f32.mrf.mxu0 }
 0x181   :  { %4594 = vst [vmem:[#allocation11_spill] sm:$0xff] %v4307_v28  ;;  %v1815_v56 = vadd.f32 %v2966_v30, %v4262_v10  ;;  %v3031_v36 = vpop.f32.mrf.mxu1 }
 0x182   :  { %v2968_v37 = vpop.f32.mrf.mxu0 }
 0x183   :  { %v4310_v39 = vadd.f32 %v3030_v32, %v1815_v56  ;;  %v2969_v40 = vadd.f32 %v2968_v37, %v2967_v33  ;;  %v3032_v3 = vpop.f32.mrf.mxu1 }
 0x184   :  { %v3033_v42 = vadd.f32 %v3032_v3, %v3031_v36  ;;  %v2970_v44 = vpop.f32.mrf.mxu0 }
 0x185   :  { %4595 = vst [vmem:[#allocation12_spill] sm:$0xff] %v4310_v39  ;;  %v1820_v1 = vadd.f32 %v2969_v40, %v4265_v21  ;;  %v3034_v46 = vpop.f32.mrf.mxu1 }
 0x186   :  { %v2971_v16 = vpop.f32.mrf.mxu0 }
 0x187   :  { %v4313_v48 = vadd.f32 %v3033_v42, %v1820_v1  ;;  %v2972_v49 = vadd.f32 %v2971_v16, %v2970_v44  ;;  %v3035_v11 = vpop.f32.mrf.mxu1 }
 0x188   :  { %v3036_v52 = vadd.f32 %v3035_v11, %v3034_v46  ;;  %v3053_v53 = vpop.f32.mrf.mxu0 }
 0x189   :  { %4596 = vst [vmem:[#allocation13_spill] sm:$0xff] %v4313_v48  ;;  %v1823_v10 = vadd.f32 %v2972_v49, %v4268_v31  ;;  %v4316_v55 = vpop.f32.mrf.mxu1 }
 0x18a   :  { %v3054_v27 = vpop.f32.mrf.mxu0 }
 0x18b   :  { %v4318_v57 = vadd.f32 %v3036_v52, %v1823_v10  ;;  %v3055_v58 = vadd.f32 %v3054_v27, %v3053_v53  ;;  %v3118_v20 = vpop.f32.mrf.mxu1 }
 0x18c   :  { %v3056_v61 = vpop.f32.mrf.mxu0 }
 0x18d   :  { %4597 = vst [vmem:[#allocation14_spill] sm:$0xff] %v4318_v57  ;;  %v4321_v21 = vadd.f32 %v3055_v58, %v4271_v41  ;;  %v4323_v62 = vpop.f32.mrf.mxu1 }
 0x18e   :  { %v3057_v0 = vpop.f32.mrf.mxu0 }
 0x18f   :  { %v4325_v35 = vpop.f32.mrf.mxu1 }
 0x190   :  { %v3059_v2 = vpop.f32.mrf.mxu0 }
 0x191   :  { %v3123_v4 = vpop.f32.mrf.mxu1 }
 0x192   :  { %v3060_v29 = vpop.f32.mrf.mxu0 }
 0x193   :  { %v3124_v31 = vpop.f32.mrf.mxu1 }
 0x194   :  { %v3062_v6 = vpop.f32.mrf.mxu0 }
 0x195   :  { %v3126_v7 = vpop.f32.mrf.mxu1 }
 0x196   :  { %v3063_v9 = vpop.f32.mrf.mxu0 }
 0x197   :  { %v3127_v43 = vpop.f32.mrf.mxu1 }
 0x198   :  { %v3065_v12 = vpop.f32.mrf.mxu0 }
 0x199   :  { %v4327_v13 = vpop.f32.mrf.mxu1 }
 0x19a   :  { %v3066_v38 = vpop.f32.mrf.mxu0 }
 0x19b   :  { %v4329_v15 = vpop.f32.mrf.mxu1 }
 0x19c   :  { %v3068_v41 = vpop.f32.mrf.mxu0 }
 0x19d   :  { %v4331_v17 = vpop.f32.mrf.mxu1 }
 0x19e   :  { %v3069_v19 = vpop.f32.mrf.mxu0 }
 0x19f   :  { %v4333_v51 = vpop.f32.mrf.mxu1 }
 0x1a0   :  { %v3071_v22 = vpop.f32.mrf.mxu0 }
 0x1a1   :  { %v4335_v23 = vpop.f32.mrf.mxu1 }
 0x1a2   :  { %v3072_v47 = vpop.f32.mrf.mxu0 }
 0x1a3   :  { %v4337_v25 = vpop.f32.mrf.mxu1 }
 0x1a4   :  { %v3074_v26 = vpop.f32.mrf.mxu0 }
 0x1a5   :  { %v4339_v30 = vpop.f32.mrf.mxu1 }
 0x1a6   :  { %v3075_v59 = vpop.f32.mrf.mxu0 }
 0x1a7   :  { %v4341_v32 = vpop.f32.mrf.mxu1 }
 0x1a8   :  { %v3077_v33 = vpop.f32.mrf.mxu0 }
 0x1a9   :  { %v4343_v56 = vpop.f32.mrf.mxu1 }
 0x1aa   :  { %v3078_v36 = vpop.f32.mrf.mxu0 }
 0x1ab   :  { %v4345_v37 = vpop.f32.mrf.mxu1 }
 0x1ac   :  { %v4347_v40 = vpop.f32.mrf.mxu0 }
 0x1ad   :  { %v4349_v3 = vpop.f32.mrf.mxu1 }
 0x1ae   :  { %v4351_v42 = vpop.f32.mrf.mxu0 }
 0x1af   :  { %v4353_v44 = vpop.f32.mrf.mxu1 }
 0x1b0   :  { %v4355_v1 = vpop.f32.mrf.mxu0 }
 0x1b1   :  { %v4357_v46 = vpop.f32.mrf.mxu1 }
 0x1b2   :  { %v4359_v16 = vpop.f32.mrf.mxu0 }
 0x1b3   :  { %v4361_v49 = vpop.f32.mrf.mxu1 }
 0x1b4   :  { %4598 = vst [vmem:[#allocation15_spill] sm:$0xff] %v4361_v49  ;;  %v4363_v11 = vpop.f32.mrf.mxu0  ;;  %v3128_v49 = vadd.f32 %v3127_v43, %v3126_v7 }
 0x1b5   :  { %4599 = vst [vmem:[#allocation16_spill] sm:$0xff] %v4363_v11  ;;  %v4365_v52 = vpop.f32.mrf.mxu1 }
 0x1b6   :  { %4600 = vst [vmem:[#allocation17_spill] sm:$0xff] %v4365_v52  ;;  %v4367_v53 = vpop.f32.mrf.mxu0 }
 0x1b7   :  { %4601 = vst [vmem:[#allocation18_spill] sm:$0xff] %v4367_v53  ;;  %v4369_v10 = vpop.f32.mrf.mxu1 }
 0x1b8   :  { %4602 = vst [vmem:[#allocation19_spill] sm:$0xff] %v4369_v10  ;;  %v4371_v27 = vpop.f32.mrf.mxu0 }
 0x1b9   :  { %4603 = vst [vmem:[#allocation20_spill] sm:$0xff] %v4371_v27  ;;  %v4373_v58 = vpop.f32.mrf.mxu1  ;;  %v3061_v27 = vadd.f32 %v3060_v29, %v3059_v2  ;;  %v3067_v2 = vadd.f32 %v3066_v38, %v3065_v12  ;;  %v3070_v29 = vadd.f32 %v3069_v19, %v3068_v41  ;;  %v3082_v19 = vadd.f32 %v4351_v42, %v4347_v40 }
 0x1ba   :  { %4604 = vst [vmem:[#allocation21_spill] sm:$0xff] %v4373_v58  ;;  %v4375_v57 = vpop.f32.mrf.mxu0  ;;  %v3064_v58 = vadd.f32 %v3063_v9, %v3062_v6  ;;  %v3073_v9 = vadd.f32 %v3072_v47, %v3071_v22 }
 0x1bb   :  { %4605 = vst [vmem:[#allocation22_spill] sm:$0xff] %v4375_v57  ;;  %v4377_v48 = vpop.f32.mrf.mxu1  ;;  %v1974_v43 = vadd.f32 %v3067_v2, %v4283_v14  ;;  %v1977_v12 = vadd.f32 %v3070_v29, %v4286_v24  ;;  %v3143_v24 = vadd.f32 %v4345_v37, %v4343_v56  ;;  %v4616_v37 = vld [vmem:[#allocation15_spill] sm:$0xff] }
 0x1bc   :  { %4606 = vst [vmem:[#allocation23_spill] sm:$0xff] %v4377_v48  ;;  %v4379_v39 = vpop.f32.mrf.mxu0  ;;  %v3119_v48 = vadd.f32 %v3118_v20, %v4316_v55  ;;  %v3149_v40 = vadd.f32 %v4616_v37, %v4357_v46 }
 0x1bd   :  { %4607 = vst [vmem:[#allocation24_spill] sm:$0xff] %v4379_v39  ;;  %v4381_v28 = vpop.f32.mrf.mxu1 }
 0x1be   :  { %4608 = vst [vmem:[#allocation25_spill] sm:$0xff] %v4381_v28  ;;  %v4383_v18 = vpop.f32.mrf.mxu0  ;;  %v3058_v28 = vadd.f32 %v3057_v0, %v3056_v61  ;;  %v2055_v55 = vadd.f32 %v3119_v48, %v4321_v21  ;;  %v3079_v61 = vadd.f32 %v3078_v36, %v3077_v33  ;;  %v3134_v48 = vadd.f32 %v4333_v51, %v4331_v17 }
 0x1bf   :  { %4609 = vst [vmem:[#allocation26_spill] sm:$0xff] %v4383_v18  ;;  %v4385_v8 = vpop.f32.mrf.mxu1  ;;  %v1993_v36 = vadd.f32 %v3082_v19, %v4298_v63 }
 0x1c0   :  { %4610 = vst [vmem:[#allocation27_spill] sm:$0xff] %v4385_v8  ;;  %v4387_v52 = vpop.f32.mrf.mxu0  ;;  %v1966_v8 = vadd.f32 %v3061_v27, %v4277_v60  ;;  %v1961_v20 = vadd.f32 %v3058_v28, %v4274_v50  ;;  %v3122_v60 = vadd.f32 %v4325_v35, %v4323_v62  ;;  %v3137_v50 = vadd.f32 %v4337_v25, %v4335_v23 }
 0x1c1   :  { %4611 = vst [vmem:[#allocation28_spill] sm:$0xff] %v4387_v52  ;;  %v4389_v53 = vpop.f32.mrf.mxu1  ;;  %v3125_v52 = vadd.f32 %v3124_v31, %v3123_v4  ;;  %v1982_v62 = vadd.f32 %v3073_v9, %v4289_v34  ;;  %v1990_v14 = vadd.f32 %v3079_v61, %v4295_v54  ;;  %v2074_v54 = vadd.f32 %v3134_v48, %v1977_v12 }
 0x1c2   :  { %4612 = vst [vmem:[#allocation29_spill] sm:$0xff] %v4389_v53  ;;  %v4391_v10 = vpop.f32.mrf.mxu0  ;;  %v1969_v53 = vadd.f32 %v3064_v58, %v4280_v5  ;;  %v3131_v5 = vadd.f32 %v4329_v15, %v4327_v13  ;;  %v2058_v38 = vadd.f32 %v3122_v60, %v1961_v20  ;;  %v3085_v25 = vadd.f32 %v4359_v16, %v4355_v1  ;;  %v4617_v1 = vld [vmem:[#allocation16_spill] sm:$0xff]  ;;  %v4618_v16 = vld [vmem:[#allocation18_spill] sm:$0xff]  ;;  %v4623_v20 = vld [vmem:[#allocation19_spill] sm:$0xff] }
 0x1c3   :  { %4613 = vst [vmem:[#allocation30_spill] sm:$0xff] %v4391_v10  ;;  %v4393_v11 = vpop.f32.mrf.mxu1  ;;  %v2063_v4 = vadd.f32 %v3125_v52, %v1966_v8  ;;  %v3140_v8 = vadd.f32 %v4341_v32, %v4339_v30  ;;  %v2079_v23 = vadd.f32 %v3137_v50, %v1982_v62  ;;  %v3088_v52 = vadd.f32 %v4618_v16, %v4617_v1  ;;  %v4620_v27 = vld [vmem:[#allocation22_spill] sm:$0xff]  ;;  %v4627_v62 = vld [vmem:[#allocation11_spill] sm:$0xff] }
 0x1c4   :  { %4614 = vst [vmem:[#allocation31_spill] sm:$0xff] %v4393_v11  ;;  %v4395_v57 = vpop.f32.mrf.mxu0  ;;  %v2066_v7 = vadd.f32 %v3128_v49, %v1969_v53  ;;  %v2071_v51 = vadd.f32 %v3131_v5, %v1974_v43  ;;  %v4619_v53 = vld [vmem:[#allocation20_spill] sm:$0xff]  ;;  %v4626_v50 = vld [vmem:[#allocation10_spill] sm:$0xff] }
 0x1c5   :  { %4615 = vst [vmem:[#allocation32_spill] sm:$0xff] %v4395_v57  ;;  %v4398_v39 = vpop.f32.mrf.mxu1  ;;  %v3076_v57 = vadd.f32 %v3075_v59, %v3074_v26  ;;  %v2087_v26 = vadd.f32 %v3143_v24, %v1990_v14  ;;  %v3146_v59 = vadd.f32 %v4353_v44, %v4349_v3  ;;  %v3091_v58 = vadd.f32 %v4620_v27, %v4619_v53  ;;  %v4621_v44 = vld [vmem:[#allocation9_spill] sm:$0xff]  ;;  %v4624_v61 = vld [vmem:[#allocation24_spill] sm:$0xff] }
 0x1c6   :  { %v4400_v18 = vpop.f32.mrf.mxu0  ;;  %v1998_v29 = vadd.f32 %v3085_v25, %v4621_v44 }
 0x1c7   :  { %v4404_v10 = vpop.f32.mrf.mxu1  ;;  %v1985_v35 = vadd.f32 %v3076_v57, %v4292_v45 }
 0x1c8   :  { %v3199_v6 = vpop.f32.mrf.mxu0  ;;  %v2095_v25 = vadd.f32 %v3149_v40, %v1998_v29 }
 0x1c9   :  { %v4406_v11 = vpop.f32.mrf.mxu1  ;;  %v2160_v13 = vadd.f32 %v3199_v6, %v2063_v4  ;;  %v2082_v47 = vadd.f32 %v3140_v8, %v1985_v35  ;;  %v2006_v35 = vadd.f32 %v3091_v58, %v4627_v62  ;;  %v4628_v8 = vld [vmem:[#allocation21_spill] sm:$0xff]  ;;  %v4633_v58 = vld [vmem:[#allocation28_spill] sm:$0xff] }
 0x1ca   :  { %v2151_v0 = vpop.f32.mrf.mxu0  ;;  %v4634_v44 = vld [vmem:[#allocation30_spill] sm:$0xff] }
 0x1cb   :  { %v2152_v31 = vadd.f32 %v2151_v0, %v2055_v55  ;;  %v4420_v28 = vpop.f32.mrf.mxu1  ;;  %v2232_v22 = vmul.f32 0.2, %v2160_v13  ;;  %vm2216_vm1 = vcmp.ge.f32.partialorder %v2160_v13, 0.0  ;;  %v4622_v55 = vld [vmem:[#allocation17_spill] sm:$0xff]  ;;  %v4625_v0 = vld [vmem:[#allocation26_spill] sm:$0xff] }
 0x1cc   :  { %v3200_v21 = vpop.f32.mrf.mxu0  ;;  %v3152_v60 = vadd.f32 %v4623_v20, %v4622_v55  ;;  %v3094_v5 = vadd.f32 %v4625_v0, %v4624_v61  ;;  %v4637_v55 = vld [vmem:[#allocation32_spill] sm:$0xff] }
 0x1cd   :  { %v2230_v41 = vmul.f32 0.2, %v2152_v31  ;;  %v2163_v17 = vadd.f32 %v3200_v21, %v2066_v7  ;;  %vm2214_vm0 = vcmp.ge.f32.partialorder %v2152_v31, 0.0  ;;  %v4431_v34 = vpop.f32.mrf.mxu1  ;;  %v4446_v2 = vsel %vm2216_vm1, %v2160_v13, %v2232_v22  ;;  %v4629_v13 = vld [vmem:[#allocation23_spill] sm:$0xff] }
 0x1ce   :  { %v2154_v15 = vpop.f32.mrf.mxu0  ;;  %v2001_v21 = vadd.f32 %v3088_v52, %v4626_v50  ;;  %v3155_v14 = vadd.f32 %v4629_v13, %v4628_v8  ;;  %v3100_v20 = vadd.f32 %v4400_v18, %v4637_v55  ;;  %v3164_v18 = vadd.f32 %v4404_v10, %v4398_v39  ;;  %v4639_v8 = vld [vmem:[#allocation14_spill] sm:$0xff] }
 0x1cf   :  { %v2155_v45 = vadd.f32 %v2154_v15, %v2058_v38  ;;  %v4437_v32 = vsel %vm2214_vm0, %v2152_v31, %v2230_v41  ;;  %v2233_v33 = vmul.f32 0.2, %v2163_v17  ;;  %vm2217_vm3 = vcmp.ge.f32.partialorder %v2163_v17, 0.0  ;;  %v2186_v42 = vpop.f32.mrf.mxu1 }
 0x1d0   :  { %v3203_v57 = vpop.f32.mrf.mxu0  ;;  %v2284_v63 = vmul.f32 %v4437_v32, %v4437_v32  ;;  %v2286_v31 = vmul.f32 %v4446_v2, %v4446_v2  ;;  %v2098_v52 = vadd.f32 %v3152_v60, %v2001_v21  ;;  %v2017_v13 = vadd.f32 %v3100_v20, %v4639_v8 }
 0x1d1   :  { %vm2215_vm2 = vcmp.ge.f32.partialorder %v2155_v45, 0.0  ;;  %v2231_v56 = vmul.f32 0.2, %v2155_v45  ;;  %v4461_v4 = vsel %vm2217_vm3, %v2163_v17, %v2233_v33  ;;  %v4466_v12 = vpop.f32.mrf.mxu1  ;;  %v2176_v24 = vadd.f32 %v3203_v57, %v2079_v23 }
 0x1d2   :  { %v2167_v30 = vpop.f32.mrf.mxu0  ;;  %v2287_v38 = vmul.f32 %v4461_v4, %v4461_v4 }
 0x1d3   :  { %v2168_v49 = vadd.f32 %v2167_v30, %v2071_v51  ;;  %v4448_v3 = vsel %vm2215_vm2, %v2155_v45, %v2231_v56  ;;  %v4630_v45 = vld [vmem:[#allocation25_spill] sm:$0xff]  ;;  %v4631_v51 = vld [vmem:[#allocation27_spill] sm:$0xff]  ;;  %v2090_v30 = vadd.f32 %v3146_v59, %v1993_v36  ;;  %v4632_v56 = vld [vmem:[#allocation12_spill] sm:$0xff]  ;;  %v2199_v16 = vpop.f32.mrf.mxu1  ;;  %v2236_v53 = vmul.f32 0.2, %v2176_v24 }
 0x1d4   :  { %v2262_v46 = vadd.f32 %v4448_v3, %v4437_v32  ;;  %v2285_v6 = vmul.f32 %v4448_v3, %v4448_v3  ;;  %v3204_v9 = vpop.f32.mrf.mxu0  ;;  %v3158_v22 = vadd.f32 %v4631_v51, %v4630_v45  ;;  %v2009_v37 = vadd.f32 %v3094_v5, %v4632_v56 }
 0x1d5   :  { %vm2218_vm4 = vcmp.ge.f32.partialorder %v2168_v49, 0.0  ;;  %v2234_v48 = vmul.f32 0.2, %v2168_v49  ;;  %v2179_v33 = vadd.f32 %v3204_v9, %v2082_v47  ;;  %vm2220_vm5 = vcmp.ge.f32.partialorder %v2176_v24, 0.0 }
 0x1d6   :  { %v2263_v7 = vadd.f32 %v2262_v46, %v4446_v2  ;;  %v2300_v43 = vadd.f32 %v2285_v6, %v2284_v63  ;;  %v2170_v19 = vpop.f32.mrf.mxu0  ;;  %v3097_v63 = vadd.f32 %v4634_v44, %v4633_v58  ;;  %v2103_v47 = vadd.f32 %v3155_v14, %v2006_v35  ;;  %v4635_v46 = vld [vmem:[#allocation29_spill] sm:$0xff]  ;;  %v4636_v6 = vld [vmem:[#allocation31_spill] sm:$0xff] }
 0x1d7   :  { %v4474_v41 = vsel %vm2218_vm4, %v2168_v49, %v2234_v48  ;;  %v2184_v49 = vadd.f32 %v4420_v28, %v2087_v26  ;;  %v2171_v27 = vadd.f32 %v2170_v19, %v2074_v54  ;;  %v2187_v36 = vadd.f32 %v2186_v42, %v2090_v30  ;;  %v3212_v28 = vpop.f32.mrf.mxu1  ;;  %v4638_v42 = vld [vmem:[#allocation13_spill] sm:$0xff] }
 0x1d8   :  { %v2301_v15 = vadd.f32 %v2300_v43, %v2286_v31  ;;  %v2264_v17 = vadd.f32 %v2263_v7, %v4461_v4  ;;  %v2288_v57 = vmul.f32 %v4474_v41, %v4474_v41  ;;  %v2237_v40 = vmul.f32 0.2, %v2179_v33 }
 0x1d9   :  { %vm2219_vm6 = vcmp.ge.f32.partialorder %v2171_v27, 0.0  ;;  %v2235_v29 = vmul.f32 0.2, %v2171_v27  ;;  %v3161_v9 = vadd.f32 %v4636_v6, %v4635_v46  ;;  %vm2221_vm7 = vcmp.ge.f32.partialorder %v2179_v33, 0.0  ;;  %v2202_v35 = vpop.f32.mrf.mxu1 }
 0x1da   :  { %v2265_v1 = vadd.f32 %v2264_v17, %v4474_v41  ;;  %v2302_v23 = vadd.f32 %v2301_v15, %v2287_v38  ;;  %v2106_v26 = vadd.f32 %v3158_v22, %v2009_v37  ;;  %v2192_v54 = vadd.f32 %v4406_v11, %v2095_v25 }
 0x1db   :  { %v2238_v60 = vmul.f32 0.2, %v2184_v49  ;;  %v4491_v61 = vsel %vm2220_vm5, %v2176_v24, %v2236_v53  ;;  %v4493_v0 = vsel %vm2219_vm6, %v2171_v27, %v2235_v29  ;;  %v2014_v5 = vadd.f32 %v3097_v63, %v4638_v42 }
 0x1dc   :  { %v2303_v59 = vadd.f32 %v2302_v23, %v2288_v57  ;;  %vm2222_vm8 = vcmp.ge.f32.partialorder %v2184_v49, 0.0  ;;  %v2266_v31 = vadd.f32 %v2265_v1, %v4493_v0  ;;  %v2289_v7 = vmul.f32 %v4493_v0, %v4493_v0 }
 0x1dd   :  { %v2195_v43 = vadd.f32 %v4431_v34, %v2098_v52  ;;  %v2239_v48 = vmul.f32 0.2, %v2187_v36  ;;  %v4502_v11 = vsel %vm2221_vm7, %v2179_v33, %v2237_v40  ;;  %vm2223_vm9 = vcmp.ge.f32.partialorder %v2187_v36, 0.0 }
 0x1de   :  { %v2290_v50 = vmul.f32 %v4491_v61, %v4491_v61  ;;  %v2267_v21 = vadd.f32 %v2266_v31, %v4491_v61  ;;  %v2304_v62 = vadd.f32 %v2303_v59, %v2289_v7  ;;  %v2240_v14 = vmul.f32 0.2, %v2192_v54 }
 0x1df   :  { %v4508_v24 = vsel %vm2222_vm8, %v2184_v49, %v2238_v60  ;;  %v2200_v38 = vadd.f32 %v2199_v16, %v2103_v47  ;;  %vm2224_vm10 = vcmp.ge.f32.partialorder %v2192_v54, 0.0  ;;  %v2291_v39 = vmul.f32 %v4502_v11, %v4502_v11 }
 0x1e0   :  { %v2268_v10 = vadd.f32 %v2267_v21, %v4502_v11  ;;  %v2305_v34 = vadd.f32 %v2304_v62, %v2290_v50  ;;  %v2241_v15 = vmul.f32 0.2, %v2195_v43  ;;  %v4513_v17 = vsel %vm2223_vm9, %v2187_v36, %v2239_v48 }
 0x1e1   :  { %v2111_v19 = vadd.f32 %v3161_v9, %v2014_v5  ;;  %v2203_v45 = vadd.f32 %v2202_v35, %v2106_v26  ;;  %v2292_v51 = vmul.f32 %v4508_v24, %v4508_v24  ;;  %vm2225_vm11 = vcmp.ge.f32.partialorder %v2195_v43, 0.0 }
 0x1e2   :  { %v2269_v22 = vadd.f32 %v2268_v10, %v4508_v24  ;;  %v2306_v25 = vadd.f32 %v2305_v34, %v2291_v39  ;;  %v4518_v30 = vsel %vm2224_vm10, %v2192_v54, %v2240_v14  ;;  %v2242_v56 = vmul.f32 0.2, %v2200_v38 }
 0x1e3   :  { %v2208_v33 = vadd.f32 %v4466_v12, %v2111_v19  ;;  %v2114_v37 = vadd.f32 %v3164_v18, %v2017_v13  ;;  %v2293_v1 = vmul.f32 %v4513_v17, %v4513_v17  ;;  %vm2226_vm12 = vcmp.ge.f32.partialorder %v2200_v38, 0.0 }
 0x1e4   :  { %v2307_v57 = vadd.f32 %v2306_v25, %v2292_v51  ;;  %v2270_v23 = vadd.f32 %v2269_v22, %v4513_v17  ;;  %v4524_v16 = vsel %vm2225_vm11, %v2195_v43, %v2241_v15  ;;  %v2243_v52 = vmul.f32 0.2, %v2203_v45 }
 0x1e5   :  { %v2211_v49 = vadd.f32 %v3212_v28, %v2114_v37  ;;  %v2294_v53 = vmul.f32 %v4518_v30, %v4518_v30  ;;  %vm2227_vm13 = vcmp.ge.f32.partialorder %v2203_v45, 0.0  ;;  %v2244_v58 = vmul.f32 0.2, %v2208_v33 }
 0x1e6   :  { %v2271_v27 = vadd.f32 %v2270_v23, %v4518_v30  ;;  %v2308_v12 = vadd.f32 %v2307_v57, %v2293_v1  ;;  %v4529_v44 = vsel %vm2226_vm12, %v2200_v38, %v2242_v56  ;;  %v2295_v63 = vmul.f32 %v4524_v16, %v4524_v16 }
 0x1e7   :  { %vm2228_vm14 = vcmp.ge.f32.partialorder %v2208_v33, 0.0  ;;  %v2245_v36 = vmul.f32 0.2, %v2211_v49  ;;  %v4534_v40 = vsel %vm2227_vm13, %v2203_v45, %v2243_v52  ;;  %v2296_v29 = vmul.f32 %v4529_v44, %v4529_v44 }
 0x1e8   :  { %v2272_v59 = vadd.f32 %v2271_v27, %v4524_v16  ;;  %v2309_v47 = vadd.f32 %v2308_v12, %v2294_v53  ;;  %vm2229_vm15 = vcmp.ge.f32.partialorder %v2211_v49, 0.0  ;;  %v4539_v9 = vsel %vm2228_vm14, %v2208_v33, %v2244_v58 }
 0x1e9   :  { %v2297_v20 = vmul.f32 %v4534_v40, %v4534_v40  ;;  %v2261_v26 = vsel %vm2229_vm15, %v2211_v49, %v2245_v36  ;;  %v2298_v54 = vmul.f32 %v4539_v9, %v4539_v9 }
 0x1ea   :  { %v2273_v46 = vadd.f32 %v2272_v59, %v4529_v44  ;;  %v2310_v6 = vadd.f32 %v2309_v47, %v2295_v63  ;;  %v2299_v5 = vmul.f32 %v2261_v26, %v2261_v26 }
 0x1ec   :  { %v2274_v55 = vadd.f32 %v2273_v46, %v4534_v40  ;;  %v2311_v28 = vadd.f32 %v2310_v6, %v2296_v29 }
 0x1ee   :  { %v2275_v60 = vadd.f32 %v2274_v55, %v4539_v9  ;;  %v2312_v42 = vadd.f32 %v2311_v28, %v2297_v20 }
 0x1f0   :  { %v2276_v31 = vadd.f32 %v2275_v60, %v2261_v26  ;;  %v2313_v7 = vadd.f32 %v2312_v42, %v2298_v54 }
 0x1f2   :  { %v2277_v18 = vrot.slane %v2276_v31, 4  ;;  %v2314_v43 = vadd.f32 %v2313_v7, %v2299_v5  ;;  %v2701_v5 = vld [vmem:[#allocation6] ss:$0 sm:$0xff] }
 0x1f4   :  { %v2278_v48 = vadd.f32 %v2277_v18, %v2276_v31  ;;  %v2315_v50 = vrot.slane %v2314_v43, 4 }
 0x1f6   :  { %v2279_v21 = vrot.slane %v2278_v48, 2  ;;  %v2316_v62 = vadd.f32 %v2315_v50, %v2314_v43 }
 0x1f8   :  { %v2280_v35 = vadd.f32 %v2279_v21, %v2278_v48  ;;  %v2317_v8 = vrot.slane %v2316_v62, 2 }
 0x1fa   :  { %v2281_v13 = vrot.slane %v2280_v35, 1  ;;  %v2318_v14 = vadd.f32 %v2317_v8, %v2316_v62 }
 0x1fc   :  { %v2282_v38 = vadd.f32 %v2281_v13, %v2280_v35  ;;  %v2319_v39 = vrot.slane %v2318_v14, 1 }
 0x1fe   :  { %v2283_v10 = vmul.f32 0.0078125, %v2282_v38  ;;  %v2320_v34 = vadd.f32 %v2319_v39, %v2318_v14 }
 0x200   :  { %v2321_v15 = vmul.f32 0.0078125, %v2320_v34  ;;  %v2322_v19 = vmul.f32 %v2283_v10, %v2283_v10  ;;  %v2325_v45 = vsub.f32 %v4437_v32, %v2283_v10  ;;  %v2326_v51 = vsub.f32 %v4448_v3, %v2283_v10 }
 0x201   :  { %v2327_v22 = vsub.f32 %v4446_v2, %v2283_v10  ;;  %v2328_v25 = vsub.f32 %v4461_v4, %v2283_v10  ;;  %v2329_v33 = vsub.f32 %v4474_v41, %v2283_v10  ;;  %v2330_v56 = vsub.f32 %v4493_v0, %v2283_v10 }
 0x202   :  { %v2323_v37 = vsub.f32 %v2321_v15, %v2322_v19  ;;  %v2331_v1 = vsub.f32 %v4491_v61, %v2283_v10  ;;  %v2332_v57 = vsub.f32 %v4502_v11, %v2283_v10  ;;  %v2333_v23 = vsub.f32 %v4508_v24, %v2283_v10 }
 0x203   :  { %v2334_v49 = vsub.f32 %v4513_v17, %v2283_v10  ;;  %v2335_v32 = vsub.f32 %v4518_v30, %v2283_v10  ;;  %v2336_v3 = vsub.f32 %v4524_v16, %v2283_v10  ;;  %v2337_v2 = vsub.f32 %v4529_v44, %v2283_v10  ;;  %v2700_v16 = vld [vmem:[#allocation4] ss:$0 sm:$0xff] }
 0x204   :  { %v2324_v4 = vmax.f32 %v2323_v37, 0.0  ;;  %v2338_v41 = vsub.f32 %v4534_v40, %v2283_v10  ;;  %v2339_v0 = vsub.f32 %v4539_v9, %v2283_v10  ;;  %v2340_v52 = vsub.f32 %v2261_v26, %v2283_v10 }
 0x206   :  { %v2341_v53 = vadd.f32 1e-05, %v2324_v4 }
 0x208   :  { %3488 = vrsqrt.f32 %v2341_v53 }
 0x215   :  { %v3489_v61 = vpop.eup %3488 }
 0x216   :  { %v2343_v11 = vmul.f32 %v3489_v61, %v2325_v45  ;;  %v2344_v27 = vmul.f32 %v3489_v61, %v2326_v51  ;;  %v2345_v24 = vmul.f32 %v3489_v61, %v2327_v22  ;;  %v2346_v12 = vmul.f32 %v3489_v61, %v2328_v25 }
 0x217   :  { %v2347_v17 = vmul.f32 %v3489_v61, %v2329_v33  ;;  %v2348_v58 = vmul.f32 %v3489_v61, %v2330_v56  ;;  %v2349_v30 = vmul.f32 %v3489_v61, %v2331_v1  ;;  %v2350_v63 = vmul.f32 %v3489_v61, %v2332_v57 }
 0x218   :  { %v2351_v59 = vmul.f32 %v3489_v61, %v2333_v23  ;;  %v2352_v44 = vmul.f32 %v3489_v61, %v2334_v49  ;;  %v2353_v47 = vmul.f32 %v3489_v61, %v2335_v32  ;;  %v2354_v36 = vmul.f32 %v3489_v61, %v2336_v3 }
 0x219   :  { %v2355_v40 = vmul.f32 %v3489_v61, %v2337_v2  ;;  %v2356_v29 = vmul.f32 %v3489_v61, %v2338_v41  ;;  %v2357_v46 = vmul.f32 %v3489_v61, %v2339_v0  ;;  %v2358_v6 = vmul.f32 %v3489_v61, %v2340_v52 }
 0x21a   :  { %v2366_v9 = vmul.f32 %v2700_v16, %v2343_v11  ;;  %v2367_v55 = vmul.f32 %v2700_v16, %v2344_v27  ;;  %v2368_v20 = vmul.f32 %v2700_v16, %v2345_v24  ;;  %v2369_v28 = vmul.f32 %v2700_v16, %v2346_v12 }
 0x21b   :  { %v2370_v26 = vmul.f32 %v2700_v16, %v2347_v17  ;;  %v2371_v54 = vmul.f32 %v2700_v16, %v2348_v58  ;;  %v2372_v60 = vmul.f32 %v2700_v16, %v2349_v30  ;;  %v2373_v42 = vmul.f32 %v2700_v16, %v2350_v63 }
 0x21c   :  { %v2374_v31 = vmul.f32 %v2700_v16, %v2351_v59  ;;  %v2375_v7 = vmul.f32 %v2700_v16, %v2352_v44  ;;  %v2376_v18 = vmul.f32 %v2700_v16, %v2353_v47  ;;  %v2377_v43 = vmul.f32 %v2700_v16, %v2354_v36 }
 0x21d   :  { %v2378_v48 = vmul.f32 %v2700_v16, %v2355_v40  ;;  %v2379_v50 = vmul.f32 %v2700_v16, %v2356_v29  ;;  %v2380_v21 = vmul.f32 %v2700_v16, %v2357_v46  ;;  %v2381_v62 = vmul.f32 %v2700_v16, %v2358_v6 }
 0x21e   :  { %v2389_v35 = vadd.f32 %v2701_v5, %v2366_v9  ;;  %v2390_v8 = vadd.f32 %v2701_v5, %v2367_v55  ;;  %v2391_v13 = vadd.f32 %v2701_v5, %v2368_v20  ;;  %v2392_v14 = vadd.f32 %v2701_v5, %v2369_v28 }
 0x21f   :  { %v2393_v38 = vadd.f32 %v2701_v5, %v2370_v26  ;;  %v2394_v39 = vadd.f32 %v2701_v5, %v2371_v54  ;;  %v2395_v10 = vadd.f32 %v2701_v5, %v2372_v60  ;;  %v2396_v34 = vadd.f32 %v2701_v5, %v2373_v42 }
 0x220   :  { %v2397_v15 = vadd.f32 %v2701_v5, %v2374_v31  ;;  %v2398_v19 = vadd.f32 %v2701_v5, %v2375_v7  ;;  %v2399_v45 = vadd.f32 %v2701_v5, %v2376_v18  ;;  %v2400_v51 = vadd.f32 %v2701_v5, %v2377_v43 }
 0x221   :  { %v2401_v22 = vadd.f32 %v2701_v5, %v2378_v48  ;;  %v2402_v25 = vadd.f32 %v2701_v5, %v2379_v50  ;;  %v2403_v33 = vadd.f32 %v2701_v5, %v2380_v21  ;;  %v2404_v56 = vadd.f32 %v2701_v5, %v2381_v62 }
 0x222   :  { %v2737_v37 = vpack.c.bf16 %v2390_v8, %v2389_v35  ;;  %v2742_v1 = vpack.c.bf16 %v2392_v14, %v2391_v13  ;;  %v2747_v57 = vpack.c.bf16 %v2394_v39, %v2393_v38  ;;  %v2752_v23 = vpack.c.bf16 %v2396_v34, %v2395_v10 }
 0x223   :  { %v2757_v49 = vpack.c.bf16 %v2398_v19, %v2397_v15  ;;  %v2762_v32 = vpack.c.bf16 %v2400_v51, %v2399_v45  ;;  %v2767_v3 = vpack.c.bf16 %v2402_v25, %v2401_v22  ;;  %v2772_v2 = vpack.c.bf16 %v2404_v56, %v2403_v33 }
 0x224   :  { %2738 = vst [vmem:[%s4591_s5] sm:$0xff] %v2737_v37   ;;  %2774 = vst [vmem:[%s4591_s5 + $0x8] sm:$0xff] %v2742_v1  }
 0x225   :  { %2775 = vst [vmem:[%s4591_s5 + $0x10] sm:$0xff] %v2747_v57   ;;  %2776 = vst [vmem:[%s4591_s5 + $0x18] sm:$0xff] %v2752_v23  }
 0x226   :  { %2777 = vst [vmem:[%s4591_s5 + $0x20] sm:$0xff] %v2757_v49   ;;  %2778 = vst [vmem:[%s4591_s5 + $0x28] sm:$0xff] %v2762_v32  }
 0x227   :  { %2779 = vst [vmem:[%s4591_s5 + $0x30] sm:$0xff] %v2767_v3   ;;  %2780 = vst [vmem:[%s4591_s5 + $0x38] sm:$0xff] %v2772_v2  }
 0x228   :  { %2489 = vsyncpa [#allocation3], 1 }
 0x229   :  { %2490 = vsyncpa [#allocation5], 1 }

// kernel: classifier_forward.5
= control target key start
LH: loop header
LB: loop body
LE: loop exit
PB: predicated region body
PF: predicated region fallthrough
CT: control target
= control target key end

     0   :  { %s13074_s0 = inlined_call_operand.vmem [shape: bf16[8,8192], index: 0, kind: input, shape index: {}]   ;;  %s13075_s1 = inlined_call_operand.hbm [shape: bf16[8192,1024], index: 1, kind: input, shape index: {}]   ;;  %s13076_s2 = inlined_call_operand.hbm [shape: f32[1,1024], index: 2, kind: input, shape index: {}]   ;;  %s13077_s3 = inlined_call_operand.vmem [shape: bf16[1024,128], index: 3, kind: input, shape index: {}]   ;;  %s13078_s4 = inlined_call_operand.vmem [shape: f32[2,8,128], index: 4, kind: output, shape index: {}]  }
   0x1   :  { %13081 = sst [smem:[#allocation11_spill]] %s13075_s1 }
   0x2   :  { %13082 = sst [smem:[#allocation12_spill]] %s13078_s4 }
   0x3   :  { %9 = vsyncpa [#allocation4], 0 }
   0x4   :  { %11 = vsyncpa [#allocation4 + $0x1], 0 }
   0x5   :  { %12 = vsyncpa [#allocation6], 0 }
   0x6   :  { %14 = vsyncpa [#allocation6 + $0x1], 0  ;;  %s11481_s15 = smov 0   ;;  %s11483_s16 = smov 0  }
   0x7   :  { %s11485_s17 = smov 0   ;;  %s11487_s18 = smov 0  }
   0x8   :  { %s11489_s19 = smov 0   ;;  %s11491_s20 = smov 0  }
   0x9   :  { %s11493_s21 = smov 0   ;;  %s11495_s22 = smov 0  }
   0xa   :  { %s11497_s23 = smov 0   ;;  %s11499_s24 = smov 0  }
   0xb   :  { %s11501_s25 = smov 0  }
   0xc LB: > { %s29_s26 = sadd.s32 1, %s11440_s23  ;;  %p74_p1 = scmp.ne.s32.totalorder %s11428_s20, %s11424_s19  ;;  %s11448_s25 = sphi %s11501_s25, %s20_s25   ;;  %s11444_s24 = sphi %s11499_s24, %s13109_s24   ;;  %s11440_s23 = sphi %s11497_s23, %s13108_s23   ;;  %s11436_s22 = sphi %s11495_s22, %s13107_s22   ;;  %s11432_s21 = sphi %s11493_s21, %s13106_s21   ;;  %s11428_s20 = sphi %s11491_s20, %s13105_s20   ;;  %s11424_s19 = sphi %s11489_s19, %s13104_s19   ;;  %s11420_s18 = sphi %s11487_s18, %s13103_s18   ;;  %s11416_s17 = sphi %s11485_s17, %s13102_s17   ;;  %s11412_s16 = sphi %s11483_s16, %s13101_s16   ;;  %s11408_s15 = sphi %s11481_s15, %s13100_s15  }
   0xd   : > { %p11538_p0 = scmp.ge.s32.totalorder %s29_s26, 2  ;;  %p75_p2 = scmp.eq.s32.totalorder %s11448_s25, 0 }
   0xe   : > { %p9605_p4 = scmp.lt.s32.totalorder %s11448_s25, 4  ;;  %s191_s30 = sand.u32 1, %s11428_s20  }
   0xf   : > { %s13111_s26 = smov (%p11538_p0, %s29_s26), 0  ;;  %p76_p3 = por %p75_p2, %p74_p1 }
  0x10   : > { %13084 = sst [smem:[#allocation9_spill]] %s13111_s26  ;;  %s8440_s5 = sshll.u32 %s191_s30, 13 }
  0x11   : > { %s8442_s6 = sshll.u32 %s11444_s24, 2  ;;  %s9548_s7 = sshll.u32 %s11440_s23, 12 }
  0x12   : > { %s195_s8 = scalar_lea.vmem [#allocation3], %s8440_s5  ;;  %s202_s10 = sadd.s32 %s9548_s7, %s8442_s6 }
  0x13   : > { %s205_s9 = sshll.u32 %s195_s8, 4  ;;  %s8444_s11 = sshll.u32 %s202_s10, 6  ;;  %s206_s9 = int_to_ptr.vmem [resolvable:$true] %s205_s9 }
  0x14   : > { %p11559_p5 = pnand %p9605_p4, %p76_p3  ;;  %s13086_s1 = sld [smem:[#allocation11_spill]] }
  0x15   : > { %p8448_p6 = scmp.ge.s32.totalorder %s11448_s25, 1  ;;  %s192_s29 = scalar_lea.sflag [#allocation4], %s191_s30 }
  0x16   : > { %p11300_p7 = pneg %p11559_p5  ;;  %s11311_s4 = scalar_lea.vmem %s206_s9, 131072 }
  0x17   : > { %p11312_p8 = scmp.ne.s32.totalorder %s206_s9, %s11311_s4  ;;  %s11450_s5 = smov [#allocation3]  }
  0x18   : > { %s11316_s6 = sshll.u32 %s11450_s5, 4  ;;  %s11317_s6 = int_to_ptr.vmem [resolvable:$false] %s11316_s6 }
  0x19   : > { %p11314_p9 = pnand %p11312_p8, %p11300_p7  ;;  %s11318_s7 = scalar_lea.vmem %s11317_s6, 262144 }
  0x1a   : > { %s204_s27 = scalar_lea.hbm %s13086_s1, %s8444_s11  ;;  %p11319_p11 = scmp.lt.s32.totalorder %s206_s9, %s11317_s6 }
  0x1b   : > { %p11315_p10 = pneg %p11314_p9  ;;  %p11320_p12 = scmp.lt.s32.totalorder %s11318_s7, %s11311_s4 }
  0x1d   : > { %p11321_p13 = por %p11320_p12, %p11319_p11 }
  0x1f   : > { %p11322_p1 = pnand %p11321_p13, %p11315_p10 }
  0x21   : > { %11325 = shalt.err (!%p11322_p1)
}
  0x22   : > { %s11451_s8 = smov 512   ;;  %s11452_s30 = smov 256  }
  0x23   : > { %s11453_s4 = smov 16   ;;  %p241_p3 = scmp.lt.s32.totalorder %s11448_s25, 5 }
  0x24   : > { %9601 = dma.hbm_to_vmem [thread:$0]  (!%p11559_p5), %s204_s27, 131072, %s206_s9, %s192_s29, %s11451_s8, %s11452_s30, %s11453_s4  }
  0x25   : > { %p11574_p7 = pnand %p8448_p6, %p241_p3  ;;  %s8436_s11 = sadd.s32 4294967295, %s11448_s25  }
  0x26   : > { %s32_s13 = sadd.s32 1, %s11444_s24  ;;  %p80_p8 = scmp.ne.s32.totalorder %s11424_s19, %s11420_s18 }
  0x27   : > { %s13113_s13 = smov (!%p11538_p0, %s32_s13), %s11444_s24  ;;  %p11585_p9 = scmp.eq.s32.totalorder %s8436_s11, 0 }
  0x28   : > { %p34_p5 = scmp.ge.s32.totalorder %s13113_s13, 2  ;;  %s93_s27 = sadd.s32 1, %s11416_s17 }
  0x29   : > { %p11592_p6 = por %p11585_p9, %p80_p8  ;;  %p100_p10 = scmp.ne.s32.totalorder %s11416_s17, %s11412_s16 }
  0x2a   : > { %s13115_s13 = smov (%p34_p5, %s13113_s13), 0  ;;  %p106_p11 = scmp.ne.s32.totalorder %s11412_s16, %s11408_s15 }
  0x2b   : > { %13090 = sst [smem:[#allocation10_spill]] %s13115_s13  ;;  %p11602_p0 = por %p100_p10, %p75_p2 }
  0x2c   : > { %s63_s28 = ssub.s32 %s11444_s24, %s13115_s13  ;;  %s215_s9 = sand.u32 1, %s11416_s17  }
  0x2d   : > { %s13092_s14 = ssub.s32 %s11440_s23, %s13111_s26  ;;  %p91_p12 = scmp.eq.s32.totalorder %s63_s28, 0 }
  0x2e   : > { %s64_s5 = sor.u32 %s63_s28, %s13092_s14  ;;  %p11616_p1 = por %p106_p11, %p11585_p9 }
  0x2f   : > { %p65_p13 = scmp.eq.s32.totalorder %s64_s5, 0  ;;  %s13094_s8 = sadd.s32 1, %s11428_s20 }
  0x30   : > { %s11621_s7 = scalar_select %p91_p12, %s11416_s17, %s93_s27  }
  0x31   : > { %s11626_s30 = scalar_select %p65_p13, %s11428_s20, %s13094_s8  }
  0x32   : > { %s8445_s4 = sshll.u32 %s215_s9, 2  ;;  %s9549_s11 = sshll.u32 %s11444_s24, 6 }
  0x33   : > { %s225_s13 = scalar_lea.hbm %s13076_s2, %s9549_s11  ;;  %s219_s26 = scalar_lea.vmem [#allocation5], %s8445_s4 }
  0x34   : > { %s227_s14 = sshll.u32 %s219_s26, 4  ;;  %p11636_p2 = pnand %p9605_p4, %p11602_p0  ;;  %s228_s14 = int_to_ptr.vmem [resolvable:$true] %s227_s14 }
  0x35   : > { %s216_s27 = scalar_lea.sflag [#allocation6], %s215_s9  ;;  %s11339_s28 = scalar_lea.vmem %s228_s14, 64 }
  0x36   : > { %p11328_p3 = pneg %p11636_p2  ;;  %p11340_p8 = scmp.ne.s32.totalorder %s228_s14, %s11339_s28 }
  0x37   : > { %s11454_s5 = smov [#allocation5]  }
  0x38   : > { %p11342_p9 = pnand %p11340_p8, %p11328_p3  ;;  %s11344_s1 = sshll.u32 %s11454_s5, 4  ;;  %s11345_s1 = int_to_ptr.vmem [resolvable:$false] %s11344_s1 }
  0x39   : > { %s11346_s8 = scalar_lea.vmem %s11345_s1, 128  ;;  %p11347_p10 = scmp.lt.s32.totalorder %s228_s14, %s11345_s1 }
  0x3a   : > { %p11343_p5 = pneg %p11342_p9  ;;  %p11348_p11 = scmp.lt.s32.totalorder %s11346_s8, %s11339_s28 }
  0x3c   : > { %p11349_p12 = por %p11348_p11, %p11347_p10 }
  0x3e   : > { %p11350_p13 = pnand %p11349_p12, %p11343_p5 }
  0x40   : > { %11353 = shalt.err (!%p11350_p13)
}
  0x41   : > { %9604 = dma.hbm_to_vmem [thread:$0]  (!%p11636_p2), %s225_s13, 64, %s228_s14, %s216_s27  }
  0x42   : > { %245 = sbr.rel (%p11574_p7) target bundleno = 1553 (0x611), region = 36  ;;  %s247_s26 = sand.u32 (!%p11574_p7), 1, %s11424_s19  }
  0x43   : > { %s8449_s18 = sshll.u32 (!%p11574_p7), %s247_s26, 13  ;;  %s248_s9 = scalar_lea.sflag (!%p11574_p7), [#allocation4], %s247_s26 }
  0x44   : > { %s11647_s4 = scalar_lea.vmem (!%p11574_p7), [#allocation3], %s8449_s18 }
  0x47   : > { %11399 = dma.done.wait (%p11592_p6), %s248_s9, 131072  }
  0x48   : > { %11401 = vsyncadd (%p11592_p6), %s248_s9, 4294836224  ;;  %s256_s11 = sand.u32 1, %s11412_s16  }
  0x49   : > { %s11654_s15 = sshll.u32 %s256_s11, 2  ;;  %s257_s10 = scalar_lea.sflag [#allocation6], %s256_s11 }
  0x4a   : > { %11403 = dma.done.wait (%p11616_p1), %s257_s10, 64  }
  0x4b   : > { %11405 = vsyncadd (%p11616_p1), %s257_s10, 4294967232  ;;  %s8451_s14 = sshll.u32 %s11432_s21, 5  ;;  %s8453_s29 = sshll.u32 %s11436_s22, 6 }
  0x4c   : > { %p300_p4 = scmp.lt.s32.totalorder %s8451_s14, 63  ;;  %p309_p7 = scmp.lt.s32.totalorder %s8453_s29, 127 }
  0x4d   : > { %p314_p6 = scmp.lt.s32.totalorder %s11436_s22, 1  ;;  %s13096_s10 = sld [smem:[#allocation12_spill]] }
  0x4e   : > { %s13117_s14 = smov (!%p300_p4, %s8451_s14), 63  ;;  %s13119_s29 = smov (!%p309_p7, %s8453_s29), 127 }
  0x4f   : > { %s8452_s12 = sshll.u32 %s13117_s14, 2  ;;  %s8454_s1 = sshll.u32 %s13119_s29, 2 }
  0x50   : > { %s11667_s5 = scalar_lea.vmem %s13074_s0, %s8452_s12  ;;  %s11672_s26 = scalar_lea.vmem %s13077_s3, %s8454_s1 }
  0x51   : > { %s13121_s22 = smov (!%p314_p6, %s11436_s22), 1  ;;  %p8456_p0 = scmp.ne.s32.totalorder %s11432_s21, 0 }
  0x52   : > { %s8455_s18 = sshll.u32 %s13121_s22, 3 }
  0x53   : > { %s11678_s13 = scalar_lea.vmem %s13096_s10, %s8455_s18  ;;  %322 = sbr.rel (%p8456_p0) target bundleno = 91 (0x5b), region = 48 }
  0x58   : > { %v11455_v0 = vmov 0.0  }
  0x59   : > { %323 = vst [vmem:[#allocation2 + $0x10] sm:$0xff] %v11455_v0  ;;  %324 = vst [vmem:[#allocation2] sm:$0xff] %v11455_v0 }
  0x5a   : > { %325 = vst [vmem:[#allocation2 + $0x18] sm:$0xff] %v11455_v0  ;;  %326 = vst [vmem:[#allocation2 + $0x8] sm:$0xff] %v11455_v0 }
  0x5b PF: > { %v9698_v1 = vld [vmem:[%s11647_s4 + $0xe4] ss:$16 sps:$4 sm:$0xff]   ;;  %v9702_v3 = vld [vmem:[%s11647_s4 + $0xe0] ss:$16 sps:$4 sm:$0xff]   ;;  %v332_v49 = vld [vmem:[%s11667_s5 + $0x8] sm:$0xff]  ;;  %p9513_p1 = scmp.ne.s32.totalorder %s11432_s21, 1 }
  0x5c   : > { %v9700_v2 = vld [vmem:[%s11647_s4 + $0x2e4] ss:$16 sps:$4 sm:$0xff]   ;;  %6603 = vmatprep.subr.bf16.mxu0 %v9698_v1  ;;  %v9703_v4 = vld [vmem:[%s11647_s4 + $0x2e0] ss:$16 sps:$4 sm:$0xff]   ;;  %v11733_v52 = vcombine.high %v332_v49, %v332_v49  ;;  %s13097_s21 = scalar_lea.vmem (!%p9513_p1), [#allocation5], %s11654_s15 }
  0x5d   : > { %6644 = vmatprep.subr.bf16.mxu1 %v9700_v2  ;;  %v9704_v5 = vld [vmem:[%s11647_s4 + $0xc4] ss:$16 sps:$4 sm:$0xff]   ;;  %6604 = vmatpush1.bf16.msra.mxu0 %v9702_v3  ;;  %v9708_v7 = vld [vmem:[%s11647_s4 + $0xc0] ss:$16 sps:$4 sm:$0xff]  }
  0x5e   : > { %6645 = vmatpush1.bf16.msra.mxu1 %v9703_v4  ;;  %v9706_v6 = vld [vmem:[%s11647_s4 + $0x2c4] ss:$16 sps:$4 sm:$0xff]   ;;  %6605 = vmatprep.subr.bf16.mxu0 %v9704_v5  ;;  %v9709_v8 = vld [vmem:[%s11647_s4 + $0x2c0] ss:$16 sps:$4 sm:$0xff]  }
  0x5f   : > { %6646 = vmatprep.subr.bf16.mxu1 %v9706_v6  ;;  %v9710_v9 = vld [vmem:[%s11647_s4 + $0xa4] ss:$16 sps:$4 sm:$0xff]   ;;  %v9714_v11 = vld [vmem:[%s11647_s4 + $0xa0] ss:$16 sps:$4 sm:$0xff]   ;;  %6676 = vmatprep.mubr.bf16.mxu1 %v11733_v52 }
  0x60   : > { %v9712_v10 = vld [vmem:[%s11647_s4 + $0x2a4] ss:$16 sps:$4 sm:$0xff]   ;;  %v9715_v12 = vld [vmem:[%s11647_s4 + $0x2a0] ss:$16 sps:$4 sm:$0xff]  }
  0x61   : > { %6606 = vmatpush1.bf16.msra.mxu0 %v9708_v7  ;;  %v9716_v13 = vld [vmem:[%s11647_s4 + $0x84] ss:$16 sps:$4 sm:$0xff]   ;;  %v9720_v15 = vld [vmem:[%s11647_s4 + $0x80] ss:$16 sps:$4 sm:$0xff]  }
  0x62   : > { %6647 = vmatpush1.bf16.msra.mxu1 %v9709_v8  ;;  %6607 = vmatprep.subr.bf16.mxu0 %v9710_v9  ;;  %v9718_v14 = vld [vmem:[%s11647_s4 + $0x284] ss:$16 sps:$4 sm:$0xff]   ;;  %v9721_v16 = vld [vmem:[%s11647_s4 + $0x280] ss:$16 sps:$4 sm:$0xff]   ;;  %v11757_v8 = vcombine.low %v332_v49, %v332_v49 }
  0x63   : > { %6648 = vmatprep.subr.bf16.mxu1 %v9712_v10  ;;  %v9722_v17 = vld [vmem:[%s11647_s4 + $0x64] ss:$16 sps:$4 sm:$0xff]   ;;  %v9726_v19 = vld [vmem:[%s11647_s4 + $0x60] ss:$16 sps:$4 sm:$0xff]  }
  0x64   : > { %v9724_v18 = vld [vmem:[%s11647_s4 + $0x264] ss:$16 sps:$4 sm:$0xff]   ;;  %v9727_v20 = vld [vmem:[%s11647_s4 + $0x260] ss:$16 sps:$4 sm:$0xff]  }
  0x65   : > { %6608 = vmatpush1.bf16.msra.mxu0 %v9714_v11  ;;  %v9728_v21 = vld [vmem:[%s11647_s4 + $0x44] ss:$16 sps:$4 sm:$0xff]   ;;  %v9732_v23 = vld [vmem:[%s11647_s4 + $0x40] ss:$16 sps:$4 sm:$0xff]  }
  0x66   : > { %6649 = vmatpush1.bf16.msra.mxu1 %v9715_v12  ;;  %6609 = vmatprep.subr.bf16.mxu0 %v9716_v13  ;;  %v9730_v22 = vld [vmem:[%s11647_s4 + $0x244] ss:$16 sps:$4 sm:$0xff]   ;;  %v9733_v24 = vld [vmem:[%s11647_s4 + $0x240] ss:$16 sps:$4 sm:$0xff]  }
  0x67   : > { %6650 = vmatprep.subr.bf16.mxu1 %v9718_v14  ;;  %v9734_v25 = vld [vmem:[%s11647_s4 + $0x24] ss:$16 sps:$4 sm:$0xff]   ;;  %v9738_v27 = vld [vmem:[%s11647_s4 + $0x20] ss:$16 sps:$4 sm:$0xff]  }
  0x68   : > { %v9736_v26 = vld [vmem:[%s11647_s4 + $0x224] ss:$16 sps:$4 sm:$0xff]   ;;  %v9739_v28 = vld [vmem:[%s11647_s4 + $0x220] ss:$16 sps:$4 sm:$0xff]  }
  0x69   : > { %6610 = vmatpush1.bf16.msra.mxu0 %v9720_v15  ;;  %v9740_v29 = vld [vmem:[%s11647_s4 + $0x4] ss:$16 sps:$4 sm:$0xff]   ;;  %v9744_v31 = vld [vmem:[%s11647_s4] ss:$16 sps:$4 sm:$0xff]  }
  0x6a   : > { %6651 = vmatpush1.bf16.msra.mxu1 %v9721_v16  ;;  %6611 = vmatprep.subr.bf16.mxu0 %v9722_v17  ;;  %v9742_v30 = vld [vmem:[%s11647_s4 + $0x204] ss:$16 sps:$4 sm:$0xff]   ;;  %v9745_v32 = vld [vmem:[%s11647_s4 + $0x200] ss:$16 sps:$4 sm:$0xff]  }
  0x6b   : > { %6652 = vmatprep.subr.bf16.mxu1 %v9724_v18  ;;  %v9746_v33 = vld [vmem:[%s11647_s4 + $0x1e4] ss:$16 sps:$4 sm:$0xff]   ;;  %v9750_v35 = vld [vmem:[%s11647_s4 + $0x1e0] ss:$16 sps:$4 sm:$0xff]  }
  0x6c   : > { %v9748_v34 = vld [vmem:[%s11647_s4 + $0x3e4] ss:$16 sps:$4 sm:$0xff]   ;;  %v9751_v36 = vld [vmem:[%s11647_s4 + $0x3e0] ss:$16 sps:$4 sm:$0xff]  }
  0x6d   : > { %6612 = vmatpush1.bf16.msra.mxu0 %v9726_v19  ;;  %v9752_v37 = vld [vmem:[%s11647_s4 + $0x1c4] ss:$16 sps:$4 sm:$0xff]   ;;  %v9756_v39 = vld [vmem:[%s11647_s4 + $0x1c0] ss:$16 sps:$4 sm:$0xff]  }
  0x6e   : > { %6653 = vmatpush1.bf16.msra.mxu1 %v9727_v20  ;;  %6613 = vmatprep.subr.bf16.mxu0 %v9728_v21  ;;  %v9754_v38 = vld [vmem:[%s11647_s4 + $0x3c4] ss:$16 sps:$4 sm:$0xff]   ;;  %v9757_v40 = vld [vmem:[%s11647_s4 + $0x3c0] ss:$16 sps:$4 sm:$0xff]  }
  0x6f   : > { %6654 = vmatprep.subr.bf16.mxu1 %v9730_v22  ;;  %v9758_v41 = vld [vmem:[%s11647_s4 + $0x1a4] ss:$16 sps:$4 sm:$0xff]   ;;  %v9762_v43 = vld [vmem:[%s11647_s4 + $0x1a0] ss:$16 sps:$4 sm:$0xff]  }
  0x70   : > { %v9760_v42 = vld [vmem:[%s11647_s4 + $0x3a4] ss:$16 sps:$4 sm:$0xff]   ;;  %v9763_v44 = vld [vmem:[%s11647_s4 + $0x3a0] ss:$16 sps:$4 sm:$0xff]  }
  0x71   : > { %6614 = vmatpush1.bf16.msra.mxu0 %v9732_v23  ;;  %v9764_v45 = vld [vmem:[%s11647_s4 + $0x184] ss:$16 sps:$4 sm:$0xff]   ;;  %v9768_v50 = vld [vmem:[%s11647_s4 + $0x180] ss:$16 sps:$4 sm:$0xff]  }
  0x72   : > { %6655 = vmatpush1.bf16.msra.mxu1 %v9733_v24  ;;  %6615 = vmatprep.subr.bf16.mxu0 %v9734_v25  ;;  %v9766_v46 = vld [vmem:[%s11647_s4 + $0x384] ss:$16 sps:$4 sm:$0xff]   ;;  %v9769_v51 = vld [vmem:[%s11647_s4 + $0x380] ss:$16 sps:$4 sm:$0xff]  }
  0x73   : > { %6656 = vmatprep.subr.bf16.mxu1 %v9736_v26  ;;  %v331_v47 = vld [vmem:[%s11667_s5] sm:$0xff] }
  0x74   : > { %v11728_v48 = vcombine.high %v331_v47, %v331_v47  ;;  %v9770_v53 = vld [vmem:[%s11647_s4 + $0x164] ss:$16 sps:$4 sm:$0xff]   ;;  %v9774_v55 = vld [vmem:[%s11647_s4 + $0x160] ss:$16 sps:$4 sm:$0xff]   ;;  %v11755_v7 = vcombine.low %v331_v47, %v331_v47 }
  0x75   : > { %6616 = vmatpush1.bf16.msra.mxu0 %v9738_v27  ;;  %v9772_v54 = vld [vmem:[%s11647_s4 + $0x364] ss:$16 sps:$4 sm:$0xff]   ;;  %v9775_v56 = vld [vmem:[%s11647_s4 + $0x360] ss:$16 sps:$4 sm:$0xff]  }
  0x76   : > { %6657 = vmatpush1.bf16.msra.mxu1 %v9739_v28  ;;  %6617 = vmatprep.subr.bf16.mxu0 %v9740_v29  ;;  %v9776_v57 = vld [vmem:[%s11647_s4 + $0x144] ss:$16 sps:$4 sm:$0xff]   ;;  %v9780_v59 = vld [vmem:[%s11647_s4 + $0x140] ss:$16 sps:$4 sm:$0xff]  }
  0x77   : > { %6658 = vmatprep.subr.bf16.mxu1 %v9742_v30  ;;  %6635 = vmatprep.mubr.bf16.mxu0 %v11728_v48  ;;  %v9778_v58 = vld [vmem:[%s11647_s4 + $0x344] ss:$16 sps:$4 sm:$0xff]   ;;  %v9781_v60 = vld [vmem:[%s11647_s4 + $0x340] ss:$16 sps:$4 sm:$0xff]  }
  0x78   : > { %v9782_v61 = vld [vmem:[%s11647_s4 + $0x124] ss:$16 sps:$4 sm:$0xff]   ;;  %v9786_v63 = vld [vmem:[%s11647_s4 + $0x120] ss:$16 sps:$4 sm:$0xff]  }
  0x79   : > { %6618 = vmatpush1.bf16.msra.mxu0 %v9744_v31  ;;  %v9784_v62 = vld [vmem:[%s11647_s4 + $0x324] ss:$16 sps:$4 sm:$0xff]   ;;  %v9787_v0 = vld [vmem:[%s11647_s4 + $0x320] ss:$16 sps:$4 sm:$0xff]  }
  0x7a   : > { %6659 = vmatpush1.bf16.msra.mxu1 %v9745_v32  ;;  %6619 = vmatprep.subr.bf16.mxu0 %v9746_v33  ;;  %v9788_v1 = vld [vmem:[%s11647_s4 + $0x104] ss:$16 sps:$4 sm:$0xff]   ;;  %v9792_v3 = vld [vmem:[%s11647_s4 + $0x100] ss:$16 sps:$4 sm:$0xff]  }
  0x7b   : > { %6660 = vmatprep.subr.bf16.mxu1 %v9748_v34  ;;  %v9790_v2 = vld [vmem:[%s11647_s4 + $0x304] ss:$16 sps:$4 sm:$0xff]   ;;  %v9793_v4 = vld [vmem:[%s11647_s4 + $0x300] ss:$16 sps:$4 sm:$0xff]   ;;  %v11789_v34 = vld [vmem:[%s11667_s5 + $0x18] sm:$0xff] }
  0x7c   : > { %v9800_v5 = vld [vmem:[%s11647_s4 + $0x4e4] ss:$16 sps:$4 sm:$0xff]   ;;  %v9798_v9 = vld [vmem:[%s11647_s4 + $0x4e0] ss:$16 sps:$4 sm:$0xff]  }
  0x7d   : > { %6620 = vmatpush2.bf16.msra.mxu0 %v9750_v35  ;;  %v9803_v6 = vld [vmem:[%s11647_s4 + $0x6e4] ss:$16 sps:$4 sm:$0xff]   ;;  %v9801_v10 = vld [vmem:[%s11647_s4 + $0x6e0] ss:$16 sps:$4 sm:$0xff]  }
  0x7e   : > { %6661 = vmatpush2.bf16.msra.mxu1 %v9751_v36  ;;  %6621 = vmatprep.subr.bf16.mxu0 %v9752_v37  ;;  %v9806_v11 = vld [vmem:[%s11647_s4 + $0x4c4] ss:$16 sps:$4 sm:$0xff]   ;;  %v9804_v13 = vld [vmem:[%s11647_s4 + $0x4c0] ss:$16 sps:$4 sm:$0xff]  }
  0x7f   : > { %6662 = vmatprep.subr.bf16.mxu1 %v9754_v38  ;;  %v9809_v12 = vld [vmem:[%s11647_s4 + $0x6c4] ss:$16 sps:$4 sm:$0xff]   ;;  %v9807_v14 = vld [vmem:[%s11647_s4 + $0x6c0] ss:$16 sps:$4 sm:$0xff]   ;;  %v11799_v38 = vcombine.high %v11789_v34, %v11789_v34 }
  0x80   : > { %v9812_v15 = vld [vmem:[%s11647_s4 + $0x4a4] ss:$16 sps:$4 sm:$0xff]   ;;  %v9810_v17 = vld [vmem:[%s11647_s4 + $0x4a0] ss:$16 sps:$4 sm:$0xff]  }
  0x81   : > { %6622 = vmatpush2.bf16.msra.mxu0 %v9756_v39  ;;  %v9815_v16 = vld [vmem:[%s11647_s4 + $0x6a4] ss:$16 sps:$4 sm:$0xff]   ;;  %v9813_v18 = vld [vmem:[%s11647_s4 + $0x6a0] ss:$16 sps:$4 sm:$0xff]  }
  0x82   : > { %6663 = vmatpush2.bf16.msra.mxu1 %v9757_v40  ;;  %6623 = vmatprep.subr.bf16.mxu0 %v9758_v41  ;;  %v9818_v19 = vld [vmem:[%s11647_s4 + $0x484] ss:$16 sps:$4 sm:$0xff]   ;;  %v9816_v21 = vld [vmem:[%s11647_s4 + $0x480] ss:$16 sps:$4 sm:$0xff]  }
  0x83   : > { %6664 = vmatprep.subr.bf16.mxu1 %v9760_v42  ;;  %v9821_v20 = vld [vmem:[%s11647_s4 + $0x684] ss:$16 sps:$4 sm:$0xff]   ;;  %v9819_v22 = vld [vmem:[%s11647_s4 + $0x680] ss:$16 sps:$4 sm:$0xff]  }
  0x84   : > { %v9824_v23 = vld [vmem:[%s11647_s4 + $0x464] ss:$16 sps:$4 sm:$0xff]   ;;  %v9822_v25 = vld [vmem:[%s11647_s4 + $0x460] ss:$16 sps:$4 sm:$0xff]  }
  0x85   : > { %6624 = vmatpush2.bf16.msra.mxu0 %v9762_v43  ;;  %v9827_v24 = vld [vmem:[%s11647_s4 + $0x664] ss:$16 sps:$4 sm:$0xff]   ;;  %v9825_v26 = vld [vmem:[%s11647_s4 + $0x660] ss:$16 sps:$4 sm:$0xff]  }
  0x86   : > { %6665 = vmatpush2.bf16.msra.mxu1 %v9763_v44  ;;  %6625 = vmatprep.subr.bf16.mxu0 %v9764_v45  ;;  %v9830_v27 = vld [vmem:[%s11647_s4 + $0x444] ss:$16 sps:$4 sm:$0xff]   ;;  %v9828_v29 = vld [vmem:[%s11647_s4 + $0x440] ss:$16 sps:$4 sm:$0xff]  }
  0x87   : > { %6666 = vmatprep.subr.bf16.mxu1 %v9766_v46  ;;  %v9833_v28 = vld [vmem:[%s11647_s4 + $0x644] ss:$16 sps:$4 sm:$0xff]   ;;  %v9831_v30 = vld [vmem:[%s11647_s4 + $0x640] ss:$16 sps:$4 sm:$0xff]  }
  0x88   : > { %v9836_v31 = vld [vmem:[%s11647_s4 + $0x424] ss:$16 sps:$4 sm:$0xff]   ;;  %v9834_v35 = vld [vmem:[%s11647_s4 + $0x420] ss:$16 sps:$4 sm:$0xff]  }
  0x89   : > { %6626 = vmatpush2.bf16.msra.mxu0 %v9768_v50  ;;  %v9839_v32 = vld [vmem:[%s11647_s4 + $0x624] ss:$16 sps:$4 sm:$0xff]   ;;  %v9837_v36 = vld [vmem:[%s11647_s4 + $0x620] ss:$16 sps:$4 sm:$0xff]  }
  0x8a   : > { %6667 = vmatpush2.bf16.msra.mxu1 %v9769_v51  ;;  %6627 = vmatprep.subr.bf16.mxu0 %v9770_v53  ;;  %v11786_v33 = vld [vmem:[%s11667_s5 + $0x10] sm:$0xff] }
  0x8b   : > { %6668 = vmatprep.subr.bf16.mxu1 %v9772_v54  ;;  %v11795_v37 = vcombine.high %v11786_v33, %v11786_v33  ;;  %v9842_v39 = vld [vmem:[%s11647_s4 + $0x404] ss:$16 sps:$4 sm:$0xff]   ;;  %v9840_v41 = vld [vmem:[%s11647_s4 + $0x400] ss:$16 sps:$4 sm:$0xff]  }
  0x8c   : > { %v9845_v40 = vld [vmem:[%s11647_s4 + $0x604] ss:$16 sps:$4 sm:$0xff]   ;;  %v9843_v42 = vld [vmem:[%s11647_s4 + $0x600] ss:$16 sps:$4 sm:$0xff]  }
  0x8d   : > { %6628 = vmatpush2.bf16.msra.mxu0 %v9774_v55  ;;  %v9848_v43 = vld [vmem:[%s11647_s4 + $0x5e4] ss:$16 sps:$4 sm:$0xff]   ;;  %v9846_v45 = vld [vmem:[%s11647_s4 + $0x5e0] ss:$16 sps:$4 sm:$0xff]  }
  0x8e   : > { %6669 = vmatpush2.bf16.msra.mxu1 %v9775_v56  ;;  %6629 = vmatprep.subr.bf16.mxu0 %v9776_v57  ;;  %v9851_v44 = vld [vmem:[%s11647_s4 + $0x7e4] ss:$16 sps:$4 sm:$0xff]   ;;  %v9849_v46 = vld [vmem:[%s11647_s4 + $0x7e0] ss:$16 sps:$4 sm:$0xff]  }
  0x8f   : > { %6670 = vmatprep.subr.bf16.mxu1 %v9778_v58  ;;  %v9854_v47 = vld [vmem:[%s11647_s4 + $0x5c4] ss:$16 sps:$4 sm:$0xff]   ;;  %v9852_v50 = vld [vmem:[%s11647_s4 + $0x5c0] ss:$16 sps:$4 sm:$0xff]  }
  0x90   : > { %v9857_v49 = vld [vmem:[%s11647_s4 + $0x7c4] ss:$16 sps:$4 sm:$0xff]   ;;  %v9855_v51 = vld [vmem:[%s11647_s4 + $0x7c0] ss:$16 sps:$4 sm:$0xff]  }
  0x91   : > { %6630 = vmatpush2.bf16.msra.mxu0 %v9780_v59  ;;  %v9860_v53 = vld [vmem:[%s11647_s4 + $0x5a4] ss:$16 sps:$4 sm:$0xff]   ;;  %v9858_v55 = vld [vmem:[%s11647_s4 + $0x5a0] ss:$16 sps:$4 sm:$0xff]  }
  0x92   : > { %6671 = vmatpush2.bf16.msra.mxu1 %v9781_v60  ;;  %6631 = vmatprep.subr.bf16.mxu0 %v9782_v61  ;;  %v9863_v54 = vld [vmem:[%s11647_s4 + $0x7a4] ss:$16 sps:$4 sm:$0xff]   ;;  %v9861_v56 = vld [vmem:[%s11647_s4 + $0x7a0] ss:$16 sps:$4 sm:$0xff]  }
  0x93   : > { %6672 = vmatprep.subr.bf16.mxu1 %v9784_v62  ;;  %v9866_v57 = vld [vmem:[%s11647_s4 + $0x584] ss:$16 sps:$4 sm:$0xff]   ;;  %v9864_v59 = vld [vmem:[%s11647_s4 + $0x580] ss:$16 sps:$4 sm:$0xff]  }
  0x94   : > { %v9869_v58 = vld [vmem:[%s11647_s4 + $0x784] ss:$16 sps:$4 sm:$0xff]   ;;  %v9867_v60 = vld [vmem:[%s11647_s4 + $0x780] ss:$16 sps:$4 sm:$0xff]  }
  0x95   : > { %6632 = vmatpush2.bf16.msra.mxu0 %v9786_v63  ;;  %v9872_v61 = vld [vmem:[%s11647_s4 + $0x564] ss:$16 sps:$4 sm:$0xff]   ;;  %v9870_v63 = vld [vmem:[%s11647_s4 + $0x560] ss:$16 sps:$4 sm:$0xff]  }
  0x96   : > { %6673 = vmatpush2.bf16.msra.mxu1 %v9787_v0  ;;  %6633 = vmatprep.subr.bf16.mxu0 %v9788_v1  ;;  %v9875_v62 = vld [vmem:[%s11647_s4 + $0x764] ss:$16 sps:$4 sm:$0xff]   ;;  %v9873_v0 = vld [vmem:[%s11647_s4 + $0x760] ss:$16 sps:$4 sm:$0xff]  }
  0x97   : > { %6674 = vmatprep.subr.bf16.mxu1 %v9790_v2  ;;  %v9878_v1 = vld [vmem:[%s11647_s4 + $0x544] ss:$16 sps:$4 sm:$0xff]  }
  0x98   : > { %v9881_v2 = vld [vmem:[%s11647_s4 + $0x744] ss:$16 sps:$4 sm:$0xff]  }
  0x99   : > { %6634 = vmatpush2.bf16.msra.mxu0 %v9792_v3  ;;  %v9876_v3 = vld [vmem:[%s11647_s4 + $0x540] ss:$16 sps:$4 sm:$0xff]  }
  0x9a   : > { %6675 = vmatpush2.bf16.msra.mxu1 %v9793_v4  ;;  %6685 = vmatprep.subr.bf16.mxu0 %v9800_v5  ;;  %v9879_v4 = vld [vmem:[%s11647_s4 + $0x740] ss:$16 sps:$4 sm:$0xff]   ;;  %v9884_v5 = vld [vmem:[%s11647_s4 + $0x524] ss:$16 sps:$4 sm:$0xff]  }
  0x9b   : > { %6726 = vmatprep.subr.bf16.mxu1 %v9803_v6  ;;  %v9887_v6 = vld [vmem:[%s11647_s4 + $0x724] ss:$16 sps:$4 sm:$0xff]  }
  0x9c   : > { %6636 = vmatmul.mubr.bf16.vlgmr.msra.gmra.mxu0 %v11755_v7 }
  0x9d   : > { %6677 = vmatmul.mubr.bf16.vlgmr.msra.gmra.mxu1 %v11757_v8  ;;  %6686 = vmatpush1.bf16.msra.mxu0 %v9798_v9  ;;  %v9882_v9 = vld [vmem:[%s11647_s4 + $0x520] ss:$16 sps:$4 sm:$0xff]  }
  0x9e   : > { %6727 = vmatpush1.bf16.msra.mxu1 %v9801_v10  ;;  %6687 = vmatprep.subr.bf16.mxu0 %v9806_v11  ;;  %v9885_v10 = vld [vmem:[%s11647_s4 + $0x720] ss:$16 sps:$4 sm:$0xff]   ;;  %v9890_v11 = vld [vmem:[%s11647_s4 + $0x504] ss:$16 sps:$4 sm:$0xff]  }
  0x9f   : > { %6728 = vmatprep.subr.bf16.mxu1 %v9809_v12  ;;  %6717 = vmatprep.mubr.bf16.mxu0 %v11795_v37  ;;  %v9893_v12 = vld [vmem:[%s11647_s4 + $0x704] ss:$16 sps:$4 sm:$0xff]  }
  0xa0   : > { %6758 = vmatprep.mubr.bf16.mxu1 %v11799_v38 }
  0xa1   : > { %6688 = vmatpush1.bf16.msra.mxu0 %v9804_v13  ;;  %v9888_v13 = vld [vmem:[%s11647_s4 + $0x500] ss:$16 sps:$4 sm:$0xff]  }
  0xa2   : > { %6729 = vmatpush1.bf16.msra.mxu1 %v9807_v14  ;;  %6689 = vmatprep.subr.bf16.mxu0 %v9812_v15  ;;  %v9891_v14 = vld [vmem:[%s11647_s4 + $0x700] ss:$16 sps:$4 sm:$0xff]   ;;  %v9900_v15 = vld [vmem:[%s11647_s4 + $0x8e4] ss:$16 sps:$4 sm:$0xff]  }
  0xa3   : > { %6730 = vmatprep.subr.bf16.mxu1 %v9815_v16  ;;  %v9903_v16 = vld [vmem:[%s11647_s4 + $0xae4] ss:$16 sps:$4 sm:$0xff]  }
  0xa5   : > { %6690 = vmatpush1.bf16.msra.mxu0 %v9810_v17  ;;  %v11843_v17 = vcombine.low %v11786_v33, %v11786_v33  ;;  %v9918_v33 = vld [vmem:[%s11647_s4 + $0x884] ss:$16 sps:$4 sm:$0xff]  }
  0xa6   : > { %6731 = vmatpush1.bf16.msra.mxu1 %v9813_v18  ;;  %6691 = vmatprep.subr.bf16.mxu0 %v9818_v19  ;;  %v11847_v18 = vcombine.low %v11789_v34, %v11789_v34  ;;  %v9898_v19 = vld [vmem:[%s11647_s4 + $0x8e0] ss:$16 sps:$4 sm:$0xff]   ;;  %v9921_v34 = vld [vmem:[%s11647_s4 + $0xa84] ss:$16 sps:$4 sm:$0xff]  }
  0xa7   : > { %6732 = vmatprep.subr.bf16.mxu1 %v9821_v20  ;;  %v9901_v20 = vld [vmem:[%s11647_s4 + $0xae0] ss:$16 sps:$4 sm:$0xff]  }
  0xa9   : > { %6692 = vmatpush1.bf16.msra.mxu0 %v9816_v21  ;;  %v9906_v21 = vld [vmem:[%s11647_s4 + $0x8c4] ss:$16 sps:$4 sm:$0xff]  }
  0xaa   : > { %6733 = vmatpush1.bf16.msra.mxu1 %v9819_v22  ;;  %6693 = vmatprep.subr.bf16.mxu0 %v9824_v23  ;;  %v9909_v22 = vld [vmem:[%s11647_s4 + $0xac4] ss:$16 sps:$4 sm:$0xff]  }
  0xab   : > { %6734 = vmatprep.subr.bf16.mxu1 %v9827_v24  ;;  %v11854_v23 = vld [vmem:[%s11667_s5 + $0x20] sm:$0xff]  ;;  %v11857_v24 = vld [vmem:[%s11667_s5 + $0x28] sm:$0xff] }
  0xad   : > { %6694 = vmatpush1.bf16.msra.mxu0 %v9822_v25  ;;  %v11861_v25 = vcombine.high %v11854_v23, %v11854_v23 }
  0xae   : > { %6735 = vmatpush1.bf16.msra.mxu1 %v9825_v26  ;;  %6695 = vmatprep.subr.bf16.mxu0 %v9830_v27  ;;  %v11865_v26 = vcombine.high %v11857_v24, %v11857_v24  ;;  %v9904_v27 = vld [vmem:[%s11647_s4 + $0x8c0] ss:$16 sps:$4 sm:$0xff]  }
  0xaf   : > { %6736 = vmatprep.subr.bf16.mxu1 %v9833_v28  ;;  %v9907_v28 = vld [vmem:[%s11647_s4 + $0xac0] ss:$16 sps:$4 sm:$0xff]  }
  0xb1   : > { %6696 = vmatpush1.bf16.msra.mxu0 %v9828_v29  ;;  %v9912_v29 = vld [vmem:[%s11647_s4 + $0x8a4] ss:$16 sps:$4 sm:$0xff]  }
  0xb2   : > { %6737 = vmatpush1.bf16.msra.mxu1 %v9831_v30  ;;  %6697 = vmatprep.subr.bf16.mxu0 %v9836_v31  ;;  %v9915_v30 = vld [vmem:[%s11647_s4 + $0xaa4] ss:$16 sps:$4 sm:$0xff]   ;;  %v9910_v31 = vld [vmem:[%s11647_s4 + $0x8a0] ss:$16 sps:$4 sm:$0xff]  }
  0xb3   : > { %6738 = vmatprep.subr.bf16.mxu1 %v9839_v32  ;;  %v9913_v32 = vld [vmem:[%s11647_s4 + $0xaa0] ss:$16 sps:$4 sm:$0xff]  }
  0xb5   : > { %6698 = vmatpush1.bf16.msra.mxu0 %v9834_v35  ;;  %v9916_v35 = vld [vmem:[%s11647_s4 + $0x880] ss:$16 sps:$4 sm:$0xff]  }
  0xb6   : > { %6739 = vmatpush1.bf16.msra.mxu1 %v9837_v36  ;;  %6699 = vmatprep.subr.bf16.mxu0 %v9842_v39  ;;  %v9919_v36 = vld [vmem:[%s11647_s4 + $0xa80] ss:$16 sps:$4 sm:$0xff]   ;;  %v9924_v39 = vld [vmem:[%s11647_s4 + $0x864] ss:$16 sps:$4 sm:$0xff]  }
  0xb7   : > { %6740 = vmatprep.subr.bf16.mxu1 %v9845_v40  ;;  %v9927_v40 = vld [vmem:[%s11647_s4 + $0xa64] ss:$16 sps:$4 sm:$0xff]  }
  0xb9   : > { %6700 = vmatpush1.bf16.msra.mxu0 %v9840_v41  ;;  %v9922_v41 = vld [vmem:[%s11647_s4 + $0x860] ss:$16 sps:$4 sm:$0xff]  }
  0xba   : > { %6741 = vmatpush1.bf16.msra.mxu1 %v9843_v42  ;;  %6701 = vmatprep.subr.bf16.mxu0 %v9848_v43  ;;  %v9925_v42 = vld [vmem:[%s11647_s4 + $0xa60] ss:$16 sps:$4 sm:$0xff]   ;;  %v9930_v43 = vld [vmem:[%s11647_s4 + $0x844] ss:$16 sps:$4 sm:$0xff]  }
  0xbb   : > { %6742 = vmatprep.subr.bf16.mxu1 %v9851_v44  ;;  %v9933_v44 = vld [vmem:[%s11647_s4 + $0xa44] ss:$16 sps:$4 sm:$0xff]  }
  0xbd   : > { %6702 = vmatpush2.bf16.msra.mxu0 %v9846_v45  ;;  %v9928_v45 = vld [vmem:[%s11647_s4 + $0x840] ss:$16 sps:$4 sm:$0xff]  }
  0xbe   : > { %6743 = vmatpush2.bf16.msra.mxu1 %v9849_v46  ;;  %6703 = vmatprep.subr.bf16.mxu0 %v9854_v47  ;;  %v9931_v46 = vld [vmem:[%s11647_s4 + $0xa40] ss:$16 sps:$4 sm:$0xff]   ;;  %v9936_v47 = vld [vmem:[%s11647_s4 + $0x824] ss:$16 sps:$4 sm:$0xff]  }
  0xbf   : > { %6744 = vmatprep.subr.bf16.mxu1 %v9857_v49  ;;  %v9939_v49 = vld [vmem:[%s11647_s4 + $0xa24] ss:$16 sps:$4 sm:$0xff]  }
  0xc1   : > { %6704 = vmatpush2.bf16.msra.mxu0 %v9852_v50  ;;  %v9934_v50 = vld [vmem:[%s11647_s4 + $0x820] ss:$16 sps:$4 sm:$0xff]  }
  0xc2   : > { %6745 = vmatpush2.bf16.msra.mxu1 %v9855_v51  ;;  %6705 = vmatprep.subr.bf16.mxu0 %v9860_v53  ;;  %v9937_v51 = vld [vmem:[%s11647_s4 + $0xa20] ss:$16 sps:$4 sm:$0xff]   ;;  %v9942_v53 = vld [vmem:[%s11647_s4 + $0x804] ss:$16 sps:$4 sm:$0xff]  }
  0xc3   : > { %6746 = vmatprep.subr.bf16.mxu1 %v9863_v54  ;;  %v9945_v54 = vld [vmem:[%s11647_s4 + $0xa04] ss:$16 sps:$4 sm:$0xff]  }
  0xc5   : > { %6706 = vmatpush2.bf16.msra.mxu0 %v9858_v55  ;;  %v9940_v55 = vld [vmem:[%s11647_s4 + $0x800] ss:$16 sps:$4 sm:$0xff]  }
  0xc6   : > { %6747 = vmatpush2.bf16.msra.mxu1 %v9861_v56  ;;  %6707 = vmatprep.subr.bf16.mxu0 %v9866_v57  ;;  %v9943_v56 = vld [vmem:[%s11647_s4 + $0xa00] ss:$16 sps:$4 sm:$0xff]   ;;  %v9948_v57 = vld [vmem:[%s11647_s4 + $0x9e4] ss:$16 sps:$4 sm:$0xff]  }
  0xc7   : > { %6748 = vmatprep.subr.bf16.mxu1 %v9869_v58  ;;  %v9951_v58 = vld [vmem:[%s11647_s4 + $0xbe4] ss:$16 sps:$4 sm:$0xff]  }
  0xc9   : > { %6708 = vmatpush2.bf16.msra.mxu0 %v9864_v59  ;;  %v9946_v59 = vld [vmem:[%s11647_s4 + $0x9e0] ss:$16 sps:$4 sm:$0xff]  }
  0xca   : > { %6749 = vmatpush2.bf16.msra.mxu1 %v9867_v60  ;;  %6709 = vmatprep.subr.bf16.mxu0 %v9872_v61  ;;  %v9949_v60 = vld [vmem:[%s11647_s4 + $0xbe0] ss:$16 sps:$4 sm:$0xff]   ;;  %v9954_v61 = vld [vmem:[%s11647_s4 + $0x9c4] ss:$16 sps:$4 sm:$0xff]  }
  0xcb   : > { %6750 = vmatprep.subr.bf16.mxu1 %v9875_v62  ;;  %v9957_v62 = vld [vmem:[%s11647_s4 + $0xbc4] ss:$16 sps:$4 sm:$0xff]  }
  0xcd   : > { %6710 = vmatpush2.bf16.msra.mxu0 %v9870_v63  ;;  %v9952_v63 = vld [vmem:[%s11647_s4 + $0x9c0] ss:$16 sps:$4 sm:$0xff]  }
  0xce   : > { %6751 = vmatpush2.bf16.msra.mxu1 %v9873_v0  ;;  %6711 = vmatprep.subr.bf16.mxu0 %v9878_v1  ;;  %v9955_v0 = vld [vmem:[%s11647_s4 + $0xbc0] ss:$16 sps:$4 sm:$0xff]   ;;  %v9960_v1 = vld [vmem:[%s11647_s4 + $0x9a4] ss:$16 sps:$4 sm:$0xff]  }
  0xcf   : > { %6752 = vmatprep.subr.bf16.mxu1 %v9881_v2  ;;  %v9963_v2 = vld [vmem:[%s11647_s4 + $0xba4] ss:$16 sps:$4 sm:$0xff]  }
  0xd1   : > { %6712 = vmatpush2.bf16.msra.mxu0 %v9876_v3  ;;  %v9958_v3 = vld [vmem:[%s11647_s4 + $0x9a0] ss:$16 sps:$4 sm:$0xff]  }
  0xd2   : > { %6753 = vmatpush2.bf16.msra.mxu1 %v9879_v4  ;;  %6713 = vmatprep.subr.bf16.mxu0 %v9884_v5  ;;  %v9961_v4 = vld [vmem:[%s11647_s4 + $0xba0] ss:$16 sps:$4 sm:$0xff]   ;;  %v9966_v5 = vld [vmem:[%s11647_s4 + $0x984] ss:$16 sps:$4 sm:$0xff]  }
  0xd3   : > { %6754 = vmatprep.subr.bf16.mxu1 %v9887_v6  ;;  %v9969_v6 = vld [vmem:[%s11647_s4 + $0xb84] ss:$16 sps:$4 sm:$0xff]  }
  0xd5   : > { %6714 = vmatpush2.bf16.msra.mxu0 %v9882_v9  ;;  %v9964_v9 = vld [vmem:[%s11647_s4 + $0x980] ss:$16 sps:$4 sm:$0xff]  }
  0xd6   : > { %6755 = vmatpush2.bf16.msra.mxu1 %v9885_v10  ;;  %6715 = vmatprep.subr.bf16.mxu0 %v9890_v11  ;;  %v9967_v10 = vld [vmem:[%s11647_s4 + $0xb80] ss:$16 sps:$4 sm:$0xff]   ;;  %v9972_v11 = vld [vmem:[%s11647_s4 + $0x964] ss:$16 sps:$4 sm:$0xff]  }
  0xd7   : > { %6756 = vmatprep.subr.bf16.mxu1 %v9893_v12  ;;  %v9975_v12 = vld [vmem:[%s11647_s4 + $0xb64] ss:$16 sps:$4 sm:$0xff]  }
  0xd9   : > { %6716 = vmatpush2.bf16.msra.mxu0 %v9888_v13  ;;  %v9970_v13 = vld [vmem:[%s11647_s4 + $0x960] ss:$16 sps:$4 sm:$0xff]  }
  0xda   : > { %6757 = vmatpush2.bf16.msra.mxu1 %v9891_v14  ;;  %6767 = vmatprep.subr.bf16.mxu0 %v9900_v15  ;;  %v9973_v14 = vld [vmem:[%s11647_s4 + $0xb60] ss:$16 sps:$4 sm:$0xff]   ;;  %v9978_v15 = vld [vmem:[%s11647_s4 + $0x944] ss:$16 sps:$4 sm:$0xff]  }
  0xdb   : > { %6808 = vmatprep.subr.bf16.mxu1 %v9903_v16  ;;  %v9981_v16 = vld [vmem:[%s11647_s4 + $0xb44] ss:$16 sps:$4 sm:$0xff]  }
  0xdc   : > { %6718 = vmatmul.mubr.bf16.vlgmr.msra.gmra.mxu0 %v11843_v17 }
  0xdd   : > { %6759 = vmatmul.mubr.bf16.vlgmr.msra.gmra.mxu1 %v11847_v18  ;;  %6768 = vmatpush1.bf16.msra.mxu0 %v9898_v19  ;;  %v9976_v19 = vld [vmem:[%s11647_s4 + $0x940] ss:$16 sps:$4 sm:$0xff]  }
  0xde   : > { %6809 = vmatpush1.bf16.msra.mxu1 %v9901_v20  ;;  %6769 = vmatprep.subr.bf16.mxu0 %v9906_v21  ;;  %v9979_v20 = vld [vmem:[%s11647_s4 + $0xb40] ss:$16 sps:$4 sm:$0xff]   ;;  %v9984_v21 = vld [vmem:[%s11647_s4 + $0x924] ss:$16 sps:$4 sm:$0xff]  }
  0xdf   : > { %6810 = vmatprep.subr.bf16.mxu1 %v9909_v22  ;;  %6799 = vmatprep.mubr.bf16.mxu0 %v11861_v25  ;;  %v9987_v22 = vld [vmem:[%s11647_s4 + $0xb24] ss:$16 sps:$4 sm:$0xff]  }
  0xe0   : > { %6840 = vmatprep.mubr.bf16.mxu1 %v11865_v26 }
  0xe1   : > { %6770 = vmatpush1.bf16.msra.mxu0 %v9904_v27  ;;  %v9982_v27 = vld [vmem:[%s11647_s4 + $0x920] ss:$16 sps:$4 sm:$0xff]  }
  0xe2   : > { %6811 = vmatpush1.bf16.msra.mxu1 %v9907_v28  ;;  %6771 = vmatprep.subr.bf16.mxu0 %v9912_v29  ;;  %v9985_v28 = vld [vmem:[%s11647_s4 + $0xb20] ss:$16 sps:$4 sm:$0xff]   ;;  %v9990_v29 = vld [vmem:[%s11647_s4 + $0x904] ss:$16 sps:$4 sm:$0xff]  }
  0xe3   : > { %6812 = vmatprep.subr.bf16.mxu1 %v9915_v30  ;;  %v9993_v30 = vld [vmem:[%s11647_s4 + $0xb04] ss:$16 sps:$4 sm:$0xff]  }
  0xe5   : > { %6772 = vmatpush1.bf16.msra.mxu0 %v9910_v31  ;;  %v9988_v31 = vld [vmem:[%s11647_s4 + $0x900] ss:$16 sps:$4 sm:$0xff]  }
  0xe6   : > { %6813 = vmatpush1.bf16.msra.mxu1 %v9913_v32  ;;  %6773 = vmatprep.subr.bf16.mxu0 %v9918_v33  ;;  %v9991_v32 = vld [vmem:[%s11647_s4 + $0xb00] ss:$16 sps:$4 sm:$0xff]   ;;  %v10000_v33 = vld [vmem:[%s11647_s4 + $0xce4] ss:$16 sps:$4 sm:$0xff]  }
  0xe7   : > { %6814 = vmatprep.subr.bf16.mxu1 %v9921_v34  ;;  %v10003_v34 = vld [vmem:[%s11647_s4 + $0xee4] ss:$16 sps:$4 sm:$0xff]  }
  0xe9   : > { %6774 = vmatpush1.bf16.msra.mxu0 %v9916_v35  ;;  %v9998_v35 = vld [vmem:[%s11647_s4 + $0xce0] ss:$16 sps:$4 sm:$0xff]  }
  0xea   : > { %6815 = vmatpush1.bf16.msra.mxu1 %v9919_v36  ;;  %6775 = vmatprep.subr.bf16.mxu0 %v9924_v39  ;;  %v10001_v36 = vld [vmem:[%s11647_s4 + $0xee0] ss:$16 sps:$4 sm:$0xff]   ;;  %v11935_v39 = vcombine.low %v11854_v23, %v11854_v23 }
  0xeb   : > { %6816 = vmatprep.subr.bf16.mxu1 %v9927_v40  ;;  %v11939_v40 = vcombine.low %v11857_v24, %v11857_v24 }
  0xed   : > { %6776 = vmatpush1.bf16.msra.mxu0 %v9922_v41  ;;  %v11942_v41 = vld [vmem:[%s11667_s5 + $0x30] sm:$0xff] }
  0xee   : > { %6817 = vmatpush1.bf16.msra.mxu1 %v9925_v42  ;;  %6777 = vmatprep.subr.bf16.mxu0 %v9930_v43  ;;  %v11945_v42 = vld [vmem:[%s11667_s5 + $0x38] sm:$0xff]  ;;  %v10006_v43 = vld [vmem:[%s11647_s4 + $0xcc4] ss:$16 sps:$4 sm:$0xff]   ;;  %v11951_v23 = vcombine.high %v11942_v41, %v11942_v41 }
  0xef   : > { %6818 = vmatprep.subr.bf16.mxu1 %v9933_v44  ;;  %v10009_v44 = vld [vmem:[%s11647_s4 + $0xec4] ss:$16 sps:$4 sm:$0xff]   ;;  %v11955_v24 = vcombine.high %v11945_v42, %v11945_v42 }
  0xf1   : > { %6778 = vmatpush1.bf16.msra.mxu0 %v9928_v45  ;;  %v10004_v45 = vld [vmem:[%s11647_s4 + $0xcc0] ss:$16 sps:$4 sm:$0xff]  }
  0xf2   : > { %6819 = vmatpush1.bf16.msra.mxu1 %v9931_v46  ;;  %6779 = vmatprep.subr.bf16.mxu0 %v9936_v47  ;;  %v10007_v46 = vld [vmem:[%s11647_s4 + $0xec0] ss:$16 sps:$4 sm:$0xff]   ;;  %v10012_v47 = vld [vmem:[%s11647_s4 + $0xca4] ss:$16 sps:$4 sm:$0xff]  }
  0xf3   : > { %6820 = vmatprep.subr.bf16.mxu1 %v9939_v49  ;;  %v10015_v49 = vld [vmem:[%s11647_s4 + $0xea4] ss:$16 sps:$4 sm:$0xff]  }
  0xf5   : > { %6780 = vmatpush1.bf16.msra.mxu0 %v9934_v50  ;;  %v10010_v50 = vld [vmem:[%s11647_s4 + $0xca0] ss:$16 sps:$4 sm:$0xff]  }
  0xf6   : > { %6821 = vmatpush1.bf16.msra.mxu1 %v9937_v51  ;;  %6781 = vmatprep.subr.bf16.mxu0 %v9942_v53  ;;  %v10013_v51 = vld [vmem:[%s11647_s4 + $0xea0] ss:$16 sps:$4 sm:$0xff]   ;;  %v10018_v53 = vld [vmem:[%s11647_s4 + $0xc84] ss:$16 sps:$4 sm:$0xff]  }
  0xf7   : > { %6822 = vmatprep.subr.bf16.mxu1 %v9945_v54  ;;  %v10021_v54 = vld [vmem:[%s11647_s4 + $0xe84] ss:$16 sps:$4 sm:$0xff]  }
  0xf9   : > { %6782 = vmatpush1.bf16.msra.mxu0 %v9940_v55  ;;  %v10016_v55 = vld [vmem:[%s11647_s4 + $0xc80] ss:$16 sps:$4 sm:$0xff]  }
  0xfa   : > { %6823 = vmatpush1.bf16.msra.mxu1 %v9943_v56  ;;  %6783 = vmatprep.subr.bf16.mxu0 %v9948_v57  ;;  %v10019_v56 = vld [vmem:[%s11647_s4 + $0xe80] ss:$16 sps:$4 sm:$0xff]   ;;  %v10024_v57 = vld [vmem:[%s11647_s4 + $0xc64] ss:$16 sps:$4 sm:$0xff]  }
  0xfb   : > { %6824 = vmatprep.subr.bf16.mxu1 %v9951_v58  ;;  %v10027_v58 = vld [vmem:[%s11647_s4 + $0xe64] ss:$16 sps:$4 sm:$0xff]  }
  0xfd   : > { %6784 = vmatpush2.bf16.msra.mxu0 %v9946_v59  ;;  %v10022_v59 = vld [vmem:[%s11647_s4 + $0xc60] ss:$16 sps:$4 sm:$0xff]  }
  0xfe   : > { %6825 = vmatpush2.bf16.msra.mxu1 %v9949_v60  ;;  %6785 = vmatprep.subr.bf16.mxu0 %v9954_v61  ;;  %v10025_v60 = vld [vmem:[%s11647_s4 + $0xe60] ss:$16 sps:$4 sm:$0xff]   ;;  %v10030_v61 = vld [vmem:[%s11647_s4 + $0xc44] ss:$16 sps:$4 sm:$0xff]  }
  0xff   : > { %6826 = vmatprep.subr.bf16.mxu1 %v9957_v62  ;;  %v10033_v62 = vld [vmem:[%s11647_s4 + $0xe44] ss:$16 sps:$4 sm:$0xff]  }
 0x101   : > { %6786 = vmatpush2.bf16.msra.mxu0 %v9952_v63  ;;  %v10028_v63 = vld [vmem:[%s11647_s4 + $0xc40] ss:$16 sps:$4 sm:$0xff]  }
 0x102   : > { %6827 = vmatpush2.bf16.msra.mxu1 %v9955_v0  ;;  %6787 = vmatprep.subr.bf16.mxu0 %v9960_v1  ;;  %v10031_v0 = vld [vmem:[%s11647_s4 + $0xe40] ss:$16 sps:$4 sm:$0xff]   ;;  %v10036_v1 = vld [vmem:[%s11647_s4 + $0xc24] ss:$16 sps:$4 sm:$0xff]  }
 0x103   : > { %6828 = vmatprep.subr.bf16.mxu1 %v9963_v2  ;;  %v10039_v2 = vld [vmem:[%s11647_s4 + $0xe24] ss:$16 sps:$4 sm:$0xff]  }
 0x105   : > { %6788 = vmatpush2.bf16.msra.mxu0 %v9958_v3  ;;  %v10034_v3 = vld [vmem:[%s11647_s4 + $0xc20] ss:$16 sps:$4 sm:$0xff]  }
 0x106   : > { %6829 = vmatpush2.bf16.msra.mxu1 %v9961_v4  ;;  %6789 = vmatprep.subr.bf16.mxu0 %v9966_v5  ;;  %v10037_v4 = vld [vmem:[%s11647_s4 + $0xe20] ss:$16 sps:$4 sm:$0xff]   ;;  %v10042_v5 = vld [vmem:[%s11647_s4 + $0xc04] ss:$16 sps:$4 sm:$0xff]  }
 0x107   : > { %6830 = vmatprep.subr.bf16.mxu1 %v9969_v6  ;;  %v10045_v6 = vld [vmem:[%s11647_s4 + $0xe04] ss:$16 sps:$4 sm:$0xff]  }
 0x109   : > { %6790 = vmatpush2.bf16.msra.mxu0 %v9964_v9  ;;  %v10040_v9 = vld [vmem:[%s11647_s4 + $0xc00] ss:$16 sps:$4 sm:$0xff]  }
 0x10a   : > { %6831 = vmatpush2.bf16.msra.mxu1 %v9967_v10  ;;  %6791 = vmatprep.subr.bf16.mxu0 %v9972_v11  ;;  %v10043_v10 = vld [vmem:[%s11647_s4 + $0xe00] ss:$16 sps:$4 sm:$0xff]   ;;  %v10048_v11 = vld [vmem:[%s11647_s4 + $0xde4] ss:$16 sps:$4 sm:$0xff]  }
 0x10b   : > { %6832 = vmatprep.subr.bf16.mxu1 %v9975_v12  ;;  %v10051_v12 = vld [vmem:[%s11647_s4 + $0xfe4] ss:$16 sps:$4 sm:$0xff]  }
 0x10d   : > { %6792 = vmatpush2.bf16.msra.mxu0 %v9970_v13  ;;  %v10046_v13 = vld [vmem:[%s11647_s4 + $0xde0] ss:$16 sps:$4 sm:$0xff]  }
 0x10e   : > { %6833 = vmatpush2.bf16.msra.mxu1 %v9973_v14  ;;  %6793 = vmatprep.subr.bf16.mxu0 %v9978_v15  ;;  %v10049_v14 = vld [vmem:[%s11647_s4 + $0xfe0] ss:$16 sps:$4 sm:$0xff]   ;;  %v10054_v15 = vld [vmem:[%s11647_s4 + $0xdc4] ss:$16 sps:$4 sm:$0xff]  }
 0x10f   : > { %6834 = vmatprep.subr.bf16.mxu1 %v9981_v16  ;;  %v10057_v16 = vld [vmem:[%s11647_s4 + $0xfc4] ss:$16 sps:$4 sm:$0xff]  }
 0x111   : > { %6794 = vmatpush2.bf16.msra.mxu0 %v9976_v19  ;;  %v10052_v19 = vld [vmem:[%s11647_s4 + $0xdc0] ss:$16 sps:$4 sm:$0xff]  }
 0x112   : > { %6835 = vmatpush2.bf16.msra.mxu1 %v9979_v20  ;;  %6795 = vmatprep.subr.bf16.mxu0 %v9984_v21  ;;  %v10055_v20 = vld [vmem:[%s11647_s4 + $0xfc0] ss:$16 sps:$4 sm:$0xff]   ;;  %v10060_v21 = vld [vmem:[%s11647_s4 + $0xda4] ss:$16 sps:$4 sm:$0xff]  }
 0x113   : > { %6836 = vmatprep.subr.bf16.mxu1 %v9987_v22  ;;  %v10063_v22 = vld [vmem:[%s11647_s4 + $0xfa4] ss:$16 sps:$4 sm:$0xff]  }
 0x115   : > { %6796 = vmatpush2.bf16.msra.mxu0 %v9982_v27  ;;  %v10058_v27 = vld [vmem:[%s11647_s4 + $0xda0] ss:$16 sps:$4 sm:$0xff]  }
 0x116   : > { %6837 = vmatpush2.bf16.msra.mxu1 %v9985_v28  ;;  %6797 = vmatprep.subr.bf16.mxu0 %v9990_v29  ;;  %v10061_v28 = vld [vmem:[%s11647_s4 + $0xfa0] ss:$16 sps:$4 sm:$0xff]   ;;  %v10066_v29 = vld [vmem:[%s11647_s4 + $0xd84] ss:$16 sps:$4 sm:$0xff]  }
 0x117   : > { %6838 = vmatprep.subr.bf16.mxu1 %v9993_v30  ;;  %v10069_v30 = vld [vmem:[%s11647_s4 + $0xf84] ss:$16 sps:$4 sm:$0xff]  }
 0x119   : > { %6798 = vmatpush2.bf16.msra.mxu0 %v9988_v31  ;;  %v10064_v31 = vld [vmem:[%s11647_s4 + $0xd80] ss:$16 sps:$4 sm:$0xff]  }
 0x11a   : > { %6839 = vmatpush2.bf16.msra.mxu1 %v9991_v32  ;;  %6849 = vmatprep.subr.bf16.mxu0 %v10000_v33  ;;  %v10067_v32 = vld [vmem:[%s11647_s4 + $0xf80] ss:$16 sps:$4 sm:$0xff]   ;;  %v10072_v33 = vld [vmem:[%s11647_s4 + $0xd64] ss:$16 sps:$4 sm:$0xff]  }
 0x11b   : > { %6890 = vmatprep.subr.bf16.mxu1 %v10003_v34  ;;  %v10075_v34 = vld [vmem:[%s11647_s4 + $0xf64] ss:$16 sps:$4 sm:$0xff]  }
 0x11c   : > { %6800 = vmatmul.mubr.bf16.vlgmr.msra.gmra.mxu0 %v11935_v39 }
 0x11d   : > { %6841 = vmatmul.mubr.bf16.vlgmr.msra.gmra.mxu1 %v11939_v40  ;;  %6850 = vmatpush1.bf16.msra.mxu0 %v9998_v35  ;;  %v10070_v35 = vld [vmem:[%s11647_s4 + $0xd60] ss:$16 sps:$4 sm:$0xff]  }
 0x11e   : > { %6891 = vmatpush1.bf16.msra.mxu1 %v10001_v36  ;;  %6851 = vmatprep.subr.bf16.mxu0 %v10006_v43  ;;  %v10073_v36 = vld [vmem:[%s11647_s4 + $0xf60] ss:$16 sps:$4 sm:$0xff]   ;;  %v10078_v43 = vld [vmem:[%s11647_s4 + $0xd44] ss:$16 sps:$4 sm:$0xff]  }
 0x11f   : > { %6892 = vmatprep.subr.bf16.mxu1 %v10009_v44  ;;  %6881 = vmatprep.mubr.bf16.mxu0 %v11951_v23  ;;  %v10081_v44 = vld [vmem:[%s11647_s4 + $0xf44] ss:$16 sps:$4 sm:$0xff]  }
 0x120   : > { %6922 = vmatprep.mubr.bf16.mxu1 %v11955_v24 }
 0x121   : > { %6852 = vmatpush1.bf16.msra.mxu0 %v10004_v45  ;;  %v10076_v45 = vld [vmem:[%s11647_s4 + $0xd40] ss:$16 sps:$4 sm:$0xff]  }
 0x122   : > { %6893 = vmatpush1.bf16.msra.mxu1 %v10007_v46  ;;  %6853 = vmatprep.subr.bf16.mxu0 %v10012_v47  ;;  %v10079_v46 = vld [vmem:[%s11647_s4 + $0xf40] ss:$16 sps:$4 sm:$0xff]   ;;  %v10084_v47 = vld [vmem:[%s11647_s4 + $0xd24] ss:$16 sps:$4 sm:$0xff]  }
 0x123   : > { %6894 = vmatprep.subr.bf16.mxu1 %v10015_v49  ;;  %v10087_v49 = vld [vmem:[%s11647_s4 + $0xf24] ss:$16 sps:$4 sm:$0xff]  }
 0x125   : > { %6854 = vmatpush1.bf16.msra.mxu0 %v10010_v50  ;;  %v10082_v50 = vld [vmem:[%s11647_s4 + $0xd20] ss:$16 sps:$4 sm:$0xff]  }
 0x126   : > { %6895 = vmatpush1.bf16.msra.mxu1 %v10013_v51  ;;  %6855 = vmatprep.subr.bf16.mxu0 %v10018_v53  ;;  %v10085_v51 = vld [vmem:[%s11647_s4 + $0xf20] ss:$16 sps:$4 sm:$0xff]   ;;  %v10090_v53 = vld [vmem:[%s11647_s4 + $0xd04] ss:$16 sps:$4 sm:$0xff]  }
 0x127   : > { %6896 = vmatprep.subr.bf16.mxu1 %v10021_v54  ;;  %v10093_v54 = vld [vmem:[%s11647_s4 + $0xf04] ss:$16 sps:$4 sm:$0xff]  }
 0x129   : > { %6856 = vmatpush1.bf16.msra.mxu0 %v10016_v55  ;;  %v10088_v55 = vld [vmem:[%s11647_s4 + $0xd00] ss:$16 sps:$4 sm:$0xff]  }
 0x12a   : > { %6897 = vmatpush1.bf16.msra.mxu1 %v10019_v56  ;;  %6857 = vmatprep.subr.bf16.mxu0 %v10024_v57  ;;  %v10091_v56 = vld [vmem:[%s11647_s4 + $0xf00] ss:$16 sps:$4 sm:$0xff]   ;;  %v10100_v57 = vld [vmem:[%s11647_s4 + $0x10e4] ss:$16 sps:$4 sm:$0xff]  }
 0x12b   : > { %6898 = vmatprep.subr.bf16.mxu1 %v10027_v58  ;;  %v10103_v58 = vld [vmem:[%s11647_s4 + $0x12e4] ss:$16 sps:$4 sm:$0xff]  }
 0x12d   : > { %6858 = vmatpush1.bf16.msra.mxu0 %v10022_v59  ;;  %v12022_v59 = vld [vmem:[%s11667_s5 + $0x40] sm:$0xff] }
 0x12e   : > { %6899 = vmatpush1.bf16.msra.mxu1 %v10025_v60  ;;  %6859 = vmatprep.subr.bf16.mxu0 %v10030_v61  ;;  %v12026_v60 = vcombine.low %v11942_v41, %v11942_v41  ;;  %v12030_v61 = vcombine.low %v11945_v42, %v11945_v42  ;;  %v12041_v41 = vcombine.high %v12022_v59, %v12022_v59 }
 0x12f   : > { %6900 = vmatprep.subr.bf16.mxu1 %v10033_v62  ;;  %v12033_v62 = vld [vmem:[%s11667_s5 + $0x48] sm:$0xff] }
 0x130   : > { %v12045_v42 = vcombine.high %v12033_v62, %v12033_v62 }
 0x131   : > { %6860 = vmatpush1.bf16.msra.mxu0 %v10028_v63  ;;  %v10098_v63 = vld [vmem:[%s11647_s4 + $0x10e0] ss:$16 sps:$4 sm:$0xff]  }
 0x132   : > { %6901 = vmatpush1.bf16.msra.mxu1 %v10031_v0  ;;  %6861 = vmatprep.subr.bf16.mxu0 %v10036_v1  ;;  %v10101_v0 = vld [vmem:[%s11647_s4 + $0x12e0] ss:$16 sps:$4 sm:$0xff]   ;;  %v10106_v1 = vld [vmem:[%s11647_s4 + $0x10c4] ss:$16 sps:$4 sm:$0xff]  }
 0x133   : > { %6902 = vmatprep.subr.bf16.mxu1 %v10039_v2  ;;  %v10109_v2 = vld [vmem:[%s11647_s4 + $0x12c4] ss:$16 sps:$4 sm:$0xff]  }
 0x135   : > { %6862 = vmatpush1.bf16.msra.mxu0 %v10034_v3 }
 0x136   : > { %6903 = vmatpush1.bf16.msra.mxu1 %v10037_v4  ;;  %6863 = vmatprep.subr.bf16.mxu0 %v10042_v5  ;;  %v10104_v5 = vld [vmem:[%s11647_s4 + $0x10c0] ss:$16 sps:$4 sm:$0xff]  }
 0x137   : > { %6904 = vmatprep.subr.bf16.mxu1 %v10045_v6  ;;  %v10107_v6 = vld [vmem:[%s11647_s4 + $0x12c0] ss:$16 sps:$4 sm:$0xff]  }
 0x139   : > { %6864 = vmatpush1.bf16.msra.mxu0 %v10040_v9 }
 0x13a   : > { %6905 = vmatpush1.bf16.msra.mxu1 %v10043_v10  ;;  %6865 = vmatprep.subr.bf16.mxu0 %v10048_v11  ;;  %v10112_v10 = vld [vmem:[%s11647_s4 + $0x10a4] ss:$16 sps:$4 sm:$0xff]  }
 0x13b   : > { %6906 = vmatprep.subr.bf16.mxu1 %v10051_v12 }
 0x13d   : > { %6866 = vmatpush2.bf16.msra.mxu0 %v10046_v13  ;;  %v10115_v13 = vld [vmem:[%s11647_s4 + $0x12a4] ss:$16 sps:$4 sm:$0xff]  }
 0x13e   : > { %6907 = vmatpush2.bf16.msra.mxu1 %v10049_v14  ;;  %6867 = vmatprep.subr.bf16.mxu0 %v10054_v15 }
 0x13f   : > { %6908 = vmatprep.subr.bf16.mxu1 %v10057_v16 }
 0x141   : > { %6868 = vmatpush2.bf16.msra.mxu0 %v10052_v19  ;;  %v10110_v19 = vld [vmem:[%s11647_s4 + $0x10a0] ss:$16 sps:$4 sm:$0xff]  }
 0x142   : > { %6909 = vmatpush2.bf16.msra.mxu1 %v10055_v20  ;;  %6869 = vmatprep.subr.bf16.mxu0 %v10060_v21  ;;  %v10113_v20 = vld [vmem:[%s11647_s4 + $0x12a0] ss:$16 sps:$4 sm:$0xff]   ;;  %v10118_v21 = vld [vmem:[%s11647_s4 + $0x1084] ss:$16 sps:$4 sm:$0xff]  }
 0x143   : > { %6910 = vmatprep.subr.bf16.mxu1 %v10063_v22 }
 0x145   : > { %6870 = vmatpush2.bf16.msra.mxu0 %v10058_v27 }
 0x146   : > { %6911 = vmatpush2.bf16.msra.mxu1 %v10061_v28  ;;  %6871 = vmatprep.subr.bf16.mxu0 %v10066_v29  ;;  %v10121_v28 = vld [vmem:[%s11647_s4 + $0x1284] ss:$16 sps:$4 sm:$0xff]   ;;  %v10116_v29 = vld [vmem:[%s11647_s4 + $0x1080] ss:$16 sps:$4 sm:$0xff]  }
 0x147   : > { %6912 = vmatprep.subr.bf16.mxu1 %v10069_v30  ;;  %v10119_v30 = vld [vmem:[%s11647_s4 + $0x1280] ss:$16 sps:$4 sm:$0xff]  }
 0x149   : > { %6872 = vmatpush2.bf16.msra.mxu0 %v10064_v31  ;;  %v10124_v31 = vld [vmem:[%s11647_s4 + $0x1064] ss:$16 sps:$4 sm:$0xff]  }
 0x14a   : > { %6913 = vmatpush2.bf16.msra.mxu1 %v10067_v32  ;;  %6873 = vmatprep.subr.bf16.mxu0 %v10072_v33  ;;  %v10127_v32 = vld [vmem:[%s11647_s4 + $0x1264] ss:$16 sps:$4 sm:$0xff]   ;;  %v10122_v33 = vld [vmem:[%s11647_s4 + $0x1060] ss:$16 sps:$4 sm:$0xff]  }
 0x14b   : > { %6914 = vmatprep.subr.bf16.mxu1 %v10075_v34  ;;  %v10125_v34 = vld [vmem:[%s11647_s4 + $0x1260] ss:$16 sps:$4 sm:$0xff]  }
 0x14d   : > { %6874 = vmatpush2.bf16.msra.mxu0 %v10070_v35  ;;  %v10130_v35 = vld [vmem:[%s11647_s4 + $0x1044] ss:$16 sps:$4 sm:$0xff]  }
 0x14e   : > { %6915 = vmatpush2.bf16.msra.mxu1 %v10073_v36  ;;  %6875 = vmatprep.subr.bf16.mxu0 %v10078_v43  ;;  %v10133_v36 = vld [vmem:[%s11647_s4 + $0x1244] ss:$16 sps:$4 sm:$0xff]   ;;  %v10128_v43 = vld [vmem:[%s11647_s4 + $0x1040] ss:$16 sps:$4 sm:$0xff]  }
 0x14f   : > { %6916 = vmatprep.subr.bf16.mxu1 %v10081_v44  ;;  %v10131_v44 = vld [vmem:[%s11647_s4 + $0x1240] ss:$16 sps:$4 sm:$0xff]  }
 0x151   : > { %6876 = vmatpush2.bf16.msra.mxu0 %v10076_v45  ;;  %v10136_v45 = vld [vmem:[%s11647_s4 + $0x1024] ss:$16 sps:$4 sm:$0xff]  }
 0x152   : > { %6917 = vmatpush2.bf16.msra.mxu1 %v10079_v46  ;;  %6877 = vmatprep.subr.bf16.mxu0 %v10084_v47  ;;  %v10139_v46 = vld [vmem:[%s11647_s4 + $0x1224] ss:$16 sps:$4 sm:$0xff]   ;;  %v10134_v47 = vld [vmem:[%s11647_s4 + $0x1020] ss:$16 sps:$4 sm:$0xff]  }
 0x153   : > { %6918 = vmatprep.subr.bf16.mxu1 %v10087_v49  ;;  %v10137_v49 = vld [vmem:[%s11647_s4 + $0x1220] ss:$16 sps:$4 sm:$0xff]  }
 0x155   : > { %6878 = vmatpush2.bf16.msra.mxu0 %v10082_v50  ;;  %v10142_v50 = vld [vmem:[%s11647_s4 + $0x1004] ss:$16 sps:$4 sm:$0xff]  }
 0x156   : > { %6919 = vmatpush2.bf16.msra.mxu1 %v10085_v51  ;;  %6879 = vmatprep.subr.bf16.mxu0 %v10090_v53  ;;  %v10145_v51 = vld [vmem:[%s11647_s4 + $0x1204] ss:$16 sps:$4 sm:$0xff]   ;;  %v10140_v53 = vld [vmem:[%s11647_s4 + $0x1000] ss:$16 sps:$4 sm:$0xff]  }
 0x157   : > { %6920 = vmatprep.subr.bf16.mxu1 %v10093_v54  ;;  %v10143_v54 = vld [vmem:[%s11647_s4 + $0x1200] ss:$16 sps:$4 sm:$0xff]  }
 0x159   : > { %6880 = vmatpush2.bf16.msra.mxu0 %v10088_v55  ;;  %v10148_v55 = vld [vmem:[%s11647_s4 + $0x11e4] ss:$16 sps:$4 sm:$0xff]  }
 0x15a   : > { %6921 = vmatpush2.bf16.msra.mxu1 %v10091_v56  ;;  %6931 = vmatprep.subr.bf16.mxu0 %v10100_v57  ;;  %v10151_v56 = vld [vmem:[%s11647_s4 + $0x13e4] ss:$16 sps:$4 sm:$0xff]   ;;  %v10146_v57 = vld [vmem:[%s11647_s4 + $0x11e0] ss:$16 sps:$4 sm:$0xff]  }
 0x15b   : > { %6972 = vmatprep.subr.bf16.mxu1 %v10103_v58  ;;  %v10149_v58 = vld [vmem:[%s11647_s4 + $0x13e0] ss:$16 sps:$4 sm:$0xff]  }
 0x15c   : > { %v6637_v3 = vpop.f32.mrf.mxu0  ;;  %6882 = vmatmul.mubr.bf16.vlgmr.msra.gmra.mxu0 %v12026_v60 }
 0x15d   : > { %v6678_v4 = vpop.f32.mrf.mxu1  ;;  %6923 = vmatmul.mubr.bf16.vlgmr.msra.gmra.mxu1 %v12030_v61  ;;  %6932 = vmatpush1.bf16.msra.mxu0 %v10098_v63  ;;  %v10154_v63 = vld [vmem:[%s11647_s4 + $0x11c4] ss:$16 sps:$4 sm:$0xff]  }
 0x15e   : > { %v12051_v9 = vadd.f32 %v6678_v4, %v6637_v3  ;;  %6973 = vmatpush1.bf16.msra.mxu1 %v10101_v0  ;;  %v6639_v11 = vpop.f32.mrf.mxu0  ;;  %6933 = vmatprep.subr.bf16.mxu0 %v10106_v1  ;;  %v10157_v0 = vld [vmem:[%s11647_s4 + $0x13c4] ss:$16 sps:$4 sm:$0xff]   ;;  %v10152_v1 = vld [vmem:[%s11647_s4 + $0x11c0] ss:$16 sps:$4 sm:$0xff]  }
 0x15f   : > { %v6680_v12 = vpop.f32.mrf.mxu1  ;;  %6974 = vmatprep.subr.bf16.mxu1 %v10109_v2  ;;  %6963 = vmatprep.mubr.bf16.mxu0 %v12041_v41  ;;  %v10155_v2 = vld [vmem:[%s11647_s4 + $0x13c0] ss:$16 sps:$4 sm:$0xff]   ;;  %v10160_v3 = vld [vmem:[%s11647_s4 + $0x11a4] ss:$16 sps:$4 sm:$0xff]  }
 0x160   : > { %v12055_v14 = vadd.f32 %v6680_v12, %v6639_v11  ;;  %7004 = vmatprep.mubr.bf16.mxu1 %v12045_v42  ;;  %v6641_v15 = vpop.f32.mrf.mxu0  ;;  %v10163_v4 = vld [vmem:[%s11647_s4 + $0x13a4] ss:$16 sps:$4 sm:$0xff]   ;;  %v10164_v12 = vld [vmem:[%s11647_s4 + $0x1180] ss:$16 sps:$4 sm:$0xff]  }
 0x161   : > { %v6682_v16 = vpop.f32.mrf.mxu1  ;;  %6934 = vmatpush1.bf16.msra.mxu0 %v10104_v5  ;;  %v10158_v5 = vld [vmem:[%s11647_s4 + $0x11a0] ss:$16 sps:$4 sm:$0xff]   ;;  %v10169_v11 = vld [vmem:[%s11647_s4 + $0x1384] ss:$16 sps:$4 sm:$0xff]  }
 0x162   : > { %6975 = vmatpush1.bf16.msra.mxu1 %v10107_v6  ;;  %v6642_v22 = vpop.f32.mrf.mxu0  ;;  %6935 = vmatprep.subr.bf16.mxu0 %v10112_v10  ;;  %v10161_v6 = vld [vmem:[%s11647_s4 + $0x13a0] ss:$16 sps:$4 sm:$0xff]   ;;  %v10166_v10 = vld [vmem:[%s11647_s4 + $0x1184] ss:$16 sps:$4 sm:$0xff]  }
 0x163   : > { %v6683_v27 = vpop.f32.mrf.mxu1  ;;  %6976 = vmatprep.subr.bf16.mxu1 %v10115_v13  ;;  %v10167_v13 = vld [vmem:[%s11647_s4 + $0x1380] ss:$16 sps:$4 sm:$0xff]   ;;  %v10172_v15 = vld [vmem:[%s11647_s4 + $0x1164] ss:$16 sps:$4 sm:$0xff]  }
 0x164   : > { %v10175_v16 = vld [vmem:[%s11647_s4 + $0x1364] ss:$16 sps:$4 sm:$0xff]   ;;  %v10176_v27 = vld [vmem:[%s11647_s4 + $0x1140] ss:$16 sps:$4 sm:$0xff]  }
 0x165   : > { %6936 = vmatpush1.bf16.msra.mxu0 %v10110_v19  ;;  %v10170_v19 = vld [vmem:[%s11647_s4 + $0x1160] ss:$16 sps:$4 sm:$0xff]   ;;  %v10181_v22 = vld [vmem:[%s11647_s4 + $0x1344] ss:$16 sps:$4 sm:$0xff]  }
 0x166   : > { %6977 = vmatpush1.bf16.msra.mxu1 %v10113_v20  ;;  %6937 = vmatprep.subr.bf16.mxu0 %v10118_v21  ;;  %v10173_v20 = vld [vmem:[%s11647_s4 + $0x1360] ss:$16 sps:$4 sm:$0xff]   ;;  %v10178_v21 = vld [vmem:[%s11647_s4 + $0x1144] ss:$16 sps:$4 sm:$0xff]  }
 0x167   : > { %6978 = vmatprep.subr.bf16.mxu1 %v10121_v28  ;;  %v10179_v28 = vld [vmem:[%s11647_s4 + $0x1340] ss:$16 sps:$4 sm:$0xff]  }
 0x169   : > { %6938 = vmatpush1.bf16.msra.mxu0 %v10116_v29  ;;  %v10184_v29 = vld [vmem:[%s11647_s4 + $0x1124] ss:$16 sps:$4 sm:$0xff]  }
 0x16a   : > { %6979 = vmatpush1.bf16.msra.mxu1 %v10119_v30  ;;  %6939 = vmatprep.subr.bf16.mxu0 %v10124_v31  ;;  %v10187_v30 = vld [vmem:[%s11647_s4 + $0x1324] ss:$16 sps:$4 sm:$0xff]   ;;  %v10182_v31 = vld [vmem:[%s11647_s4 + $0x1120] ss:$16 sps:$4 sm:$0xff]  }
 0x16b   : > { %6980 = vmatprep.subr.bf16.mxu1 %v10127_v32  ;;  %v10185_v32 = vld [vmem:[%s11647_s4 + $0x1320] ss:$16 sps:$4 sm:$0xff]  }
 0x16d   : > { %6940 = vmatpush1.bf16.msra.mxu0 %v10122_v33  ;;  %v10190_v33 = vld [vmem:[%s11647_s4 + $0x1104] ss:$16 sps:$4 sm:$0xff]  }
 0x16e   : > { %6981 = vmatpush1.bf16.msra.mxu1 %v10125_v34  ;;  %6941 = vmatprep.subr.bf16.mxu0 %v10130_v35  ;;  %v10193_v34 = vld [vmem:[%s11647_s4 + $0x1304] ss:$16 sps:$4 sm:$0xff]   ;;  %v10188_v35 = vld [vmem:[%s11647_s4 + $0x1100] ss:$16 sps:$4 sm:$0xff]  }
 0x16f   : > { %6982 = vmatprep.subr.bf16.mxu1 %v10133_v36  ;;  %v10191_v36 = vld [vmem:[%s11647_s4 + $0x1300] ss:$16 sps:$4 sm:$0xff]  }
 0x171   : > { %6942 = vmatpush1.bf16.msra.mxu0 %v10128_v43  ;;  %v10200_v43 = vld [vmem:[%s11647_s4 + $0x14e4] ss:$16 sps:$4 sm:$0xff]  }
 0x172   : > { %6983 = vmatpush1.bf16.msra.mxu1 %v10131_v44  ;;  %6943 = vmatprep.subr.bf16.mxu0 %v10136_v45  ;;  %v10203_v44 = vld [vmem:[%s11647_s4 + $0x16e4] ss:$16 sps:$4 sm:$0xff]   ;;  %v10198_v45 = vld [vmem:[%s11647_s4 + $0x14e0] ss:$16 sps:$4 sm:$0xff]  }
 0x173   : > { %6984 = vmatprep.subr.bf16.mxu1 %v10139_v46  ;;  %v10201_v46 = vld [vmem:[%s11647_s4 + $0x16e0] ss:$16 sps:$4 sm:$0xff]  }
 0x175   : > { %6944 = vmatpush1.bf16.msra.mxu0 %v10134_v47  ;;  %v12119_v47 = vcombine.low %v12022_v59, %v12022_v59 }
 0x176   : > { %6985 = vmatpush1.bf16.msra.mxu1 %v10137_v49  ;;  %6945 = vmatprep.subr.bf16.mxu0 %v10142_v50  ;;  %v12123_v49 = vcombine.low %v12033_v62, %v12033_v62  ;;  %v12126_v50 = vld [vmem:[%s11667_s5 + $0x50] sm:$0xff] }
 0x177   : > { %6986 = vmatprep.subr.bf16.mxu1 %v10145_v51  ;;  %v12129_v51 = vld [vmem:[%s11667_s5 + $0x58] sm:$0xff]  ;;  %v12137_v59 = vcombine.high %v12126_v50, %v12126_v50 }
 0x178   : > { %v12141_v62 = vcombine.high %v12129_v51, %v12129_v51 }
 0x179   : > { %6946 = vmatpush1.bf16.msra.mxu0 %v10140_v53  ;;  %v10206_v53 = vld [vmem:[%s11647_s4 + $0x14c4] ss:$16 sps:$4 sm:$0xff]  }
 0x17a   : > { %6987 = vmatpush1.bf16.msra.mxu1 %v10143_v54  ;;  %6947 = vmatprep.subr.bf16.mxu0 %v10148_v55  ;;  %v10209_v54 = vld [vmem:[%s11647_s4 + $0x16c4] ss:$16 sps:$4 sm:$0xff]   ;;  %v10204_v55 = vld [vmem:[%s11647_s4 + $0x14c0] ss:$16 sps:$4 sm:$0xff]  }
 0x17b   : > { %6988 = vmatprep.subr.bf16.mxu1 %v10151_v56  ;;  %v10207_v56 = vld [vmem:[%s11647_s4 + $0x16c0] ss:$16 sps:$4 sm:$0xff]  }
 0x17d   : > { %6948 = vmatpush2.bf16.msra.mxu0 %v10146_v57 }
 0x17e   : > { %6989 = vmatpush2.bf16.msra.mxu1 %v10149_v58  ;;  %6949 = vmatprep.subr.bf16.mxu0 %v10154_v63 }
 0x17f   : > { %6990 = vmatprep.subr.bf16.mxu1 %v10157_v0 }
 0x181   : > { %6950 = vmatpush2.bf16.msra.mxu0 %v10152_v1 }
 0x182   : > { %6991 = vmatpush2.bf16.msra.mxu1 %v10155_v2  ;;  %6951 = vmatprep.subr.bf16.mxu0 %v10160_v3  ;;  %v10212_v2 = vld [vmem:[%s11647_s4 + $0x14a4] ss:$16 sps:$4 sm:$0xff]  }
 0x183   : > { %6992 = vmatprep.subr.bf16.mxu1 %v10163_v4  ;;  %v10215_v3 = vld [vmem:[%s11647_s4 + $0x16a4] ss:$16 sps:$4 sm:$0xff]  }
 0x185   : > { %6952 = vmatpush2.bf16.msra.mxu0 %v10158_v5 }
 0x186   : > { %6993 = vmatpush2.bf16.msra.mxu1 %v10161_v6  ;;  %6953 = vmatprep.subr.bf16.mxu0 %v10166_v10  ;;  %v10210_v6 = vld [vmem:[%s11647_s4 + $0x14a0] ss:$16 sps:$4 sm:$0xff]  }
 0x187   : > { %6994 = vmatprep.subr.bf16.mxu1 %v10169_v11  ;;  %v10213_v10 = vld [vmem:[%s11647_s4 + $0x16a0] ss:$16 sps:$4 sm:$0xff]  }
 0x189   : > { %6954 = vmatpush2.bf16.msra.mxu0 %v10164_v12 }
 0x18a   : > { %6995 = vmatpush2.bf16.msra.mxu1 %v10167_v13  ;;  %6955 = vmatprep.subr.bf16.mxu0 %v10172_v15 }
 0x18b   : > { %6996 = vmatprep.subr.bf16.mxu1 %v10175_v16  ;;  %v10221_v16 = vld [vmem:[%s11647_s4 + $0x1684] ss:$16 sps:$4 sm:$0xff]  }
 0x18d   : > { %6956 = vmatpush2.bf16.msra.mxu0 %v10170_v19  ;;  %v10216_v19 = vld [vmem:[%s11647_s4 + $0x1480] ss:$16 sps:$4 sm:$0xff]  }
 0x18e   : > { %6997 = vmatpush2.bf16.msra.mxu1 %v10173_v20  ;;  %6957 = vmatprep.subr.bf16.mxu0 %v10178_v21  ;;  %v10219_v20 = vld [vmem:[%s11647_s4 + $0x1680] ss:$16 sps:$4 sm:$0xff]   ;;  %v10224_v21 = vld [vmem:[%s11647_s4 + $0x1464] ss:$16 sps:$4 sm:$0xff]  }
 0x18f   : > { %6998 = vmatprep.subr.bf16.mxu1 %v10181_v22  ;;  %v10227_v22 = vld [vmem:[%s11647_s4 + $0x1664] ss:$16 sps:$4 sm:$0xff]  }
 0x191   : > { %6958 = vmatpush2.bf16.msra.mxu0 %v10176_v27  ;;  %v10222_v27 = vld [vmem:[%s11647_s4 + $0x1460] ss:$16 sps:$4 sm:$0xff]  }
 0x192   : > { %6999 = vmatpush2.bf16.msra.mxu1 %v10179_v28  ;;  %6959 = vmatprep.subr.bf16.mxu0 %v10184_v29  ;;  %v10225_v28 = vld [vmem:[%s11647_s4 + $0x1660] ss:$16 sps:$4 sm:$0xff]   ;;  %v10230_v29 = vld [vmem:[%s11647_s4 + $0x1444] ss:$16 sps:$4 sm:$0xff]  }
 0x193   : > { %7000 = vmatprep.subr.bf16.mxu1 %v10187_v30  ;;  %v10233_v30 = vld [vmem:[%s11647_s4 + $0x1644] ss:$16 sps:$4 sm:$0xff]  }
 0x195   : > { %6960 = vmatpush2.bf16.msra.mxu0 %v10182_v31  ;;  %v10228_v31 = vld [vmem:[%s11647_s4 + $0x1440] ss:$16 sps:$4 sm:$0xff]  }
 0x196   : > { %7001 = vmatpush2.bf16.msra.mxu1 %v10185_v32  ;;  %6961 = vmatprep.subr.bf16.mxu0 %v10190_v33  ;;  %v10231_v32 = vld [vmem:[%s11647_s4 + $0x1640] ss:$16 sps:$4 sm:$0xff]   ;;  %v10236_v33 = vld [vmem:[%s11647_s4 + $0x1424] ss:$16 sps:$4 sm:$0xff]  }
 0x197   : > { %7002 = vmatprep.subr.bf16.mxu1 %v10193_v34  ;;  %v10239_v34 = vld [vmem:[%s11647_s4 + $0x1624] ss:$16 sps:$4 sm:$0xff]  }
 0x199   : > { %6962 = vmatpush2.bf16.msra.mxu0 %v10188_v35  ;;  %v10234_v35 = vld [vmem:[%s11647_s4 + $0x1420] ss:$16 sps:$4 sm:$0xff]  }
 0x19a   : > { %7003 = vmatpush2.bf16.msra.mxu1 %v10191_v36  ;;  %7013 = vmatprep.subr.bf16.mxu0 %v10200_v43  ;;  %v10237_v36 = vld [vmem:[%s11647_s4 + $0x1620] ss:$16 sps:$4 sm:$0xff]   ;;  %v10242_v43 = vld [vmem:[%s11647_s4 + $0x1404] ss:$16 sps:$4 sm:$0xff]  }
 0x19b   : > { %7054 = vmatprep.subr.bf16.mxu1 %v10203_v44  ;;  %v10245_v44 = vld [vmem:[%s11647_s4 + $0x1604] ss:$16 sps:$4 sm:$0xff]  }
 0x19c   : > { %v6719_v57 = vpop.f32.mrf.mxu0  ;;  %6964 = vmatmul.mubr.bf16.vlgmr.msra.gmra.mxu0 %v12119_v47 }
 0x19d   : > { %v6760_v58 = vpop.f32.mrf.mxu1  ;;  %7005 = vmatmul.mubr.bf16.vlgmr.msra.gmra.mxu1 %v12123_v49  ;;  %v6720_v63 = vadd.f32 %v6719_v57, %v12051_v9  ;;  %7014 = vmatpush1.bf16.msra.mxu0 %v10198_v45  ;;  %v10240_v45 = vld [vmem:[%s11647_s4 + $0x1400] ss:$16 sps:$4 sm:$0xff]   ;;  %v10254_v57 = vld [vmem:[%s11647_s4 + $0x15c4] ss:$16 sps:$4 sm:$0xff]  }
 0x19e   : > { %7055 = vmatpush1.bf16.msra.mxu1 %v10201_v46  ;;  %v6721_v0 = vpop.f32.mrf.mxu0  ;;  %7015 = vmatprep.subr.bf16.mxu0 %v10206_v53  ;;  %v10243_v46 = vld [vmem:[%s11647_s4 + $0x1600] ss:$16 sps:$4 sm:$0xff]   ;;  %v10248_v53 = vld [vmem:[%s11647_s4 + $0x15e4] ss:$16 sps:$4 sm:$0xff]  }
 0x19f   : > { %v6762_v1 = vpop.f32.mrf.mxu1  ;;  %7056 = vmatprep.subr.bf16.mxu1 %v10209_v54  ;;  %v12148_v4 = vadd.f32 %v6760_v58, %v6720_v63  ;;  %v6722_v5 = vadd.f32 %v6721_v0, %v12055_v14  ;;  %7045 = vmatprep.mubr.bf16.mxu0 %v12137_v59  ;;  %v10218_v14 = vld [vmem:[%s11647_s4 + $0x1484] ss:$16 sps:$4 sm:$0xff]   ;;  %v10252_v63 = vld [vmem:[%s11647_s4 + $0x15c0] ss:$16 sps:$4 sm:$0xff]  }
 0x1a0   : > { %7086 = vmatprep.mubr.bf16.mxu1 %v12141_v62  ;;  %v6723_v9 = vpop.f32.mrf.mxu0  ;;  %v10251_v54 = vld [vmem:[%s11647_s4 + $0x17e4] ss:$16 sps:$4 sm:$0xff]   ;;  %v10255_v0 = vld [vmem:[%s11647_s4 + $0x17c0] ss:$16 sps:$4 sm:$0xff]  }
 0x1a1   : > { %v6764_v11 = vpop.f32.mrf.mxu1  ;;  %v12155_v12 = vadd.f32 %v6762_v1, %v6722_v5  ;;  %7016 = vmatpush1.bf16.msra.mxu0 %v10204_v55  ;;  %v10246_v55 = vld [vmem:[%s11647_s4 + $0x15e0] ss:$16 sps:$4 sm:$0xff]   ;;  %v10257_v58 = vld [vmem:[%s11647_s4 + $0x17c4] ss:$16 sps:$4 sm:$0xff]  }
 0x1a2   : > { %7057 = vmatpush1.bf16.msra.mxu1 %v10207_v56  ;;  %v6724_v13 = vpop.f32.mrf.mxu0  ;;  %7017 = vmatprep.subr.bf16.mxu0 %v10212_v2  ;;  %v10249_v56 = vld [vmem:[%s11647_s4 + $0x17e0] ss:$16 sps:$4 sm:$0xff]   ;;  %v10260_v1 = vld [vmem:[%s11647_s4 + $0x15a4] ss:$16 sps:$4 sm:$0xff]  }
 0x1a3   : > { %v6765_v15 = vpop.f32.mrf.mxu1  ;;  %7058 = vmatprep.subr.bf16.mxu1 %v10215_v3  ;;  %v10263_v2 = vld [vmem:[%s11647_s4 + $0x17a4] ss:$16 sps:$4 sm:$0xff]   ;;  %v10258_v3 = vld [vmem:[%s11647_s4 + $0x15a0] ss:$16 sps:$4 sm:$0xff]  }
 0x1a4   : > { %v10261_v5 = vld [vmem:[%s11647_s4 + $0x17a0] ss:$16 sps:$4 sm:$0xff]   ;;  %v10272_v13 = vld [vmem:[%s11647_s4 + $0x1564] ss:$16 sps:$4 sm:$0xff]  }
 0x1a5   : > { %7018 = vmatpush1.bf16.msra.mxu0 %v10210_v6  ;;  %v10266_v6 = vld [vmem:[%s11647_s4 + $0x1584] ss:$16 sps:$4 sm:$0xff]   ;;  %v10264_v9 = vld [vmem:[%s11647_s4 + $0x1580] ss:$16 sps:$4 sm:$0xff]  }
 0x1a6   : > { %7059 = vmatpush1.bf16.msra.mxu1 %v10213_v10  ;;  %7019 = vmatprep.subr.bf16.mxu0 %v10218_v14  ;;  %v10269_v10 = vld [vmem:[%s11647_s4 + $0x1784] ss:$16 sps:$4 sm:$0xff]   ;;  %v10267_v11 = vld [vmem:[%s11647_s4 + $0x1780] ss:$16 sps:$4 sm:$0xff]  }
 0x1a7   : > { %7060 = vmatprep.subr.bf16.mxu1 %v10221_v16  ;;  %v10275_v15 = vld [vmem:[%s11647_s4 + $0x1764] ss:$16 sps:$4 sm:$0xff]   ;;  %v10270_v14 = vld [vmem:[%s11647_s4 + $0x1560] ss:$16 sps:$4 sm:$0xff]  }
 0x1a8   : > { %v10273_v16 = vld [vmem:[%s11647_s4 + $0x1760] ss:$16 sps:$4 sm:$0xff]  }
 0x1a9   : > { %7020 = vmatpush1.bf16.msra.mxu0 %v10216_v19  ;;  %v10278_v19 = vld [vmem:[%s11647_s4 + $0x1544] ss:$16 sps:$4 sm:$0xff]  }
 0x1aa   : > { %7061 = vmatpush1.bf16.msra.mxu1 %v10219_v20  ;;  %7021 = vmatprep.subr.bf16.mxu0 %v10224_v21  ;;  %v10281_v20 = vld [vmem:[%s11647_s4 + $0x1744] ss:$16 sps:$4 sm:$0xff]   ;;  %v10276_v21 = vld [vmem:[%s11647_s4 + $0x1540] ss:$16 sps:$4 sm:$0xff]  }
 0x1ab   : > { %7062 = vmatprep.subr.bf16.mxu1 %v10227_v22  ;;  %v10279_v22 = vld [vmem:[%s11647_s4 + $0x1740] ss:$16 sps:$4 sm:$0xff]  }
 0x1ad   : > { %7022 = vmatpush1.bf16.msra.mxu0 %v10222_v27  ;;  %v10284_v27 = vld [vmem:[%s11647_s4 + $0x1524] ss:$16 sps:$4 sm:$0xff]  }
 0x1ae   : > { %7063 = vmatpush1.bf16.msra.mxu1 %v10225_v28  ;;  %7023 = vmatprep.subr.bf16.mxu0 %v10230_v29  ;;  %v10287_v28 = vld [vmem:[%s11647_s4 + $0x1724] ss:$16 sps:$4 sm:$0xff]   ;;  %v10282_v29 = vld [vmem:[%s11647_s4 + $0x1520] ss:$16 sps:$4 sm:$0xff]  }
 0x1af   : > { %7064 = vmatprep.subr.bf16.mxu1 %v10233_v30  ;;  %v10285_v30 = vld [vmem:[%s11647_s4 + $0x1720] ss:$16 sps:$4 sm:$0xff]  }
 0x1b1   : > { %7024 = vmatpush1.bf16.msra.mxu0 %v10228_v31  ;;  %v10290_v31 = vld [vmem:[%s11647_s4 + $0x1504] ss:$16 sps:$4 sm:$0xff]  }
 0x1b2   : > { %7065 = vmatpush1.bf16.msra.mxu1 %v10231_v32  ;;  %7025 = vmatprep.subr.bf16.mxu0 %v10236_v33  ;;  %v10293_v32 = vld [vmem:[%s11647_s4 + $0x1704] ss:$16 sps:$4 sm:$0xff]   ;;  %v10288_v33 = vld [vmem:[%s11647_s4 + $0x1500] ss:$16 sps:$4 sm:$0xff]  }
 0x1b3   : > { %7066 = vmatprep.subr.bf16.mxu1 %v10239_v34  ;;  %v10291_v34 = vld [vmem:[%s11647_s4 + $0x1700] ss:$16 sps:$4 sm:$0xff]  }
 0x1b5   : > { %7026 = vmatpush1.bf16.msra.mxu0 %v10234_v35  ;;  %v10300_v35 = vld [vmem:[%s11647_s4 + $0x18e4] ss:$16 sps:$4 sm:$0xff]  }
 0x1b6   : > { %7067 = vmatpush1.bf16.msra.mxu1 %v10237_v36  ;;  %7027 = vmatprep.subr.bf16.mxu0 %v10242_v43  ;;  %v10303_v36 = vld [vmem:[%s11647_s4 + $0x1ae4] ss:$16 sps:$4 sm:$0xff]   ;;  %v10298_v43 = vld [vmem:[%s11647_s4 + $0x18e0] ss:$16 sps:$4 sm:$0xff]  }
 0x1b7   : > { %7068 = vmatprep.subr.bf16.mxu1 %v10245_v44  ;;  %v10301_v44 = vld [vmem:[%s11647_s4 + $0x1ae0] ss:$16 sps:$4 sm:$0xff]  }
 0x1b9   : > { %7028 = vmatpush1.bf16.msra.mxu0 %v10240_v45  ;;  %v12215_v45 = vcombine.low %v12126_v50, %v12126_v50 }
 0x1ba   : > { %7069 = vmatpush1.bf16.msra.mxu1 %v10243_v46  ;;  %7029 = vmatprep.subr.bf16.mxu0 %v10248_v53  ;;  %v12219_v46 = vcombine.low %v12129_v51, %v12129_v51  ;;  %v12222_v53 = vld [vmem:[%s11667_s5 + $0x60] sm:$0xff] }
 0x1bb   : > { %7070 = vmatprep.subr.bf16.mxu1 %v10251_v54  ;;  %v12225_v54 = vld [vmem:[%s11667_s5 + $0x68] sm:$0xff]  ;;  %v12233_v50 = vcombine.high %v12222_v53, %v12222_v53 }
 0x1bc   : > { %v12237_v51 = vcombine.high %v12225_v54, %v12225_v54 }
 0x1bd   : > { %7030 = vmatpush2.bf16.msra.mxu0 %v10246_v55  ;;  %v10306_v55 = vld [vmem:[%s11647_s4 + $0x18c4] ss:$16 sps:$4 sm:$0xff]  }
 0x1be   : > { %7071 = vmatpush2.bf16.msra.mxu1 %v10249_v56  ;;  %7031 = vmatprep.subr.bf16.mxu0 %v10254_v57  ;;  %v10309_v56 = vld [vmem:[%s11647_s4 + $0x1ac4] ss:$16 sps:$4 sm:$0xff]   ;;  %v10304_v57 = vld [vmem:[%s11647_s4 + $0x18c0] ss:$16 sps:$4 sm:$0xff]  }
 0x1bf   : > { %7072 = vmatprep.subr.bf16.mxu1 %v10257_v58  ;;  %v10307_v58 = vld [vmem:[%s11647_s4 + $0x1ac0] ss:$16 sps:$4 sm:$0xff]  }
 0x1c1   : > { %7032 = vmatpush2.bf16.msra.mxu0 %v10252_v63 }
 0x1c2   : > { %7073 = vmatpush2.bf16.msra.mxu1 %v10255_v0  ;;  %7033 = vmatprep.subr.bf16.mxu0 %v10260_v1 }
 0x1c3   : > { %7074 = vmatprep.subr.bf16.mxu1 %v10263_v2 }
 0x1c5   : > { %7034 = vmatpush2.bf16.msra.mxu0 %v10258_v3 }
 0x1c6   : > { %7075 = vmatpush2.bf16.msra.mxu1 %v10261_v5  ;;  %7035 = vmatprep.subr.bf16.mxu0 %v10266_v6  ;;  %v10312_v5 = vld [vmem:[%s11647_s4 + $0x18a4] ss:$16 sps:$4 sm:$0xff]  }
 0x1c7   : > { %7076 = vmatprep.subr.bf16.mxu1 %v10269_v10  ;;  %v10315_v6 = vld [vmem:[%s11647_s4 + $0x1aa4] ss:$16 sps:$4 sm:$0xff]  }
 0x1c9   : > { %7036 = vmatpush2.bf16.msra.mxu0 %v10264_v9 }
 0x1ca   : > { %7077 = vmatpush2.bf16.msra.mxu1 %v10267_v11  ;;  %7037 = vmatprep.subr.bf16.mxu0 %v10272_v13  ;;  %v10310_v11 = vld [vmem:[%s11647_s4 + $0x18a0] ss:$16 sps:$4 sm:$0xff]  }
 0x1cb   : > { %7078 = vmatprep.subr.bf16.mxu1 %v10275_v15  ;;  %v10313_v13 = vld [vmem:[%s11647_s4 + $0x1aa0] ss:$16 sps:$4 sm:$0xff]  }
 0x1cd   : > { %7038 = vmatpush2.bf16.msra.mxu0 %v10270_v14 }
 0x1ce   : > { %7079 = vmatpush2.bf16.msra.mxu1 %v10273_v16  ;;  %7039 = vmatprep.subr.bf16.mxu0 %v10278_v19 }
 0x1cf   : > { %7080 = vmatprep.subr.bf16.mxu1 %v10281_v20  ;;  %v10321_v20 = vld [vmem:[%s11647_s4 + $0x1a84] ss:$16 sps:$4 sm:$0xff]  }
 0x1d1   : > { %7040 = vmatpush2.bf16.msra.mxu0 %v10276_v21  ;;  %v10316_v21 = vld [vmem:[%s11647_s4 + $0x1880] ss:$16 sps:$4 sm:$0xff]  }
 0x1d2   : > { %7081 = vmatpush2.bf16.msra.mxu1 %v10279_v22  ;;  %7041 = vmatprep.subr.bf16.mxu0 %v10284_v27  ;;  %v10319_v22 = vld [vmem:[%s11647_s4 + $0x1a80] ss:$16 sps:$4 sm:$0xff]   ;;  %v10324_v27 = vld [vmem:[%s11647_s4 + $0x1864] ss:$16 sps:$4 sm:$0xff]  }
 0x1d3   : > { %7082 = vmatprep.subr.bf16.mxu1 %v10287_v28  ;;  %v10327_v28 = vld [vmem:[%s11647_s4 + $0x1a64] ss:$16 sps:$4 sm:$0xff]  }
 0x1d5   : > { %7042 = vmatpush2.bf16.msra.mxu0 %v10282_v29  ;;  %v10322_v29 = vld [vmem:[%s11647_s4 + $0x1860] ss:$16 sps:$4 sm:$0xff]  }
 0x1d6   : > { %7083 = vmatpush2.bf16.msra.mxu1 %v10285_v30  ;;  %7043 = vmatprep.subr.bf16.mxu0 %v10290_v31  ;;  %v10325_v30 = vld [vmem:[%s11647_s4 + $0x1a60] ss:$16 sps:$4 sm:$0xff]   ;;  %v10330_v31 = vld [vmem:[%s11647_s4 + $0x1844] ss:$16 sps:$4 sm:$0xff]  }
 0x1d7   : > { %7084 = vmatprep.subr.bf16.mxu1 %v10293_v32  ;;  %v10333_v32 = vld [vmem:[%s11647_s4 + $0x1a44] ss:$16 sps:$4 sm:$0xff]  }
 0x1d9   : > { %7044 = vmatpush2.bf16.msra.mxu0 %v10288_v33  ;;  %v10328_v33 = vld [vmem:[%s11647_s4 + $0x1840] ss:$16 sps:$4 sm:$0xff]  }
 0x1da   : > { %7085 = vmatpush2.bf16.msra.mxu1 %v10291_v34  ;;  %7095 = vmatprep.subr.bf16.mxu0 %v10300_v35  ;;  %v10331_v34 = vld [vmem:[%s11647_s4 + $0x1a40] ss:$16 sps:$4 sm:$0xff]   ;;  %v10336_v35 = vld [vmem:[%s11647_s4 + $0x1824] ss:$16 sps:$4 sm:$0xff]  }
 0x1db   : > { %7136 = vmatprep.subr.bf16.mxu1 %v10303_v36  ;;  %v10339_v36 = vld [vmem:[%s11647_s4 + $0x1a24] ss:$16 sps:$4 sm:$0xff]  }
 0x1dc   : > { %v6801_v63 = vpop.f32.mrf.mxu0  ;;  %7046 = vmatmul.mubr.bf16.vlgmr.msra.gmra.mxu0 %v12215_v45 }
 0x1dd   : > { %v6842_v0 = vpop.f32.mrf.mxu1  ;;  %7087 = vmatmul.mubr.bf16.vlgmr.msra.gmra.mxu1 %v12219_v46  ;;  %v6802_v1 = vadd.f32 %v6801_v63, %v12148_v4  ;;  %7096 = vmatpush1.bf16.msra.mxu0 %v10298_v43  ;;  %v10334_v43 = vld [vmem:[%s11647_s4 + $0x1820] ss:$16 sps:$4 sm:$0xff]   ;;  %v10348_v63 = vld [vmem:[%s11647_s4 + $0x19e4] ss:$16 sps:$4 sm:$0xff]  }
 0x1de   : > { %7137 = vmatpush1.bf16.msra.mxu1 %v10301_v44  ;;  %v6803_v2 = vpop.f32.mrf.mxu0  ;;  %7097 = vmatprep.subr.bf16.mxu0 %v10306_v55  ;;  %v10337_v44 = vld [vmem:[%s11647_s4 + $0x1a20] ss:$16 sps:$4 sm:$0xff]   ;;  %v10342_v55 = vld [vmem:[%s11647_s4 + $0x1804] ss:$16 sps:$4 sm:$0xff]  }
 0x1df   : > { %v6844_v3 = vpop.f32.mrf.mxu1  ;;  %7138 = vmatprep.subr.bf16.mxu1 %v10309_v56  ;;  %v12244_v10 = vadd.f32 %v6842_v0, %v6802_v1  ;;  %v6804_v9 = vadd.f32 %v6803_v2, %v12155_v12  ;;  %7127 = vmatprep.mubr.bf16.mxu0 %v12233_v50  ;;  %v10318_v12 = vld [vmem:[%s11647_s4 + $0x1884] ss:$16 sps:$4 sm:$0xff]   ;;  %v10346_v1 = vld [vmem:[%s11647_s4 + $0x19e0] ss:$16 sps:$4 sm:$0xff]  }
 0x1e0   : > { %7168 = vmatprep.mubr.bf16.mxu1 %v12237_v51  ;;  %v6805_v4 = vpop.f32.mrf.mxu0  ;;  %v10345_v56 = vld [vmem:[%s11647_s4 + $0x1a04] ss:$16 sps:$4 sm:$0xff]   ;;  %v10349_v2 = vld [vmem:[%s11647_s4 + $0x1be0] ss:$16 sps:$4 sm:$0xff]  }
 0x1e1   : > { %v6846_v15 = vpop.f32.mrf.mxu1  ;;  %v12251_v14 = vadd.f32 %v6844_v3, %v6804_v9  ;;  %7098 = vmatpush1.bf16.msra.mxu0 %v10304_v57  ;;  %v10340_v57 = vld [vmem:[%s11647_s4 + $0x1800] ss:$16 sps:$4 sm:$0xff]   ;;  %v10351_v0 = vld [vmem:[%s11647_s4 + $0x1be4] ss:$16 sps:$4 sm:$0xff]  }
 0x1e2   : > { %7139 = vmatpush1.bf16.msra.mxu1 %v10307_v58  ;;  %v6806_v16 = vpop.f32.mrf.mxu0  ;;  %7099 = vmatprep.subr.bf16.mxu0 %v10312_v5  ;;  %v10343_v58 = vld [vmem:[%s11647_s4 + $0x1a00] ss:$16 sps:$4 sm:$0xff]   ;;  %v10354_v3 = vld [vmem:[%s11647_s4 + $0x19c4] ss:$16 sps:$4 sm:$0xff]  }
 0x1e3   : > { %v6847_v19 = vpop.f32.mrf.mxu1  ;;  %7140 = vmatprep.subr.bf16.mxu1 %v10315_v6  ;;  %v10357_v5 = vld [vmem:[%s11647_s4 + $0x1bc4] ss:$16 sps:$4 sm:$0xff]   ;;  %v10352_v6 = vld [vmem:[%s11647_s4 + $0x19c0] ss:$16 sps:$4 sm:$0xff]  }
 0x1e4   : > { %v10355_v9 = vld [vmem:[%s11647_s4 + $0x1bc0] ss:$16 sps:$4 sm:$0xff]   ;;  %v10366_v16 = vld [vmem:[%s11647_s4 + $0x1984] ss:$16 sps:$4 sm:$0xff]  }
 0x1e5   : > { %7100 = vmatpush1.bf16.msra.mxu0 %v10310_v11  ;;  %v10360_v11 = vld [vmem:[%s11647_s4 + $0x19a4] ss:$16 sps:$4 sm:$0xff]   ;;  %v10358_v4 = vld [vmem:[%s11647_s4 + $0x19a0] ss:$16 sps:$4 sm:$0xff]  }
 0x1e6   : > { %7141 = vmatpush1.bf16.msra.mxu1 %v10313_v13  ;;  %7101 = vmatprep.subr.bf16.mxu0 %v10318_v12  ;;  %v10363_v13 = vld [vmem:[%s11647_s4 + $0x1ba4] ss:$16 sps:$4 sm:$0xff]   ;;  %v10361_v15 = vld [vmem:[%s11647_s4 + $0x1ba0] ss:$16 sps:$4 sm:$0xff]  }
 0x1e7   : > { %7142 = vmatprep.subr.bf16.mxu1 %v10321_v20  ;;  %v10369_v19 = vld [vmem:[%s11647_s4 + $0x1b84] ss:$16 sps:$4 sm:$0xff]   ;;  %v10364_v12 = vld [vmem:[%s11647_s4 + $0x1980] ss:$16 sps:$4 sm:$0xff]  }
 0x1e8   : > { %v10367_v20 = vld [vmem:[%s11647_s4 + $0x1b80] ss:$16 sps:$4 sm:$0xff]  }
 0x1e9   : > { %7102 = vmatpush1.bf16.msra.mxu0 %v10316_v21  ;;  %v10372_v21 = vld [vmem:[%s11647_s4 + $0x1964] ss:$16 sps:$4 sm:$0xff]  }
 0x1ea   : > { %7143 = vmatpush1.bf16.msra.mxu1 %v10319_v22  ;;  %7103 = vmatprep.subr.bf16.mxu0 %v10324_v27  ;;  %v10375_v22 = vld [vmem:[%s11647_s4 + $0x1b64] ss:$16 sps:$4 sm:$0xff]   ;;  %v10370_v27 = vld [vmem:[%s11647_s4 + $0x1960] ss:$16 sps:$4 sm:$0xff]  }
 0x1eb   : > { %7144 = vmatprep.subr.bf16.mxu1 %v10327_v28  ;;  %v10373_v28 = vld [vmem:[%s11647_s4 + $0x1b60] ss:$16 sps:$4 sm:$0xff]  }
 0x1ed   : > { %7104 = vmatpush1.bf16.msra.mxu0 %v10322_v29  ;;  %v10378_v29 = vld [vmem:[%s11647_s4 + $0x1944] ss:$16 sps:$4 sm:$0xff]  }
 0x1ee   : > { %7145 = vmatpush1.bf16.msra.mxu1 %v10325_v30  ;;  %7105 = vmatprep.subr.bf16.mxu0 %v10330_v31  ;;  %v10381_v30 = vld [vmem:[%s11647_s4 + $0x1b44] ss:$16 sps:$4 sm:$0xff]   ;;  %v10376_v31 = vld [vmem:[%s11647_s4 + $0x1940] ss:$16 sps:$4 sm:$0xff]  }
 0x1ef   : > { %7146 = vmatprep.subr.bf16.mxu1 %v10333_v32  ;;  %v10379_v32 = vld [vmem:[%s11647_s4 + $0x1b40] ss:$16 sps:$4 sm:$0xff]  }
 0x1f1   : > { %7106 = vmatpush1.bf16.msra.mxu0 %v10328_v33  ;;  %v10384_v33 = vld [vmem:[%s11647_s4 + $0x1924] ss:$16 sps:$4 sm:$0xff]  }
 0x1f2   : > { %7147 = vmatpush1.bf16.msra.mxu1 %v10331_v34  ;;  %7107 = vmatprep.subr.bf16.mxu0 %v10336_v35  ;;  %v10387_v34 = vld [vmem:[%s11647_s4 + $0x1b24] ss:$16 sps:$4 sm:$0xff]   ;;  %v10382_v35 = vld [vmem:[%s11647_s4 + $0x1920] ss:$16 sps:$4 sm:$0xff]  }
 0x1f3   : > { %7148 = vmatprep.subr.bf16.mxu1 %v10339_v36  ;;  %v10385_v36 = vld [vmem:[%s11647_s4 + $0x1b20] ss:$16 sps:$4 sm:$0xff]  }
 0x1f5   : > { %7108 = vmatpush1.bf16.msra.mxu0 %v10334_v43  ;;  %v10390_v43 = vld [vmem:[%s11647_s4 + $0x1904] ss:$16 sps:$4 sm:$0xff]  }
 0x1f6   : > { %7149 = vmatpush1.bf16.msra.mxu1 %v10337_v44  ;;  %7109 = vmatprep.subr.bf16.mxu0 %v10342_v55  ;;  %v10393_v44 = vld [vmem:[%s11647_s4 + $0x1b04] ss:$16 sps:$4 sm:$0xff]   ;;  %v10388_v55 = vld [vmem:[%s11647_s4 + $0x1900] ss:$16 sps:$4 sm:$0xff]  }
 0x1f7   : > { %7150 = vmatprep.subr.bf16.mxu1 %v10345_v56  ;;  %v10391_v56 = vld [vmem:[%s11647_s4 + $0x1b00] ss:$16 sps:$4 sm:$0xff]  }
 0x1f9   : > { %7110 = vmatpush1.bf16.msra.mxu0 %v10340_v57  ;;  %v10400_v57 = vld [vmem:[%s11647_s4 + $0x1ce4] ss:$16 sps:$4 sm:$0xff]  }
 0x1fa   : > { %7151 = vmatpush1.bf16.msra.mxu1 %v10343_v58  ;;  %7111 = vmatprep.subr.bf16.mxu0 %v10348_v63  ;;  %v10403_v58 = vld [vmem:[%s11647_s4 + $0x1ee4] ss:$16 sps:$4 sm:$0xff]  }
 0x1fb   : > { %7152 = vmatprep.subr.bf16.mxu1 %v10351_v0  ;;  %v12308_v63 = vld [vmem:[%s11667_s5 + $0x70] sm:$0xff]  ;;  %v12311_v0 = vld [vmem:[%s11667_s5 + $0x78] sm:$0xff] }
 0x1fd   : > { %7112 = vmatpush2.bf16.msra.mxu0 %v10346_v1  ;;  %v10398_v1 = vld [vmem:[%s11647_s4 + $0x1ce0] ss:$16 sps:$4 sm:$0xff]  }
 0x1fe   : > { %7153 = vmatpush2.bf16.msra.mxu1 %v10349_v2  ;;  %7113 = vmatprep.subr.bf16.mxu0 %v10354_v3  ;;  %v10401_v2 = vld [vmem:[%s11647_s4 + $0x1ee0] ss:$16 sps:$4 sm:$0xff]   ;;  %v12317_v3 = vcombine.low %v12222_v53, %v12222_v53  ;;  %v12333_v53 = vcombine.high %v12311_v0, %v12311_v0 }
 0x1ff   : > { %7154 = vmatprep.subr.bf16.mxu1 %v10357_v5  ;;  %v12321_v5 = vcombine.low %v12225_v54, %v12225_v54 }
 0x201   : > { %7114 = vmatpush2.bf16.msra.mxu0 %v10352_v6  ;;  %v10406_v6 = vld [vmem:[%s11647_s4 + $0x1cc4] ss:$16 sps:$4 sm:$0xff]  }
 0x202   : > { %7155 = vmatpush2.bf16.msra.mxu1 %v10355_v9  ;;  %7115 = vmatprep.subr.bf16.mxu0 %v10360_v11  ;;  %v10409_v9 = vld [vmem:[%s11647_s4 + $0x1ec4] ss:$16 sps:$4 sm:$0xff]   ;;  %v10404_v11 = vld [vmem:[%s11647_s4 + $0x1cc0] ss:$16 sps:$4 sm:$0xff]  }
 0x203   : > { %7156 = vmatprep.subr.bf16.mxu1 %v10363_v13  ;;  %v10407_v13 = vld [vmem:[%s11647_s4 + $0x1ec0] ss:$16 sps:$4 sm:$0xff]  }
 0x205   : > { %7116 = vmatpush2.bf16.msra.mxu0 %v10358_v4  ;;  %v12329_v4 = vcombine.high %v12308_v63, %v12308_v63 }
 0x206   : > { %7157 = vmatpush2.bf16.msra.mxu1 %v10361_v15  ;;  %7117 = vmatprep.subr.bf16.mxu0 %v10366_v16 }
 0x207   : > { %7158 = vmatprep.subr.bf16.mxu1 %v10369_v19 }
 0x209   : > { %7118 = vmatpush2.bf16.msra.mxu0 %v10364_v12 }
 0x20a   : > { %7159 = vmatpush2.bf16.msra.mxu1 %v10367_v20  ;;  %7119 = vmatprep.subr.bf16.mxu0 %v10372_v21  ;;  %v10412_v20 = vld [vmem:[%s11647_s4 + $0x1ca4] ss:$16 sps:$4 sm:$0xff]  }
 0x20b   : > { %7160 = vmatprep.subr.bf16.mxu1 %v10375_v22  ;;  %v10415_v21 = vld [vmem:[%s11647_s4 + $0x1ea4] ss:$16 sps:$4 sm:$0xff]  }
 0x20d   : > { %7120 = vmatpush2.bf16.msra.mxu0 %v10370_v27 }
 0x20e   : > { %7161 = vmatpush2.bf16.msra.mxu1 %v10373_v28  ;;  %7121 = vmatprep.subr.bf16.mxu0 %v10378_v29  ;;  %v10410_v28 = vld [vmem:[%s11647_s4 + $0x1ca0] ss:$16 sps:$4 sm:$0xff]  }
 0x20f   : > { %7162 = vmatprep.subr.bf16.mxu1 %v10381_v30  ;;  %v10413_v29 = vld [vmem:[%s11647_s4 + $0x1ea0] ss:$16 sps:$4 sm:$0xff]  }
 0x211   : > { %7122 = vmatpush2.bf16.msra.mxu0 %v10376_v31 }
 0x212   : > { %7163 = vmatpush2.bf16.msra.mxu1 %v10379_v32  ;;  %7123 = vmatprep.subr.bf16.mxu0 %v10384_v33 }
 0x213   : > { %7164 = vmatprep.subr.bf16.mxu1 %v10387_v34  ;;  %v10421_v34 = vld [vmem:[%s11647_s4 + $0x1e84] ss:$16 sps:$4 sm:$0xff]  }
 0x215   : > { %7124 = vmatpush2.bf16.msra.mxu0 %v10382_v35  ;;  %v10416_v35 = vld [vmem:[%s11647_s4 + $0x1c80] ss:$16 sps:$4 sm:$0xff]  }
 0x216   : > { %7165 = vmatpush2.bf16.msra.mxu1 %v10385_v36  ;;  %7125 = vmatprep.subr.bf16.mxu0 %v10390_v43  ;;  %v10419_v36 = vld [vmem:[%s11647_s4 + $0x1e80] ss:$16 sps:$4 sm:$0xff]   ;;  %v10424_v43 = vld [vmem:[%s11647_s4 + $0x1c64] ss:$16 sps:$4 sm:$0xff]  }
 0x217   : > { %7166 = vmatprep.subr.bf16.mxu1 %v10393_v44  ;;  %v10427_v44 = vld [vmem:[%s11647_s4 + $0x1e64] ss:$16 sps:$4 sm:$0xff]  }
 0x219   : > { %7126 = vmatpush2.bf16.msra.mxu0 %v10388_v55  ;;  %v10422_v55 = vld [vmem:[%s11647_s4 + $0x1c60] ss:$16 sps:$4 sm:$0xff]  }
 0x21a   : > { %7167 = vmatpush2.bf16.msra.mxu1 %v10391_v56  ;;  %7177 = vmatprep.subr.bf16.mxu0 %v10400_v57  ;;  %v10425_v56 = vld [vmem:[%s11647_s4 + $0x1e60] ss:$16 sps:$4 sm:$0xff]   ;;  %v10430_v57 = vld [vmem:[%s11647_s4 + $0x1c44] ss:$16 sps:$4 sm:$0xff]  }
 0x21b   : > { %7218 = vmatprep.subr.bf16.mxu1 %v10403_v58  ;;  %v10433_v58 = vld [vmem:[%s11647_s4 + $0x1e44] ss:$16 sps:$4 sm:$0xff]  }
 0x21c   : > { %v6883_v54 = vpop.f32.mrf.mxu0  ;;  %7128 = vmatmul.mubr.bf16.vlgmr.msra.gmra.mxu0 %v12317_v3 }
 0x21d   : > { %v6924_v15 = vpop.f32.mrf.mxu1  ;;  %7169 = vmatmul.mubr.bf16.vlgmr.msra.gmra.mxu1 %v12321_v5  ;;  %v6884_v16 = vadd.f32 %v6883_v54, %v12244_v10  ;;  %7178 = vmatpush1.bf16.msra.mxu0 %v10398_v1  ;;  %v10428_v1 = vld [vmem:[%s11647_s4 + $0x1c40] ss:$16 sps:$4 sm:$0xff]   ;;  %v10442_v54 = vld [vmem:[%s11647_s4 + $0x1c04] ss:$16 sps:$4 sm:$0xff]  }
 0x21e   : > { %7219 = vmatpush1.bf16.msra.mxu1 %v10401_v2  ;;  %v6885_v19 = vpop.f32.mrf.mxu0  ;;  %7179 = vmatprep.subr.bf16.mxu0 %v10406_v6  ;;  %v10431_v2 = vld [vmem:[%s11647_s4 + $0x1e40] ss:$16 sps:$4 sm:$0xff]   ;;  %v10436_v6 = vld [vmem:[%s11647_s4 + $0x1c24] ss:$16 sps:$4 sm:$0xff]  }
 0x21f   : > { %v6926_v12 = vpop.f32.mrf.mxu1  ;;  %7220 = vmatprep.subr.bf16.mxu1 %v10409_v9  ;;  %v12340_v22 = vadd.f32 %v6924_v15, %v6884_v16  ;;  %v6886_v27 = vadd.f32 %v6885_v19, %v12251_v14  ;;  %7209 = vmatprep.mubr.bf16.mxu0 %v12329_v4  ;;  %v10418_v14 = vld [vmem:[%s11647_s4 + $0x1c84] ss:$16 sps:$4 sm:$0xff]   ;;  %v10440_v16 = vld [vmem:[%s11647_s4 + $0x1c00] ss:$16 sps:$4 sm:$0xff]  }
 0x220   : > { %7250 = vmatprep.mubr.bf16.mxu1 %v12333_v53  ;;  %v6887_v10 = vpop.f32.mrf.mxu0  ;;  %v10439_v9 = vld [vmem:[%s11647_s4 + $0x1e24] ss:$16 sps:$4 sm:$0xff]   ;;  %v10443_v19 = vld [vmem:[%s11647_s4 + $0x1e00] ss:$16 sps:$4 sm:$0xff]  }
 0x221   : > { %v6928_v30 = vpop.f32.mrf.mxu1  ;;  %v12347_v31 = vadd.f32 %v6926_v12, %v6886_v27  ;;  %7180 = vmatpush1.bf16.msra.mxu0 %v10404_v11  ;;  %v10434_v11 = vld [vmem:[%s11647_s4 + $0x1c20] ss:$16 sps:$4 sm:$0xff]   ;;  %v10445_v15 = vld [vmem:[%s11647_s4 + $0x1e04] ss:$16 sps:$4 sm:$0xff]  }
 0x222   : > { %7221 = vmatpush1.bf16.msra.mxu1 %v10407_v13  ;;  %v6888_v32 = vpop.f32.mrf.mxu0  ;;  %7181 = vmatprep.subr.bf16.mxu0 %v10412_v20  ;;  %v10437_v13 = vld [vmem:[%s11647_s4 + $0x1e20] ss:$16 sps:$4 sm:$0xff]   ;;  %v10448_v12 = vld [vmem:[%s11647_s4 + $0x1de4] ss:$16 sps:$4 sm:$0xff]  }
 0x223   : > { %v6929_v33 = vpop.f32.mrf.mxu1  ;;  %7222 = vmatprep.subr.bf16.mxu1 %v10415_v21  ;;  %v10451_v20 = vld [vmem:[%s11647_s4 + $0x1fe4] ss:$16 sps:$4 sm:$0xff]   ;;  %v10446_v21 = vld [vmem:[%s11647_s4 + $0x1de0] ss:$16 sps:$4 sm:$0xff]  }
 0x224   : > { %v10449_v27 = vld [vmem:[%s11647_s4 + $0x1fe0] ss:$16 sps:$4 sm:$0xff]   ;;  %v10460_v32 = vld [vmem:[%s11647_s4 + $0x1da4] ss:$16 sps:$4 sm:$0xff]  }
 0x225   : > { %7182 = vmatpush1.bf16.msra.mxu0 %v10410_v28  ;;  %v10454_v28 = vld [vmem:[%s11647_s4 + $0x1dc4] ss:$16 sps:$4 sm:$0xff]   ;;  %v10452_v10 = vld [vmem:[%s11647_s4 + $0x1dc0] ss:$16 sps:$4 sm:$0xff]  }
 0x226   : > { %7223 = vmatpush1.bf16.msra.mxu1 %v10413_v29  ;;  %7183 = vmatprep.subr.bf16.mxu0 %v10418_v14  ;;  %v10457_v29 = vld [vmem:[%s11647_s4 + $0x1fc4] ss:$16 sps:$4 sm:$0xff]   ;;  %v10455_v30 = vld [vmem:[%s11647_s4 + $0x1fc0] ss:$16 sps:$4 sm:$0xff]  }
 0x227   : > { %7224 = vmatprep.subr.bf16.mxu1 %v10421_v34  ;;  %v10463_v33 = vld [vmem:[%s11647_s4 + $0x1fa4] ss:$16 sps:$4 sm:$0xff]   ;;  %v10458_v14 = vld [vmem:[%s11647_s4 + $0x1da0] ss:$16 sps:$4 sm:$0xff]  }
 0x228   : > { %v10461_v34 = vld [vmem:[%s11647_s4 + $0x1fa0] ss:$16 sps:$4 sm:$0xff]  }
 0x229   : > { %7184 = vmatpush1.bf16.msra.mxu0 %v10416_v35  ;;  %v10466_v35 = vld [vmem:[%s11647_s4 + $0x1d84] ss:$16 sps:$4 sm:$0xff]  }
 0x22a   : > { %7225 = vmatpush1.bf16.msra.mxu1 %v10419_v36  ;;  %7185 = vmatprep.subr.bf16.mxu0 %v10424_v43  ;;  %v10469_v36 = vld [vmem:[%s11647_s4 + $0x1f84] ss:$16 sps:$4 sm:$0xff]   ;;  %v10464_v43 = vld [vmem:[%s11647_s4 + $0x1d80] ss:$16 sps:$4 sm:$0xff]  }
 0x22b   : > { %7226 = vmatprep.subr.bf16.mxu1 %v10427_v44  ;;  %v10467_v44 = vld [vmem:[%s11647_s4 + $0x1f80] ss:$16 sps:$4 sm:$0xff]  }
 0x22d   : > { %7186 = vmatpush1.bf16.msra.mxu0 %v10422_v55  ;;  %v10472_v55 = vld [vmem:[%s11647_s4 + $0x1d64] ss:$16 sps:$4 sm:$0xff]  }
 0x22e   : > { %7227 = vmatpush1.bf16.msra.mxu1 %v10425_v56  ;;  %7187 = vmatprep.subr.bf16.mxu0 %v10430_v57  ;;  %v10475_v56 = vld [vmem:[%s11647_s4 + $0x1f64] ss:$16 sps:$4 sm:$0xff]   ;;  %v10470_v57 = vld [vmem:[%s11647_s4 + $0x1d60] ss:$16 sps:$4 sm:$0xff]  }
 0x22f   : > { %7228 = vmatprep.subr.bf16.mxu1 %v10433_v58  ;;  %v10473_v58 = vld [vmem:[%s11647_s4 + $0x1f60] ss:$16 sps:$4 sm:$0xff]  }
 0x231   : > { %7188 = vmatpush1.bf16.msra.mxu0 %v10428_v1  ;;  %v10478_v1 = vld [vmem:[%s11647_s4 + $0x1d44] ss:$16 sps:$4 sm:$0xff]  }
 0x232   : > { %7229 = vmatpush1.bf16.msra.mxu1 %v10431_v2  ;;  %7189 = vmatprep.subr.bf16.mxu0 %v10436_v6  ;;  %v10481_v2 = vld [vmem:[%s11647_s4 + $0x1f44] ss:$16 sps:$4 sm:$0xff]   ;;  %v10476_v6 = vld [vmem:[%s11647_s4 + $0x1d40] ss:$16 sps:$4 sm:$0xff]  }
 0x233   : > { %7230 = vmatprep.subr.bf16.mxu1 %v10439_v9  ;;  %v10479_v9 = vld [vmem:[%s11647_s4 + $0x1f40] ss:$16 sps:$4 sm:$0xff]  }
 0x235   : > { %7190 = vmatpush1.bf16.msra.mxu0 %v10434_v11  ;;  %v10484_v11 = vld [vmem:[%s11647_s4 + $0x1d24] ss:$16 sps:$4 sm:$0xff]  }
 0x236   : > { %7231 = vmatpush1.bf16.msra.mxu1 %v10437_v13  ;;  %7191 = vmatprep.subr.bf16.mxu0 %v10442_v54  ;;  %v10487_v13 = vld [vmem:[%s11647_s4 + $0x1f24] ss:$16 sps:$4 sm:$0xff]   ;;  %v10482_v54 = vld [vmem:[%s11647_s4 + $0x1d20] ss:$16 sps:$4 sm:$0xff]  }
 0x237   : > { %7232 = vmatprep.subr.bf16.mxu1 %v10445_v15  ;;  %v10485_v15 = vld [vmem:[%s11647_s4 + $0x1f20] ss:$16 sps:$4 sm:$0xff]  }
 0x239   : > { %7192 = vmatpush1.bf16.msra.mxu0 %v10440_v16  ;;  %v10490_v16 = vld [vmem:[%s11647_s4 + $0x1d04] ss:$16 sps:$4 sm:$0xff]  }
 0x23a   : > { %7233 = vmatpush1.bf16.msra.mxu1 %v10443_v19  ;;  %7193 = vmatprep.subr.bf16.mxu0 %v10448_v12  ;;  %v10493_v19 = vld [vmem:[%s11647_s4 + $0x1f04] ss:$16 sps:$4 sm:$0xff]   ;;  %v10488_v12 = vld [vmem:[%s11647_s4 + $0x1d00] ss:$16 sps:$4 sm:$0xff]  }
 0x23b   : > { %7234 = vmatprep.subr.bf16.mxu1 %v10451_v20  ;;  %v10491_v20 = vld [vmem:[%s11647_s4 + $0x1f00] ss:$16 sps:$4 sm:$0xff]  }
 0x23d   : > { %7194 = vmatpush2.bf16.msra.mxu0 %v10446_v21  ;;  %v10500_v21 = vld [vmem:[%s11647_s4 + $0xec] ss:$16 sps:$4 sm:$0xff]  }
 0x23e   : > { %7235 = vmatpush2.bf16.msra.mxu1 %v10449_v27  ;;  %7195 = vmatprep.subr.bf16.mxu0 %v10454_v28  ;;  %v10503_v27 = vld [vmem:[%s11647_s4 + $0x2ec] ss:$16 sps:$4 sm:$0xff]   ;;  %v10498_v28 = vld [vmem:[%s11647_s4 + $0xe8] ss:$16 sps:$4 sm:$0xff]  }
 0x23f   : > { %7236 = vmatprep.subr.bf16.mxu1 %v10457_v29  ;;  %v10501_v29 = vld [vmem:[%s11647_s4 + $0x2e8] ss:$16 sps:$4 sm:$0xff]  }
 0x241   : > { %7196 = vmatpush2.bf16.msra.mxu0 %v10452_v10  ;;  %v12407_v10 = vcombine.low %v12308_v63, %v12308_v63 }
 0x242   : > { %7237 = vmatpush2.bf16.msra.mxu1 %v10455_v30  ;;  %7197 = vmatprep.subr.bf16.mxu0 %v10460_v32  ;;  %v12411_v30 = vcombine.low %v12311_v0, %v12311_v0  ;;  %v10506_v32 = vld [vmem:[%s11647_s4 + $0xcc] ss:$16 sps:$4 sm:$0xff]  }
 0x243   : > { %7238 = vmatprep.subr.bf16.mxu1 %v10463_v33  ;;  %v10509_v33 = vld [vmem:[%s11647_s4 + $0x2cc] ss:$16 sps:$4 sm:$0xff]  }
 0x245   : > { %7198 = vmatpush2.bf16.msra.mxu0 %v10458_v14  ;;  %v10504_v14 = vld [vmem:[%s11647_s4 + $0xc8] ss:$16 sps:$4 sm:$0xff]  }
 0x246   : > { %7239 = vmatpush2.bf16.msra.mxu1 %v10461_v34  ;;  %7199 = vmatprep.subr.bf16.mxu0 %v10466_v35  ;;  %v10507_v34 = vld [vmem:[%s11647_s4 + $0x2c8] ss:$16 sps:$4 sm:$0xff]  }
 0x247   : > { %7240 = vmatprep.subr.bf16.mxu1 %v10469_v36 }
 0x249   : > { %7200 = vmatpush2.bf16.msra.mxu0 %v10464_v43 }
 0x24a   : > { %7241 = vmatpush2.bf16.msra.mxu1 %v10467_v44  ;;  %7201 = vmatprep.subr.bf16.mxu0 %v10472_v55  ;;  %v10512_v44 = vld [vmem:[%s11647_s4 + $0xac] ss:$16 sps:$4 sm:$0xff]  }
 0x24b   : > { %7242 = vmatprep.subr.bf16.mxu1 %v10475_v56  ;;  %v10515_v55 = vld [vmem:[%s11647_s4 + $0x2ac] ss:$16 sps:$4 sm:$0xff]  }
 0x24d   : > { %7202 = vmatpush2.bf16.msra.mxu0 %v10470_v57 }
 0x24e   : > { %7243 = vmatpush2.bf16.msra.mxu1 %v10473_v58  ;;  %7203 = vmatprep.subr.bf16.mxu0 %v10478_v1  ;;  %v10510_v58 = vld [vmem:[%s11647_s4 + $0xa8] ss:$16 sps:$4 sm:$0xff]  }
 0x24f   : > { %7244 = vmatprep.subr.bf16.mxu1 %v10481_v2  ;;  %v10513_v1 = vld [vmem:[%s11647_s4 + $0x2a8] ss:$16 sps:$4 sm:$0xff]  }
 0x251   : > { %7204 = vmatpush2.bf16.msra.mxu0 %v10476_v6 }
 0x252   : > { %7245 = vmatpush2.bf16.msra.mxu1 %v10479_v9  ;;  %7205 = vmatprep.subr.bf16.mxu0 %v10484_v11 }
 0x253   : > { %7246 = vmatprep.subr.bf16.mxu1 %v10487_v13  ;;  %v10519_v13 = vld [vmem:[%s11647_s4 + $0x288] ss:$16 sps:$4 sm:$0xff]  }
 0x255   : > { %7206 = vmatpush2.bf16.msra.mxu0 %v10482_v54  ;;  %v10524_v54 = vld [vmem:[%s11647_s4 + $0x6c] ss:$16 sps:$4 sm:$0xff]  }
 0x256   : > { %7247 = vmatpush2.bf16.msra.mxu1 %v10485_v15  ;;  %7207 = vmatprep.subr.bf16.mxu0 %v10490_v16  ;;  %v10527_v15 = vld [vmem:[%s11647_s4 + $0x26c] ss:$16 sps:$4 sm:$0xff]   ;;  %v10522_v16 = vld [vmem:[%s11647_s4 + $0x68] ss:$16 sps:$4 sm:$0xff]  }
 0x257   : > { %7248 = vmatprep.subr.bf16.mxu1 %v10493_v19  ;;  %v10525_v19 = vld [vmem:[%s11647_s4 + $0x268] ss:$16 sps:$4 sm:$0xff]  }
 0x259   : > { %7208 = vmatpush2.bf16.msra.mxu0 %v10488_v12  ;;  %v10530_v12 = vld [vmem:[%s11647_s4 + $0x4c] ss:$16 sps:$4 sm:$0xff]  }
 0x25a   : > { %7249 = vmatpush2.bf16.msra.mxu1 %v10491_v20  ;;  %7259 = vmatprep.subr.bf16.mxu0 %v10500_v21  ;;  %v10533_v20 = vld [vmem:[%s11647_s4 + $0x24c] ss:$16 sps:$4 sm:$0xff]   ;;  %v10528_v21 = vld [vmem:[%s11647_s4 + $0x48] ss:$16 sps:$4 sm:$0xff]  }
 0x25b   : > { %7300 = vmatprep.subr.bf16.mxu1 %v10503_v27  ;;  %v10531_v27 = vld [vmem:[%s11647_s4 + $0x248] ss:$16 sps:$4 sm:$0xff]  }
 0x25c   : > { %v6965_v35 = vpop.f32.mrf.mxu0  ;;  %7210 = vmatmul.mubr.bf16.vlgmr.msra.gmra.mxu0 %v12407_v10 }
 0x25d   : > { %v7006_v36 = vpop.f32.mrf.mxu1  ;;  %7251 = vmatmul.mubr.bf16.vlgmr.msra.gmra.mxu1 %v12411_v30  ;;  %v6966_v63 = vadd.f32 %v6965_v35, %v12340_v22  ;;  %7260 = vmatpush1.bf16.msra.mxu0 %v10498_v28  ;;  %v10536_v28 = vld [vmem:[%s11647_s4 + $0x2c] ss:$16 sps:$4 sm:$0xff]   ;;  %v10540_v35 = vld [vmem:[%s11647_s4 + $0x8] ss:$16 sps:$4 sm:$0xff]  }
 0x25e   : > { %7301 = vmatpush1.bf16.msra.mxu1 %v10501_v29  ;;  %v6967_v0 = vpop.f32.mrf.mxu0  ;;  %7261 = vmatprep.subr.bf16.mxu0 %v10506_v32  ;;  %v10539_v29 = vld [vmem:[%s11647_s4 + $0x22c] ss:$16 sps:$4 sm:$0xff]   ;;  %v10534_v32 = vld [vmem:[%s11647_s4 + $0x28] ss:$16 sps:$4 sm:$0xff]  }
 0x25f   : > { %v7008_v43 = vpop.f32.mrf.mxu1  ;;  %7302 = vmatprep.subr.bf16.mxu1 %v10509_v33  ;;  %v12422_v56 = vadd.f32 %v7006_v36, %v6966_v63  ;;  %v6968_v57 = vadd.f32 %v6967_v0, %v12347_v31  ;;  %7291 = vmatprep.mubr.bf16.mxu0 %v11728_v48  ;;  %v10518_v31 = vld [vmem:[%s11647_s4 + $0x8c] ss:$16 sps:$4 sm:$0xff]   ;;  %v10537_v33 = vld [vmem:[%s11647_s4 + $0x228] ss:$16 sps:$4 sm:$0xff]  }
 0x260   : > { %7332 = vmatprep.mubr.bf16.mxu1 %v11733_v52  ;;  %v6969_v22 = vpop.f32.mrf.mxu0  ;;  %v10521_v48 = vld [vmem:[%s11647_s4 + $0x28c] ss:$16 sps:$4 sm:$0xff]   ;;  %v10516_v52 = vld [vmem:[%s11647_s4 + $0x88] ss:$16 sps:$4 sm:$0xff]  }
 0x261   : > { %v7010_v2 = vpop.f32.mrf.mxu1  ;;  %v12429_v6 = vadd.f32 %v7008_v43, %v6968_v57  ;;  %7262 = vmatpush1.bf16.msra.mxu0 %v10504_v14  ;;  %v10542_v14 = vld [vmem:[%s11647_s4 + $0xc] ss:$16 sps:$4 sm:$0xff]   ;;  %v10543_v36 = vld [vmem:[%s11647_s4 + $0x208] ss:$16 sps:$4 sm:$0xff]  }
 0x262   : > { %7303 = vmatpush1.bf16.msra.mxu1 %v10507_v34  ;;  %v6970_v9 = vpop.f32.mrf.mxu0  ;;  %7263 = vmatprep.subr.bf16.mxu0 %v10512_v44  ;;  %v10545_v34 = vld [vmem:[%s11647_s4 + $0x20c] ss:$16 sps:$4 sm:$0xff]   ;;  %v10546_v43 = vld [vmem:[%s11647_s4 + $0x1e8] ss:$16 sps:$4 sm:$0xff]  }
 0x263   : > { %v7011_v11 = vpop.f32.mrf.mxu1  ;;  %7304 = vmatprep.subr.bf16.mxu1 %v10515_v55  ;;  %v10548_v63 = vld [vmem:[%s11647_s4 + $0x1ec] ss:$16 sps:$4 sm:$0xff]   ;;  %v10549_v44 = vld [vmem:[%s11647_s4 + $0x3e8] ss:$16 sps:$4 sm:$0xff]  }
 0x264   : > { %v10551_v0 = vld [vmem:[%s11647_s4 + $0x3ec] ss:$16 sps:$4 sm:$0xff]   ;;  %v10558_v9 = vld [vmem:[%s11647_s4 + $0x1a8] ss:$16 sps:$4 sm:$0xff]  }
 0x265   : > { %7264 = vmatpush1.bf16.msra.mxu0 %v10510_v58  ;;  %v10554_v55 = vld [vmem:[%s11647_s4 + $0x1cc] ss:$16 sps:$4 sm:$0xff]   ;;  %v10552_v58 = vld [vmem:[%s11647_s4 + $0x1c8] ss:$16 sps:$4 sm:$0xff]  }
 0x266   : > { %7305 = vmatpush1.bf16.msra.mxu1 %v10513_v1  ;;  %7265 = vmatprep.subr.bf16.mxu0 %v10518_v31  ;;  %v10557_v57 = vld [vmem:[%s11647_s4 + $0x3cc] ss:$16 sps:$4 sm:$0xff]   ;;  %v10555_v1 = vld [vmem:[%s11647_s4 + $0x3c8] ss:$16 sps:$4 sm:$0xff]  }
 0x267   : > { %7306 = vmatprep.subr.bf16.mxu1 %v10521_v48  ;;  %v10560_v22 = vld [vmem:[%s11647_s4 + $0x1ac] ss:$16 sps:$4 sm:$0xff]   ;;  %v10561_v11 = vld [vmem:[%s11647_s4 + $0x3a8] ss:$16 sps:$4 sm:$0xff]  }
 0x268   : > { %v10563_v2 = vld [vmem:[%s11647_s4 + $0x3ac] ss:$16 sps:$4 sm:$0xff]  }
 0x269   : > { %7266 = vmatpush1.bf16.msra.mxu0 %v10516_v52  ;;  %v10566_v31 = vld [vmem:[%s11647_s4 + $0x18c] ss:$16 sps:$4 sm:$0xff]   ;;  %v10564_v52 = vld [vmem:[%s11647_s4 + $0x188] ss:$16 sps:$4 sm:$0xff]  }
 0x26a   : > { %7307 = vmatpush1.bf16.msra.mxu1 %v10519_v13  ;;  %7267 = vmatprep.subr.bf16.mxu0 %v10524_v54  ;;  %v10569_v48 = vld [vmem:[%s11647_s4 + $0x38c] ss:$16 sps:$4 sm:$0xff]   ;;  %v10567_v13 = vld [vmem:[%s11647_s4 + $0x388] ss:$16 sps:$4 sm:$0xff]  }
 0x26b   : > { %7308 = vmatprep.subr.bf16.mxu1 %v10527_v15  ;;  %v10572_v54 = vld [vmem:[%s11647_s4 + $0x16c] ss:$16 sps:$4 sm:$0xff]  }
 0x26c   : > { %v10575_v15 = vld [vmem:[%s11647_s4 + $0x36c] ss:$16 sps:$4 sm:$0xff]  }
 0x26d   : > { %7268 = vmatpush1.bf16.msra.mxu0 %v10522_v16  ;;  %v10570_v16 = vld [vmem:[%s11647_s4 + $0x168] ss:$16 sps:$4 sm:$0xff]  }
 0x26e   : > { %7309 = vmatpush1.bf16.msra.mxu1 %v10525_v19  ;;  %7269 = vmatprep.subr.bf16.mxu0 %v10530_v12  ;;  %v10573_v19 = vld [vmem:[%s11647_s4 + $0x368] ss:$16 sps:$4 sm:$0xff]   ;;  %v10578_v12 = vld [vmem:[%s11647_s4 + $0x14c] ss:$16 sps:$4 sm:$0xff]  }
 0x26f   : > { %7310 = vmatprep.subr.bf16.mxu1 %v10533_v20  ;;  %v10581_v20 = vld [vmem:[%s11647_s4 + $0x34c] ss:$16 sps:$4 sm:$0xff]  }
 0x271   : > { %7270 = vmatpush1.bf16.msra.mxu0 %v10528_v21  ;;  %v10576_v21 = vld [vmem:[%s11647_s4 + $0x148] ss:$16 sps:$4 sm:$0xff]  }
 0x272   : > { %7311 = vmatpush1.bf16.msra.mxu1 %v10531_v27  ;;  %7271 = vmatprep.subr.bf16.mxu0 %v10536_v28  ;;  %v10579_v27 = vld [vmem:[%s11647_s4 + $0x348] ss:$16 sps:$4 sm:$0xff]   ;;  %v10584_v28 = vld [vmem:[%s11647_s4 + $0x12c] ss:$16 sps:$4 sm:$0xff]  }
 0x273   : > { %7312 = vmatprep.subr.bf16.mxu1 %v10539_v29  ;;  %v10587_v29 = vld [vmem:[%s11647_s4 + $0x32c] ss:$16 sps:$4 sm:$0xff]  }
 0x275   : > { %7272 = vmatpush1.bf16.msra.mxu0 %v10534_v32  ;;  %v10582_v32 = vld [vmem:[%s11647_s4 + $0x128] ss:$16 sps:$4 sm:$0xff]  }
 0x276   : > { %7313 = vmatpush1.bf16.msra.mxu1 %v10537_v33  ;;  %7273 = vmatprep.subr.bf16.mxu0 %v10542_v14  ;;  %v10585_v33 = vld [vmem:[%s11647_s4 + $0x328] ss:$16 sps:$4 sm:$0xff]   ;;  %v10590_v14 = vld [vmem:[%s11647_s4 + $0x10c] ss:$16 sps:$4 sm:$0xff]  }
 0x277   : > { %7314 = vmatprep.subr.bf16.mxu1 %v10545_v34  ;;  %v10593_v34 = vld [vmem:[%s11647_s4 + $0x30c] ss:$16 sps:$4 sm:$0xff]  }
 0x279   : > { %7274 = vmatpush1.bf16.msra.mxu0 %v10540_v35  ;;  %v10588_v35 = vld [vmem:[%s11647_s4 + $0x108] ss:$16 sps:$4 sm:$0xff]  }
 0x27a   : > { %7315 = vmatpush1.bf16.msra.mxu1 %v10543_v36  ;;  %7275 = vmatprep.subr.bf16.mxu0 %v10548_v63  ;;  %v10591_v36 = vld [vmem:[%s11647_s4 + $0x308] ss:$16 sps:$4 sm:$0xff]   ;;  %v10596_v63 = vld [vmem:[%s11647_s4 + $0x4ec] ss:$16 sps:$4 sm:$0xff]  }
 0x27b   : > { %7316 = vmatprep.subr.bf16.mxu1 %v10551_v0  ;;  %v10599_v0 = vld [vmem:[%s11647_s4 + $0x6ec] ss:$16 sps:$4 sm:$0xff]  }
 0x27d   : > { %7276 = vmatpush2.bf16.msra.mxu0 %v10546_v43  ;;  %v10594_v43 = vld [vmem:[%s11647_s4 + $0x4e8] ss:$16 sps:$4 sm:$0xff]  }
 0x27e   : > { %7317 = vmatpush2.bf16.msra.mxu1 %v10549_v44  ;;  %7277 = vmatprep.subr.bf16.mxu0 %v10554_v55  ;;  %v10597_v44 = vld [vmem:[%s11647_s4 + $0x6e8] ss:$16 sps:$4 sm:$0xff]   ;;  %v10602_v55 = vld [vmem:[%s11647_s4 + $0x4cc] ss:$16 sps:$4 sm:$0xff]  }
 0x27f   : > { %7318 = vmatprep.subr.bf16.mxu1 %v10557_v57  ;;  %v10605_v57 = vld [vmem:[%s11647_s4 + $0x6cc] ss:$16 sps:$4 sm:$0xff]  }
 0x281   : > { %7278 = vmatpush2.bf16.msra.mxu0 %v10552_v58  ;;  %v10600_v58 = vld [vmem:[%s11647_s4 + $0x4c8] ss:$16 sps:$4 sm:$0xff]  }
 0x282   : > { %7319 = vmatpush2.bf16.msra.mxu1 %v10555_v1  ;;  %7279 = vmatprep.subr.bf16.mxu0 %v10560_v22 }
 0x283   : > { %7320 = vmatprep.subr.bf16.mxu1 %v10563_v2 }
 0x285   : > { %7280 = vmatpush2.bf16.msra.mxu0 %v10558_v9  ;;  %v10603_v9 = vld [vmem:[%s11647_s4 + $0x6c8] ss:$16 sps:$4 sm:$0xff]  }
 0x286   : > { %7321 = vmatpush2.bf16.msra.mxu1 %v10561_v11  ;;  %7281 = vmatprep.subr.bf16.mxu0 %v10566_v31 }
 0x287   : > { %7322 = vmatprep.subr.bf16.mxu1 %v10569_v48  ;;  %v10608_v48 = vld [vmem:[%s11647_s4 + $0x4ac] ss:$16 sps:$4 sm:$0xff]  }
 0x289   : > { %7282 = vmatpush2.bf16.msra.mxu0 %v10564_v52  ;;  %v10611_v52 = vld [vmem:[%s11647_s4 + $0x6ac] ss:$16 sps:$4 sm:$0xff]  }
 0x28a   : > { %7323 = vmatpush2.bf16.msra.mxu1 %v10567_v13  ;;  %7283 = vmatprep.subr.bf16.mxu0 %v10572_v54 }
 0x28b   : > { %7324 = vmatprep.subr.bf16.mxu1 %v10575_v15  ;;  %v10606_v15 = vld [vmem:[%s11647_s4 + $0x4a8] ss:$16 sps:$4 sm:$0xff]  }
 0x28d   : > { %7284 = vmatpush2.bf16.msra.mxu0 %v10570_v16  ;;  %v10609_v16 = vld [vmem:[%s11647_s4 + $0x6a8] ss:$16 sps:$4 sm:$0xff]  }
 0x28e   : > { %7325 = vmatpush2.bf16.msra.mxu1 %v10573_v19  ;;  %7285 = vmatprep.subr.bf16.mxu0 %v10578_v12 }
 0x28f   : > { %7326 = vmatprep.subr.bf16.mxu1 %v10581_v20  ;;  %v10615_v20 = vld [vmem:[%s11647_s4 + $0x688] ss:$16 sps:$4 sm:$0xff]  }
 0x291   : > { %7286 = vmatpush2.bf16.msra.mxu0 %v10576_v21  ;;  %v10620_v21 = vld [vmem:[%s11647_s4 + $0x46c] ss:$16 sps:$4 sm:$0xff]  }
 0x292   : > { %7327 = vmatpush2.bf16.msra.mxu1 %v10579_v27  ;;  %7287 = vmatprep.subr.bf16.mxu0 %v10584_v28  ;;  %v10623_v27 = vld [vmem:[%s11647_s4 + $0x66c] ss:$16 sps:$4 sm:$0xff]   ;;  %v10618_v28 = vld [vmem:[%s11647_s4 + $0x468] ss:$16 sps:$4 sm:$0xff]  }
 0x293   : > { %7328 = vmatprep.subr.bf16.mxu1 %v10587_v29  ;;  %v10621_v29 = vld [vmem:[%s11647_s4 + $0x668] ss:$16 sps:$4 sm:$0xff]  }
 0x295   : > { %7288 = vmatpush2.bf16.msra.mxu0 %v10582_v32  ;;  %v10626_v32 = vld [vmem:[%s11647_s4 + $0x44c] ss:$16 sps:$4 sm:$0xff]  }
 0x296   : > { %7329 = vmatpush2.bf16.msra.mxu1 %v10585_v33  ;;  %7289 = vmatprep.subr.bf16.mxu0 %v10590_v14  ;;  %v10629_v33 = vld [vmem:[%s11647_s4 + $0x64c] ss:$16 sps:$4 sm:$0xff]   ;;  %v10624_v14 = vld [vmem:[%s11647_s4 + $0x448] ss:$16 sps:$4 sm:$0xff]  }
 0x297   : > { %7330 = vmatprep.subr.bf16.mxu1 %v10593_v34  ;;  %v10627_v34 = vld [vmem:[%s11647_s4 + $0x648] ss:$16 sps:$4 sm:$0xff]  }
 0x299   : > { %7290 = vmatpush2.bf16.msra.mxu0 %v10588_v35  ;;  %v10632_v35 = vld [vmem:[%s11647_s4 + $0x42c] ss:$16 sps:$4 sm:$0xff]  }
 0x29a   : > { %7331 = vmatpush2.bf16.msra.mxu1 %v10591_v36  ;;  %7341 = vmatprep.subr.bf16.mxu0 %v10596_v63  ;;  %v10635_v36 = vld [vmem:[%s11647_s4 + $0x62c] ss:$16 sps:$4 sm:$0xff]   ;;  %v10630_v63 = vld [vmem:[%s11647_s4 + $0x428] ss:$16 sps:$4 sm:$0xff]  }
 0x29b   : > { %7382 = vmatprep.subr.bf16.mxu1 %v10599_v0  ;;  %v10633_v0 = vld [vmem:[%s11647_s4 + $0x628] ss:$16 sps:$4 sm:$0xff]  }
 0x29c   : > { %v7047_v1 = vpop.f32.mrf.mxu0  ;;  %7292 = vmatmul.mubr.bf16.vlgmr.msra.gmra.mxu0 %v11755_v7 }
 0x29d   : > { %v7088_v22 = vpop.f32.mrf.mxu1  ;;  %7333 = vmatmul.mubr.bf16.vlgmr.msra.gmra.mxu1 %v11757_v8  ;;  %v7048_v2 = vadd.f32 %v7047_v1, %v12422_v56  ;;  %7342 = vmatpush1.bf16.msra.mxu0 %v10594_v43  ;;  %v10638_v43 = vld [vmem:[%s11647_s4 + $0x40c] ss:$16 sps:$4 sm:$0xff]  }
 0x29e   : > { %7383 = vmatpush1.bf16.msra.mxu1 %v10597_v44  ;;  %v7049_v11 = vpop.f32.mrf.mxu0  ;;  %7343 = vmatprep.subr.bf16.mxu0 %v10602_v55  ;;  %v10641_v44 = vld [vmem:[%s11647_s4 + $0x60c] ss:$16 sps:$4 sm:$0xff]   ;;  %v10636_v55 = vld [vmem:[%s11647_s4 + $0x408] ss:$16 sps:$4 sm:$0xff]  }
 0x29f   : > { %v7090_v31 = vpop.f32.mrf.mxu1  ;;  %7384 = vmatprep.subr.bf16.mxu1 %v10605_v57  ;;  %v12496_v13 = vadd.f32 %v7088_v22, %v7048_v2  ;;  %v7050_v7 = vadd.f32 %v7049_v11, %v12429_v6  ;;  %7373 = vmatprep.mubr.bf16.mxu0 %v11795_v37  ;;  %v10614_v37 = vld [vmem:[%s11647_s4 + $0x48c] ss:$16 sps:$4 sm:$0xff]   ;;  %v10612_v6 = vld [vmem:[%s11647_s4 + $0x488] ss:$16 sps:$4 sm:$0xff]  }
 0x2a0   : > { %7414 = vmatprep.mubr.bf16.mxu1 %v11799_v38  ;;  %v7051_v8 = vpop.f32.mrf.mxu0  ;;  %v10617_v38 = vld [vmem:[%s11647_s4 + $0x68c] ss:$16 sps:$4 sm:$0xff]   ;;  %v10639_v57 = vld [vmem:[%s11647_s4 + $0x608] ss:$16 sps:$4 sm:$0xff]  }
 0x2a1   : > { %v7092_v56 = vpop.f32.mrf.mxu1  ;;  %v12501_v54 = vadd.f32 %v7090_v31, %v7050_v7  ;;  %7344 = vmatpush1.bf16.msra.mxu0 %v10600_v58  ;;  %v10644_v58 = vld [vmem:[%s11647_s4 + $0x5ec] ss:$16 sps:$4 sm:$0xff]   ;;  %v10642_v22 = vld [vmem:[%s11647_s4 + $0x5e8] ss:$16 sps:$4 sm:$0xff]  }
 0x2a2   : > { %7385 = vmatpush1.bf16.msra.mxu1 %v10603_v9  ;;  %v7052_v19 = vpop.f32.mrf.mxu0  ;;  %7345 = vmatprep.subr.bf16.mxu0 %v10608_v48  ;;  %v10647_v1 = vld [vmem:[%s11647_s4 + $0x7ec] ss:$16 sps:$4 sm:$0xff]   ;;  %v10645_v2 = vld [vmem:[%s11647_s4 + $0x7e8] ss:$16 sps:$4 sm:$0xff]  }
 0x2a3   : > { %v7093_v12 = vpop.f32.mrf.mxu1  ;;  %7386 = vmatprep.subr.bf16.mxu1 %v10611_v52  ;;  %v10650_v9 = vld [vmem:[%s11647_s4 + $0x5cc] ss:$16 sps:$4 sm:$0xff]   ;;  %v10648_v31 = vld [vmem:[%s11647_s4 + $0x5c8] ss:$16 sps:$4 sm:$0xff]  }
 0x2a4   : > { %v10653_v11 = vld [vmem:[%s11647_s4 + $0x7cc] ss:$16 sps:$4 sm:$0xff]   ;;  %v10651_v48 = vld [vmem:[%s11647_s4 + $0x7c8] ss:$16 sps:$4 sm:$0xff]  }
 0x2a5   : > { %7346 = vmatpush1.bf16.msra.mxu0 %v10606_v15  ;;  %v10656_v52 = vld [vmem:[%s11647_s4 + $0x5ac] ss:$16 sps:$4 sm:$0xff]   ;;  %v10654_v8 = vld [vmem:[%s11647_s4 + $0x5a8] ss:$16 sps:$4 sm:$0xff]  }
 0x2a6   : > { %7387 = vmatpush1.bf16.msra.mxu1 %v10609_v16  ;;  %7347 = vmatprep.subr.bf16.mxu0 %v10614_v37  ;;  %v10659_v7 = vld [vmem:[%s11647_s4 + $0x7ac] ss:$16 sps:$4 sm:$0xff]   ;;  %v10657_v56 = vld [vmem:[%s11647_s4 + $0x7a8] ss:$16 sps:$4 sm:$0xff]  }
 0x2a7   : > { %7388 = vmatprep.subr.bf16.mxu1 %v10617_v38  ;;  %v10662_v15 = vld [vmem:[%s11647_s4 + $0x58c] ss:$16 sps:$4 sm:$0xff]   ;;  %v10660_v19 = vld [vmem:[%s11647_s4 + $0x588] ss:$16 sps:$4 sm:$0xff]  }
 0x2a8   : > { %v10665_v16 = vld [vmem:[%s11647_s4 + $0x78c] ss:$16 sps:$4 sm:$0xff]   ;;  %v10663_v12 = vld [vmem:[%s11647_s4 + $0x788] ss:$16 sps:$4 sm:$0xff]  }
 0x2a9   : > { %7348 = vmatpush1.bf16.msra.mxu0 %v10612_v6  ;;  %v10668_v37 = vld [vmem:[%s11647_s4 + $0x56c] ss:$16 sps:$4 sm:$0xff]   ;;  %v10666_v6 = vld [vmem:[%s11647_s4 + $0x568] ss:$16 sps:$4 sm:$0xff]  }
 0x2aa   : > { %7389 = vmatpush1.bf16.msra.mxu1 %v10615_v20  ;;  %7349 = vmatprep.subr.bf16.mxu0 %v10620_v21  ;;  %v10671_v38 = vld [vmem:[%s11647_s4 + $0x76c] ss:$16 sps:$4 sm:$0xff]   ;;  %v10669_v20 = vld [vmem:[%s11647_s4 + $0x768] ss:$16 sps:$4 sm:$0xff]  }
 0x2ab   : > { %7390 = vmatprep.subr.bf16.mxu1 %v10623_v27  ;;  %v10674_v21 = vld [vmem:[%s11647_s4 + $0x54c] ss:$16 sps:$4 sm:$0xff]  }
 0x2ac   : > { %v10677_v27 = vld [vmem:[%s11647_s4 + $0x74c] ss:$16 sps:$4 sm:$0xff]  }
 0x2ad   : > { %7350 = vmatpush1.bf16.msra.mxu0 %v10618_v28  ;;  %v10672_v28 = vld [vmem:[%s11647_s4 + $0x548] ss:$16 sps:$4 sm:$0xff]  }
 0x2ae   : > { %7391 = vmatpush1.bf16.msra.mxu1 %v10621_v29  ;;  %7351 = vmatprep.subr.bf16.mxu0 %v10626_v32  ;;  %v10675_v29 = vld [vmem:[%s11647_s4 + $0x748] ss:$16 sps:$4 sm:$0xff]   ;;  %v10680_v32 = vld [vmem:[%s11647_s4 + $0x52c] ss:$16 sps:$4 sm:$0xff]  }
 0x2af   : > { %7392 = vmatprep.subr.bf16.mxu1 %v10629_v33  ;;  %v10683_v33 = vld [vmem:[%s11647_s4 + $0x72c] ss:$16 sps:$4 sm:$0xff]  }
 0x2b1   : > { %7352 = vmatpush1.bf16.msra.mxu0 %v10624_v14  ;;  %v10678_v14 = vld [vmem:[%s11647_s4 + $0x528] ss:$16 sps:$4 sm:$0xff]  }
 0x2b2   : > { %7393 = vmatpush1.bf16.msra.mxu1 %v10627_v34  ;;  %7353 = vmatprep.subr.bf16.mxu0 %v10632_v35  ;;  %v10681_v34 = vld [vmem:[%s11647_s4 + $0x728] ss:$16 sps:$4 sm:$0xff]   ;;  %v10686_v35 = vld [vmem:[%s11647_s4 + $0x50c] ss:$16 sps:$4 sm:$0xff]  }
 0x2b3   : > { %7394 = vmatprep.subr.bf16.mxu1 %v10635_v36  ;;  %v10689_v36 = vld [vmem:[%s11647_s4 + $0x70c] ss:$16 sps:$4 sm:$0xff]  }
 0x2b5   : > { %7354 = vmatpush1.bf16.msra.mxu0 %v10630_v63  ;;  %v10684_v63 = vld [vmem:[%s11647_s4 + $0x508] ss:$16 sps:$4 sm:$0xff]  }
 0x2b6   : > { %7395 = vmatpush1.bf16.msra.mxu1 %v10633_v0  ;;  %7355 = vmatprep.subr.bf16.mxu0 %v10638_v43  ;;  %v10687_v0 = vld [vmem:[%s11647_s4 + $0x708] ss:$16 sps:$4 sm:$0xff]   ;;  %v10692_v43 = vld [vmem:[%s11647_s4 + $0x8ec] ss:$16 sps:$4 sm:$0xff]  }
 0x2b7   : > { %7396 = vmatprep.subr.bf16.mxu1 %v10641_v44  ;;  %v10695_v44 = vld [vmem:[%s11647_s4 + $0xaec] ss:$16 sps:$4 sm:$0xff]  }
 0x2b9   : > { %7356 = vmatpush1.bf16.msra.mxu0 %v10636_v55  ;;  %v10690_v55 = vld [vmem:[%s11647_s4 + $0x8e8] ss:$16 sps:$4 sm:$0xff]  }
 0x2ba   : > { %7397 = vmatpush1.bf16.msra.mxu1 %v10639_v57  ;;  %7357 = vmatprep.subr.bf16.mxu0 %v10644_v58  ;;  %v10693_v57 = vld [vmem:[%s11647_s4 + $0xae8] ss:$16 sps:$4 sm:$0xff]   ;;  %v10698_v58 = vld [vmem:[%s11647_s4 + $0x8cc] ss:$16 sps:$4 sm:$0xff]  }
 0x2bb   : > { %7398 = vmatprep.subr.bf16.mxu1 %v10647_v1  ;;  %v10701_v1 = vld [vmem:[%s11647_s4 + $0xacc] ss:$16 sps:$4 sm:$0xff]  }
 0x2bd   : > { %7358 = vmatpush2.bf16.msra.mxu0 %v10642_v22 }
 0x2be   : > { %7399 = vmatpush2.bf16.msra.mxu1 %v10645_v2  ;;  %7359 = vmatprep.subr.bf16.mxu0 %v10650_v9  ;;  %v10696_v9 = vld [vmem:[%s11647_s4 + $0x8c8] ss:$16 sps:$4 sm:$0xff]  }
 0x2bf   : > { %7400 = vmatprep.subr.bf16.mxu1 %v10653_v11  ;;  %v10699_v11 = vld [vmem:[%s11647_s4 + $0xac8] ss:$16 sps:$4 sm:$0xff]  }
 0x2c1   : > { %7360 = vmatpush2.bf16.msra.mxu0 %v10648_v31 }
 0x2c2   : > { %7401 = vmatpush2.bf16.msra.mxu1 %v10651_v48  ;;  %7361 = vmatprep.subr.bf16.mxu0 %v10656_v52  ;;  %v10704_v52 = vld [vmem:[%s11647_s4 + $0x8ac] ss:$16 sps:$4 sm:$0xff]  }
 0x2c3   : > { %7402 = vmatprep.subr.bf16.mxu1 %v10659_v7  ;;  %v10707_v7 = vld [vmem:[%s11647_s4 + $0xaac] ss:$16 sps:$4 sm:$0xff]  }
 0x2c5   : > { %7362 = vmatpush2.bf16.msra.mxu0 %v10654_v8  ;;  %v10702_v8 = vld [vmem:[%s11647_s4 + $0x8a8] ss:$16 sps:$4 sm:$0xff]  }
 0x2c6   : > { %7403 = vmatpush2.bf16.msra.mxu1 %v10657_v56  ;;  %7363 = vmatprep.subr.bf16.mxu0 %v10662_v15  ;;  %v10705_v56 = vld [vmem:[%s11647_s4 + $0xaa8] ss:$16 sps:$4 sm:$0xff]  }
 0x2c7   : > { %7404 = vmatprep.subr.bf16.mxu1 %v10665_v16 }
 0x2c9   : > { %7364 = vmatpush2.bf16.msra.mxu0 %v10660_v19  ;;  %v10710_v19 = vld [vmem:[%s11647_s4 + $0x88c] ss:$16 sps:$4 sm:$0xff]  }
 0x2ca   : > { %7405 = vmatpush2.bf16.msra.mxu1 %v10663_v12  ;;  %7365 = vmatprep.subr.bf16.mxu0 %v10668_v37  ;;  %v10711_v12 = vld [vmem:[%s11647_s4 + $0xa88] ss:$16 sps:$4 sm:$0xff]   ;;  %v10716_v37 = vld [vmem:[%s11647_s4 + $0x86c] ss:$16 sps:$4 sm:$0xff]  }
 0x2cb   : > { %7406 = vmatprep.subr.bf16.mxu1 %v10671_v38  ;;  %v10719_v38 = vld [vmem:[%s11647_s4 + $0xa6c] ss:$16 sps:$4 sm:$0xff]  }
 0x2cd   : > { %7366 = vmatpush2.bf16.msra.mxu0 %v10666_v6  ;;  %v10714_v6 = vld [vmem:[%s11647_s4 + $0x868] ss:$16 sps:$4 sm:$0xff]  }
 0x2ce   : > { %7407 = vmatpush2.bf16.msra.mxu1 %v10669_v20  ;;  %7367 = vmatprep.subr.bf16.mxu0 %v10674_v21  ;;  %v10717_v20 = vld [vmem:[%s11647_s4 + $0xa68] ss:$16 sps:$4 sm:$0xff]   ;;  %v10722_v21 = vld [vmem:[%s11647_s4 + $0x84c] ss:$16 sps:$4 sm:$0xff]  }
 0x2cf   : > { %7408 = vmatprep.subr.bf16.mxu1 %v10677_v27  ;;  %v10725_v27 = vld [vmem:[%s11647_s4 + $0xa4c] ss:$16 sps:$4 sm:$0xff]  }
 0x2d1   : > { %7368 = vmatpush2.bf16.msra.mxu0 %v10672_v28  ;;  %v10720_v28 = vld [vmem:[%s11647_s4 + $0x848] ss:$16 sps:$4 sm:$0xff]  }
 0x2d2   : > { %7409 = vmatpush2.bf16.msra.mxu1 %v10675_v29  ;;  %7369 = vmatprep.subr.bf16.mxu0 %v10680_v32  ;;  %v10723_v29 = vld [vmem:[%s11647_s4 + $0xa48] ss:$16 sps:$4 sm:$0xff]   ;;  %v10728_v32 = vld [vmem:[%s11647_s4 + $0x82c] ss:$16 sps:$4 sm:$0xff]  }
 0x2d3   : > { %7410 = vmatprep.subr.bf16.mxu1 %v10683_v33  ;;  %v10731_v33 = vld [vmem:[%s11647_s4 + $0xa2c] ss:$16 sps:$4 sm:$0xff]  }
 0x2d5   : > { %7370 = vmatpush2.bf16.msra.mxu0 %v10678_v14  ;;  %v10726_v14 = vld [vmem:[%s11647_s4 + $0x828] ss:$16 sps:$4 sm:$0xff]  }
 0x2d6   : > { %7411 = vmatpush2.bf16.msra.mxu1 %v10681_v34  ;;  %7371 = vmatprep.subr.bf16.mxu0 %v10686_v35  ;;  %v10729_v34 = vld [vmem:[%s11647_s4 + $0xa28] ss:$16 sps:$4 sm:$0xff]   ;;  %v10734_v35 = vld [vmem:[%s11647_s4 + $0x80c] ss:$16 sps:$4 sm:$0xff]  }
 0x2d7   : > { %7412 = vmatprep.subr.bf16.mxu1 %v10689_v36  ;;  %v10737_v36 = vld [vmem:[%s11647_s4 + $0xa0c] ss:$16 sps:$4 sm:$0xff]  }
 0x2d9   : > { %7372 = vmatpush2.bf16.msra.mxu0 %v10684_v63  ;;  %v10732_v63 = vld [vmem:[%s11647_s4 + $0x808] ss:$16 sps:$4 sm:$0xff]  }
 0x2da   : > { %7413 = vmatpush2.bf16.msra.mxu1 %v10687_v0  ;;  %7423 = vmatprep.subr.bf16.mxu0 %v10692_v43  ;;  %v10735_v0 = vld [vmem:[%s11647_s4 + $0xa08] ss:$16 sps:$4 sm:$0xff]   ;;  %v10740_v43 = vld [vmem:[%s11647_s4 + $0x9ec] ss:$16 sps:$4 sm:$0xff]  }
 0x2db   : > { %7464 = vmatprep.subr.bf16.mxu1 %v10695_v44  ;;  %v10743_v44 = vld [vmem:[%s11647_s4 + $0xbec] ss:$16 sps:$4 sm:$0xff]  }
 0x2dc   : > { %v12563_v22 = vpop.f32.mrf.mxu0  ;;  %7374 = vmatmul.mubr.bf16.vlgmr.msra.gmra.mxu0 %v11843_v17 }
 0x2dd   : > { %v12565_v2 = vpop.f32.mrf.mxu1  ;;  %7415 = vmatmul.mubr.bf16.vlgmr.msra.gmra.mxu1 %v11847_v18  ;;  %7424 = vmatpush1.bf16.msra.mxu0 %v10690_v55  ;;  %v10738_v55 = vld [vmem:[%s11647_s4 + $0x9e8] ss:$16 sps:$4 sm:$0xff]  }
 0x2de   : > { %7465 = vmatpush1.bf16.msra.mxu1 %v10693_v57  ;;  %v12571_v31 = vpop.f32.mrf.mxu0  ;;  %7425 = vmatprep.subr.bf16.mxu0 %v10698_v58  ;;  %v10741_v57 = vld [vmem:[%s11647_s4 + $0xbe8] ss:$16 sps:$4 sm:$0xff]   ;;  %v10746_v58 = vld [vmem:[%s11647_s4 + $0x9cc] ss:$16 sps:$4 sm:$0xff]  }
 0x2df   : > { %v12573_v48 = vpop.f32.mrf.mxu1  ;;  %7466 = vmatprep.subr.bf16.mxu1 %v10701_v1  ;;  %7455 = vmatprep.mubr.bf16.mxu0 %v11861_v25  ;;  %v10713_v25 = vld [vmem:[%s11647_s4 + $0xa8c] ss:$16 sps:$4 sm:$0xff]  }
 0x2e0   : > { %7496 = vmatprep.mubr.bf16.mxu1 %v11865_v26  ;;  %v7133_v17 = vpop.f32.mrf.mxu0  ;;  %v10708_v26 = vld [vmem:[%s11647_s4 + $0x888] ss:$16 sps:$4 sm:$0xff]   ;;  %v10749_v1 = vld [vmem:[%s11647_s4 + $0xbcc] ss:$16 sps:$4 sm:$0xff]  }
 0x2e1   : > { %v7174_v18 = vpop.f32.mrf.mxu1  ;;  %7426 = vmatpush1.bf16.msra.mxu0 %v10696_v9  ;;  %v10744_v9 = vld [vmem:[%s11647_s4 + $0x9c8] ss:$16 sps:$4 sm:$0xff]  }
 0x2e2   : > { %7467 = vmatpush1.bf16.msra.mxu1 %v10699_v11  ;;  %v7134_v15 = vpop.f32.mrf.mxu0  ;;  %7427 = vmatprep.subr.bf16.mxu0 %v10704_v52  ;;  %v10747_v11 = vld [vmem:[%s11647_s4 + $0xbc8] ss:$16 sps:$4 sm:$0xff]   ;;  %v10752_v52 = vld [vmem:[%s11647_s4 + $0x9ac] ss:$16 sps:$4 sm:$0xff]  }
 0x2e3   : > { %v7175_v16 = vpop.f32.mrf.mxu1  ;;  %7468 = vmatprep.subr.bf16.mxu1 %v10707_v7  ;;  %v10755_v7 = vld [vmem:[%s11647_s4 + $0xbac] ss:$16 sps:$4 sm:$0xff]   ;;  %v10750_v17 = vld [vmem:[%s11647_s4 + $0x9a8] ss:$16 sps:$4 sm:$0xff]  }
 0x2e4   : > { %v10753_v18 = vld [vmem:[%s11647_s4 + $0xba8] ss:$16 sps:$4 sm:$0xff]  }
 0x2e5   : > { %7428 = vmatpush1.bf16.msra.mxu0 %v10702_v8  ;;  %v10758_v8 = vld [vmem:[%s11647_s4 + $0x98c] ss:$16 sps:$4 sm:$0xff]   ;;  %v10756_v15 = vld [vmem:[%s11647_s4 + $0x988] ss:$16 sps:$4 sm:$0xff]  }
 0x2e6   : > { %7469 = vmatpush1.bf16.msra.mxu1 %v10705_v56  ;;  %7429 = vmatprep.subr.bf16.mxu0 %v10710_v19  ;;  %v10761_v56 = vld [vmem:[%s11647_s4 + $0xb8c] ss:$16 sps:$4 sm:$0xff]   ;;  %v10759_v16 = vld [vmem:[%s11647_s4 + $0xb88] ss:$16 sps:$4 sm:$0xff]  }
 0x2e7   : > { %7470 = vmatprep.subr.bf16.mxu1 %v10713_v25  ;;  %v10764_v19 = vld [vmem:[%s11647_s4 + $0x96c] ss:$16 sps:$4 sm:$0xff]  }
 0x2e8   : > { %v10767_v25 = vld [vmem:[%s11647_s4 + $0xb6c] ss:$16 sps:$4 sm:$0xff]  }
 0x2e9   : > { %7430 = vmatpush1.bf16.msra.mxu0 %v10708_v26  ;;  %v10762_v26 = vld [vmem:[%s11647_s4 + $0x968] ss:$16 sps:$4 sm:$0xff]  }
 0x2ea   : > { %7471 = vmatpush1.bf16.msra.mxu1 %v10711_v12  ;;  %7431 = vmatprep.subr.bf16.mxu0 %v10716_v37  ;;  %v10765_v12 = vld [vmem:[%s11647_s4 + $0xb68] ss:$16 sps:$4 sm:$0xff]   ;;  %v10770_v37 = vld [vmem:[%s11647_s4 + $0x94c] ss:$16 sps:$4 sm:$0xff]  }
 0x2eb   : > { %7472 = vmatprep.subr.bf16.mxu1 %v10719_v38  ;;  %v10773_v38 = vld [vmem:[%s11647_s4 + $0xb4c] ss:$16 sps:$4 sm:$0xff]  }
 0x2ed   : > { %7432 = vmatpush1.bf16.msra.mxu0 %v10714_v6  ;;  %v10768_v6 = vld [vmem:[%s11647_s4 + $0x948] ss:$16 sps:$4 sm:$0xff]  }
 0x2ee   : > { %7473 = vmatpush1.bf16.msra.mxu1 %v10717_v20  ;;  %7433 = vmatprep.subr.bf16.mxu0 %v10722_v21  ;;  %v10771_v20 = vld [vmem:[%s11647_s4 + $0xb48] ss:$16 sps:$4 sm:$0xff]   ;;  %v10776_v21 = vld [vmem:[%s11647_s4 + $0x92c] ss:$16 sps:$4 sm:$0xff]  }
 0x2ef   : > { %7474 = vmatprep.subr.bf16.mxu1 %v10725_v27  ;;  %v10779_v27 = vld [vmem:[%s11647_s4 + $0xb2c] ss:$16 sps:$4 sm:$0xff]  }
 0x2f1   : > { %7434 = vmatpush1.bf16.msra.mxu0 %v10720_v28  ;;  %v10774_v28 = vld [vmem:[%s11647_s4 + $0x928] ss:$16 sps:$4 sm:$0xff]  }
 0x2f2   : > { %7475 = vmatpush1.bf16.msra.mxu1 %v10723_v29  ;;  %7435 = vmatprep.subr.bf16.mxu0 %v10728_v32  ;;  %v10777_v29 = vld [vmem:[%s11647_s4 + $0xb28] ss:$16 sps:$4 sm:$0xff]   ;;  %v10782_v32 = vld [vmem:[%s11647_s4 + $0x90c] ss:$16 sps:$4 sm:$0xff]  }
 0x2f3   : > { %7476 = vmatprep.subr.bf16.mxu1 %v10731_v33  ;;  %v10785_v33 = vld [vmem:[%s11647_s4 + $0xb0c] ss:$16 sps:$4 sm:$0xff]  }
 0x2f5   : > { %7436 = vmatpush1.bf16.msra.mxu0 %v10726_v14  ;;  %v10780_v14 = vld [vmem:[%s11647_s4 + $0x908] ss:$16 sps:$4 sm:$0xff]  }
 0x2f6   : > { %7477 = vmatpush1.bf16.msra.mxu1 %v10729_v34  ;;  %7437 = vmatprep.subr.bf16.mxu0 %v10734_v35  ;;  %v10783_v34 = vld [vmem:[%s11647_s4 + $0xb08] ss:$16 sps:$4 sm:$0xff]   ;;  %v10788_v35 = vld [vmem:[%s11647_s4 + $0xcec] ss:$16 sps:$4 sm:$0xff]  }
 0x2f7   : > { %7478 = vmatprep.subr.bf16.mxu1 %v10737_v36  ;;  %v10791_v36 = vld [vmem:[%s11647_s4 + $0xeec] ss:$16 sps:$4 sm:$0xff]  }
 0x2f9   : > { %7438 = vmatpush1.bf16.msra.mxu0 %v10732_v63  ;;  %v7130_v63 = vadd.f32 %v12563_v22, %v12496_v13  ;;  %v10792_v22 = vld [vmem:[%s11647_s4 + $0xcc8] ss:$16 sps:$4 sm:$0xff]  }
 0x2fa   : > { %7479 = vmatpush1.bf16.msra.mxu1 %v10735_v0  ;;  %7439 = vmatprep.subr.bf16.mxu0 %v10740_v43  ;;  %v7132_v0 = vadd.f32 %v12571_v31, %v12501_v54  ;;  %v10786_v43 = vld [vmem:[%s11647_s4 + $0xce8] ss:$16 sps:$4 sm:$0xff]  }
 0x2fb   : > { %7480 = vmatprep.subr.bf16.mxu1 %v10743_v44  ;;  %v10789_v44 = vld [vmem:[%s11647_s4 + $0xee8] ss:$16 sps:$4 sm:$0xff]  }
 0x2fc   : > { %v7173_v13 = vadd.f32 %v12573_v48, %v7132_v0  ;;  %v10795_v31 = vld [vmem:[%s11647_s4 + $0xec8] ss:$16 sps:$4 sm:$0xff]   ;;  %v10833_v0 = vld [vmem:[%s11647_s4 + $0xe0c] ss:$16 sps:$4 sm:$0xff]  }
 0x2fd   : > { %7440 = vmatpush2.bf16.msra.mxu0 %v10738_v55  ;;  %v10794_v55 = vld [vmem:[%s11647_s4 + $0xccc] ss:$16 sps:$4 sm:$0xff]  }
 0x2fe   : > { %7481 = vmatpush2.bf16.msra.mxu1 %v10741_v57  ;;  %7441 = vmatprep.subr.bf16.mxu0 %v10746_v58  ;;  %v10797_v57 = vld [vmem:[%s11647_s4 + $0xecc] ss:$16 sps:$4 sm:$0xff]   ;;  %v7171_v58 = vadd.f32 %v12565_v2, %v7130_v63 }
 0x2ff   : > { %7482 = vmatprep.subr.bf16.mxu1 %v10749_v1  ;;  %v10800_v2 = vld [vmem:[%s11647_s4 + $0xcac] ss:$16 sps:$4 sm:$0xff]  }
 0x300   : > { %v10830_v63 = vld [vmem:[%s11647_s4 + $0xc0c] ss:$16 sps:$4 sm:$0xff]  }
 0x301   : > { %7442 = vmatpush2.bf16.msra.mxu0 %v10744_v9 }
 0x302   : > { %7483 = vmatpush2.bf16.msra.mxu1 %v10747_v11  ;;  %7443 = vmatprep.subr.bf16.mxu0 %v10752_v52  ;;  %v327_v11 = vld [vmem:[#allocation2 + $0x10] sm:$0xff] }
 0x303   : > { %7484 = vmatprep.subr.bf16.mxu1 %v10755_v7 }
 0x305   : > { %7444 = vmatpush2.bf16.msra.mxu0 %v10750_v17  ;;  %v10803_v17 = vld [vmem:[%s11647_s4 + $0xeac] ss:$16 sps:$4 sm:$0xff]  }
 0x306   : > { %7485 = vmatpush2.bf16.msra.mxu1 %v10753_v18  ;;  %7445 = vmatprep.subr.bf16.mxu0 %v10758_v8 }
 0x307   : > { %7486 = vmatprep.subr.bf16.mxu1 %v10761_v56 }
 0x309   : > { %7446 = vmatpush2.bf16.msra.mxu0 %v10756_v15 }
 0x30a   : > { %7487 = vmatpush2.bf16.msra.mxu1 %v10759_v16  ;;  %7447 = vmatprep.subr.bf16.mxu0 %v10764_v19  ;;  %v10798_v16 = vld [vmem:[%s11647_s4 + $0xca8] ss:$16 sps:$4 sm:$0xff]  }
 0x30b   : > { %7488 = vmatprep.subr.bf16.mxu1 %v10767_v25  ;;  %v10801_v19 = vld [vmem:[%s11647_s4 + $0xea8] ss:$16 sps:$4 sm:$0xff]  }
 0x30d   : > { %7448 = vmatpush2.bf16.msra.mxu0 %v10762_v26 }
 0x30e   : > { %7489 = vmatpush2.bf16.msra.mxu1 %v10765_v12  ;;  %7449 = vmatprep.subr.bf16.mxu0 %v10770_v37  ;;  %v10804_v37 = vld [vmem:[%s11647_s4 + $0xc88] ss:$16 sps:$4 sm:$0xff]  }
 0x30f   : > { %7490 = vmatprep.subr.bf16.mxu1 %v10773_v38  ;;  %v10807_v38 = vld [vmem:[%s11647_s4 + $0xe88] ss:$16 sps:$4 sm:$0xff]  }
 0x311   : > { %7450 = vmatpush2.bf16.msra.mxu0 %v10768_v6  ;;  %v10812_v6 = vld [vmem:[%s11647_s4 + $0xc6c] ss:$16 sps:$4 sm:$0xff]  }
 0x312   : > { %7491 = vmatpush2.bf16.msra.mxu1 %v10771_v20  ;;  %7451 = vmatprep.subr.bf16.mxu0 %v10776_v21  ;;  %v10815_v20 = vld [vmem:[%s11647_s4 + $0xe6c] ss:$16 sps:$4 sm:$0xff]   ;;  %v10810_v21 = vld [vmem:[%s11647_s4 + $0xc68] ss:$16 sps:$4 sm:$0xff]  }
 0x313   : > { %7492 = vmatprep.subr.bf16.mxu1 %v10779_v27  ;;  %v10813_v27 = vld [vmem:[%s11647_s4 + $0xe68] ss:$16 sps:$4 sm:$0xff]  }
 0x315   : > { %7452 = vmatpush2.bf16.msra.mxu0 %v10774_v28  ;;  %v10818_v28 = vld [vmem:[%s11647_s4 + $0xc4c] ss:$16 sps:$4 sm:$0xff]  }
 0x316   : > { %7493 = vmatpush2.bf16.msra.mxu1 %v10777_v29  ;;  %7453 = vmatprep.subr.bf16.mxu0 %v10782_v32  ;;  %v10821_v29 = vld [vmem:[%s11647_s4 + $0xe4c] ss:$16 sps:$4 sm:$0xff]   ;;  %v10816_v32 = vld [vmem:[%s11647_s4 + $0xc48] ss:$16 sps:$4 sm:$0xff]  }
 0x317   : > { %7494 = vmatprep.subr.bf16.mxu1 %v10785_v33  ;;  %v10819_v33 = vld [vmem:[%s11647_s4 + $0xe48] ss:$16 sps:$4 sm:$0xff]  }
 0x319   : > { %7454 = vmatpush2.bf16.msra.mxu0 %v10780_v14  ;;  %v10824_v14 = vld [vmem:[%s11647_s4 + $0xc2c] ss:$16 sps:$4 sm:$0xff]  }
 0x31a   : > { %7495 = vmatpush2.bf16.msra.mxu1 %v10783_v34  ;;  %7505 = vmatprep.subr.bf16.mxu0 %v10788_v35  ;;  %v10827_v34 = vld [vmem:[%s11647_s4 + $0xe2c] ss:$16 sps:$4 sm:$0xff]   ;;  %v10822_v35 = vld [vmem:[%s11647_s4 + $0xc28] ss:$16 sps:$4 sm:$0xff]  }
 0x31b   : > { %7546 = vmatprep.subr.bf16.mxu1 %v10791_v36  ;;  %v10825_v36 = vld [vmem:[%s11647_s4 + $0xe28] ss:$16 sps:$4 sm:$0xff]  }
 0x31c   : > { %v7211_v1 = vpop.f32.mrf.mxu0  ;;  %7456 = vmatmul.mubr.bf16.vlgmr.msra.gmra.mxu0 %v11935_v39 }
 0x31d   : > { %v7252_v9 = vpop.f32.mrf.mxu1  ;;  %7497 = vmatmul.mubr.bf16.vlgmr.msra.gmra.mxu1 %v11939_v40  ;;  %v7212_v54 = vadd.f32 %v7211_v1, %v7171_v58  ;;  %7506 = vmatpush1.bf16.msra.mxu0 %v10786_v43  ;;  %v328_v40 = vld [vmem:[#allocation2] sm:$0xff]  ;;  %v10828_v43 = vld [vmem:[%s11647_s4 + $0xc08] ss:$16 sps:$4 sm:$0xff]  }
 0x31e   : > { %7547 = vmatpush1.bf16.msra.mxu1 %v10789_v44  ;;  %v7213_v52 = vpop.f32.mrf.mxu0  ;;  %7507 = vmatprep.subr.bf16.mxu0 %v10794_v55  ;;  %v10831_v44 = vld [vmem:[%s11647_s4 + $0xe08] ss:$16 sps:$4 sm:$0xff]   ;;  %v10836_v55 = vld [vmem:[%s11647_s4 + $0xdec] ss:$16 sps:$4 sm:$0xff]  }
 0x31f   : > { %v7254_v7 = vpop.f32.mrf.mxu1  ;;  %7548 = vmatprep.subr.bf16.mxu1 %v10797_v57  ;;  %v7253_v18 = vadd.f32 %v7252_v9, %v7212_v54  ;;  %v7214_v39 = vadd.f32 %v7213_v52, %v7173_v13  ;;  %7537 = vmatprep.mubr.bf16.mxu0 %v11951_v23  ;;  %v10806_v23 = vld [vmem:[%s11647_s4 + $0xc8c] ss:$16 sps:$4 sm:$0xff]   ;;  %v10834_v58 = vld [vmem:[%s11647_s4 + $0xde8] ss:$16 sps:$4 sm:$0xff]  }
 0x320   : > { %7578 = vmatprep.mubr.bf16.mxu1 %v11955_v24  ;;  %v7215_v48 = vpop.f32.mrf.mxu0  ;;  %v10809_v24 = vld [vmem:[%s11647_s4 + $0xe8c] ss:$16 sps:$4 sm:$0xff]   ;;  %v10837_v1 = vld [vmem:[%s11647_s4 + $0xfe8] ss:$16 sps:$4 sm:$0xff]  }
 0x321   : > { %v7256_v8 = vpop.f32.mrf.mxu1  ;;  %v7915_v56 = vadd.f32 %v7253_v18, %v327_v11  ;;  %v7255_v15 = vadd.f32 %v7254_v7, %v7214_v39  ;;  %7508 = vmatpush1.bf16.msra.mxu0 %v10792_v22  ;;  %v10839_v57 = vld [vmem:[%s11647_s4 + $0xfec] ss:$16 sps:$4 sm:$0xff]   ;;  %v10840_v54 = vld [vmem:[%s11647_s4 + $0xdc8] ss:$16 sps:$4 sm:$0xff]  }
 0x322   : > { %7549 = vmatpush1.bf16.msra.mxu1 %v10795_v31  ;;  %v7216_v25 = vpop.f32.mrf.mxu0  ;;  %7509 = vmatprep.subr.bf16.mxu0 %v10800_v2  ;;  %v10842_v9 = vld [vmem:[%s11647_s4 + $0xdcc] ss:$16 sps:$4 sm:$0xff]   ;;  %v10843_v22 = vld [vmem:[%s11647_s4 + $0xfc8] ss:$16 sps:$4 sm:$0xff]  }
 0x323   : > { %v7257_v26 = vpop.f32.mrf.mxu1  ;;  %7550 = vmatprep.subr.bf16.mxu1 %v10803_v17  ;;  %7919 = vst [vmem:[#allocation2 + $0x10] sm:$0xff] %v7915_v56  ;;  %v7916_v12 = vadd.f32 %v7255_v15, %v328_v40  ;;  %v10845_v13 = vld [vmem:[%s11647_s4 + $0xfcc] ss:$16 sps:$4 sm:$0xff]   ;;  %v10846_v52 = vld [vmem:[%s11647_s4 + $0xda8] ss:$16 sps:$4 sm:$0xff]  }
 0x324   : > { %v10848_v31 = vld [vmem:[%s11647_s4 + $0xdac] ss:$16 sps:$4 sm:$0xff]   ;;  %v10849_v7 = vld [vmem:[%s11647_s4 + $0xfa8] ss:$16 sps:$4 sm:$0xff]  }
 0x325   : > { %7920 = vst [vmem:[#allocation2] sm:$0xff] %v7916_v12  ;;  %7510 = vmatpush1.bf16.msra.mxu0 %v10798_v16  ;;  %v10851_v11 = vld [vmem:[%s11647_s4 + $0xfac] ss:$16 sps:$4 sm:$0xff]   ;;  %v10852_v18 = vld [vmem:[%s11647_s4 + $0xd88] ss:$16 sps:$4 sm:$0xff]  }
 0x326   : > { %7551 = vmatpush1.bf16.msra.mxu1 %v10801_v19  ;;  %7511 = vmatprep.subr.bf16.mxu0 %v10806_v23  ;;  %v10854_v2 = vld [vmem:[%s11647_s4 + $0xd8c] ss:$16 sps:$4 sm:$0xff]   ;;  %v10855_v39 = vld [vmem:[%s11647_s4 + $0xf88] ss:$16 sps:$4 sm:$0xff]  }
 0x327   : > { %7552 = vmatprep.subr.bf16.mxu1 %v10809_v24  ;;  %v10857_v17 = vld [vmem:[%s11647_s4 + $0xf8c] ss:$16 sps:$4 sm:$0xff]   ;;  %v10858_v8 = vld [vmem:[%s11647_s4 + $0xd68] ss:$16 sps:$4 sm:$0xff]  }
 0x328   : > { %v10860_v40 = vld [vmem:[%s11647_s4 + $0xd6c] ss:$16 sps:$4 sm:$0xff]   ;;  %v10861_v56 = vld [vmem:[%s11647_s4 + $0xf68] ss:$16 sps:$4 sm:$0xff]  }
 0x329   : > { %7512 = vmatpush1.bf16.msra.mxu0 %v10804_v37  ;;  %v10863_v48 = vld [vmem:[%s11647_s4 + $0xf6c] ss:$16 sps:$4 sm:$0xff]   ;;  %v10864_v19 = vld [vmem:[%s11647_s4 + $0xd48] ss:$16 sps:$4 sm:$0xff]  }
 0x32a   : > { %7553 = vmatpush1.bf16.msra.mxu1 %v10807_v38  ;;  %7513 = vmatprep.subr.bf16.mxu0 %v10812_v6  ;;  %v10866_v15 = vld [vmem:[%s11647_s4 + $0xd4c] ss:$16 sps:$4 sm:$0xff]   ;;  %v10867_v25 = vld [vmem:[%s11647_s4 + $0xf48] ss:$16 sps:$4 sm:$0xff]  }
 0x32b   : > { %7554 = vmatprep.subr.bf16.mxu1 %v10815_v20  ;;  %v10869_v16 = vld [vmem:[%s11647_s4 + $0xf4c] ss:$16 sps:$4 sm:$0xff]   ;;  %v10870_v24 = vld [vmem:[%s11647_s4 + $0xd28] ss:$16 sps:$4 sm:$0xff]  }
 0x32c   : > { %v10872_v26 = vld [vmem:[%s11647_s4 + $0xd2c] ss:$16 sps:$4 sm:$0xff]   ;;  %v10873_v12 = vld [vmem:[%s11647_s4 + $0xf28] ss:$16 sps:$4 sm:$0xff]  }
 0x32d   : > { %7514 = vmatpush1.bf16.msra.mxu0 %v10810_v21  ;;  %v10875_v23 = vld [vmem:[%s11647_s4 + $0xf2c] ss:$16 sps:$4 sm:$0xff]   ;;  %v10876_v6 = vld [vmem:[%s11647_s4 + $0xd08] ss:$16 sps:$4 sm:$0xff]  }
 0x32e   : > { %7555 = vmatpush1.bf16.msra.mxu1 %v10813_v27  ;;  %7515 = vmatprep.subr.bf16.mxu0 %v10818_v28  ;;  %v10878_v37 = vld [vmem:[%s11647_s4 + $0xd0c] ss:$16 sps:$4 sm:$0xff]   ;;  %v10879_v20 = vld [vmem:[%s11647_s4 + $0xf08] ss:$16 sps:$4 sm:$0xff]  }
 0x32f   : > { %7556 = vmatprep.subr.bf16.mxu1 %v10821_v29  ;;  %v10881_v38 = vld [vmem:[%s11647_s4 + $0xf0c] ss:$16 sps:$4 sm:$0xff]   ;;  %v10882_v28 = vld [vmem:[%s11647_s4 + $0x10e8] ss:$16 sps:$4 sm:$0xff]  }
 0x330   : > { %v10884_v21 = vld [vmem:[%s11647_s4 + $0x10ec] ss:$16 sps:$4 sm:$0xff]   ;;  %v10885_v29 = vld [vmem:[%s11647_s4 + $0x12e8] ss:$16 sps:$4 sm:$0xff]  }
 0x331   : > { %7516 = vmatpush1.bf16.msra.mxu0 %v10816_v32  ;;  %v10887_v27 = vld [vmem:[%s11647_s4 + $0x12ec] ss:$16 sps:$4 sm:$0xff]  }
 0x332   : > { %7557 = vmatpush1.bf16.msra.mxu1 %v10819_v33  ;;  %7517 = vmatprep.subr.bf16.mxu0 %v10824_v14  ;;  %v10890_v32 = vld [vmem:[%s11647_s4 + $0x10cc] ss:$16 sps:$4 sm:$0xff]  }
 0x333   : > { %7558 = vmatprep.subr.bf16.mxu1 %v10827_v34  ;;  %v10893_v33 = vld [vmem:[%s11647_s4 + $0x12cc] ss:$16 sps:$4 sm:$0xff]  }
 0x335   : > { %7518 = vmatpush1.bf16.msra.mxu0 %v10822_v35 }
 0x336   : > { %7559 = vmatpush1.bf16.msra.mxu1 %v10825_v36  ;;  %7519 = vmatprep.subr.bf16.mxu0 %v10830_v63  ;;  %v10888_v36 = vld [vmem:[%s11647_s4 + $0x10c8] ss:$16 sps:$4 sm:$0xff]  }
 0x337   : > { %7560 = vmatprep.subr.bf16.mxu1 %v10833_v0  ;;  %v10891_v63 = vld [vmem:[%s11647_s4 + $0x12c8] ss:$16 sps:$4 sm:$0xff]  }
 0x339   : > { %7520 = vmatpush1.bf16.msra.mxu0 %v10828_v43 }
 0x33a   : > { %7561 = vmatpush1.bf16.msra.mxu1 %v10831_v44  ;;  %7521 = vmatprep.subr.bf16.mxu0 %v10836_v55  ;;  %v10896_v44 = vld [vmem:[%s11647_s4 + $0x10ac] ss:$16 sps:$4 sm:$0xff]  }
 0x33b   : > { %7562 = vmatprep.subr.bf16.mxu1 %v10839_v57  ;;  %v10899_v55 = vld [vmem:[%s11647_s4 + $0x12ac] ss:$16 sps:$4 sm:$0xff]  }
 0x33d   : > { %7522 = vmatpush2.bf16.msra.mxu0 %v10834_v58  ;;  %v10894_v58 = vld [vmem:[%s11647_s4 + $0x10a8] ss:$16 sps:$4 sm:$0xff]  }
 0x33e   : > { %7563 = vmatpush2.bf16.msra.mxu1 %v10837_v1  ;;  %7523 = vmatprep.subr.bf16.mxu0 %v10842_v9  ;;  %v10897_v1 = vld [vmem:[%s11647_s4 + $0x12a8] ss:$16 sps:$4 sm:$0xff]  }
 0x33f   : > { %7564 = vmatprep.subr.bf16.mxu1 %v10845_v13 }
 0x341   : > { %7524 = vmatpush2.bf16.msra.mxu0 %v10840_v54  ;;  %v10902_v54 = vld [vmem:[%s11647_s4 + $0x108c] ss:$16 sps:$4 sm:$0xff]  }
 0x342   : > { %7565 = vmatpush2.bf16.msra.mxu1 %v10843_v22  ;;  %7525 = vmatprep.subr.bf16.mxu0 %v10848_v31  ;;  %v10903_v22 = vld [vmem:[%s11647_s4 + $0x1288] ss:$16 sps:$4 sm:$0xff]   ;;  %v10908_v31 = vld [vmem:[%s11647_s4 + $0x106c] ss:$16 sps:$4 sm:$0xff]  }
 0x343   : > { %7566 = vmatprep.subr.bf16.mxu1 %v10851_v11  ;;  %v10911_v11 = vld [vmem:[%s11647_s4 + $0x126c] ss:$16 sps:$4 sm:$0xff]  }
 0x345   : > { %7526 = vmatpush2.bf16.msra.mxu0 %v10846_v52  ;;  %v10906_v52 = vld [vmem:[%s11647_s4 + $0x1068] ss:$16 sps:$4 sm:$0xff]  }
 0x346   : > { %7567 = vmatpush2.bf16.msra.mxu1 %v10849_v7  ;;  %7527 = vmatprep.subr.bf16.mxu0 %v10854_v2  ;;  %v10909_v7 = vld [vmem:[%s11647_s4 + $0x1268] ss:$16 sps:$4 sm:$0xff]   ;;  %v10914_v2 = vld [vmem:[%s11647_s4 + $0x104c] ss:$16 sps:$4 sm:$0xff]  }
 0x347   : > { %7568 = vmatprep.subr.bf16.mxu1 %v10857_v17  ;;  %v10917_v17 = vld [vmem:[%s11647_s4 + $0x124c] ss:$16 sps:$4 sm:$0xff]  }
 0x349   : > { %7528 = vmatpush2.bf16.msra.mxu0 %v10852_v18  ;;  %v10912_v18 = vld [vmem:[%s11647_s4 + $0x1048] ss:$16 sps:$4 sm:$0xff]  }
 0x34a   : > { %7569 = vmatpush2.bf16.msra.mxu1 %v10855_v39  ;;  %7529 = vmatprep.subr.bf16.mxu0 %v10860_v40  ;;  %v10915_v39 = vld [vmem:[%s11647_s4 + $0x1248] ss:$16 sps:$4 sm:$0xff]   ;;  %v10920_v40 = vld [vmem:[%s11647_s4 + $0x102c] ss:$16 sps:$4 sm:$0xff]  }
 0x34b   : > { %7570 = vmatprep.subr.bf16.mxu1 %v10863_v48  ;;  %v10923_v48 = vld [vmem:[%s11647_s4 + $0x122c] ss:$16 sps:$4 sm:$0xff]  }
 0x34d   : > { %7530 = vmatpush2.bf16.msra.mxu0 %v10858_v8  ;;  %v10918_v8 = vld [vmem:[%s11647_s4 + $0x1028] ss:$16 sps:$4 sm:$0xff]  }
 0x34e   : > { %7571 = vmatpush2.bf16.msra.mxu1 %v10861_v56  ;;  %7531 = vmatprep.subr.bf16.mxu0 %v10866_v15  ;;  %v10921_v56 = vld [vmem:[%s11647_s4 + $0x1228] ss:$16 sps:$4 sm:$0xff]   ;;  %v10926_v15 = vld [vmem:[%s11647_s4 + $0x100c] ss:$16 sps:$4 sm:$0xff]  }
 0x34f   : > { %7572 = vmatprep.subr.bf16.mxu1 %v10869_v16  ;;  %v10929_v16 = vld [vmem:[%s11647_s4 + $0x120c] ss:$16 sps:$4 sm:$0xff]  }
 0x351   : > { %7532 = vmatpush2.bf16.msra.mxu0 %v10864_v19  ;;  %v10924_v19 = vld [vmem:[%s11647_s4 + $0x1008] ss:$16 sps:$4 sm:$0xff]  }
 0x352   : > { %7573 = vmatpush2.bf16.msra.mxu1 %v10867_v25  ;;  %7533 = vmatprep.subr.bf16.mxu0 %v10872_v26  ;;  %v10927_v25 = vld [vmem:[%s11647_s4 + $0x1208] ss:$16 sps:$4 sm:$0xff]   ;;  %v10932_v26 = vld [vmem:[%s11647_s4 + $0x11ec] ss:$16 sps:$4 sm:$0xff]  }
 0x353   : > { %7574 = vmatprep.subr.bf16.mxu1 %v10875_v23  ;;  %v10935_v23 = vld [vmem:[%s11647_s4 + $0x13ec] ss:$16 sps:$4 sm:$0xff]  }
 0x355   : > { %7534 = vmatpush2.bf16.msra.mxu0 %v10870_v24  ;;  %v10930_v24 = vld [vmem:[%s11647_s4 + $0x11e8] ss:$16 sps:$4 sm:$0xff]  }
 0x356   : > { %7575 = vmatpush2.bf16.msra.mxu1 %v10873_v12  ;;  %7535 = vmatprep.subr.bf16.mxu0 %v10878_v37  ;;  %v10933_v12 = vld [vmem:[%s11647_s4 + $0x13e8] ss:$16 sps:$4 sm:$0xff]   ;;  %v10938_v37 = vld [vmem:[%s11647_s4 + $0x11cc] ss:$16 sps:$4 sm:$0xff]  }
 0x357   : > { %7576 = vmatprep.subr.bf16.mxu1 %v10881_v38  ;;  %v10941_v38 = vld [vmem:[%s11647_s4 + $0x13cc] ss:$16 sps:$4 sm:$0xff]  }
 0x359   : > { %7536 = vmatpush2.bf16.msra.mxu0 %v10876_v6  ;;  %v10936_v6 = vld [vmem:[%s11647_s4 + $0x11c8] ss:$16 sps:$4 sm:$0xff]  }
 0x35a   : > { %7577 = vmatpush2.bf16.msra.mxu1 %v10879_v20  ;;  %7587 = vmatprep.subr.bf16.mxu0 %v10884_v21  ;;  %v10939_v20 = vld [vmem:[%s11647_s4 + $0x13c8] ss:$16 sps:$4 sm:$0xff]   ;;  %v10944_v21 = vld [vmem:[%s11647_s4 + $0x11ac] ss:$16 sps:$4 sm:$0xff]  }
 0x35b   : > { %7628 = vmatprep.subr.bf16.mxu1 %v10887_v27  ;;  %v10947_v27 = vld [vmem:[%s11647_s4 + $0x13ac] ss:$16 sps:$4 sm:$0xff]  }
 0x35c   : > { %v7293_v14 = vpop.f32.mrf.mxu0  ;;  %7538 = vmatmul.mubr.bf16.vlgmr.msra.gmra.mxu0 %v12026_v60 }
 0x35d   : > { %v7334_v34 = vpop.f32.mrf.mxu1  ;;  %7579 = vmatmul.mubr.bf16.vlgmr.msra.gmra.mxu1 %v12030_v61  ;;  %7588 = vmatpush1.bf16.msra.mxu0 %v10882_v28  ;;  %v10942_v28 = vld [vmem:[%s11647_s4 + $0x11a8] ss:$16 sps:$4 sm:$0xff]  }
 0x35e   : > { %v12715_v35 = vadd.f32 %v7334_v34, %v7293_v14  ;;  %7629 = vmatpush1.bf16.msra.mxu1 %v10885_v29  ;;  %v7295_v0 = vpop.f32.mrf.mxu0  ;;  %7589 = vmatprep.subr.bf16.mxu0 %v10890_v32  ;;  %v10945_v29 = vld [vmem:[%s11647_s4 + $0x13a8] ss:$16 sps:$4 sm:$0xff]   ;;  %v10950_v32 = vld [vmem:[%s11647_s4 + $0x118c] ss:$16 sps:$4 sm:$0xff]  }
 0x35f   : > { %v7336_v43 = vpop.f32.mrf.mxu1  ;;  %7630 = vmatprep.subr.bf16.mxu1 %v10893_v33  ;;  %7619 = vmatprep.mubr.bf16.mxu0 %v12041_v41  ;;  %v10905_v41 = vld [vmem:[%s11647_s4 + $0x128c] ss:$16 sps:$4 sm:$0xff]   ;;  %v10948_v14 = vld [vmem:[%s11647_s4 + $0x1188] ss:$16 sps:$4 sm:$0xff]  }
 0x360   : > { %v12721_v57 = vadd.f32 %v7336_v43, %v7295_v0  ;;  %7660 = vmatprep.mubr.bf16.mxu1 %v12045_v42  ;;  %v7297_v60 = vpop.f32.mrf.mxu0  ;;  %v10900_v42 = vld [vmem:[%s11647_s4 + $0x1088] ss:$16 sps:$4 sm:$0xff]   ;;  %v10953_v33 = vld [vmem:[%s11647_s4 + $0x138c] ss:$16 sps:$4 sm:$0xff]  }
 0x361   : > { %v7338_v61 = vpop.f32.mrf.mxu1  ;;  %7590 = vmatpush1.bf16.msra.mxu0 %v10888_v36  ;;  %v10951_v34 = vld [vmem:[%s11647_s4 + $0x1388] ss:$16 sps:$4 sm:$0xff]   ;;  %v10956_v36 = vld [vmem:[%s11647_s4 + $0x116c] ss:$16 sps:$4 sm:$0xff]  }
 0x362   : > { %7631 = vmatpush1.bf16.msra.mxu1 %v10891_v63  ;;  %v7298_v9 = vpop.f32.mrf.mxu0  ;;  %7591 = vmatprep.subr.bf16.mxu0 %v10896_v44  ;;  %v10959_v63 = vld [vmem:[%s11647_s4 + $0x136c] ss:$16 sps:$4 sm:$0xff]   ;;  %v10954_v0 = vld [vmem:[%s11647_s4 + $0x1168] ss:$16 sps:$4 sm:$0xff]  }
 0x363   : > { %v7339_v13 = vpop.f32.mrf.mxu1  ;;  %7632 = vmatprep.subr.bf16.mxu1 %v10899_v55  ;;  %v10957_v43 = vld [vmem:[%s11647_s4 + $0x1368] ss:$16 sps:$4 sm:$0xff]   ;;  %v10962_v44 = vld [vmem:[%s11647_s4 + $0x114c] ss:$16 sps:$4 sm:$0xff]  }
 0x364   : > { %v10965_v55 = vld [vmem:[%s11647_s4 + $0x134c] ss:$16 sps:$4 sm:$0xff]   ;;  %v10960_v60 = vld [vmem:[%s11647_s4 + $0x1148] ss:$16 sps:$4 sm:$0xff]  }
 0x365   : > { %7592 = vmatpush1.bf16.msra.mxu0 %v10894_v58  ;;  %v10963_v61 = vld [vmem:[%s11647_s4 + $0x1348] ss:$16 sps:$4 sm:$0xff]   ;;  %v10968_v58 = vld [vmem:[%s11647_s4 + $0x112c] ss:$16 sps:$4 sm:$0xff]  }
 0x366   : > { %7633 = vmatpush1.bf16.msra.mxu1 %v10897_v1  ;;  %7593 = vmatprep.subr.bf16.mxu0 %v10902_v54  ;;  %v10971_v1 = vld [vmem:[%s11647_s4 + $0x132c] ss:$16 sps:$4 sm:$0xff]   ;;  %v10966_v9 = vld [vmem:[%s11647_s4 + $0x1128] ss:$16 sps:$4 sm:$0xff]  }
 0x367   : > { %7634 = vmatprep.subr.bf16.mxu1 %v10905_v41  ;;  %v10969_v13 = vld [vmem:[%s11647_s4 + $0x1328] ss:$16 sps:$4 sm:$0xff]   ;;  %v10974_v54 = vld [vmem:[%s11647_s4 + $0x110c] ss:$16 sps:$4 sm:$0xff]  }
 0x368   : > { %v10977_v41 = vld [vmem:[%s11647_s4 + $0x130c] ss:$16 sps:$4 sm:$0xff]  }
 0x369   : > { %7594 = vmatpush1.bf16.msra.mxu0 %v10900_v42  ;;  %v10972_v42 = vld [vmem:[%s11647_s4 + $0x1108] ss:$16 sps:$4 sm:$0xff]  }
 0x36a   : > { %7635 = vmatpush1.bf16.msra.mxu1 %v10903_v22  ;;  %7595 = vmatprep.subr.bf16.mxu0 %v10908_v31  ;;  %v10975_v22 = vld [vmem:[%s11647_s4 + $0x1308] ss:$16 sps:$4 sm:$0xff]   ;;  %v10980_v31 = vld [vmem:[%s11647_s4 + $0x14ec] ss:$16 sps:$4 sm:$0xff]  }
 0x36b   : > { %7636 = vmatprep.subr.bf16.mxu1 %v10911_v11  ;;  %v10983_v11 = vld [vmem:[%s11647_s4 + $0x16ec] ss:$16 sps:$4 sm:$0xff]  }
 0x36d   : > { %7596 = vmatpush1.bf16.msra.mxu0 %v10906_v52  ;;  %v10978_v52 = vld [vmem:[%s11647_s4 + $0x14e8] ss:$16 sps:$4 sm:$0xff]  }
 0x36e   : > { %7637 = vmatpush1.bf16.msra.mxu1 %v10909_v7  ;;  %7597 = vmatprep.subr.bf16.mxu0 %v10914_v2  ;;  %v10981_v7 = vld [vmem:[%s11647_s4 + $0x16e8] ss:$16 sps:$4 sm:$0xff]   ;;  %v10986_v2 = vld [vmem:[%s11647_s4 + $0x14cc] ss:$16 sps:$4 sm:$0xff]  }
 0x36f   : > { %7638 = vmatprep.subr.bf16.mxu1 %v10917_v17  ;;  %v10989_v17 = vld [vmem:[%s11647_s4 + $0x16cc] ss:$16 sps:$4 sm:$0xff]  }
 0x371   : > { %7598 = vmatpush1.bf16.msra.mxu0 %v10912_v18 }
 0x372   : > { %7639 = vmatpush1.bf16.msra.mxu1 %v10915_v39  ;;  %7599 = vmatprep.subr.bf16.mxu0 %v10920_v40 }
 0x373   : > { %7640 = vmatprep.subr.bf16.mxu1 %v10923_v48  ;;  %v10984_v48 = vld [vmem:[%s11647_s4 + $0x14c8] ss:$16 sps:$4 sm:$0xff]  }
 0x375   : > { %7600 = vmatpush1.bf16.msra.mxu0 %v10918_v8  ;;  %v10987_v8 = vld [vmem:[%s11647_s4 + $0x16c8] ss:$16 sps:$4 sm:$0xff]  }
 0x376   : > { %7641 = vmatpush1.bf16.msra.mxu1 %v10921_v56  ;;  %7601 = vmatprep.subr.bf16.mxu0 %v10926_v15 }
 0x377   : > { %7642 = vmatprep.subr.bf16.mxu1 %v10929_v16  ;;  %v10992_v16 = vld [vmem:[%s11647_s4 + $0x14ac] ss:$16 sps:$4 sm:$0xff]  }
 0x379   : > { %7602 = vmatpush1.bf16.msra.mxu0 %v10924_v19  ;;  %v10995_v19 = vld [vmem:[%s11647_s4 + $0x16ac] ss:$16 sps:$4 sm:$0xff]  }
 0x37a   : > { %7643 = vmatpush1.bf16.msra.mxu1 %v10927_v25  ;;  %7603 = vmatprep.subr.bf16.mxu0 %v10932_v26 }
 0x37b   : > { %7644 = vmatprep.subr.bf16.mxu1 %v10935_v23  ;;  %v10990_v23 = vld [vmem:[%s11647_s4 + $0x14a8] ss:$16 sps:$4 sm:$0xff]  }
 0x37d   : > { %7604 = vmatpush2.bf16.msra.mxu0 %v10930_v24  ;;  %v10993_v24 = vld [vmem:[%s11647_s4 + $0x16a8] ss:$16 sps:$4 sm:$0xff]  }
 0x37e   : > { %7645 = vmatpush2.bf16.msra.mxu1 %v10933_v12  ;;  %7605 = vmatprep.subr.bf16.mxu0 %v10938_v37 }
 0x37f   : > { %7646 = vmatprep.subr.bf16.mxu1 %v10941_v38  ;;  %v10999_v38 = vld [vmem:[%s11647_s4 + $0x1688] ss:$16 sps:$4 sm:$0xff]  }
 0x381   : > { %7606 = vmatpush2.bf16.msra.mxu0 %v10936_v6  ;;  %v11004_v6 = vld [vmem:[%s11647_s4 + $0x146c] ss:$16 sps:$4 sm:$0xff]  }
 0x382   : > { %7647 = vmatpush2.bf16.msra.mxu1 %v10939_v20  ;;  %7607 = vmatprep.subr.bf16.mxu0 %v10944_v21  ;;  %v11007_v20 = vld [vmem:[%s11647_s4 + $0x166c] ss:$16 sps:$4 sm:$0xff]   ;;  %v11002_v21 = vld [vmem:[%s11647_s4 + $0x1468] ss:$16 sps:$4 sm:$0xff]  }
 0x383   : > { %7648 = vmatprep.subr.bf16.mxu1 %v10947_v27  ;;  %v11005_v27 = vld [vmem:[%s11647_s4 + $0x1668] ss:$16 sps:$4 sm:$0xff]  }
 0x385   : > { %7608 = vmatpush2.bf16.msra.mxu0 %v10942_v28  ;;  %v11010_v28 = vld [vmem:[%s11647_s4 + $0x144c] ss:$16 sps:$4 sm:$0xff]  }
 0x386   : > { %7649 = vmatpush2.bf16.msra.mxu1 %v10945_v29  ;;  %7609 = vmatprep.subr.bf16.mxu0 %v10950_v32  ;;  %v11013_v29 = vld [vmem:[%s11647_s4 + $0x164c] ss:$16 sps:$4 sm:$0xff]   ;;  %v11008_v32 = vld [vmem:[%s11647_s4 + $0x1448] ss:$16 sps:$4 sm:$0xff]  }
 0x387   : > { %7650 = vmatprep.subr.bf16.mxu1 %v10953_v33  ;;  %v11011_v33 = vld [vmem:[%s11647_s4 + $0x1648] ss:$16 sps:$4 sm:$0xff]  }
 0x389   : > { %7610 = vmatpush2.bf16.msra.mxu0 %v10948_v14  ;;  %v11016_v14 = vld [vmem:[%s11647_s4 + $0x142c] ss:$16 sps:$4 sm:$0xff]  }
 0x38a   : > { %7651 = vmatpush2.bf16.msra.mxu1 %v10951_v34  ;;  %7611 = vmatprep.subr.bf16.mxu0 %v10956_v36  ;;  %v11019_v34 = vld [vmem:[%s11647_s4 + $0x162c] ss:$16 sps:$4 sm:$0xff]   ;;  %v11014_v36 = vld [vmem:[%s11647_s4 + $0x1428] ss:$16 sps:$4 sm:$0xff]  }
 0x38b   : > { %7652 = vmatprep.subr.bf16.mxu1 %v10959_v63  ;;  %v11017_v63 = vld [vmem:[%s11647_s4 + $0x1628] ss:$16 sps:$4 sm:$0xff]  }
 0x38d   : > { %7612 = vmatpush2.bf16.msra.mxu0 %v10954_v0  ;;  %v11022_v0 = vld [vmem:[%s11647_s4 + $0x140c] ss:$16 sps:$4 sm:$0xff]  }
 0x38e   : > { %7653 = vmatpush2.bf16.msra.mxu1 %v10957_v43  ;;  %7613 = vmatprep.subr.bf16.mxu0 %v10962_v44  ;;  %v11025_v43 = vld [vmem:[%s11647_s4 + $0x160c] ss:$16 sps:$4 sm:$0xff]   ;;  %v11020_v44 = vld [vmem:[%s11647_s4 + $0x1408] ss:$16 sps:$4 sm:$0xff]  }
 0x38f   : > { %7654 = vmatprep.subr.bf16.mxu1 %v10965_v55  ;;  %v11023_v55 = vld [vmem:[%s11647_s4 + $0x1608] ss:$16 sps:$4 sm:$0xff]  }
 0x391   : > { %7614 = vmatpush2.bf16.msra.mxu0 %v10960_v60  ;;  %v11028_v60 = vld [vmem:[%s11647_s4 + $0x15ec] ss:$16 sps:$4 sm:$0xff]  }
 0x392   : > { %7655 = vmatpush2.bf16.msra.mxu1 %v10963_v61  ;;  %7615 = vmatprep.subr.bf16.mxu0 %v10968_v58  ;;  %v11031_v61 = vld [vmem:[%s11647_s4 + $0x17ec] ss:$16 sps:$4 sm:$0xff]   ;;  %v11026_v58 = vld [vmem:[%s11647_s4 + $0x15e8] ss:$16 sps:$4 sm:$0xff]  }
 0x393   : > { %7656 = vmatprep.subr.bf16.mxu1 %v10971_v1  ;;  %v11029_v1 = vld [vmem:[%s11647_s4 + $0x17e8] ss:$16 sps:$4 sm:$0xff]  }
 0x395   : > { %7616 = vmatpush2.bf16.msra.mxu0 %v10966_v9  ;;  %v11034_v9 = vld [vmem:[%s11647_s4 + $0x15cc] ss:$16 sps:$4 sm:$0xff]  }
 0x396   : > { %7657 = vmatpush2.bf16.msra.mxu1 %v10969_v13  ;;  %7617 = vmatprep.subr.bf16.mxu0 %v10974_v54  ;;  %v11037_v13 = vld [vmem:[%s11647_s4 + $0x17cc] ss:$16 sps:$4 sm:$0xff]   ;;  %v11032_v54 = vld [vmem:[%s11647_s4 + $0x15c8] ss:$16 sps:$4 sm:$0xff]  }
 0x397   : > { %7658 = vmatprep.subr.bf16.mxu1 %v10977_v41  ;;  %v11035_v41 = vld [vmem:[%s11647_s4 + $0x17c8] ss:$16 sps:$4 sm:$0xff]  }
 0x399   : > { %7618 = vmatpush2.bf16.msra.mxu0 %v10972_v42  ;;  %v11040_v42 = vld [vmem:[%s11647_s4 + $0x15ac] ss:$16 sps:$4 sm:$0xff]  }
 0x39a   : > { %7659 = vmatpush2.bf16.msra.mxu1 %v10975_v22  ;;  %7669 = vmatprep.subr.bf16.mxu0 %v10980_v31  ;;  %v11043_v22 = vld [vmem:[%s11647_s4 + $0x17ac] ss:$16 sps:$4 sm:$0xff]   ;;  %v11038_v31 = vld [vmem:[%s11647_s4 + $0x15a8] ss:$16 sps:$4 sm:$0xff]  }
 0x39b   : > { %7710 = vmatprep.subr.bf16.mxu1 %v10983_v11  ;;  %v11041_v11 = vld [vmem:[%s11647_s4 + $0x17a8] ss:$16 sps:$4 sm:$0xff]  }
 0x39c   : > { %v7375_v18 = vpop.f32.mrf.mxu0  ;;  %7620 = vmatmul.mubr.bf16.vlgmr.msra.gmra.mxu0 %v12119_v47 }
 0x39d   : > { %v7416_v39 = vpop.f32.mrf.mxu1  ;;  %7661 = vmatmul.mubr.bf16.vlgmr.msra.gmra.mxu1 %v12123_v49  ;;  %v7376_v40 = vadd.f32 %v7375_v18, %v12715_v35  ;;  %7670 = vmatpush1.bf16.msra.mxu0 %v10978_v52  ;;  %v11046_v52 = vld [vmem:[%s11647_s4 + $0x158c] ss:$16 sps:$4 sm:$0xff]  }
 0x39e   : > { %7711 = vmatpush1.bf16.msra.mxu1 %v10981_v7  ;;  %v7377_v56 = vpop.f32.mrf.mxu0  ;;  %7671 = vmatprep.subr.bf16.mxu0 %v10986_v2  ;;  %v11049_v7 = vld [vmem:[%s11647_s4 + $0x178c] ss:$16 sps:$4 sm:$0xff]   ;;  %v11044_v2 = vld [vmem:[%s11647_s4 + $0x1588] ss:$16 sps:$4 sm:$0xff]  }
 0x39f   : > { %v7418_v15 = vpop.f32.mrf.mxu1  ;;  %7712 = vmatprep.subr.bf16.mxu1 %v10989_v17  ;;  %v12792_v25 = vadd.f32 %v7416_v39, %v7376_v40  ;;  %v7378_v47 = vadd.f32 %v7377_v56, %v12721_v57  ;;  %7701 = vmatprep.mubr.bf16.mxu0 %v12137_v59  ;;  %v10998_v59 = vld [vmem:[%s11647_s4 + $0x148c] ss:$16 sps:$4 sm:$0xff]   ;;  %v10996_v57 = vld [vmem:[%s11647_s4 + $0x1488] ss:$16 sps:$4 sm:$0xff]  }
 0x3a0   : > { %7742 = vmatprep.mubr.bf16.mxu1 %v12141_v62  ;;  %v7379_v49 = vpop.f32.mrf.mxu0  ;;  %v11001_v62 = vld [vmem:[%s11647_s4 + $0x168c] ss:$16 sps:$4 sm:$0xff]   ;;  %v11047_v17 = vld [vmem:[%s11647_s4 + $0x1788] ss:$16 sps:$4 sm:$0xff]  }
 0x3a1   : > { %v7420_v35 = vpop.f32.mrf.mxu1  ;;  %v12797_v26 = vadd.f32 %v7418_v15, %v7378_v47  ;;  %7672 = vmatpush1.bf16.msra.mxu0 %v10984_v48  ;;  %v11052_v18 = vld [vmem:[%s11647_s4 + $0x156c] ss:$16 sps:$4 sm:$0xff]   ;;  %v11050_v40 = vld [vmem:[%s11647_s4 + $0x1568] ss:$16 sps:$4 sm:$0xff]  }
 0x3a2   : > { %7713 = vmatpush1.bf16.msra.mxu1 %v10987_v8  ;;  %v7380_v12 = vpop.f32.mrf.mxu0  ;;  %7673 = vmatprep.subr.bf16.mxu0 %v10992_v16  ;;  %v11055_v39 = vld [vmem:[%s11647_s4 + $0x176c] ss:$16 sps:$4 sm:$0xff]   ;;  %v11053_v48 = vld [vmem:[%s11647_s4 + $0x1768] ss:$16 sps:$4 sm:$0xff]  }
 0x3a3   : > { %v7421_v37 = vpop.f32.mrf.mxu1  ;;  %7714 = vmatprep.subr.bf16.mxu1 %v10995_v19  ;;  %v11058_v8 = vld [vmem:[%s11647_s4 + $0x154c] ss:$16 sps:$4 sm:$0xff]   ;;  %v11056_v15 = vld [vmem:[%s11647_s4 + $0x1548] ss:$16 sps:$4 sm:$0xff]  }
 0x3a4   : > { %v11061_v56 = vld [vmem:[%s11647_s4 + $0x174c] ss:$16 sps:$4 sm:$0xff]   ;;  %v11059_v16 = vld [vmem:[%s11647_s4 + $0x1748] ss:$16 sps:$4 sm:$0xff]  }
 0x3a5   : > { %7674 = vmatpush1.bf16.msra.mxu0 %v10990_v23  ;;  %v11064_v19 = vld [vmem:[%s11647_s4 + $0x152c] ss:$16 sps:$4 sm:$0xff]   ;;  %v11062_v49 = vld [vmem:[%s11647_s4 + $0x1528] ss:$16 sps:$4 sm:$0xff]  }
 0x3a6   : > { %7715 = vmatpush1.bf16.msra.mxu1 %v10993_v24  ;;  %7675 = vmatprep.subr.bf16.mxu0 %v10998_v59  ;;  %v11067_v47 = vld [vmem:[%s11647_s4 + $0x172c] ss:$16 sps:$4 sm:$0xff]   ;;  %v11065_v35 = vld [vmem:[%s11647_s4 + $0x1728] ss:$16 sps:$4 sm:$0xff]  }
 0x3a7   : > { %7716 = vmatprep.subr.bf16.mxu1 %v11001_v62  ;;  %v11070_v23 = vld [vmem:[%s11647_s4 + $0x150c] ss:$16 sps:$4 sm:$0xff]   ;;  %v11068_v12 = vld [vmem:[%s11647_s4 + $0x1508] ss:$16 sps:$4 sm:$0xff]  }
 0x3a8   : > { %v11073_v24 = vld [vmem:[%s11647_s4 + $0x170c] ss:$16 sps:$4 sm:$0xff]   ;;  %v11071_v37 = vld [vmem:[%s11647_s4 + $0x1708] ss:$16 sps:$4 sm:$0xff]  }
 0x3a9   : > { %7676 = vmatpush1.bf16.msra.mxu0 %v10996_v57  ;;  %v11076_v59 = vld [vmem:[%s11647_s4 + $0x18ec] ss:$16 sps:$4 sm:$0xff]   ;;  %v11074_v57 = vld [vmem:[%s11647_s4 + $0x18e8] ss:$16 sps:$4 sm:$0xff]  }
 0x3aa   : > { %7717 = vmatpush1.bf16.msra.mxu1 %v10999_v38  ;;  %7677 = vmatprep.subr.bf16.mxu0 %v11004_v6  ;;  %v11079_v62 = vld [vmem:[%s11647_s4 + $0x1aec] ss:$16 sps:$4 sm:$0xff]   ;;  %v11077_v38 = vld [vmem:[%s11647_s4 + $0x1ae8] ss:$16 sps:$4 sm:$0xff]  }
 0x3ab   : > { %7718 = vmatprep.subr.bf16.mxu1 %v11007_v20  ;;  %v11082_v6 = vld [vmem:[%s11647_s4 + $0x18cc] ss:$16 sps:$4 sm:$0xff]  }
 0x3ac   : > { %v11085_v20 = vld [vmem:[%s11647_s4 + $0x1acc] ss:$16 sps:$4 sm:$0xff]  }
 0x3ad   : > { %7678 = vmatpush1.bf16.msra.mxu0 %v11002_v21 }
 0x3ae   : > { %7719 = vmatpush1.bf16.msra.mxu1 %v11005_v27  ;;  %7679 = vmatprep.subr.bf16.mxu0 %v11010_v28 }
 0x3af   : > { %7720 = vmatprep.subr.bf16.mxu1 %v11013_v29  ;;  %v11080_v29 = vld [vmem:[%s11647_s4 + $0x18c8] ss:$16 sps:$4 sm:$0xff]  }
 0x3b1   : > { %7680 = vmatpush1.bf16.msra.mxu0 %v11008_v32  ;;  %v11083_v32 = vld [vmem:[%s11647_s4 + $0x1ac8] ss:$16 sps:$4 sm:$0xff]  }
 0x3b2   : > { %7721 = vmatpush1.bf16.msra.mxu1 %v11011_v33  ;;  %7681 = vmatprep.subr.bf16.mxu0 %v11016_v14 }
 0x3b3   : > { %7722 = vmatprep.subr.bf16.mxu1 %v11019_v34  ;;  %v11088_v34 = vld [vmem:[%s11647_s4 + $0x18ac] ss:$16 sps:$4 sm:$0xff]  }
 0x3b5   : > { %7682 = vmatpush1.bf16.msra.mxu0 %v11014_v36  ;;  %v11091_v36 = vld [vmem:[%s11647_s4 + $0x1aac] ss:$16 sps:$4 sm:$0xff]  }
 0x3b6   : > { %7723 = vmatpush1.bf16.msra.mxu1 %v11017_v63  ;;  %7683 = vmatprep.subr.bf16.mxu0 %v11022_v0 }
 0x3b7   : > { %7724 = vmatprep.subr.bf16.mxu1 %v11025_v43  ;;  %v11086_v43 = vld [vmem:[%s11647_s4 + $0x18a8] ss:$16 sps:$4 sm:$0xff]  }
 0x3b9   : > { %7684 = vmatpush1.bf16.msra.mxu0 %v11020_v44  ;;  %v11089_v44 = vld [vmem:[%s11647_s4 + $0x1aa8] ss:$16 sps:$4 sm:$0xff]  }
 0x3ba   : > { %7725 = vmatpush1.bf16.msra.mxu1 %v11023_v55  ;;  %7685 = vmatprep.subr.bf16.mxu0 %v11028_v60 }
 0x3bb   : > { %7726 = vmatprep.subr.bf16.mxu1 %v11031_v61  ;;  %v11095_v61 = vld [vmem:[%s11647_s4 + $0x1a88] ss:$16 sps:$4 sm:$0xff]  }
 0x3bd   : > { %7686 = vmatpush2.bf16.msra.mxu0 %v11026_v58  ;;  %v11100_v58 = vld [vmem:[%s11647_s4 + $0x186c] ss:$16 sps:$4 sm:$0xff]  }
 0x3be   : > { %7727 = vmatpush2.bf16.msra.mxu1 %v11029_v1  ;;  %7687 = vmatprep.subr.bf16.mxu0 %v11034_v9  ;;  %v11103_v1 = vld [vmem:[%s11647_s4 + $0x1a6c] ss:$16 sps:$4 sm:$0xff]   ;;  %v11098_v9 = vld [vmem:[%s11647_s4 + $0x1868] ss:$16 sps:$4 sm:$0xff]  }
 0x3bf   : > { %7728 = vmatprep.subr.bf16.mxu1 %v11037_v13  ;;  %v11101_v13 = vld [vmem:[%s11647_s4 + $0x1a68] ss:$16 sps:$4 sm:$0xff]  }
 0x3c1   : > { %7688 = vmatpush2.bf16.msra.mxu0 %v11032_v54  ;;  %v11106_v54 = vld [vmem:[%s11647_s4 + $0x184c] ss:$16 sps:$4 sm:$0xff]  }
 0x3c2   : > { %7729 = vmatpush2.bf16.msra.mxu1 %v11035_v41  ;;  %7689 = vmatprep.subr.bf16.mxu0 %v11040_v42  ;;  %v11109_v41 = vld [vmem:[%s11647_s4 + $0x1a4c] ss:$16 sps:$4 sm:$0xff]   ;;  %v11104_v42 = vld [vmem:[%s11647_s4 + $0x1848] ss:$16 sps:$4 sm:$0xff]  }
 0x3c3   : > { %7730 = vmatprep.subr.bf16.mxu1 %v11043_v22  ;;  %v11107_v22 = vld [vmem:[%s11647_s4 + $0x1a48] ss:$16 sps:$4 sm:$0xff]  }
 0x3c5   : > { %7690 = vmatpush2.bf16.msra.mxu0 %v11038_v31  ;;  %v11112_v31 = vld [vmem:[%s11647_s4 + $0x182c] ss:$16 sps:$4 sm:$0xff]  }
 0x3c6   : > { %7731 = vmatpush2.bf16.msra.mxu1 %v11041_v11  ;;  %7691 = vmatprep.subr.bf16.mxu0 %v11046_v52  ;;  %v11115_v11 = vld [vmem:[%s11647_s4 + $0x1a2c] ss:$16 sps:$4 sm:$0xff]   ;;  %v11110_v52 = vld [vmem:[%s11647_s4 + $0x1828] ss:$16 sps:$4 sm:$0xff]  }
 0x3c7   : > { %7732 = vmatprep.subr.bf16.mxu1 %v11049_v7  ;;  %v11113_v7 = vld [vmem:[%s11647_s4 + $0x1a28] ss:$16 sps:$4 sm:$0xff]  }
 0x3c9   : > { %7692 = vmatpush2.bf16.msra.mxu0 %v11044_v2  ;;  %v11118_v2 = vld [vmem:[%s11647_s4 + $0x180c] ss:$16 sps:$4 sm:$0xff]  }
 0x3ca   : > { %7733 = vmatpush2.bf16.msra.mxu1 %v11047_v17  ;;  %7693 = vmatprep.subr.bf16.mxu0 %v11052_v18  ;;  %v11121_v17 = vld [vmem:[%s11647_s4 + $0x1a0c] ss:$16 sps:$4 sm:$0xff]   ;;  %v11116_v18 = vld [vmem:[%s11647_s4 + $0x1808] ss:$16 sps:$4 sm:$0xff]  }
 0x3cb   : > { %7734 = vmatprep.subr.bf16.mxu1 %v11055_v39  ;;  %v11119_v39 = vld [vmem:[%s11647_s4 + $0x1a08] ss:$16 sps:$4 sm:$0xff]  }
 0x3cd   : > { %7694 = vmatpush2.bf16.msra.mxu0 %v11050_v40  ;;  %v11124_v40 = vld [vmem:[%s11647_s4 + $0x19ec] ss:$16 sps:$4 sm:$0xff]  }
 0x3ce   : > { %7735 = vmatpush2.bf16.msra.mxu1 %v11053_v48  ;;  %7695 = vmatprep.subr.bf16.mxu0 %v11058_v8  ;;  %v11127_v48 = vld [vmem:[%s11647_s4 + $0x1bec] ss:$16 sps:$4 sm:$0xff]   ;;  %v11122_v8 = vld [vmem:[%s11647_s4 + $0x19e8] ss:$16 sps:$4 sm:$0xff]  }
 0x3cf   : > { %7736 = vmatprep.subr.bf16.mxu1 %v11061_v56  ;;  %v11125_v56 = vld [vmem:[%s11647_s4 + $0x1be8] ss:$16 sps:$4 sm:$0xff]  }
 0x3d1   : > { %7696 = vmatpush2.bf16.msra.mxu0 %v11056_v15  ;;  %v11130_v15 = vld [vmem:[%s11647_s4 + $0x19cc] ss:$16 sps:$4 sm:$0xff]  }
 0x3d2   : > { %7737 = vmatpush2.bf16.msra.mxu1 %v11059_v16  ;;  %7697 = vmatprep.subr.bf16.mxu0 %v11064_v19  ;;  %v11133_v16 = vld [vmem:[%s11647_s4 + $0x1bcc] ss:$16 sps:$4 sm:$0xff]   ;;  %v11128_v19 = vld [vmem:[%s11647_s4 + $0x19c8] ss:$16 sps:$4 sm:$0xff]  }
 0x3d3   : > { %7738 = vmatprep.subr.bf16.mxu1 %v11067_v47  ;;  %v11131_v47 = vld [vmem:[%s11647_s4 + $0x1bc8] ss:$16 sps:$4 sm:$0xff]  }
 0x3d5   : > { %7698 = vmatpush2.bf16.msra.mxu0 %v11062_v49  ;;  %v11136_v49 = vld [vmem:[%s11647_s4 + $0x19ac] ss:$16 sps:$4 sm:$0xff]  }
 0x3d6   : > { %7739 = vmatpush2.bf16.msra.mxu1 %v11065_v35  ;;  %7699 = vmatprep.subr.bf16.mxu0 %v11070_v23  ;;  %v11139_v35 = vld [vmem:[%s11647_s4 + $0x1bac] ss:$16 sps:$4 sm:$0xff]   ;;  %v11134_v23 = vld [vmem:[%s11647_s4 + $0x19a8] ss:$16 sps:$4 sm:$0xff]  }
 0x3d7   : > { %7740 = vmatprep.subr.bf16.mxu1 %v11073_v24  ;;  %v11137_v24 = vld [vmem:[%s11647_s4 + $0x1ba8] ss:$16 sps:$4 sm:$0xff]  }
 0x3d9   : > { %7700 = vmatpush2.bf16.msra.mxu0 %v11068_v12  ;;  %v11142_v12 = vld [vmem:[%s11647_s4 + $0x198c] ss:$16 sps:$4 sm:$0xff]  }
 0x3da   : > { %7741 = vmatpush2.bf16.msra.mxu1 %v11071_v37  ;;  %7751 = vmatprep.subr.bf16.mxu0 %v11076_v59  ;;  %v11145_v37 = vld [vmem:[%s11647_s4 + $0x1b8c] ss:$16 sps:$4 sm:$0xff]   ;;  %v11140_v59 = vld [vmem:[%s11647_s4 + $0x1988] ss:$16 sps:$4 sm:$0xff]  }
 0x3db   : > { %7792 = vmatprep.subr.bf16.mxu1 %v11079_v62  ;;  %v11143_v62 = vld [vmem:[%s11647_s4 + $0x1b88] ss:$16 sps:$4 sm:$0xff]  }
 0x3dc   : > { %v7457_v21 = vpop.f32.mrf.mxu0  ;;  %7702 = vmatmul.mubr.bf16.vlgmr.msra.gmra.mxu0 %v12215_v45 }
 0x3dd   : > { %v7498_v27 = vpop.f32.mrf.mxu1  ;;  %7743 = vmatmul.mubr.bf16.vlgmr.msra.gmra.mxu1 %v12219_v46  ;;  %v7458_v28 = vadd.f32 %v7457_v21, %v12792_v25  ;;  %7752 = vmatpush1.bf16.msra.mxu0 %v11074_v57  ;;  %v11148_v57 = vld [vmem:[%s11647_s4 + $0x196c] ss:$16 sps:$4 sm:$0xff]  }
 0x3de   : > { %7793 = vmatpush1.bf16.msra.mxu1 %v11077_v38  ;;  %v7459_v33 = vpop.f32.mrf.mxu0  ;;  %7753 = vmatprep.subr.bf16.mxu0 %v11082_v6  ;;  %v11151_v38 = vld [vmem:[%s11647_s4 + $0x1b6c] ss:$16 sps:$4 sm:$0xff]   ;;  %v11146_v6 = vld [vmem:[%s11647_s4 + $0x1968] ss:$16 sps:$4 sm:$0xff]  }
 0x3df   : > { %v7500_v14 = vpop.f32.mrf.mxu1  ;;  %7794 = vmatprep.subr.bf16.mxu1 %v11085_v20  ;;  %v12866_v63 = vadd.f32 %v7498_v27, %v7458_v28  ;;  %v7460_v45 = vadd.f32 %v7459_v33, %v12797_v26  ;;  %7783 = vmatprep.mubr.bf16.mxu0 %v12233_v50  ;;  %v11094_v50 = vld [vmem:[%s11647_s4 + $0x188c] ss:$16 sps:$4 sm:$0xff]   ;;  %v11092_v26 = vld [vmem:[%s11647_s4 + $0x1888] ss:$16 sps:$4 sm:$0xff]  }
 0x3e0   : > { %7824 = vmatprep.mubr.bf16.mxu1 %v12237_v51  ;;  %v7461_v46 = vpop.f32.mrf.mxu0  ;;  %v11097_v51 = vld [vmem:[%s11647_s4 + $0x1a8c] ss:$16 sps:$4 sm:$0xff]   ;;  %v11149_v20 = vld [vmem:[%s11647_s4 + $0x1b68] ss:$16 sps:$4 sm:$0xff]  }
 0x3e1   : > { %v7502_v25 = vpop.f32.mrf.mxu1  ;;  %v12871_v0 = vadd.f32 %v7500_v14, %v7460_v45  ;;  %7754 = vmatpush1.bf16.msra.mxu0 %v11080_v29  ;;  %v11154_v21 = vld [vmem:[%s11647_s4 + $0x194c] ss:$16 sps:$4 sm:$0xff]   ;;  %v11152_v28 = vld [vmem:[%s11647_s4 + $0x1948] ss:$16 sps:$4 sm:$0xff]  }
 0x3e2   : > { %7795 = vmatpush1.bf16.msra.mxu1 %v11083_v32  ;;  %v7462_v55 = vpop.f32.mrf.mxu0  ;;  %7755 = vmatprep.subr.bf16.mxu0 %v11088_v34  ;;  %v11157_v27 = vld [vmem:[%s11647_s4 + $0x1b4c] ss:$16 sps:$4 sm:$0xff]   ;;  %v11155_v29 = vld [vmem:[%s11647_s4 + $0x1b48] ss:$16 sps:$4 sm:$0xff]  }
 0x3e3   : > { %v7503_v60 = vpop.f32.mrf.mxu1  ;;  %7796 = vmatprep.subr.bf16.mxu1 %v11091_v36  ;;  %v11160_v32 = vld [vmem:[%s11647_s4 + $0x192c] ss:$16 sps:$4 sm:$0xff]   ;;  %v11158_v14 = vld [vmem:[%s11647_s4 + $0x1928] ss:$16 sps:$4 sm:$0xff]  }
 0x3e4   : > { %v11163_v33 = vld [vmem:[%s11647_s4 + $0x1b2c] ss:$16 sps:$4 sm:$0xff]   ;;  %v11161_v34 = vld [vmem:[%s11647_s4 + $0x1b28] ss:$16 sps:$4 sm:$0xff]  }
 0x3e5   : > { %7756 = vmatpush1.bf16.msra.mxu0 %v11086_v43  ;;  %v11166_v36 = vld [vmem:[%s11647_s4 + $0x190c] ss:$16 sps:$4 sm:$0xff]   ;;  %v11164_v46 = vld [vmem:[%s11647_s4 + $0x1908] ss:$16 sps:$4 sm:$0xff]  }
 0x3e6   : > { %7797 = vmatpush1.bf16.msra.mxu1 %v11089_v44  ;;  %7757 = vmatprep.subr.bf16.mxu0 %v11094_v50  ;;  %v11169_v45 = vld [vmem:[%s11647_s4 + $0x1b0c] ss:$16 sps:$4 sm:$0xff]   ;;  %v11167_v25 = vld [vmem:[%s11647_s4 + $0x1b08] ss:$16 sps:$4 sm:$0xff]  }
 0x3e7   : > { %7798 = vmatprep.subr.bf16.mxu1 %v11097_v51  ;;  %v11172_v43 = vld [vmem:[%s11647_s4 + $0x1cec] ss:$16 sps:$4 sm:$0xff]   ;;  %v11170_v55 = vld [vmem:[%s11647_s4 + $0x1ce8] ss:$16 sps:$4 sm:$0xff]  }
 0x3e8   : > { %v11175_v44 = vld [vmem:[%s11647_s4 + $0x1eec] ss:$16 sps:$4 sm:$0xff]   ;;  %v11173_v60 = vld [vmem:[%s11647_s4 + $0x1ee8] ss:$16 sps:$4 sm:$0xff]  }
 0x3e9   : > { %7758 = vmatpush1.bf16.msra.mxu0 %v11092_v26  ;;  %v11178_v50 = vld [vmem:[%s11647_s4 + $0x1ccc] ss:$16 sps:$4 sm:$0xff]  }
 0x3ea   : > { %7799 = vmatpush1.bf16.msra.mxu1 %v11095_v61  ;;  %7759 = vmatprep.subr.bf16.mxu0 %v11100_v58  ;;  %v11181_v51 = vld [vmem:[%s11647_s4 + $0x1ecc] ss:$16 sps:$4 sm:$0xff]  }
 0x3eb   : > { %7800 = vmatprep.subr.bf16.mxu1 %v11103_v1  ;;  %v11176_v1 = vld [vmem:[%s11647_s4 + $0x1cc8] ss:$16 sps:$4 sm:$0xff]  }
 0x3ed   : > { %7760 = vmatpush1.bf16.msra.mxu0 %v11098_v9  ;;  %v11179_v9 = vld [vmem:[%s11647_s4 + $0x1ec8] ss:$16 sps:$4 sm:$0xff]  }
 0x3ee   : > { %7801 = vmatpush1.bf16.msra.mxu1 %v11101_v13  ;;  %7761 = vmatprep.subr.bf16.mxu0 %v11106_v54 }
 0x3ef   : > { %7802 = vmatprep.subr.bf16.mxu1 %v11109_v41  ;;  %v11184_v41 = vld [vmem:[%s11647_s4 + $0x1cac] ss:$16 sps:$4 sm:$0xff]  }
 0x3f1   : > { %7762 = vmatpush1.bf16.msra.mxu0 %v11104_v42  ;;  %v11187_v42 = vld [vmem:[%s11647_s4 + $0x1eac] ss:$16 sps:$4 sm:$0xff]  }
 0x3f2   : > { %7803 = vmatpush1.bf16.msra.mxu1 %v11107_v22  ;;  %7763 = vmatprep.subr.bf16.mxu0 %v11112_v31 }
 0x3f3   : > { %7804 = vmatprep.subr.bf16.mxu1 %v11115_v11  ;;  %v11182_v11 = vld [vmem:[%s11647_s4 + $0x1ca8] ss:$16 sps:$4 sm:$0xff]  }
 0x3f5   : > { %7764 = vmatpush1.bf16.msra.mxu0 %v11110_v52  ;;  %v11185_v52 = vld [vmem:[%s11647_s4 + $0x1ea8] ss:$16 sps:$4 sm:$0xff]  }
 0x3f6   : > { %7805 = vmatpush1.bf16.msra.mxu1 %v11113_v7  ;;  %7765 = vmatprep.subr.bf16.mxu0 %v11118_v2 }
 0x3f7   : > { %7806 = vmatprep.subr.bf16.mxu1 %v11121_v17  ;;  %v11191_v17 = vld [vmem:[%s11647_s4 + $0x1e88] ss:$16 sps:$4 sm:$0xff]  }
 0x3f9   : > { %7766 = vmatpush1.bf16.msra.mxu0 %v11116_v18  ;;  %v11196_v18 = vld [vmem:[%s11647_s4 + $0x1c6c] ss:$16 sps:$4 sm:$0xff]  }
 0x3fa   : > { %7807 = vmatpush1.bf16.msra.mxu1 %v11119_v39  ;;  %7767 = vmatprep.subr.bf16.mxu0 %v11124_v40  ;;  %v11199_v39 = vld [vmem:[%s11647_s4 + $0x1e6c] ss:$16 sps:$4 sm:$0xff]   ;;  %v11194_v40 = vld [vmem:[%s11647_s4 + $0x1c68] ss:$16 sps:$4 sm:$0xff]  }
 0x3fb   : > { %7808 = vmatprep.subr.bf16.mxu1 %v11127_v48  ;;  %v11197_v48 = vld [vmem:[%s11647_s4 + $0x1e68] ss:$16 sps:$4 sm:$0xff]  }
 0x3fd   : > { %7768 = vmatpush2.bf16.msra.mxu0 %v11122_v8  ;;  %v11202_v8 = vld [vmem:[%s11647_s4 + $0x1c4c] ss:$16 sps:$4 sm:$0xff]  }
 0x3fe   : > { %7809 = vmatpush2.bf16.msra.mxu1 %v11125_v56  ;;  %7769 = vmatprep.subr.bf16.mxu0 %v11130_v15  ;;  %v11205_v56 = vld [vmem:[%s11647_s4 + $0x1e4c] ss:$16 sps:$4 sm:$0xff]   ;;  %v11200_v15 = vld [vmem:[%s11647_s4 + $0x1c48] ss:$16 sps:$4 sm:$0xff]  }
 0x3ff   : > { %7810 = vmatprep.subr.bf16.mxu1 %v11133_v16  ;;  %v11203_v16 = vld [vmem:[%s11647_s4 + $0x1e48] ss:$16 sps:$4 sm:$0xff]  }
 0x401   : > { %7770 = vmatpush2.bf16.msra.mxu0 %v11128_v19  ;;  %v11208_v19 = vld [vmem:[%s11647_s4 + $0x1c2c] ss:$16 sps:$4 sm:$0xff]  }
 0x402   : > { %7811 = vmatpush2.bf16.msra.mxu1 %v11131_v47  ;;  %7771 = vmatprep.subr.bf16.mxu0 %v11136_v49  ;;  %v11211_v47 = vld [vmem:[%s11647_s4 + $0x1e2c] ss:$16 sps:$4 sm:$0xff]   ;;  %v11206_v49 = vld [vmem:[%s11647_s4 + $0x1c28] ss:$16 sps:$4 sm:$0xff]  }
 0x403   : > { %7812 = vmatprep.subr.bf16.mxu1 %v11139_v35  ;;  %v11209_v35 = vld [vmem:[%s11647_s4 + $0x1e28] ss:$16 sps:$4 sm:$0xff]  }
 0x405   : > { %7772 = vmatpush2.bf16.msra.mxu0 %v11134_v23  ;;  %v11214_v23 = vld [vmem:[%s11647_s4 + $0x1c0c] ss:$16 sps:$4 sm:$0xff]  }
 0x406   : > { %7813 = vmatpush2.bf16.msra.mxu1 %v11137_v24  ;;  %7773 = vmatprep.subr.bf16.mxu0 %v11142_v12  ;;  %v11217_v24 = vld [vmem:[%s11647_s4 + $0x1e0c] ss:$16 sps:$4 sm:$0xff]   ;;  %v11212_v12 = vld [vmem:[%s11647_s4 + $0x1c08] ss:$16 sps:$4 sm:$0xff]  }
 0x407   : > { %7814 = vmatprep.subr.bf16.mxu1 %v11145_v37  ;;  %v11215_v37 = vld [vmem:[%s11647_s4 + $0x1e08] ss:$16 sps:$4 sm:$0xff]  }
 0x409   : > { %7774 = vmatpush2.bf16.msra.mxu0 %v11140_v59  ;;  %v11220_v59 = vld [vmem:[%s11647_s4 + $0x1dec] ss:$16 sps:$4 sm:$0xff]  }
 0x40a   : > { %7815 = vmatpush2.bf16.msra.mxu1 %v11143_v62  ;;  %7775 = vmatprep.subr.bf16.mxu0 %v11148_v57  ;;  %v11223_v62 = vld [vmem:[%s11647_s4 + $0x1fec] ss:$16 sps:$4 sm:$0xff]   ;;  %v11218_v57 = vld [vmem:[%s11647_s4 + $0x1de8] ss:$16 sps:$4 sm:$0xff]  }
 0x40b   : > { %7816 = vmatprep.subr.bf16.mxu1 %v11151_v38  ;;  %v11221_v38 = vld [vmem:[%s11647_s4 + $0x1fe8] ss:$16 sps:$4 sm:$0xff]  }
 0x40d   : > { %7776 = vmatpush2.bf16.msra.mxu0 %v11146_v6  ;;  %v11226_v6 = vld [vmem:[%s11647_s4 + $0x1dcc] ss:$16 sps:$4 sm:$0xff]  }
 0x40e   : > { %7817 = vmatpush2.bf16.msra.mxu1 %v11149_v20  ;;  %7777 = vmatprep.subr.bf16.mxu0 %v11154_v21  ;;  %v11229_v20 = vld [vmem:[%s11647_s4 + $0x1fcc] ss:$16 sps:$4 sm:$0xff]   ;;  %v11224_v21 = vld [vmem:[%s11647_s4 + $0x1dc8] ss:$16 sps:$4 sm:$0xff]  }
 0x40f   : > { %7818 = vmatprep.subr.bf16.mxu1 %v11157_v27  ;;  %v11227_v27 = vld [vmem:[%s11647_s4 + $0x1fc8] ss:$16 sps:$4 sm:$0xff]  }
 0x411   : > { %7778 = vmatpush2.bf16.msra.mxu0 %v11152_v28  ;;  %v11232_v28 = vld [vmem:[%s11647_s4 + $0x1dac] ss:$16 sps:$4 sm:$0xff]  }
 0x412   : > { %7819 = vmatpush2.bf16.msra.mxu1 %v11155_v29  ;;  %7779 = vmatprep.subr.bf16.mxu0 %v11160_v32  ;;  %v11235_v29 = vld [vmem:[%s11647_s4 + $0x1fac] ss:$16 sps:$4 sm:$0xff]   ;;  %v11230_v32 = vld [vmem:[%s11647_s4 + $0x1da8] ss:$16 sps:$4 sm:$0xff]  }
 0x413   : > { %7820 = vmatprep.subr.bf16.mxu1 %v11163_v33  ;;  %v11233_v33 = vld [vmem:[%s11647_s4 + $0x1fa8] ss:$16 sps:$4 sm:$0xff]  }
 0x415   : > { %7780 = vmatpush2.bf16.msra.mxu0 %v11158_v14  ;;  %v11238_v14 = vld [vmem:[%s11647_s4 + $0x1d8c] ss:$16 sps:$4 sm:$0xff]  }
 0x416   : > { %7821 = vmatpush2.bf16.msra.mxu1 %v11161_v34  ;;  %7781 = vmatprep.subr.bf16.mxu0 %v11166_v36  ;;  %v11241_v34 = vld [vmem:[%s11647_s4 + $0x1f8c] ss:$16 sps:$4 sm:$0xff]   ;;  %v11236_v36 = vld [vmem:[%s11647_s4 + $0x1d88] ss:$16 sps:$4 sm:$0xff]  }
 0x417   : > { %7822 = vmatprep.subr.bf16.mxu1 %v11169_v45  ;;  %v11239_v45 = vld [vmem:[%s11647_s4 + $0x1f88] ss:$16 sps:$4 sm:$0xff]  }
 0x419   : > { %7782 = vmatpush2.bf16.msra.mxu0 %v11164_v46  ;;  %v11244_v46 = vld [vmem:[%s11647_s4 + $0x1d6c] ss:$16 sps:$4 sm:$0xff]  }
 0x41a   : > { %7823 = vmatpush2.bf16.msra.mxu1 %v11167_v25  ;;  %7833 = vmatprep.subr.bf16.mxu0 %v11172_v43  ;;  %v11247_v25 = vld [vmem:[%s11647_s4 + $0x1f6c] ss:$16 sps:$4 sm:$0xff]   ;;  %v11242_v43 = vld [vmem:[%s11647_s4 + $0x1d68] ss:$16 sps:$4 sm:$0xff]  }
 0x41b   : > { %7874 = vmatprep.subr.bf16.mxu1 %v11175_v44  ;;  %v11245_v44 = vld [vmem:[%s11647_s4 + $0x1f68] ss:$16 sps:$4 sm:$0xff]  }
 0x41c   : > { %v7539_v26 = vpop.f32.mrf.mxu0  ;;  %7784 = vmatmul.mubr.bf16.vlgmr.msra.gmra.mxu0 %v12317_v3 }
 0x41d   : > { %v7580_v61 = vpop.f32.mrf.mxu1  ;;  %7825 = vmatmul.mubr.bf16.vlgmr.msra.gmra.mxu1 %v12321_v5  ;;  %v7540_v58 = vadd.f32 %v7539_v26, %v12866_v63  ;;  %7834 = vmatpush1.bf16.msra.mxu0 %v11170_v55  ;;  %v11250_v55 = vld [vmem:[%s11647_s4 + $0x1d4c] ss:$16 sps:$4 sm:$0xff]  }
 0x41e   : > { %7875 = vmatpush1.bf16.msra.mxu1 %v11173_v60  ;;  %v7541_v13 = vpop.f32.mrf.mxu0  ;;  %7835 = vmatprep.subr.bf16.mxu0 %v11178_v50  ;;  %v11253_v60 = vld [vmem:[%s11647_s4 + $0x1f4c] ss:$16 sps:$4 sm:$0xff]   ;;  %v11248_v50 = vld [vmem:[%s11647_s4 + $0x1d48] ss:$16 sps:$4 sm:$0xff]  }
 0x41f   : > { %v7582_v54 = vpop.f32.mrf.mxu1  ;;  %7876 = vmatprep.subr.bf16.mxu1 %v11181_v51  ;;  %v12940_v22 = vadd.f32 %v7580_v61, %v7540_v58  ;;  %v7542_v3 = vadd.f32 %v7541_v13, %v12871_v0  ;;  %7865 = vmatprep.mubr.bf16.mxu0 %v12329_v4  ;;  %v11190_v4 = vld [vmem:[%s11647_s4 + $0x1c8c] ss:$16 sps:$4 sm:$0xff]   ;;  %v11188_v0 = vld [vmem:[%s11647_s4 + $0x1c88] ss:$16 sps:$4 sm:$0xff]  }
 0x420   : > { %7906 = vmatprep.mubr.bf16.mxu1 %v12333_v53  ;;  %v7543_v5 = vpop.f32.mrf.mxu0  ;;  %v11193_v53 = vld [vmem:[%s11647_s4 + $0x1e8c] ss:$16 sps:$4 sm:$0xff]   ;;  %v11251_v51 = vld [vmem:[%s11647_s4 + $0x1f48] ss:$16 sps:$4 sm:$0xff]  }
 0x421   : > { %v7584_v63 = vpop.f32.mrf.mxu1  ;;  %v12945_v31 = vadd.f32 %v7582_v54, %v7542_v3  ;;  %7836 = vmatpush1.bf16.msra.mxu0 %v11176_v1  ;;  %v11256_v26 = vld [vmem:[%s11647_s4 + $0x1d2c] ss:$16 sps:$4 sm:$0xff]   ;;  %v11254_v58 = vld [vmem:[%s11647_s4 + $0x1d28] ss:$16 sps:$4 sm:$0xff]  }
 0x422   : > { %7877 = vmatpush1.bf16.msra.mxu1 %v11179_v9  ;;  %v7544_v7 = vpop.f32.mrf.mxu0  ;;  %7837 = vmatprep.subr.bf16.mxu0 %v11184_v41  ;;  %v11259_v61 = vld [vmem:[%s11647_s4 + $0x1f2c] ss:$16 sps:$4 sm:$0xff]   ;;  %v11257_v1 = vld [vmem:[%s11647_s4 + $0x1f28] ss:$16 sps:$4 sm:$0xff]  }
 0x423   : > { %v7585_v2 = vpop.f32.mrf.mxu1  ;;  %7878 = vmatprep.subr.bf16.mxu1 %v11187_v42  ;;  %v11262_v9 = vld [vmem:[%s11647_s4 + $0x1d0c] ss:$16 sps:$4 sm:$0xff]   ;;  %v11260_v54 = vld [vmem:[%s11647_s4 + $0x1d08] ss:$16 sps:$4 sm:$0xff]  }
 0x424   : > { %v11265_v13 = vld [vmem:[%s11647_s4 + $0x1f0c] ss:$16 sps:$4 sm:$0xff]   ;;  %v11263_v41 = vld [vmem:[%s11647_s4 + $0x1f08] ss:$16 sps:$4 sm:$0xff]  }
 0x425   : > { %7838 = vmatpush1.bf16.msra.mxu0 %v11182_v11 }
 0x426   : > { %7879 = vmatpush1.bf16.msra.mxu1 %v11185_v52  ;;  %7839 = vmatprep.subr.bf16.mxu0 %v11190_v4 }
 0x427   : > { %7880 = vmatprep.subr.bf16.mxu1 %v11193_v53 }
 0x429   : > { %7840 = vmatpush1.bf16.msra.mxu0 %v11188_v0 }
 0x42a   : > { %7881 = vmatpush1.bf16.msra.mxu1 %v11191_v17  ;;  %7841 = vmatprep.subr.bf16.mxu0 %v11196_v18 }
 0x42b   : > { %7882 = vmatprep.subr.bf16.mxu1 %v11199_v39 }
 0x42d   : > { %7842 = vmatpush1.bf16.msra.mxu0 %v11194_v40 }
 0x42e   : > { %7883 = vmatpush1.bf16.msra.mxu1 %v11197_v48  ;;  %7843 = vmatprep.subr.bf16.mxu0 %v11202_v8 }
 0x42f   : > { %7884 = vmatprep.subr.bf16.mxu1 %v11205_v56 }
 0x431   : > { %7844 = vmatpush1.bf16.msra.mxu0 %v11200_v15 }
 0x432   : > { %7885 = vmatpush1.bf16.msra.mxu1 %v11203_v16  ;;  %7845 = vmatprep.subr.bf16.mxu0 %v11208_v19 }
 0x433   : > { %7886 = vmatprep.subr.bf16.mxu1 %v11211_v47 }
 0x435   : > { %7846 = vmatpush1.bf16.msra.mxu0 %v11206_v49 }
 0x436   : > { %7887 = vmatpush1.bf16.msra.mxu1 %v11209_v35  ;;  %7847 = vmatprep.subr.bf16.mxu0 %v11214_v23 }
 0x437   : > { %7888 = vmatprep.subr.bf16.mxu1 %v11217_v24 }
 0x439   : > { %7848 = vmatpush1.bf16.msra.mxu0 %v11212_v12 }
 0x43a   : > { %7889 = vmatpush1.bf16.msra.mxu1 %v11215_v37  ;;  %7849 = vmatprep.subr.bf16.mxu0 %v11220_v59 }
 0x43b   : > { %7890 = vmatprep.subr.bf16.mxu1 %v11223_v62 }
 0x43d   : > { %7850 = vmatpush2.bf16.msra.mxu0 %v11218_v57 }
 0x43e   : > { %7891 = vmatpush2.bf16.msra.mxu1 %v11221_v38  ;;  %7851 = vmatprep.subr.bf16.mxu0 %v11226_v6 }
 0x43f   : > { %7892 = vmatprep.subr.bf16.mxu1 %v11229_v20 }
 0x441   : > { %7852 = vmatpush2.bf16.msra.mxu0 %v11224_v21 }
 0x442   : > { %7893 = vmatpush2.bf16.msra.mxu1 %v11227_v27  ;;  %7853 = vmatprep.subr.bf16.mxu0 %v11232_v28  ;;  %v329_v27 = vld [vmem:[#allocation2 + $0x18] sm:$0xff] }
 0x443   : > { %7894 = vmatprep.subr.bf16.mxu1 %v11235_v29 }
 0x445   : > { %7854 = vmatpush2.bf16.msra.mxu0 %v11230_v32 }
 0x446   : > { %7895 = vmatpush2.bf16.msra.mxu1 %v11233_v33  ;;  %7855 = vmatprep.subr.bf16.mxu0 %v11238_v14  ;;  %v330_v14 = vld [vmem:[#allocation2 + $0x8] sm:$0xff] }
 0x447   : > { %7896 = vmatprep.subr.bf16.mxu1 %v11241_v34 }
 0x449   : > { %7856 = vmatpush2.bf16.msra.mxu0 %v11236_v36 }
 0x44a   : > { %7897 = vmatpush2.bf16.msra.mxu1 %v11239_v45  ;;  %7857 = vmatprep.subr.bf16.mxu0 %v11244_v46 }
 0x44b   : > { %7898 = vmatprep.subr.bf16.mxu1 %v11247_v25 }
 0x44d   : > { %7858 = vmatpush2.bf16.msra.mxu0 %v11242_v43 }
 0x44e   : > { %7899 = vmatpush2.bf16.msra.mxu1 %v11245_v44  ;;  %7859 = vmatprep.subr.bf16.mxu0 %v11250_v55 }
 0x44f   : > { %7900 = vmatprep.subr.bf16.mxu1 %v11253_v60 }
 0x451   : > { %7860 = vmatpush2.bf16.msra.mxu0 %v11248_v50 }
 0x452   : > { %7901 = vmatpush2.bf16.msra.mxu1 %v11251_v51  ;;  %7861 = vmatprep.subr.bf16.mxu0 %v11256_v26 }
 0x453   : > { %7902 = vmatprep.subr.bf16.mxu1 %v11259_v61 }
 0x455   : > { %7862 = vmatpush2.bf16.msra.mxu0 %v11254_v58 }
 0x456   : > { %7903 = vmatpush2.bf16.msra.mxu1 %v11257_v1  ;;  %7863 = vmatprep.subr.bf16.mxu0 %v11262_v9 }
 0x457   : > { %7904 = vmatprep.subr.bf16.mxu1 %v11265_v13 }
 0x459   : > { %7864 = vmatpush2.bf16.msra.mxu0 %v11260_v54 }
 0x45a   : > { %7905 = vmatpush2.bf16.msra.mxu1 %v11263_v41 }
 0x45c   : > { %v7621_v42 = vpop.f32.mrf.mxu0  ;;  %7866 = vmatmul.mubr.bf16.vlgmr.msra.gmra.mxu0 %v12407_v10 }
 0x45d   : > { %v7662_v3 = vpop.f32.mrf.mxu1  ;;  %7907 = vmatmul.mubr.bf16.vlgmr.msra.gmra.mxu1 %v12411_v30  ;;  %v7622_v5 = vadd.f32 %v7621_v42, %v12940_v22 }
 0x45e   : > { %v7623_v63 = vpop.f32.mrf.mxu0 }
 0x45f   : > { %v7664_v11 = vpop.f32.mrf.mxu1  ;;  %v7663_v52 = vadd.f32 %v7662_v3, %v7622_v5  ;;  %v7624_v7 = vadd.f32 %v7623_v63, %v12945_v31 }
 0x460   : > { %v7625_v2 = vpop.f32.mrf.mxu0 }
 0x461   : > { %v7666_v4 = vpop.f32.mrf.mxu1  ;;  %v7665_v53 = vadd.f32 %v7664_v11, %v7624_v7 }
 0x462   : > { %v7626_v0 = vpop.f32.mrf.mxu0 }
 0x463   : > { %v7667_v17 = vpop.f32.mrf.mxu1 }
 0x49c   : > { %v7703_v18 = vpop.f32.mrf.mxu0 }
 0x49d   : > { %v7744_v39 = vpop.f32.mrf.mxu1  ;;  %v7704_v40 = vadd.f32 %v7703_v18, %v7663_v52 }
 0x49e   : > { %v7705_v48 = vpop.f32.mrf.mxu0 }
 0x49f   : > { %v7746_v8 = vpop.f32.mrf.mxu1  ;;  %v7745_v10 = vadd.f32 %v7744_v39, %v7704_v40  ;;  %v7706_v56 = vadd.f32 %v7705_v48, %v7665_v53 }
 0x4a0   : > { %v7707_v30 = vpop.f32.mrf.mxu0 }
 0x4a1   : > { %v7748_v15 = vpop.f32.mrf.mxu1  ;;  %v7747_v22 = vadd.f32 %v7746_v8, %v7706_v56 }
 0x4a2   : > { %v7708_v16 = vpop.f32.mrf.mxu0 }
 0x4a3   : > { %v7749_v19 = vpop.f32.mrf.mxu1 }
 0x4dc   : > { %v7785_v47 = vpop.f32.mrf.mxu0 }
 0x4dd   : > { %v7826_v49 = vpop.f32.mrf.mxu1  ;;  %v7786_v59 = vadd.f32 %v7785_v47, %v7745_v10 }
 0x4de   : > { %v7787_v31 = vpop.f32.mrf.mxu0 }
 0x4df   : > { %v7828_v35 = vpop.f32.mrf.mxu1  ;;  %v7788_v62 = vadd.f32 %v7787_v31, %v7747_v22  ;;  %v7827_v57 = vadd.f32 %v7826_v49, %v7786_v59 }
 0x4e0   : > { %v7789_v23 = vpop.f32.mrf.mxu0 }
 0x4e1   : > { %v7830_v24 = vpop.f32.mrf.mxu1  ;;  %v7829_v20 = vadd.f32 %v7828_v35, %v7788_v62 }
 0x4e2   : > { %v7790_v12 = vpop.f32.mrf.mxu0 }
 0x4e3   : > { %v7831_v37 = vpop.f32.mrf.mxu1 }
 0x51c   : > { %v7867_v38 = vpop.f32.mrf.mxu0 }
 0x51d   : > { %v7908_v6 = vpop.f32.mrf.mxu1  ;;  %v7868_v21 = vadd.f32 %v7867_v38, %v7827_v57 }
 0x51e   : > { %v7869_v28 = vpop.f32.mrf.mxu0 }
 0x51f   : > { %v7910_v29 = vpop.f32.mrf.mxu1  ;;  %v7909_v32 = vadd.f32 %v7908_v6, %v7868_v21  ;;  %v7870_v33 = vadd.f32 %v7869_v28, %v7829_v20 }
 0x520   : > { %v7871_v34 = vpop.f32.mrf.mxu0 }
 0x521   : > { %v7912_v36 = vpop.f32.mrf.mxu1  ;;  %v7917_v45 = vadd.f32 %v7909_v32, %v329_v27  ;;  %v7911_v46 = vadd.f32 %v7910_v29, %v7870_v33  ;;  %7926 = sbr.rel (%p9513_p1) target bundleno = 1553 (0x611), region = 52 }
 0x522   : > { %v7872_v25 = vpop.f32.mrf.mxu0 }
 0x523   : > { %v7913_v43 = vpop.f32.mrf.mxu1  ;;  %7921 = vst [vmem:[#allocation2 + $0x18] sm:$0xff] %v7917_v45  ;;  %v7918_v44 = vadd.f32 %v7911_v46, %v330_v14 }
 0x525   : > { %7922 = vst [vmem:[#allocation2 + $0x8] sm:$0xff] %v7918_v44 }
 0x526   : > { %v11266_v55 = vld [vmem:[%s11672_s26 + $0x78] sm:$0xff]   ;;  %v11270_v26 = vld [vmem:[%s11672_s26 + $0x70] sm:$0xff]   ;;  %v11274_v9 = vld [vmem:[%s11672_s26 + $0x68] sm:$0xff]   ;;  %v7933_v2 = vlaneseq }
 0x527   : > { %v11267_v60 = vld [vmem:[%s11672_s26 + $0xf8] sm:$0xff]   ;;  %9550 = vmatprep.subr.bf16.mxu0 %v11266_v55  ;;  %v11271_v61 = vld [vmem:[%s11672_s26 + $0xf0] sm:$0xff]   ;;  %v11275_v13 = vld [vmem:[%s11672_s26 + $0xe8] sm:$0xff]  }
 0x528   : > { %v11268_v50 = vld [vmem:[%s11672_s26 + $0x38] sm:$0xff]   ;;  %9572 = vmatprep.subr.bf16.mxu1 %v11267_v60  ;;  %v11272_v58 = vld [vmem:[%s11672_s26 + $0x30] sm:$0xff]   ;;  %v11276_v54 = vld [vmem:[%s11672_s26 + $0x28] sm:$0xff]   ;;  %v7934_v18 = vshrl.u32 %v7933_v2, 7 }
 0x529   : > { %v11269_v51 = vld [vmem:[%s11672_s26 + $0xb8] sm:$0xff]   ;;  %9551 = vmatpush3.bf16.msra.mxu0 %v11268_v50  ;;  %v11273_v1 = vld [vmem:[%s11672_s26 + $0xb0] sm:$0xff]   ;;  %v11277_v41 = vld [vmem:[%s11672_s26 + $0xa8] sm:$0xff]  }
 0x52a   : > { %9573 = vmatpush3.bf16.msra.mxu1 %v11269_v51  ;;  %9552 = vmatprep.subr.bf16.mxu0 %v11270_v26  ;;  %v11278_v42 = vld [vmem:[%s11672_s26 + $0x60] sm:$0xff]   ;;  %v11282_v11 = vld [vmem:[%s11672_s26 + $0x58] sm:$0xff]   ;;  %v11286_v53 = vld [vmem:[%s11672_s26 + $0x50] sm:$0xff]   ;;  %v7939_v10 = vsub.s32 1, %v7934_v18  ;;  %v7947_v30 = vsub.s32 3, %v7934_v18  ;;  %v7935_v22 = vsub.s32 0, %v7934_v18 }
 0x52b   : > { %9574 = vmatprep.subr.bf16.mxu1 %v11271_v61  ;;  %v11279_v3 = vld [vmem:[%s11672_s26 + $0xe0] sm:$0xff]   ;;  %v11283_v52 = vld [vmem:[%s11672_s26 + $0xd8] sm:$0xff]   ;;  %v11287_v0 = vld [vmem:[%s11672_s26 + $0xd0] sm:$0xff]   ;;  %v7943_v19 = vsub.s32 2, %v7934_v18 }
 0x52c   : > { %v11280_v5 = vld [vmem:[%s11672_s26 + $0x20] sm:$0xff]   ;;  %v11284_v7 = vld [vmem:[%s11672_s26 + $0x18] sm:$0xff]   ;;  %v11288_v17 = vld [vmem:[%s11672_s26 + $0x10] sm:$0xff]  }
 0x52d   : > { %9553 = vmatpush3.bf16.msra.mxu0 %v11272_v58  ;;  %v11281_v63 = vld [vmem:[%s11672_s26 + $0xa0] sm:$0xff]   ;;  %v11285_v4 = vld [vmem:[%s11672_s26 + $0x98] sm:$0xff]   ;;  %v11289_v39 = vld [vmem:[%s11672_s26 + $0x90] sm:$0xff]  }
 0x52e   : > { %9575 = vmatpush3.bf16.msra.mxu1 %v11273_v1  ;;  %9554 = vmatprep.subr.bf16.mxu0 %v11274_v9  ;;  %v11290_v40 = vld [vmem:[%s11672_s26 + $0x48] sm:$0xff]   ;;  %v11294_v15 = vld [vmem:[%s11672_s26 + $0x40] sm:$0xff]   ;;  %v7927_v37 = vld [vmem:[#allocation2 + $0x10] sm:$0xff] }
 0x52f   : > { %9576 = vmatprep.subr.bf16.mxu1 %v11275_v13  ;;  %v11291_v48 = vld [vmem:[%s11672_s26 + $0xc8] sm:$0xff]   ;;  %v11295_v16 = vld [vmem:[%s11672_s26 + $0xc0] sm:$0xff]   ;;  %v7929_v62 = vld [vmem:[#allocation2 + $0x18] sm:$0xff] }
 0x530   : > { %v11292_v8 = vld [vmem:[%s11672_s26 + $0x8] sm:$0xff]   ;;  %v11296_v47 = vld [vmem:[%s11672_s26] sm:$0xff]  }
 0x531   : > { %9555 = vmatpush3.bf16.msra.mxu0 %v11276_v54  ;;  %v11293_v56 = vld [vmem:[%s11672_s26 + $0x88] sm:$0xff]   ;;  %v11297_v49 = vld [vmem:[%s11672_s26 + $0x80] sm:$0xff]  }
 0x532   : > { %9577 = vmatpush3.bf16.msra.mxu1 %v11277_v41  ;;  %9556 = vmatprep.subr.bf16.mxu0 %v11278_v42  ;;  %v7928_v31 = vld [vmem:[#allocation2] sm:$0xff]  ;;  %v7930_v23 = vld [vmem:[#allocation2 + $0x8] sm:$0xff] }
 0x533   : > { %9578 = vmatprep.subr.bf16.mxu1 %v11279_v3  ;;  %v7931_v35 = vld [vmem:[%s13097_s21] sm:$0xf] }
 0x534   : > { %v7940_v24 = vrot.slane %v7931_v35, %v7939_v10  ;;  %v7948_v12 = vrot.slane %v7931_v35, %v7947_v30  ;;  %v7936_v59 = vrot.slane %v7931_v35, %v7935_v22  ;;  %v7944_v57 = vrot.slane %v7931_v35, %v7943_v19 }
 0x535   : > { %9557 = vmatpush3.bf16.msra.mxu0 %v11280_v5 }
 0x536   : > { %9579 = vmatpush3.bf16.msra.mxu1 %v11281_v63  ;;  %9558 = vmatprep.subr.bf16.mxu0 %v11282_v11  ;;  %v7954_v38 = vadd.f32 %v7940_v24, %v7928_v31  ;;  %v7956_v6 = vadd.f32 %v7948_v12, %v7930_v23  ;;  %v7953_v20 = vadd.f32 %v7936_v59, %v7927_v37 }
 0x537   : > { %9580 = vmatprep.subr.bf16.mxu1 %v11283_v52  ;;  %v7955_v21 = vadd.f32 %v7944_v57, %v7929_v62 }
 0x538   : > { %vm7958_vm0 = vcmp.ge.f32.partialorder %v7954_v38, 0.0  ;;  %v7962_v27 = vmul.f32 0.2, %v7954_v38  ;;  %vm7960_vm1 = vcmp.ge.f32.partialorder %v7956_v6, 0.0  ;;  %v7964_v28 = vmul.f32 0.2, %v7956_v6 }
 0x539   : > { %9559 = vmatpush3.bf16.msra.mxu0 %v11284_v7  ;;  %vm7957_vm2 = vcmp.ge.f32.partialorder %v7953_v20, 0.0  ;;  %v7961_v29 = vmul.f32 0.2, %v7953_v20  ;;  %vm7959_vm3 = vcmp.ge.f32.partialorder %v7955_v21, 0.0  ;;  %v7963_v32 = vmul.f32 0.2, %v7955_v21 }
 0x53a   : > { %9581 = vmatpush3.bf16.msra.mxu1 %v11285_v4  ;;  %9560 = vmatprep.subr.bf16.mxu0 %v11286_v53  ;;  %v7966_v33 = vsel %vm7958_vm0, %v7954_v38, %v7962_v27  ;;  %v7968_v14 = vsel %vm7960_vm1, %v7956_v6, %v7964_v28 }
 0x53b   : > { %9582 = vmatprep.subr.bf16.mxu1 %v11287_v0  ;;  %v7970_v34 = vpack.c.bf16 %v7966_v33, %v7966_v33  ;;  %v7972_v36 = vpack.c.bf16 %v7968_v14, %v7968_v14  ;;  %v7965_v45 = vsel %vm7957_vm2, %v7953_v20, %v7961_v29  ;;  %v7967_v46 = vsel %vm7959_vm3, %v7955_v21, %v7963_v32 }
 0x53c   : > { %v7969_v25 = vpack.c.bf16 %v7965_v45, %v7965_v45  ;;  %v7971_v43 = vpack.c.bf16 %v7967_v46, %v7967_v46 }
 0x53d   : > { %9561 = vmatpush3.bf16.msra.mxu0 %v11288_v17  ;;  %8261 = vmatprep.mubr.bf16.mxu0 %v7970_v34 }
 0x53e   : > { %9583 = vmatpush3.bf16.msra.mxu1 %v11289_v39  ;;  %9562 = vmatprep.subr.bf16.mxu0 %v11290_v40 }
 0x53f   : > { %9584 = vmatprep.subr.bf16.mxu1 %v11291_v48  ;;  %8301 = vmatprep.mubr.bf16.mxu1 %v7972_v36 }
 0x541   : > { %9563 = vmatpush3.bf16.msra.mxu0 %v11292_v8 }
 0x542   : > { %9585 = vmatpush3.bf16.msra.mxu1 %v11293_v56  ;;  %9564 = vmatprep.subr.bf16.mxu0 %v11294_v15 }
 0x543   : > { %9586 = vmatprep.subr.bf16.mxu1 %v11295_v16 }
 0x545   : > { %9565 = vmatpush3.bf16.msra.mxu0 %v11296_v47 }
 0x546   : > { %9587 = vmatpush3.bf16.msra.mxu1 %v11297_v49 }
 0x548   : > { %8262 = vmatmul.mubr.bf16.vlgmr.msra.gmra.mxu0 %v7969_v25 }
 0x549   : > { %8302 = vmatmul.mubr.bf16.vlgmr.msra.gmra.mxu1 %v7971_v43 }
 0x608   : > { %v9566_v44 = vpop.f32.mrf.mxu0 }
 0x609   : > { %v9588_v55 = vpop.f32.mrf.mxu1 }
 0x60a   : > { %v9567_v60 = vpop.f32.mrf.mxu0 }
 0x60b   : > { %v9589_v50 = vpop.f32.mrf.mxu1  ;;  %v9568_v51 = vadd.f32 %v9567_v60, %v9566_v44 }
 0x60c   : > { %v9590_v26 = vadd.f32 %v9589_v50, %v9588_v55  ;;  %v9569_v61 = vpop.f32.mrf.mxu0 }
 0x60d   : > { %v9591_v58 = vpop.f32.mrf.mxu1 }
 0x60e   : > { %v8304_v1 = vadd.f32 %v9590_v26, %v9568_v51  ;;  %v9570_v9 = vpop.f32.mrf.mxu0 }
 0x60f   : > { %v9592_v13 = vpop.f32.mrf.mxu1 }
 0x610   : > { %8309 = vst [vmem:[%s11678_s13] sm:$0xff] %v8304_v1 }
 0x611 PF: > { %s20_s25 = sadd.s32 1, %s11448_s25   ;;  %s13098_s4 = sld [smem:[#allocation9_spill]] }
 0x612   : > { %p17_p2 = scmp.ge.s32.totalorder %s20_s25, 6   ;;  %s13099_s14 = sld [smem:[#allocation10_spill]] }
 0x613   : > { %s13100_s15 = smov %s11412_s16  ;;  %s13101_s16 = smov %s11416_s17 }
 0x614   : > { %s13102_s17 = smov %s11621_s7  ;;  %s13103_s18 = smov %s11424_s19 }
 0x615   : > { %s13104_s19 = smov %s11428_s20  ;;  %s13105_s20 = smov %s11626_s30 }
 0x616   : > { %s13106_s21 = smov %s11440_s23  ;;  %s13107_s22 = smov %s11444_s24 }
 0x617   : > { %s13108_s23 = smov %s13098_s4  ;;  %19 = sbr.rel (!%p17_p2) target bundleno = 12 (0xc), region = 103 }
 0x618   : > { %s13109_s24 = smov %s13099_s14 }
 0x61c   :  { %8329 = vsyncpa [#allocation4], 1 }
 0x61d   :  { %8331 = vsyncpa [#allocation4 + $0x1], 1 }
 0x61e   :  { %8332 = vsyncpa [#allocation6], 1 }
 0x61f   :  { %8334 = vsyncpa [#allocation6 + $0x1], 1 }

</bundles_post_ra>
